<compile_context>
chip_gen: v5e
topology: v5e:2x2
jax: 0.10.0
libtpu: 0.0.40
codegen_flags: <defaults>
</compile_context>

<pallas_src>
import functools

import jax
import jax.numpy as jnp
from jax.experimental import pallas as pl
from jax.experimental.pallas import tpu as pltpu

IN_FEATURES = 6400
HIDDEN = 512
OUT_FEATURES = 43
OUT_PAD = 128          # lane-dense padded fc3 output width
BN_EPS = 1e-5


def predictor_kernel(x_ref, w2_ref, shift_ref, w3_ref, b3_ref, o_ref, acc_ref):
    """Grid axis 0 walks the 6400-wide contraction dim of fc2 in tiles.

    acc_ref accumulates (x_bf16 @ W2_bf16) in f32 for the current batch; on
    the last contraction step the folded BN/bias shift + ReLU + fc3 epilogue
    runs inside the kernel and writes a lane-dense (B, 128) output tile.
    """
    k = pl.program_id(0)

    @pl.when(k == 0)
    def _():
        acc_ref[...] = jnp.zeros_like(acc_ref)

    # bf16 x bf16 -> f32 accumulation on the MXU.
    acc_ref[...] += jnp.dot(
        x_ref[...], w2_ref[...], preferred_element_type=jnp.float32
    )

    @pl.when(k == pl.num_programs(0) - 1)
    def _():
        # fc2 bias + folded BatchNorm1d collapse to a single per-feature shift.
        h = jnp.maximum(acc_ref[...] + shift_ref[...], 0.0)   # ReLU
        # dropout: identity in inference mode
        y = jnp.dot(h, w3_ref[...], preferred_element_type=jnp.float32)
        o_ref[...] = (y + b3_ref[...]).astype(o_ref.dtype)


@functools.partial(jax.jit, static_argnames=("tk",))
def predictor_forward(x, w2_folded_bf16, shift, w3_pad, b3_pad, *, tk=3200):
    B, F = x.shape
    assert F == IN_FEATURES and F % tk == 0
    grid = (F // tk,)

    x_bf16 = x.astype(jnp.bfloat16)
    shift_2d = shift.reshape(1, HIDDEN)
    b3_2d = b3_pad.reshape(1, OUT_PAD)

    flops = 2 * B * F * HIDDEN + 2 * B * HIDDEN * OUT_PAD
    bytes_accessed = (
        F * HIDDEN * 2            # W2 (bf16) — the dominant stream
        + B * F * 2               # x (bf16)
        + HIDDEN * OUT_PAD * 4    # W3 (f32, padded)
        + HIDDEN * 4              # shift
        + OUT_PAD * 4             # b3
        + B * OUT_PAD * 4         # output
    )

    out_pad = pl.pallas_call(
        predictor_kernel,
        out_shape=jax.ShapeDtypeStruct((B, OUT_PAD), jnp.float32),
        grid_spec=pltpu.PrefetchScalarGridSpec(
            num_scalar_prefetch=0,
            grid=grid,
            in_specs=[
                pl.BlockSpec((B, tk), lambda k: (0, k)),               # x tile (bf16)
                pl.BlockSpec((tk, HIDDEN), lambda k: (k, 0)),          # W2 tile (bf16)
                pl.BlockSpec((1, HIDDEN), lambda k: (0, 0)),           # fused shift
                pl.BlockSpec((HIDDEN, OUT_PAD), lambda k: (0, 0)),     # W3 (padded)
                pl.BlockSpec((1, OUT_PAD), lambda k: (0, 0)),          # b3 (padded)
            ],
            out_specs=pl.BlockSpec((B, OUT_PAD), lambda k: (0, 0)),
            scratch_shapes=[pltpu.VMEM((B, HIDDEN), jnp.float32)],
        ),
        compiler_params=pltpu.CompilerParams(
            dimension_semantics=("arbitrary",),
        ),
        cost_estimate=pl.CostEstimate(
            flops=flops, transcendentals=0, bytes_accessed=bytes_accessed),
    )(x_bf16, w2_folded_bf16, shift_2d, w3_pad, b3_2d)

    # Slice the 128-wide lane-dense output back to the real 43 classes.
    return out_pad[:, :OUT_FEATURES]


def make_params(key):
    """Deterministic synthetic parameters matching the nn.Module shapes."""
    ks = jax.random.split(key, 8)
    # fc2: weight (512, 6400), bias (512,)
    w2 = jax.random.normal(ks[0], (HIDDEN, IN_FEATURES), jnp.float32) * 0.02
    b2 = jax.random.normal(ks[1], (HIDDEN,), jnp.float32) * 0.01
    # bn2_fc: gamma/beta/running_mean/running_var (512,)
    gamma = 1.0 + 0.1 * jax.random.normal(ks[2], (HIDDEN,), jnp.float32)
    beta = 0.1 * jax.random.normal(ks[3], (HIDDEN,), jnp.float32)
    running_mean = 0.05 * jax.random.normal(ks[4], (HIDDEN,), jnp.float32)
    running_var = jnp.abs(1.0 + 0.1 * jax.random.normal(ks[5], (HIDDEN,), jnp.float32))
    # fc3: weight (43, 512), bias (43,)
    w3 = jax.random.normal(ks[6], (OUT_FEATURES, HIDDEN), jnp.float32) * 0.05
    b3 = jax.random.normal(ks[7], (OUT_FEATURES,), jnp.float32) * 0.01

    # Fold eval-mode BatchNorm1d into a per-feature scale/shift:
    #   bn(h) = scale * h + shift,  scale = gamma/sqrt(var+eps),
    #                               shift = beta - mean*scale
    bn_scale = gamma / jnp.sqrt(running_var + BN_EPS)
    bn_shift = beta - running_mean * bn_scale

    # Fold the BN scale into the columns of W2^T and fc2-bias+BN-shift into
    # one per-feature shift:  bn(x@W2^T + b2) = x @ (W2^T*scale) + (scale*b2+shift)
    w2_folded_bf16 = (w2.T * bn_scale[None, :]).astype(jnp.bfloat16)  # (6400, 512)
    shift = bn_scale * b2 + bn_shift                                   # (512,)

    # Pad fc3 to 128 output lanes (kept f32: 256 KB is bandwidth-negligible).
    w3_pad = jnp.zeros((HIDDEN, OUT_PAD), jnp.float32).at[:, :OUT_FEATURES].set(w3.T)
    b3_pad = jnp.zeros((OUT_PAD,), jnp.float32).at[:OUT_FEATURES].set(b3)

    return dict(
        w2_folded_bf16=w2_folded_bf16, shift=shift,
        w3_pad=w3_pad, b3_pad=b3_pad,
        # raw values for the pure-JAX full-precision reference
        _raw=(w2, b2, gamma, beta, running_mean, running_var, w3, b3),
    )


def reference_forward(x, params):
    w2, b2, gamma, beta, mean, var, w3, b3 = params["_raw"]
    h = x @ w2.T + b2
    h = gamma * (h - mean) / jnp.sqrt(var + BN_EPS) + beta
    h = jnp.maximum(h, 0.0)
    return h @ w3.T + b3


if __name__ == "__main__":
    key = jax.random.PRNGKey(0)
    kx, kp = jax.random.split(key)

    B = 8  # small batch
    x = jax.random.normal(kx, (B, IN_FEATURES), jnp.float32)
    params = make_params(kp)

    out = predictor_forward(
        x, params["w2_folded_bf16"], params["shift"],
        params["w3_pad"], params["b3_pad"],
    )
    out = jax.block_until_ready(out)

    ref = reference_forward(x, params)
    assert out.shape == (B, OUT_FEATURES), out.shape
    # bf16 fc2 weights: compare with a relative tolerance appropriate for
    # mixed precision (f32 accumulation keeps the error at the ~1% level).
    rel_err = float(jnp.max(jnp.abs(out - ref)) / (jnp.max(jnp.abs(ref)) + 1e-6))
    assert rel_err < 2e-2, rel_err

    print("KERNEL_OK")
</pallas_src>

<mosaic_0001>
module attributes {stable_mosaic.version = 11 : i64} {
  func.func @predictor_kernel(%arg0: i32, %arg1: memref<8x3200xbf16, #tpu.memory_space<vmem>>, %arg2: memref<3200x512xbf16, #tpu.memory_space<vmem>>, %arg3: memref<1x512xf32, #tpu.memory_space<vmem>>, %arg4: memref<512x128xf32, #tpu.memory_space<vmem>>, %arg5: memref<1x128xf32, #tpu.memory_space<vmem>>, %arg6: memref<8x128xf32, #tpu.memory_space<vmem>>, %arg7: memref<8x512xf32, #tpu.memory_space<vmem>>) attributes {dimension_semantics = [#tpu.dimension_semantics<arbitrary>], iteration_bounds = array<i64: 2>, scalar_prefetch = 0 : i64, scratch_operands = 1 : i64, tpu.core_type = #tpu.core_type<tc>, window_params = [{transform_indices = @transform_0, window_bounds = array<i64: 8, 3200>}, {transform_indices = @transform_1, window_bounds = array<i64: 3200, 512>}, {pipeline_mode = #tpu.pipeline_mode<synchronous>, transform_indices = @transform_2, window_bounds = array<i64: 1, 512>}, {pipeline_mode = #tpu.pipeline_mode<synchronous>, transform_indices = @transform_3, window_bounds = array<i64: 512, 128>}, {pipeline_mode = #tpu.pipeline_mode<synchronous>, transform_indices = @transform_4, window_bounds = array<i64: 1, 128>}, {pipeline_mode = #tpu.pipeline_mode<synchronous>, transform_indices = @transform_5, window_bounds = array<i64: 8, 128>}]} {
    %c0_i32 = arith.constant 0 : i32
    %0 = arith.cmpi eq, %arg0, %c0_i32 : i32
    %1 = arith.extui %0 : i1 to i32
    %c0_i32_0 = arith.constant 0 : i32
    %2 = arith.cmpi ne, %1, %c0_i32_0 : i32
    scf.if %2 {
      %cst_9 = arith.constant 0.000000e+00 : f32
      %12 = vector.broadcast %cst_9 : f32 to vector<8x512xf32>
      %c0_10 = arith.constant 0 : index
      %c0_11 = arith.constant 0 : index
      %13 = vector.load %arg7[%c0_10, %c0_11] : memref<8x512xf32, #tpu.memory_space<vmem>>, vector<8x512xf32>
      tpu.vector_store %arg7[%c0_10, %c0_11], %12 {strides = array<i32>} : memref<8x512xf32, #tpu.memory_space<vmem>>, vector<8x512xf32>,
    } else {
    }
    %c0 = arith.constant 0 : index
    %c0_1 = arith.constant 0 : index
    %3 = vector.load %arg7[%c0, %c0_1] : memref<8x512xf32, #tpu.memory_space<vmem>>, vector<8x512xf32>
    %c0_2 = arith.constant 0 : index
    %c0_3 = arith.constant 0 : index
    %4 = vector.load %arg1[%c0_2, %c0_3] : memref<8x3200xbf16, #tpu.memory_space<vmem>>, vector<8x3200xbf16>
    %c0_4 = arith.constant 0 : index
    %c0_5 = arith.constant 0 : index
    %5 = vector.load %arg2[%c0_4, %c0_5] : memref<3200x512xbf16, #tpu.memory_space<vmem>>, vector<3200x512xbf16>
    %cst = arith.constant dense<0.000000e+00> : vector<8x512xf32>
    %6 = tpu.matmul %4, %5, %cst {dimension_numbers = #tpu.dot_dimension_numbers<[1], [0], [0], [1], [0, 0, 1, 1], [], []>} : vector<8x3200xbf16>, vector<3200x512xbf16>, vector<8x512xf32> -> vector<8x512xf32>
    %7 = arith.addf %3, %6 : vector<8x512xf32>
    %c0_6 = arith.constant 0 : index
    %c0_7 = arith.constant 0 : index
    %8 = vector.load %arg7[%c0_6, %c0_7] : memref<8x512xf32, #tpu.memory_space<vmem>>, vector<8x512xf32>
    tpu.vector_store %arg7[%c0_6, %c0_7], %7 {strides = array<i32>} : memref<8x512xf32, #tpu.memory_space<vmem>>, vector<8x512xf32>,
    %c1_i32 = arith.constant 1 : i32
    %9 = arith.cmpi eq, %arg0, %c1_i32 : i32
    %10 = arith.extui %9 : i1 to i32
    %c0_i32_8 = arith.constant 0 : i32
    %11 = arith.cmpi ne, %10, %c0_i32_8 : i32
    scf.if %11 {
      %c0_9 = arith.constant 0 : index
      %c0_10 = arith.constant 0 : index
      %12 = vector.load %arg7[%c0_9, %c0_10] : memref<8x512xf32, #tpu.memory_space<vmem>>, vector<8x512xf32>
      %c0_11 = arith.constant 0 : index
      %c0_12 = arith.constant 0 : index
      %13 = vector.load %arg3[%c0_11, %c0_12] : memref<1x512xf32, #tpu.memory_space<vmem>>, vector<1x512xf32>
      %14 = vector.broadcast %13 : vector<1x512xf32> to vector<8x512xf32>
      %15 = arith.addf %12, %14 : vector<8x512xf32>
      %cst_13 = arith.constant 0.000000e+00 : f32
      %16 = vector.broadcast %cst_13 : f32 to vector<8x512xf32>
      %17 = arith.maximumf %15, %16 : vector<8x512xf32>
      %c0_14 = arith.constant 0 : index
      %c0_15 = arith.constant 0 : index
      %18 = vector.load %arg4[%c0_14, %c0_15] : memref<512x128xf32, #tpu.memory_space<vmem>>, vector<512x128xf32>
      %cst_16 = arith.constant dense<0.000000e+00> : vector<8x128xf32>
      %19 = tpu.matmul %17, %18, %cst_16 {dimension_numbers = #tpu.dot_dimension_numbers<[1], [0], [0], [1], [0, 0, 1, 1], [], []>} : vector<8x512xf32>, vector<512x128xf32>, vector<8x128xf32> -> vector<8x128xf32>
      %c0_17 = arith.constant 0 : index
      %c0_18 = arith.constant 0 : index
      %20 = vector.load %arg5[%c0_17, %c0_18] : memref<1x128xf32, #tpu.memory_space<vmem>>, vector<1x128xf32>
      %21 = vector.broadcast %20 : vector<1x128xf32> to vector<8x128xf32>
      %22 = arith.addf %19, %21 : vector<8x128xf32>
      %c0_19 = arith.constant 0 : index
      %c0_20 = arith.constant 0 : index
      %23 = vector.load %arg6[%c0_19, %c0_20] : memref<8x128xf32, #tpu.memory_space<vmem>>, vector<8x128xf32>
      tpu.vector_store %arg6[%c0_19, %c0_20], %22 {strides = array<i32>} : memref<8x128xf32, #tpu.memory_space<vmem>>, vector<8x128xf32>,
    } else {
    }
    return
  }
  func.func @transform_0(%arg0: i32) -> (i32, i32) {
    %c0_i32 = arith.constant 0 : i32
    %c0_i32_0 = arith.constant 0 : i32
    return %c0_i32, %arg0 : i32, i32
  }
  func.func @transform_1(%arg0: i32) -> (i32, i32) {
    %c0_i32 = arith.constant 0 : i32
    %c0_i32_0 = arith.constant 0 : i32
    return %arg0, %c0_i32 : i32, i32
  }
  func.func @transform_2(%arg0: i32) -> (i32, i32) {
    %c0_i32 = arith.constant 0 : i32
    %c0_i32_0 = arith.constant 0 : i32
    %c0_i32_1 = arith.constant 0 : i32
    return %c0_i32, %c0_i32_0 : i32, i32
  }
  func.func @transform_3(%arg0: i32) -> (i32, i32) {
    %c0_i32 = arith.constant 0 : i32
    %c0_i32_0 = arith.constant 0 : i32
    %c0_i32_1 = arith.constant 0 : i32
    return %c0_i32, %c0_i32_0 : i32, i32
  }
  func.func @transform_4(%arg0: i32) -> (i32, i32) {
    %c0_i32 = arith.constant 0 : i32
    %c0_i32_0 = arith.constant 0 : i32
    %c0_i32_1 = arith.constant 0 : i32
    return %c0_i32, %c0_i32_0 : i32, i32
  }
  func.func @transform_5(%arg0: i32) -> (i32, i32) {
    %c0_i32 = arith.constant 0 : i32
    %c0_i32_0 = arith.constant 0 : i32
    %c0_i32_1 = arith.constant 0 : i32
    return %c0_i32, %c0_i32_0 : i32, i32
  }
}

</mosaic_0001>

<bundles_post_ra>
// kernel: predictor_forward.1
= control target key start
LH: loop header
LB: loop body
LE: loop exit
PB: predicated region body
PF: predicated region fallthrough
CT: control target
= control target key end

     0   :  { %10 = vsyncpa [#allocation4], 0  ;;  %s13149_s0 = inlined_call_operand.vmem [shape: bf16[8,6400], index: 0, kind: input, shape index: {}]   ;;  %s13150_s1 = inlined_call_operand.hbm [shape: bf16[6400,512], index: 1, kind: input, shape index: {}]   ;;  %s13151_s2 = inlined_call_operand.hbm [shape: f32[1,512], index: 2, kind: input, shape index: {}]   ;;  %s13152_s3 = inlined_call_operand.hbm [shape: f32[512,128], index: 3, kind: input, shape index: {}]   ;;  %s13153_s4 = inlined_call_operand.hbm [shape: f32[1,128], index: 4, kind: input, shape index: {}]   ;;  %s13154_s5 = inlined_call_operand.hbm [shape: f32[8,128], index: 5, kind: output, shape index: {}]  }
   0x1   :  { %12 = vsyncpa [#allocation4 + $0x1], 0 }
   0x2   :  { %13 = vsyncpa [#allocation7], 0 }
   0x3   :  { %14 = vsyncpa [#allocation10], 0 }
   0x4   :  { %15 = vsyncpa [#allocation5], 0  ;;  %s11141_s18 = smov 0   ;;  %s11143_s19 = smov 0  }
   0x5   :  { %s11145_s20 = smov 0   ;;  %s11147_s21 = smov 0  }
   0x6 LB: > { %s11160_s22 = sadd.s32 4294967295, %s11100_s21   ;;  %p67_p0 = scmp.ne.s32.totalorder %s11092_s19, %s11088_s18  ;;  %s11100_s21 = sphi %s11147_s21, %s13163_s21   ;;  %s11096_s20 = sphi %s11145_s20, %s13162_s20   ;;  %s11092_s19 = sphi %s11143_s19, %s13161_s19   ;;  %s11088_s18 = sphi %s11141_s18, %s13160_s18  }
   0x7   : > { %p68_p1 = scmp.eq.s32.totalorder %s11160_s22, 0  ;;  %p6800_p2 = scmp.ge.s32.totalorder %s11100_s21, 1 }
   0x8   : > { %p162_p3 = scmp.lt.s32.totalorder %s11100_s21, 3  ;;  %p6801_p4 = scmp.ne.s32.totalorder %s11160_s22, 0 }
   0x9   : > { %p11169_p5 = por %p68_p1, %p67_p0  ;;  %s174_s26 = sshll.u32 %s13151_s2, 4  ;;  %s175_s26 = int_to_ptr.hbm [resolvable:$true] %s174_s26 }
   0xa   : > { %p11176_p6 = pnand %p6800_p2, %p162_p3  ;;  %s11102_s28 = smov [#allocation6]  }
   0xb   : > { %s176_s29 = sshll.u32 %s11102_s28, 4  ;;  %s185_s7 = sshll.u32 %s13152_s3, 4  ;;  %s177_s29 = int_to_ptr.vmem [resolvable:$true] %s176_s29  ;;  %s186_s7 = int_to_ptr.hbm [resolvable:$true] %s185_s7 }
   0xc   : > { %p10841_p7 = pneg %p11176_p6  ;;  %s11103_s9 = smov [#allocation8]  }
   0xd   : > { %s187_s10 = sshll.u32 %s11103_s9, 4  ;;  %s11104_s11 = smov 128   ;;  %s188_s10 = int_to_ptr.vmem [resolvable:$true] %s187_s10 }
   0xe   : > { %p11187_p8 = pnand %p10841_p7, %p68_p1  ;;  %s11105_s12 = smov 8  }
   0xf   : > { %s200_s15 = sshll.u32 %s13153_s4, 4  ;;  %s11106_s16 = smov [#allocation9]   ;;  %s201_s15 = int_to_ptr.hbm [resolvable:$true] %s200_s15 }
  0x10   : > { %10844 = dma.hbm_to_vmem [thread:$0]  (!%p11187_p8), %s175_s26, 64, %s177_s29, [#allocation7]  }
  0x11   : > { %10847 = dma.hbm_to_vmem [thread:$0]  (!%p11187_p8), %s186_s7, 8192, %s188_s10, [#allocation7], %s11104_s11, %s11104_s11, %s11105_s12  }
  0x12   : > { %s202_s17 = sshll.u32 %s11106_s16, 4  ;;  %s11201_s18 = sadd.s32 1, %s11100_s21   ;;  %s203_s17 = int_to_ptr.vmem [resolvable:$true] %s202_s17 }
  0x13   : > { %10850 = dma.hbm_to_vmem [thread:$0]  (!%p11187_p8), %s201_s15, 16, %s203_s17, [#allocation10]  }
  0x14   : > { %s51_s24 = ssub.s32 %s11100_s21, %s11201_s18  ;;  %s54_s25 = sadd.s32 1, %s11096_s20 }
  0x15   : > { %p52_p9 = scmp.eq.s32.totalorder %s51_s24, 0  ;;  %p61_p10 = scmp.ne.s32.totalorder %s11096_s20, %s11092_s19 }
  0x16   : > { %p62_p11 = scmp.eq.s32.totalorder %s11100_s21, 0  ;;  %p10858_p12 = scmp.lt.s32.totalorder %s11100_s21, 2 }
  0x17   : > { %s11211_s26 = scalar_select %p52_p9, %s11096_s20, %s54_s25  }
  0x18   : > { %p63_p13 = por %p62_p11, %p61_p10  ;;  %s222_s28 = sand.u32 1, %s11096_s20  }
  0x19   : > { %s10821_s29 = smul.u32 6400, %s222_s28  ;;  %s223_s13 = scalar_lea.sflag [#allocation4], %s222_s28 }
  0x1a   : > { %s10820_s30 = smul.u32 6400, %s11100_s21  ;;  %p11215_p0 = pnand %p10858_p12, %p63_p13 }
  0x1b   : > { %s226_s10 = scalar_lea.vmem [#allocation3], %s10821_s29  ;;  %s11003_s17 = scalar_lea.hbm %s13150_s1, 12800 }
  0x1c   : > { %s232_s9 = scalar_lea.hbm %s13150_s1, %s10820_s30  ;;  %s235_s11 = sshll.u32 %s226_s10, 4  ;;  %s236_s11 = int_to_ptr.vmem [resolvable:$true] %s235_s11 }
  0x1d   : > { %s233_s12 = sshll.u32 %s232_s9, 4  ;;  %p11000_p3 = pneg %p11215_p0  ;;  %s234_s12 = int_to_ptr.hbm [resolvable:$true] %s233_s12 }
  0x1e   : > { %s10996_s14 = sshra.s32 %s234_s12, 4  ;;  %s10997_s14 = int_to_ptr.hbm [resolvable:$true] %s10996_s14 }
  0x1f   : > { %s10998_s15 = scalar_lea.hbm %s10997_s14, 6400  ;;  %p11004_p9 = scmp.lt.s32.totalorder %s10997_s14, %s13150_s1 }
  0x20   : > { %p10999_p2 = scmp.ne.s32.totalorder %s10997_s14, %s10998_s15  ;;  %p11005_p10 = scmp.lt.s32.totalorder %s11003_s17, %s10998_s15 }
  0x22   : > { %p11001_p7 = pnand %p11000_p3, %p10999_p2  ;;  %p11006_p11 = por %p11005_p10, %p11004_p9 }
  0x24   : > { %p11002_p8 = pneg %p11001_p7 }
  0x26   : > { %p11007_p12 = pnand %p11006_p11, %p11002_p8 }
  0x28   : > { %11010 = shalt.err (!%p11007_p12)
}
  0x29   : > { %s11107_s28 = smov 256   ;;  %s11108_s29 = smov 16  }
  0x2a   : > { %10854 = dma.hbm_to_vmem [thread:$0]  (!%p11215_p0), %s234_s12, 102400, %s236_s11, %s223_s13, %s11107_s28, %s11107_s28, %s11108_s29  }
  0x2b   : > { %247 = sbr.rel (%p11176_p6) target bundleno = 1188 (0x4a4), region = 40  ;;  %s249_s30 = sand.u32 (!%p11176_p6), 1, %s11092_s19  }
  0x2c   : > { %s10822_s7 = smul.u32 (!%p11176_p6), 6400, %s249_s30  ;;  %s250_s8 = scalar_lea.sflag (!%p11176_p6), [#allocation4], %s249_s30 }
  0x2e   : > { %s11235_s9 = scalar_lea.vmem (!%p11176_p6), [#allocation3], %s10822_s7 }
  0x30   : > { %11071 = dma.done.wait (%p11169_p5), %s250_s8, 102400  }
  0x31   : > { %11073 = vsyncadd (%p11169_p5), %s250_s8, 4294864896 }
  0x32   : > { %11075 = dma.done.wait (%p68_p1), [#allocation7], 8256  }
  0x33   : > { %11077 = vsyncadd (%p68_p1), [#allocation7], 4294959040 }
  0x34   : > { %11079 = dma.done.wait (%p68_p1), [#allocation10], 16  }
  0x35   : > { %11081 = vsyncadd (%p68_p1), [#allocation10], 4294967280  ;;  %s296_s27 = smul.u32 25, %s11160_s22 }
  0x37   : > { %p297_p6 = scmp.lt.s32.totalorder %s296_s27, 49  ;;  %306 = sbr.rel (%p6801_p4) target bundleno = 65 (0x41), region = 60 }
  0x39   : > { %s13165_s27 = smov (!%p297_p6, %s296_s27), 49 }
  0x3a   : > { %s6811_s6 = sshll.u32 %s13165_s27, 2 }
  0x3b   : > { %s11253_s11 = scalar_lea.vmem %s13149_s0, %s6811_s6 }
  0x3c   : > { %v11109_v0 = vmov 0.0  }
  0x3d   : > { %307 = vst [vmem:[#allocation2 + $0x10] sm:$0xff] %v11109_v0 }
  0x3e   : > { %308 = vst [vmem:[#allocation2] sm:$0xff] %v11109_v0 }
  0x3f   : > { %309 = vst [vmem:[#allocation2 + $0x18] sm:$0xff] %v11109_v0 }
  0x40   : > { %310 = vst [vmem:[#allocation2 + $0x8] sm:$0xff] %v11109_v0 }
  0x41 PF: > { %v6927_v1 = vld [vmem:[%s11235_s9 + $0xe0] sm:$0xf]  ;;  %v10050_v2 = vld [vmem:[%s11235_s9 + $0xec] sm:$0xf0]  ;;  %p10013_p1 = scmp.ne.s32.totalorder %s11160_s22, 1 }
  0x42   : > { %v7055_v3 = vld [vmem:[%s11235_s9 + $0x1e0] sm:$0xf]  ;;  %v6928_v4 = vor.u32 %v10050_v2, %v6927_v1  ;;  %v10082_v5 = vld [vmem:[%s11235_s9 + $0x1ec] sm:$0xf0] }
  0x43   : > { %v7183_v6 = vld [vmem:[%s11235_s9 + $0x2e0] sm:$0xf]  ;;  %v10114_v7 = vld [vmem:[%s11235_s9 + $0x2ec] sm:$0xf0]  ;;  %v7056_v8 = vor.u32 %v10082_v5, %v7055_v3 }
  0x44   : > { %v7184_v9 = vor.u32 %v10114_v7, %v7183_v6  ;;  %v7311_v10 = vld [vmem:[%s11235_s9 + $0x3e0] sm:$0xf]  ;;  %v10146_v11 = vld [vmem:[%s11235_s9 + $0x3ec] sm:$0xf0]  ;;  %5216 = vmatpush.bf16.msra.mxu0 %v6928_v4 }
  0x45   : > { %v6911_v12 = vld [vmem:[%s11235_s9 + $0xc0] sm:$0xf]  ;;  %v7312_v13 = vor.u32 %v10146_v11, %v7311_v10  ;;  %v10046_v14 = vld [vmem:[%s11235_s9 + $0xcc] sm:$0xf0]  ;;  %5229 = vmatpush.bf16.msra.mxu1 %v7056_v8 }
  0x46   : > { %v7039_v15 = vld [vmem:[%s11235_s9 + $0x1c0] sm:$0xf]  ;;  %v10078_v16 = vld [vmem:[%s11235_s9 + $0x1cc] sm:$0xf0]  ;;  %5242 = vmatpush.bf16.msra.mxu2 %v7184_v9  ;;  %v6912_v17 = vor.u32 %v10046_v14, %v6911_v12 }
  0x47   : > { %v7040_v18 = vor.u32 %v10078_v16, %v7039_v15  ;;  %v7167_v19 = vld [vmem:[%s11235_s9 + $0x2c0] sm:$0xf]  ;;  %v10110_v20 = vld [vmem:[%s11235_s9 + $0x2cc] sm:$0xf0]  ;;  %5255 = vmatpush.bf16.msra.mxu3 %v7312_v13 }
  0x48   : > { %v7295_v21 = vld [vmem:[%s11235_s9 + $0x3c0] sm:$0xf]  ;;  %v7168_v22 = vor.u32 %v10110_v20, %v7167_v19  ;;  %v10142_v23 = vld [vmem:[%s11235_s9 + $0x3cc] sm:$0xf0]  ;;  %5217 = vmatpush.bf16.msra.mxu0 %v6912_v17 }
  0x49   : > { %v6895_v24 = vld [vmem:[%s11235_s9 + $0xa0] sm:$0xf]  ;;  %v10042_v25 = vld [vmem:[%s11235_s9 + $0xac] sm:$0xf0]  ;;  %v7296_v26 = vor.u32 %v10142_v23, %v7295_v21  ;;  %5230 = vmatpush.bf16.msra.mxu1 %v7040_v18 }
  0x4a   : > { %v7023_v27 = vld [vmem:[%s11235_s9 + $0x1a0] sm:$0xf]  ;;  %v10074_v28 = vld [vmem:[%s11235_s9 + $0x1ac] sm:$0xf0]  ;;  %v6896_v30 = vor.u32 %v10042_v25, %v6895_v24  ;;  %5243 = vmatpush.bf16.msra.mxu2 %v7168_v22 }
  0x4b   : > { %v7151_v29 = vld [vmem:[%s11235_s9 + $0x2a0] sm:$0xf]  ;;  %v10106_v31 = vld [vmem:[%s11235_s9 + $0x2ac] sm:$0xf0]  ;;  %v7024_v34 = vor.u32 %v10074_v28, %v7023_v27  ;;  %5256 = vmatpush.bf16.msra.mxu3 %v7296_v26 }
  0x4c   : > { %v7279_v32 = vld [vmem:[%s11235_s9 + $0x3a0] sm:$0xf]  ;;  %v10138_v33 = vld [vmem:[%s11235_s9 + $0x3ac] sm:$0xf0]  ;;  %v7152_v35 = vor.u32 %v10106_v31, %v7151_v29  ;;  %5218 = vmatpush.bf16.msra.mxu0 %v6896_v30 }
  0x4d   : > { %v6879_v36 = vld [vmem:[%s11235_s9 + $0x80] sm:$0xf]  ;;  %v10038_v37 = vld [vmem:[%s11235_s9 + $0x8c] sm:$0xf0]  ;;  %v7280_v39 = vor.u32 %v10138_v33, %v7279_v32  ;;  %5231 = vmatpush.bf16.msra.mxu1 %v7024_v34 }
  0x4e   : > { %v7007_v38 = vld [vmem:[%s11235_s9 + $0x180] sm:$0xf]  ;;  %v10070_v40 = vld [vmem:[%s11235_s9 + $0x18c] sm:$0xf0]  ;;  %v6880_v45 = vor.u32 %v10038_v37, %v6879_v36  ;;  %5244 = vmatpush.bf16.msra.mxu2 %v7152_v35 }
  0x4f   : > { %v7135_v41 = vld [vmem:[%s11235_s9 + $0x280] sm:$0xf]  ;;  %v10102_v42 = vld [vmem:[%s11235_s9 + $0x28c] sm:$0xf0]  ;;  %v7008_v46 = vor.u32 %v10070_v40, %v7007_v38  ;;  %5257 = vmatpush.bf16.msra.mxu3 %v7280_v39 }
  0x50   : > { %v7263_v43 = vld [vmem:[%s11235_s9 + $0x380] sm:$0xf]  ;;  %v10134_v44 = vld [vmem:[%s11235_s9 + $0x38c] sm:$0xf0]  ;;  %v7136_v47 = vor.u32 %v10102_v42, %v7135_v41  ;;  %5219 = vmatpush.bf16.msra.mxu0 %v6880_v45 }
  0x51   : > { %v6863_v48 = vld [vmem:[%s11235_s9 + $0x60] sm:$0xf]  ;;  %v10034_v49 = vld [vmem:[%s11235_s9 + $0x6c] sm:$0xf0]  ;;  %v7264_v51 = vor.u32 %v10134_v44, %v7263_v43  ;;  %5232 = vmatpush.bf16.msra.mxu1 %v7008_v46 }
  0x52   : > { %v6991_v50 = vld [vmem:[%s11235_s9 + $0x160] sm:$0xf]  ;;  %v10066_v52 = vld [vmem:[%s11235_s9 + $0x16c] sm:$0xf0]  ;;  %v6864_v57 = vor.u32 %v10034_v49, %v6863_v48  ;;  %5245 = vmatpush.bf16.msra.mxu2 %v7136_v47 }
  0x53   : > { %v7119_v53 = vld [vmem:[%s11235_s9 + $0x260] sm:$0xf]  ;;  %v10098_v54 = vld [vmem:[%s11235_s9 + $0x26c] sm:$0xf0]  ;;  %v6992_v58 = vor.u32 %v10066_v52, %v6991_v50  ;;  %5258 = vmatpush.bf16.msra.mxu3 %v7264_v51 }
  0x54   : > { %v7247_v55 = vld [vmem:[%s11235_s9 + $0x360] sm:$0xf]  ;;  %v10130_v56 = vld [vmem:[%s11235_s9 + $0x36c] sm:$0xf0]  ;;  %v7120_v59 = vor.u32 %v10098_v54, %v7119_v53  ;;  %5220 = vmatpush.bf16.msra.mxu0 %v6864_v57 }
  0x55   : > { %v6847_v60 = vld [vmem:[%s11235_s9 + $0x40] sm:$0xf]  ;;  %v10030_v61 = vld [vmem:[%s11235_s9 + $0x4c] sm:$0xf0]  ;;  %v7248_v63 = vor.u32 %v10130_v56, %v7247_v55  ;;  %5233 = vmatpush.bf16.msra.mxu1 %v6992_v58 }
  0x56   : > { %v6975_v62 = vld [vmem:[%s11235_s9 + $0x140] sm:$0xf]  ;;  %v10062_v0 = vld [vmem:[%s11235_s9 + $0x14c] sm:$0xf0]  ;;  %v6848_v5 = vor.u32 %v10030_v61, %v6847_v60  ;;  %5246 = vmatpush.bf16.msra.mxu2 %v7120_v59  ;;  %v316_v59 = vld [vmem:[%s11253_s11 + $0x8] sm:$0xff] }
  0x57   : > { %v7103_v1 = vld [vmem:[%s11235_s9 + $0x240] sm:$0xf]  ;;  %v10094_v2 = vld [vmem:[%s11235_s9 + $0x24c] sm:$0xf0]  ;;  %v6976_v6 = vor.u32 %v10062_v0, %v6975_v62  ;;  %5259 = vmatpush.bf16.msra.mxu3 %v7248_v63  ;;  %v1143_v0 = vunpack.c.l.b16 %v316_v59 }
  0x58   : > { %v7231_v3 = vld [vmem:[%s11235_s9 + $0x340] sm:$0xf]  ;;  %v10126_v4 = vld [vmem:[%s11235_s9 + $0x34c] sm:$0xf0]  ;;  %v7104_v7 = vor.u32 %v10094_v2, %v7103_v1  ;;  %5221 = vmatpush.bf16.msra.mxu0 %v6848_v5  ;;  %v1144_v1 = vunpack.c.h.b16 %v316_v59 }
  0x59   : > { %v6831_v8 = vld [vmem:[%s11235_s9 + $0x20] sm:$0xf]  ;;  %v10026_v9 = vld [vmem:[%s11235_s9 + $0x2c] sm:$0xf0]  ;;  %v7232_v11 = vor.u32 %v10126_v4, %v7231_v3  ;;  %5234 = vmatpush.bf16.msra.mxu1 %v6976_v6  ;;  %v11346_v5 = vpack.c.b16 %v1143_v0, %v1143_v0 }
  0x5a   : > { %v6959_v10 = vld [vmem:[%s11235_s9 + $0x120] sm:$0xf]  ;;  %v10058_v12 = vld [vmem:[%s11235_s9 + $0x12c] sm:$0xf0]  ;;  %v6832_v17 = vor.u32 %v10026_v9, %v6831_v8  ;;  %5247 = vmatpush.bf16.msra.mxu2 %v7104_v7  ;;  %v11349_v7 = vpack.c.b16 %v1144_v1, %v1144_v1 }
  0x5b   : > { %v7087_v13 = vld [vmem:[%s11235_s9 + $0x220] sm:$0xf]  ;;  %v10090_v14 = vld [vmem:[%s11235_s9 + $0x22c] sm:$0xf0]  ;;  %v6960_v20 = vor.u32 %v10058_v12, %v6959_v10  ;;  %5260 = vmatpush.bf16.msra.mxu3 %v7232_v11 }
  0x5c   : > { %v7215_v15 = vld [vmem:[%s11235_s9 + $0x320] sm:$0xf]  ;;  %v10122_v16 = vld [vmem:[%s11235_s9 + $0x32c] sm:$0xf0]  ;;  %v7088_v21 = vor.u32 %v10090_v14, %v7087_v13  ;;  %5222 = vmatpush.bf16.msra.mxu0 %v6832_v17 }
  0x5d   : > { %v6815_v18 = vld [vmem:[%s11235_s9] sm:$0xf]  ;;  %v10022_v19 = vld [vmem:[%s11235_s9 + $0xc] sm:$0xf0]  ;;  %v7216_v25 = vor.u32 %v10122_v16, %v7215_v15  ;;  %5235 = vmatpush.bf16.msra.mxu1 %v6960_v20 }
  0x5e   : > { %v6943_v22 = vld [vmem:[%s11235_s9 + $0x100] sm:$0xf]  ;;  %v10054_v23 = vld [vmem:[%s11235_s9 + $0x10c] sm:$0xf0]  ;;  %v6816_v32 = vor.u32 %v10022_v19, %v6815_v18  ;;  %5248 = vmatpush.bf16.msra.mxu2 %v7088_v21 }
  0x5f   : > { %v7071_v24 = vld [vmem:[%s11235_s9 + $0x200] sm:$0xf]  ;;  %v10086_v26 = vld [vmem:[%s11235_s9 + $0x20c] sm:$0xf0]  ;;  %v6944_v36 = vor.u32 %v10054_v23, %v6943_v22  ;;  %5261 = vmatpush.bf16.msra.mxu3 %v7216_v25 }
  0x60   : > { %v7199_v27 = vld [vmem:[%s11235_s9 + $0x300] sm:$0xf]  ;;  %v10118_v28 = vld [vmem:[%s11235_s9 + $0x30c] sm:$0xf0]  ;;  %v7072_v37 = vor.u32 %v10086_v26, %v7071_v24  ;;  %5223 = vmatpush.bf16.msra.mxu0 %v6816_v32 }
  0x61   : > { %v7439_v29 = vld [vmem:[%s11235_s9 + $0x4e0] sm:$0xf]  ;;  %v10178_v30 = vld [vmem:[%s11235_s9 + $0x4ec] sm:$0xf0]  ;;  %v7200_v40 = vor.u32 %v10118_v28, %v7199_v27  ;;  %5236 = vmatpush.bf16.msra.mxu1 %v6944_v36 }
  0x62   : > { %v7567_v31 = vld [vmem:[%s11235_s9 + $0x5e0] sm:$0xf]  ;;  %v10210_v33 = vld [vmem:[%s11235_s9 + $0x5ec] sm:$0xf0]  ;;  %v7440_v41 = vor.u32 %v10178_v30, %v7439_v29  ;;  %5249 = vmatpush.bf16.msra.mxu2 %v7072_v37 }
  0x63   : > { %v7695_v34 = vld [vmem:[%s11235_s9 + $0x6e0] sm:$0xf]  ;;  %v10242_v35 = vld [vmem:[%s11235_s9 + $0x6ec] sm:$0xf0]  ;;  %v7568_v42 = vor.u32 %v10210_v33, %v7567_v31  ;;  %5262 = vmatpush.bf16.msra.mxu3 %v7200_v40 }
  0x64   : > { %v7823_v38 = vld [vmem:[%s11235_s9 + $0x7e0] sm:$0xf]  ;;  %v10274_v39 = vld [vmem:[%s11235_s9 + $0x7ec] sm:$0xf0]  ;;  %v7696_v43 = vor.u32 %v10242_v35, %v7695_v34  ;;  %5268 = vmatpush.bf16.msrb.mxu0 %v7440_v41 }
  0x65   : > { %v7423_v44 = vld [vmem:[%s11235_s9 + $0x4c0] sm:$0xf]  ;;  %v10174_v45 = vld [vmem:[%s11235_s9 + $0x4cc] sm:$0xf0]  ;;  %v7824_v47 = vor.u32 %v10274_v39, %v7823_v38  ;;  %5281 = vmatpush.bf16.msrb.mxu1 %v7568_v42  ;;  %5250 = vmatmul.bf16.vlgmr.msra.gmra.mxu2 %v11346_v5 }
  0x66   : > { %v7551_v46 = vld [vmem:[%s11235_s9 + $0x5c0] sm:$0xf]  ;;  %v10206_v48 = vld [vmem:[%s11235_s9 + $0x5cc] sm:$0xf0]  ;;  %v7424_v53 = vor.u32 %v10174_v45, %v7423_v44  ;;  %5294 = vmatpush.bf16.msrb.mxu2 %v7696_v43  ;;  %5263 = vmatmul.bf16.vlgmr.msra.gmra.mxu3 %v11349_v7 }
  0x67   : > { %v7679_v49 = vld [vmem:[%s11235_s9 + $0x6c0] sm:$0xf]  ;;  %v10238_v50 = vld [vmem:[%s11235_s9 + $0x6cc] sm:$0xf0]  ;;  %v7552_v55 = vor.u32 %v10206_v48, %v7551_v46  ;;  %5307 = vmatpush.bf16.msrb.mxu3 %v7824_v47 }
  0x68   : > { %v7807_v51 = vld [vmem:[%s11235_s9 + $0x7c0] sm:$0xf]  ;;  %v10270_v52 = vld [vmem:[%s11235_s9 + $0x7cc] sm:$0xf0]  ;;  %v7680_v56 = vor.u32 %v10238_v50, %v7679_v49  ;;  %5269 = vmatpush.bf16.msrb.mxu0 %v7424_v53 }
  0x69   : > { %v7407_v54 = vld [vmem:[%s11235_s9 + $0x4a0] sm:$0xf]  ;;  %v10170_v57 = vld [vmem:[%s11235_s9 + $0x4ac] sm:$0xf0]  ;;  %v7808_v60 = vor.u32 %v10270_v52, %v7807_v51  ;;  %5282 = vmatpush.bf16.msrb.mxu1 %v7552_v55 }
  0x6a   : > { %v7535_v58 = vld [vmem:[%s11235_s9 + $0x5a0] sm:$0xf]  ;;  %v10202_v61 = vld [vmem:[%s11235_s9 + $0x5ac] sm:$0xf0]  ;;  %v7408_v4 = vor.u32 %v10170_v57, %v7407_v54  ;;  %5295 = vmatpush.bf16.msrb.mxu2 %v7680_v56 }
  0x6b   : > { %v7663_v62 = vld [vmem:[%s11235_s9 + $0x6a0] sm:$0xf]  ;;  %v10234_v63 = vld [vmem:[%s11235_s9 + $0x6ac] sm:$0xf0]  ;;  %v7536_v8 = vor.u32 %v10202_v61, %v7535_v58  ;;  %5308 = vmatpush.bf16.msrb.mxu3 %v7808_v60 }
  0x6c   : > { %v7791_v2 = vld [vmem:[%s11235_s9 + $0x7a0] sm:$0xf]  ;;  %v10266_v3 = vld [vmem:[%s11235_s9 + $0x7ac] sm:$0xf0]  ;;  %v7664_v9 = vor.u32 %v10234_v63, %v7663_v62  ;;  %5270 = vmatpush.bf16.msrb.mxu0 %v7408_v4  ;;  %v318_v4 = vld [vmem:[%s11253_s11 + $0x18] sm:$0xff] }
  0x6d   : > { %v315_v6 = vld [vmem:[%s11253_s11] sm:$0xff]  ;;  %v10166_v11 = vld [vmem:[%s11235_s9 + $0x48c] sm:$0xf0]  ;;  %v7792_v15 = vor.u32 %v10266_v3, %v7791_v2  ;;  %5283 = vmatpush.bf16.msrb.mxu1 %v7536_v8 }
  0x6e   : > { %v7391_v10 = vld [vmem:[%s11235_s9 + $0x480] sm:$0xf]  ;;  %v1141_v13 = vunpack.c.l.b16 %v315_v6  ;;  %v1142_v14 = vunpack.c.h.b16 %v315_v6  ;;  %v10198_v16 = vld [vmem:[%s11235_s9 + $0x58c] sm:$0xf0]  ;;  %5296 = vmatpush.bf16.msrb.mxu2 %v7664_v9 }
  0x6f   : > { %v7519_v12 = vld [vmem:[%s11235_s9 + $0x580] sm:$0xf]  ;;  %v10230_v18 = vld [vmem:[%s11235_s9 + $0x68c] sm:$0xf0]  ;;  %v7392_v23 = vor.u32 %v10166_v11, %v7391_v10  ;;  %5309 = vmatpush.bf16.msrb.mxu3 %v7792_v15 }
  0x70   : > { %v7647_v17 = vld [vmem:[%s11235_s9 + $0x680] sm:$0xf]  ;;  %v10262_v20 = vld [vmem:[%s11235_s9 + $0x78c] sm:$0xf0]  ;;  %v11360_v21 = vpack.c.b16 %v1141_v13, %v1141_v13  ;;  %v11363_v22 = vpack.c.b16 %v1142_v14, %v1142_v14  ;;  %v7520_v24 = vor.u32 %v10198_v16, %v7519_v12 }
  0x71   : > { %v7775_v19 = vld [vmem:[%s11235_s9 + $0x780] sm:$0xf]  ;;  %v7648_v25 = vor.u32 %v10230_v18, %v7647_v17  ;;  %v10162_v27 = vld [vmem:[%s11235_s9 + $0x46c] sm:$0xf0]  ;;  %5271 = vmatpush.bf16.msrb.mxu0 %v7392_v23  ;;  %v1147_v18 = vunpack.c.l.b16 %v318_v4 }
  0x72   : > { %v7375_v26 = vld [vmem:[%s11235_s9 + $0x460] sm:$0xf]  ;;  %v7776_v29 = vor.u32 %v10262_v20, %v7775_v19  ;;  %v10194_v30 = vld [vmem:[%s11235_s9 + $0x56c] sm:$0xf0]  ;;  %5224 = vmatmul.bf16.vlgmr.msra.gmra.mxu0 %v11360_v21  ;;  %5237 = vmatmul.bf16.vlgmr.msra.gmra.mxu1 %v11363_v22 }
  0x73   : > { %v7503_v28 = vld [vmem:[%s11235_s9 + $0x560] sm:$0xf]  ;;  %v10226_v32 = vld [vmem:[%s11235_s9 + $0x66c] sm:$0xf0]  ;;  %v7376_v35 = vor.u32 %v10162_v27, %v7375_v26  ;;  %5284 = vmatpush.bf16.msrb.mxu1 %v7520_v24  ;;  %5297 = vmatpush.bf16.msrb.mxu2 %v7648_v25  ;;  %v1148_v26 = vunpack.c.h.b16 %v318_v4 }
  0x74   : > { %v7631_v31 = vld [vmem:[%s11235_s9 + $0x660] sm:$0xf]  ;;  %v10258_v34 = vld [vmem:[%s11235_s9 + $0x76c] sm:$0xf0]  ;;  %v7504_v36 = vor.u32 %v10194_v30, %v7503_v28  ;;  %5310 = vmatpush.bf16.msrb.mxu3 %v7776_v29 }
  0x75   : > { %v7759_v33 = vld [vmem:[%s11235_s9 + $0x760] sm:$0xf]  ;;  %v7632_v37 = vor.u32 %v10226_v32, %v7631_v31  ;;  %v10158_v39 = vld [vmem:[%s11235_s9 + $0x44c] sm:$0xf0]  ;;  %5272 = vmatpush.bf16.msrb.mxu0 %v7376_v35 }
  0x76   : > { %v7359_v38 = vld [vmem:[%s11235_s9 + $0x440] sm:$0xf]  ;;  %v7760_v41 = vor.u32 %v10258_v34, %v7759_v33  ;;  %v10190_v42 = vld [vmem:[%s11235_s9 + $0x54c] sm:$0xf0] }
  0x77   : > { %v7487_v40 = vld [vmem:[%s11235_s9 + $0x540] sm:$0xf]  ;;  %v10222_v44 = vld [vmem:[%s11235_s9 + $0x64c] sm:$0xf0]  ;;  %v7360_v47 = vor.u32 %v10158_v39, %v7359_v38  ;;  %5285 = vmatpush.bf16.msrb.mxu1 %v7504_v36  ;;  %5298 = vmatpush.bf16.msrb.mxu2 %v7632_v37  ;;  %v11415_v39 = vpack.c.b16 %v1147_v18, %v1147_v18 }
  0x78   : > { %v7615_v43 = vld [vmem:[%s11235_s9 + $0x640] sm:$0xf]  ;;  %v10254_v46 = vld [vmem:[%s11235_s9 + $0x74c] sm:$0xf0]  ;;  %v7488_v48 = vor.u32 %v10190_v42, %v7487_v40  ;;  %5311 = vmatpush.bf16.msrb.mxu3 %v7760_v41 }
  0x79   : > { %v7743_v45 = vld [vmem:[%s11235_s9 + $0x740] sm:$0xf]  ;;  %v7616_v49 = vor.u32 %v10222_v44, %v7615_v43  ;;  %v10154_v51 = vld [vmem:[%s11235_s9 + $0x42c] sm:$0xf0]  ;;  %5273 = vmatpush.bf16.msrb.mxu0 %v7360_v47  ;;  %v11421_v43 = vpack.c.b16 %v1148_v26, %v1148_v26 }
  0x7a   : > { %v7343_v50 = vld [vmem:[%s11235_s9 + $0x420] sm:$0xf]  ;;  %v7744_v53 = vor.u32 %v10254_v46, %v7743_v45  ;;  %v10186_v54 = vld [vmem:[%s11235_s9 + $0x52c] sm:$0xf0] }
  0x7b   : > { %v7471_v52 = vld [vmem:[%s11235_s9 + $0x520] sm:$0xf]  ;;  %v10218_v56 = vld [vmem:[%s11235_s9 + $0x62c] sm:$0xf0]  ;;  %v7344_v60 = vor.u32 %v10154_v51, %v7343_v50  ;;  %5286 = vmatpush.bf16.msrb.mxu1 %v7488_v48  ;;  %5299 = vmatpush.bf16.msrb.mxu2 %v7616_v49 }
  0x7c   : > { %v7599_v55 = vld [vmem:[%s11235_s9 + $0x620] sm:$0xf]  ;;  %v10250_v58 = vld [vmem:[%s11235_s9 + $0x72c] sm:$0xf0]  ;;  %v7472_v0 = vor.u32 %v10186_v54, %v7471_v52  ;;  %5312 = vmatpush.bf16.msrb.mxu3 %v7744_v53 }
  0x7d   : > { %v7727_v57 = vld [vmem:[%s11235_s9 + $0x720] sm:$0xf]  ;;  %v10150_v61 = vld [vmem:[%s11235_s9 + $0x40c] sm:$0xf0]  ;;  %v7600_v1 = vor.u32 %v10218_v56, %v7599_v55  ;;  %5274 = vmatpush.bf16.msrb.mxu0 %v7344_v60 }
  0x7e   : > { %v7327_v59 = vld [vmem:[%s11235_s9 + $0x400] sm:$0xf]  ;;  %v10182_v63 = vld [vmem:[%s11235_s9 + $0x50c] sm:$0xf0]  ;;  %v7728_v6 = vor.u32 %v10250_v58, %v7727_v57 }
  0x7f   : > { %v7455_v62 = vld [vmem:[%s11235_s9 + $0x500] sm:$0xf]  ;;  %v10214_v3 = vld [vmem:[%s11235_s9 + $0x60c] sm:$0xf0]  ;;  %v7328_v14 = vor.u32 %v10150_v61, %v7327_v59  ;;  %5287 = vmatpush.bf16.msrb.mxu1 %v7472_v0  ;;  %5300 = vmatpush.bf16.msrb.mxu2 %v7600_v1 }
  0x80   : > { %v7583_v2 = vld [vmem:[%s11235_s9 + $0x600] sm:$0xf]  ;;  %v10246_v9 = vld [vmem:[%s11235_s9 + $0x70c] sm:$0xf0]  ;;  %v7456_v19 = vor.u32 %v10182_v63, %v7455_v62  ;;  %5313 = vmatpush.bf16.msrb.mxu3 %v7728_v6 }
  0x81   : > { %v7711_v8 = vld [vmem:[%s11235_s9 + $0x700] sm:$0xf]  ;;  %v317_v10 = vld [vmem:[%s11253_s11 + $0x10] sm:$0xff]  ;;  %v7584_v20 = vor.u32 %v10214_v3, %v7583_v2  ;;  %5275 = vmatpush.bf16.msrb.mxu0 %v7328_v14 }
  0x82   : > { %v7951_v11 = vld [vmem:[%s11235_s9 + $0x8e0] sm:$0xf]  ;;  %v10306_v12 = vld [vmem:[%s11235_s9 + $0x8ec] sm:$0xf0]  ;;  %v1145_v25 = vunpack.c.l.b16 %v317_v10  ;;  %v7712_v27 = vor.u32 %v10246_v9, %v7711_v8  ;;  %v1146_v29 = vunpack.c.h.b16 %v317_v10 }
  0x83   : > { %v8079_v13 = vld [vmem:[%s11235_s9 + $0x9e0] sm:$0xf]  ;;  %v10338_v15 = vld [vmem:[%s11235_s9 + $0x9ec] sm:$0xf0]  ;;  %v7952_v28 = vor.u32 %v10306_v12, %v7951_v11  ;;  %5288 = vmatpush.bf16.msrb.mxu1 %v7456_v19  ;;  %5301 = vmatpush.bf16.msrb.mxu2 %v7584_v20 }
  0x84   : > { %v8207_v16 = vld [vmem:[%s11235_s9 + $0xae0] sm:$0xf]  ;;  %v10370_v17 = vld [vmem:[%s11235_s9 + $0xaec] sm:$0xf0]  ;;  %v8080_v30 = vor.u32 %v10338_v15, %v8079_v13  ;;  %v11419_v42 = vpack.c.b16 %v1145_v25, %v1145_v25  ;;  %5314 = vmatpush.bf16.msrb.mxu3 %v7712_v27  ;;  %v11423_v45 = vpack.c.b16 %v1146_v29, %v1146_v29 }
  0x85   : > { %v8335_v23 = vld [vmem:[%s11235_s9 + $0xbe0] sm:$0xf]  ;;  %v10402_v24 = vld [vmem:[%s11235_s9 + $0xbec] sm:$0xf0]  ;;  %v8208_v31 = vor.u32 %v10370_v17, %v8207_v16  ;;  %5320 = vmatpush.bf16.msra.mxu0 %v7952_v28 }
  0x86   : > { %v7935_v32 = vld [vmem:[%s11235_s9 + $0x8c0] sm:$0xf]  ;;  %v10302_v33 = vld [vmem:[%s11235_s9 + $0x8cc] sm:$0xf0]  ;;  %v8336_v35 = vor.u32 %v10402_v24, %v8335_v23  ;;  %5302 = vmatmul.bf16.vlgmr.msrb.gmra.mxu2 %v11415_v39  ;;  %5276 = vmatmul.bf16.vlgmr.msrb.gmra.mxu0 %v11419_v42 }
  0x87   : > { %v8063_v34 = vld [vmem:[%s11235_s9 + $0x9c0] sm:$0xf]  ;;  %v10334_v36 = vld [vmem:[%s11235_s9 + $0x9cc] sm:$0xf0]  ;;  %v7936_v44 = vor.u32 %v10302_v33, %v7935_v32  ;;  %5333 = vmatpush.bf16.msra.mxu1 %v8080_v30  ;;  %5346 = vmatpush.bf16.msra.mxu2 %v8208_v31 }
  0x88   : > { %v8191_v37 = vld [vmem:[%s11235_s9 + $0xac0] sm:$0xf]  ;;  %v10366_v38 = vld [vmem:[%s11235_s9 + $0xacc] sm:$0xf0]  ;;  %v8064_v46 = vor.u32 %v10334_v36, %v8063_v34  ;;  %5359 = vmatpush.bf16.msra.mxu3 %v8336_v35  ;;  %5289 = vmatmul.bf16.vlgmr.msrb.gmra.mxu1 %v11423_v45 }
  0x89   : > { %v8319_v40 = vld [vmem:[%s11235_s9 + $0xbc0] sm:$0xf]  ;;  %v10398_v41 = vld [vmem:[%s11235_s9 + $0xbcc] sm:$0xf0]  ;;  %v8192_v47 = vor.u32 %v10366_v38, %v8191_v37  ;;  %5315 = vmatmul.bf16.vlgmr.msrb.gmra.mxu3 %v11421_v43  ;;  %5321 = vmatpush.bf16.msra.mxu0 %v7936_v44 }
  0x8a   : > { %v7919_v48 = vld [vmem:[%s11235_s9 + $0x8a0] sm:$0xf]  ;;  %v10298_v49 = vld [vmem:[%s11235_s9 + $0x8ac] sm:$0xf0]  ;;  %v8320_v51 = vor.u32 %v10398_v41, %v8319_v40 }
  0x8b   : > { %v8047_v50 = vld [vmem:[%s11235_s9 + $0x9a0] sm:$0xf]  ;;  %v10330_v52 = vld [vmem:[%s11235_s9 + $0x9ac] sm:$0xf0]  ;;  %v7920_v57 = vor.u32 %v10298_v49, %v7919_v48  ;;  %5334 = vmatpush.bf16.msra.mxu1 %v8064_v46  ;;  %5347 = vmatpush.bf16.msra.mxu2 %v8192_v47 }
  0x8c   : > { %v8175_v53 = vld [vmem:[%s11235_s9 + $0xaa0] sm:$0xf]  ;;  %v10362_v54 = vld [vmem:[%s11235_s9 + $0xaac] sm:$0xf0]  ;;  %v8048_v58 = vor.u32 %v10330_v52, %v8047_v50  ;;  %5360 = vmatpush.bf16.msra.mxu3 %v8320_v51 }
  0x8d   : > { %v8303_v55 = vld [vmem:[%s11235_s9 + $0xba0] sm:$0xf]  ;;  %v10394_v56 = vld [vmem:[%s11235_s9 + $0xbac] sm:$0xf0]  ;;  %v8176_v59 = vor.u32 %v10362_v54, %v8175_v53  ;;  %5322 = vmatpush.bf16.msra.mxu0 %v7920_v57 }
  0x8e   : > { %v7903_v60 = vld [vmem:[%s11235_s9 + $0x880] sm:$0xf]  ;;  %v10294_v61 = vld [vmem:[%s11235_s9 + $0x88c] sm:$0xf0]  ;;  %v8304_v63 = vor.u32 %v10394_v56, %v8303_v55 }
  0x8f   : > { %v8031_v62 = vld [vmem:[%s11235_s9 + $0x980] sm:$0xf]  ;;  %v10326_v0 = vld [vmem:[%s11235_s9 + $0x98c] sm:$0xf0]  ;;  %v7904_v6 = vor.u32 %v10294_v61, %v7903_v60  ;;  %5335 = vmatpush.bf16.msra.mxu1 %v8048_v58  ;;  %5348 = vmatpush.bf16.msra.mxu2 %v8176_v59 }
  0x90   : > { %v8159_v1 = vld [vmem:[%s11235_s9 + $0xa80] sm:$0xf]  ;;  %v10358_v2 = vld [vmem:[%s11235_s9 + $0xa8c] sm:$0xf0]  ;;  %v8032_v8 = vor.u32 %v10326_v0, %v8031_v62  ;;  %5361 = vmatpush.bf16.msra.mxu3 %v8304_v63  ;;  %v320_v62 = vld [vmem:[%s11253_s11 + $0x28] sm:$0xff] }
  0x91   : > { %v8287_v3 = vld [vmem:[%s11235_s9 + $0xb80] sm:$0xf]  ;;  %v10390_v4 = vld [vmem:[%s11235_s9 + $0xb8c] sm:$0xf0]  ;;  %v8160_v9 = vor.u32 %v10358_v2, %v8159_v1  ;;  %5323 = vmatpush.bf16.msra.mxu0 %v7904_v6 }
  0x92   : > { %v7887_v10 = vld [vmem:[%s11235_s9 + $0x860] sm:$0xf]  ;;  %v10290_v11 = vld [vmem:[%s11235_s9 + $0x86c] sm:$0xf0]  ;;  %v8288_v13 = vor.u32 %v10390_v4, %v8287_v3 }
  0x93   : > { %v8015_v12 = vld [vmem:[%s11235_s9 + $0x960] sm:$0xf]  ;;  %v10322_v14 = vld [vmem:[%s11235_s9 + $0x96c] sm:$0xf0]  ;;  %v7888_v19 = vor.u32 %v10290_v11, %v7887_v10  ;;  %5336 = vmatpush.bf16.msra.mxu1 %v8032_v8  ;;  %5349 = vmatpush.bf16.msra.mxu2 %v8160_v9 }
  0x94   : > { %v8143_v15 = vld [vmem:[%s11235_s9 + $0xa60] sm:$0xf]  ;;  %v10354_v16 = vld [vmem:[%s11235_s9 + $0xa6c] sm:$0xf0]  ;;  %v8016_v20 = vor.u32 %v10322_v14, %v8015_v12  ;;  %5362 = vmatpush.bf16.msra.mxu3 %v8288_v13  ;;  %v1151_v13 = vunpack.c.l.b16 %v320_v62 }
  0x95   : > { %v8271_v17 = vld [vmem:[%s11235_s9 + $0xb60] sm:$0xf]  ;;  %v10386_v18 = vld [vmem:[%s11235_s9 + $0xb6c] sm:$0xf0]  ;;  %v8144_v23 = vor.u32 %v10354_v16, %v8143_v15  ;;  %5324 = vmatpush.bf16.msra.mxu0 %v7888_v19 }
  0x96   : > { %v7871_v24 = vld [vmem:[%s11235_s9 + $0x840] sm:$0xf]  ;;  %v10286_v25 = vld [vmem:[%s11235_s9 + $0x84c] sm:$0xf0]  ;;  %v8272_v27 = vor.u32 %v10386_v18, %v8271_v17  ;;  %v1152_v17 = vunpack.c.h.b16 %v320_v62 }
  0x97   : > { %v7999_v26 = vld [vmem:[%s11235_s9 + $0x940] sm:$0xf]  ;;  %v10318_v28 = vld [vmem:[%s11235_s9 + $0x94c] sm:$0xf0]  ;;  %v7872_v33 = vor.u32 %v10286_v25, %v7871_v24  ;;  %5337 = vmatpush.bf16.msra.mxu1 %v8016_v20  ;;  %5350 = vmatpush.bf16.msra.mxu2 %v8144_v23 }
  0x98   : > { %v8127_v29 = vld [vmem:[%s11235_s9 + $0xa40] sm:$0xf]  ;;  %v10350_v30 = vld [vmem:[%s11235_s9 + $0xa4c] sm:$0xf0]  ;;  %v8000_v34 = vor.u32 %v10318_v28, %v7999_v26  ;;  %5363 = vmatpush.bf16.msra.mxu3 %v8272_v27 }
  0x99   : > { %v8255_v31 = vld [vmem:[%s11235_s9 + $0xb40] sm:$0xf]  ;;  %v10382_v32 = vld [vmem:[%s11235_s9 + $0xb4c] sm:$0xf0]  ;;  %v8128_v35 = vor.u32 %v10350_v30, %v8127_v29  ;;  %5325 = vmatpush.bf16.msra.mxu0 %v7872_v33  ;;  %v11495_v30 = vpack.c.b16 %v1151_v13, %v1151_v13 }
  0x9a   : > { %v7855_v36 = vld [vmem:[%s11235_s9 + $0x820] sm:$0xf]  ;;  %v10282_v37 = vld [vmem:[%s11235_s9 + $0x82c] sm:$0xf0]  ;;  %v8256_v40 = vor.u32 %v10382_v32, %v8255_v31 }
  0x9b   : > { %v7983_v38 = vld [vmem:[%s11235_s9 + $0x920] sm:$0xf]  ;;  %v10314_v41 = vld [vmem:[%s11235_s9 + $0x92c] sm:$0xf0]  ;;  %v7856_v50 = vor.u32 %v10282_v37, %v7855_v36  ;;  %5338 = vmatpush.bf16.msra.mxu1 %v8000_v34  ;;  %5351 = vmatpush.bf16.msra.mxu2 %v8128_v35  ;;  %v11501_v34 = vpack.c.b16 %v1152_v17, %v1152_v17 }
  0x9c   : > { %v8111_v44 = vld [vmem:[%s11235_s9 + $0xa20] sm:$0xf]  ;;  %v10346_v46 = vld [vmem:[%s11235_s9 + $0xa2c] sm:$0xf0]  ;;  %v7984_v54 = vor.u32 %v10314_v41, %v7983_v38  ;;  %5364 = vmatpush.bf16.msra.mxu3 %v8256_v40 }
  0x9d   : > { %v8239_v47 = vld [vmem:[%s11235_s9 + $0xb20] sm:$0xf]  ;;  %v10378_v48 = vld [vmem:[%s11235_s9 + $0xb2c] sm:$0xf0]  ;;  %v8112_v55 = vor.u32 %v10346_v46, %v8111_v44  ;;  %5326 = vmatpush.bf16.msra.mxu0 %v7856_v50 }
  0x9e   : > { %v7839_v49 = vld [vmem:[%s11235_s9 + $0x800] sm:$0xf]  ;;  %v10278_v51 = vld [vmem:[%s11235_s9 + $0x80c] sm:$0xf0]  ;;  %v8240_v59 = vor.u32 %v10378_v48, %v8239_v47 }
  0x9f   : > { %v7967_v52 = vld [vmem:[%s11235_s9 + $0x900] sm:$0xf]  ;;  %v10310_v53 = vld [vmem:[%s11235_s9 + $0x90c] sm:$0xf0]  ;;  %v7840_v2 = vor.u32 %v10278_v51, %v7839_v49  ;;  %5339 = vmatpush.bf16.msra.mxu1 %v7984_v54  ;;  %5352 = vmatpush.bf16.msra.mxu2 %v8112_v55 }
  0xa0   : > { %v8095_v56 = vld [vmem:[%s11235_s9 + $0xa00] sm:$0xf]  ;;  %v10342_v57 = vld [vmem:[%s11235_s9 + $0xa0c] sm:$0xf0]  ;;  %v7968_v9 = vor.u32 %v10310_v53, %v7967_v52  ;;  %5365 = vmatpush.bf16.msra.mxu3 %v8240_v59 }
  0xa1   : > { %v319_v58 = vld [vmem:[%s11253_s11 + $0x20] sm:$0xff]  ;;  %v10374_v61 = vld [vmem:[%s11235_s9 + $0xb0c] sm:$0xf0]  ;;  %v8096_v10 = vor.u32 %v10342_v57, %v8095_v56  ;;  %5327 = vmatpush.bf16.msra.mxu0 %v7840_v2 }
  0xa2   : > { %v8223_v60 = vld [vmem:[%s11235_s9 + $0xb00] sm:$0xf]  ;;  %v10434_v0 = vld [vmem:[%s11235_s9 + $0xcec] sm:$0xf0]  ;;  %v1149_v8 = vunpack.c.l.b16 %v319_v58  ;;  %v1150_v14 = vunpack.c.h.b16 %v319_v58 }
  0xa3   : > { %v8463_v63 = vld [vmem:[%s11235_s9 + $0xce0] sm:$0xf]  ;;  %v10466_v3 = vld [vmem:[%s11235_s9 + $0xdec] sm:$0xf0]  ;;  %v8224_v15 = vor.u32 %v10374_v61, %v8223_v60  ;;  %5340 = vmatpush.bf16.msra.mxu1 %v7968_v9  ;;  %5353 = vmatpush.bf16.msra.mxu2 %v8096_v10 }
  0xa4   : > { %v8591_v1 = vld [vmem:[%s11235_s9 + $0xde0] sm:$0xf]  ;;  %v10498_v6 = vld [vmem:[%s11235_s9 + $0xeec] sm:$0xf0]  ;;  %v8464_v16 = vor.u32 %v10434_v0, %v8463_v63  ;;  %v11490_v26 = vpack.c.b16 %v1149_v8, %v1149_v8  ;;  %v11497_v31 = vpack.c.b16 %v1150_v14, %v1150_v14 }
  0xa5   : > { %v8719_v4 = vld [vmem:[%s11235_s9 + $0xee0] sm:$0xf]  ;;  %v10530_v12 = vld [vmem:[%s11235_s9 + $0xfec] sm:$0xf0]  ;;  %v8592_v18 = vor.u32 %v10466_v3, %v8591_v1  ;;  %5366 = vmatpush.bf16.msra.mxu3 %v8224_v15 }
  0xa6   : > { %v8847_v11 = vld [vmem:[%s11235_s9 + $0xfe0] sm:$0xf]  ;;  %v8720_v19 = vor.u32 %v10498_v6, %v8719_v4  ;;  %v10430_v23 = vld [vmem:[%s11235_s9 + $0xccc] sm:$0xf0]  ;;  %5372 = vmatpush.bf16.msrb.mxu0 %v8464_v16  ;;  %5354 = vmatmul.bf16.vlgmr.msra.gmra.mxu2 %v11495_v30 }
  0xa7   : > { %v8447_v20 = vld [vmem:[%s11235_s9 + $0xcc0] sm:$0xf]  ;;  %v8848_v25 = vor.u32 %v10530_v12, %v8847_v11  ;;  %v10462_v27 = vld [vmem:[%s11235_s9 + $0xdcc] sm:$0xf0]  ;;  %5385 = vmatpush.bf16.msrb.mxu1 %v8592_v18  ;;  %5328 = vmatmul.bf16.vlgmr.msra.gmra.mxu0 %v11490_v26 }
  0xa8   : > { %v8575_v24 = vld [vmem:[%s11235_s9 + $0xdc0] sm:$0xf]  ;;  %v10494_v29 = vld [vmem:[%s11235_s9 + $0xecc] sm:$0xf0]  ;;  %v8448_v35 = vor.u32 %v10430_v23, %v8447_v20  ;;  %5398 = vmatpush.bf16.msrb.mxu2 %v8720_v19  ;;  %5341 = vmatmul.bf16.vlgmr.msra.gmra.mxu1 %v11497_v31 }
  0xa9   : > { %v8703_v28 = vld [vmem:[%s11235_s9 + $0xec0] sm:$0xf]  ;;  %v10526_v33 = vld [vmem:[%s11235_s9 + $0xfcc] sm:$0xf0]  ;;  %v8576_v36 = vor.u32 %v10462_v27, %v8575_v24  ;;  %5411 = vmatpush.bf16.msrb.mxu3 %v8848_v25 }
  0xaa   : > { %v8831_v32 = vld [vmem:[%s11235_s9 + $0xfc0] sm:$0xf]  ;;  %v8704_v37 = vor.u32 %v10494_v29, %v8703_v28  ;;  %v10426_v40 = vld [vmem:[%s11235_s9 + $0xcac] sm:$0xf0]  ;;  %5367 = vmatmul.bf16.vlgmr.msra.gmra.mxu3 %v11501_v34  ;;  %5373 = vmatpush.bf16.msrb.mxu0 %v8448_v35 }
  0xab   : > { %v8431_v38 = vld [vmem:[%s11235_s9 + $0xca0] sm:$0xf]  ;;  %v8832_v44 = vor.u32 %v10526_v33, %v8831_v32  ;;  %v10458_v46 = vld [vmem:[%s11235_s9 + $0xdac] sm:$0xf0]  ;;  %5386 = vmatpush.bf16.msrb.mxu1 %v8576_v36 }
  0xac   : > { %v8559_v41 = vld [vmem:[%s11235_s9 + $0xda0] sm:$0xf]  ;;  %v10490_v48 = vld [vmem:[%s11235_s9 + $0xeac] sm:$0xf0]  ;;  %v8432_v51 = vor.u32 %v10426_v40, %v8431_v38  ;;  %5399 = vmatpush.bf16.msrb.mxu2 %v8704_v37 }
  0xad   : > { %v8687_v47 = vld [vmem:[%s11235_s9 + $0xea0] sm:$0xf]  ;;  %v10522_v50 = vld [vmem:[%s11235_s9 + $0xfac] sm:$0xf0]  ;;  %v8560_v52 = vor.u32 %v10458_v46, %v8559_v41  ;;  %5412 = vmatpush.bf16.msrb.mxu3 %v8832_v44 }
  0xae   : > { %v8815_v49 = vld [vmem:[%s11235_s9 + $0xfa0] sm:$0xf]  ;;  %v8688_v53 = vor.u32 %v10490_v48, %v8687_v47  ;;  %v10422_v55 = vld [vmem:[%s11235_s9 + $0xc8c] sm:$0xf0]  ;;  %5374 = vmatpush.bf16.msrb.mxu0 %v8432_v51 }
  0xaf   : > { %v8415_v54 = vld [vmem:[%s11235_s9 + $0xc80] sm:$0xf]  ;;  %v8816_v57 = vor.u32 %v10522_v50, %v8815_v49  ;;  %v10454_v58 = vld [vmem:[%s11235_s9 + $0xd8c] sm:$0xf0]  ;;  %5387 = vmatpush.bf16.msrb.mxu1 %v8560_v52 }
  0xb0   : > { %v8543_v56 = vld [vmem:[%s11235_s9 + $0xd80] sm:$0xf]  ;;  %v10486_v60 = vld [vmem:[%s11235_s9 + $0xe8c] sm:$0xf0]  ;;  %v8416_v63 = vor.u32 %v10422_v55, %v8415_v54  ;;  %5400 = vmatpush.bf16.msrb.mxu2 %v8688_v53 }
  0xb1   : > { %v8671_v59 = vld [vmem:[%s11235_s9 + $0xe80] sm:$0xf]  ;;  %v10518_v62 = vld [vmem:[%s11235_s9 + $0xf8c] sm:$0xf0]  ;;  %v8544_v0 = vor.u32 %v10454_v58, %v8543_v56  ;;  %5413 = vmatpush.bf16.msrb.mxu3 %v8816_v57 }
  0xb2   : > { %v8799_v61 = vld [vmem:[%s11235_s9 + $0xf80] sm:$0xf]  ;;  %v8672_v1 = vor.u32 %v10486_v60, %v8671_v59  ;;  %v10418_v3 = vld [vmem:[%s11235_s9 + $0xc6c] sm:$0xf0]  ;;  %5375 = vmatpush.bf16.msrb.mxu0 %v8416_v63  ;;  %v322_v60 = vld [vmem:[%s11253_s11 + $0x38] sm:$0xff] }
  0xb3   : > { %v8399_v2 = vld [vmem:[%s11235_s9 + $0xc60] sm:$0xf]  ;;  %v8800_v6 = vor.u32 %v10518_v62, %v8799_v61  ;;  %v10450_v8 = vld [vmem:[%s11235_s9 + $0xd6c] sm:$0xf0]  ;;  %5388 = vmatpush.bf16.msrb.mxu1 %v8544_v0 }
  0xb4   : > { %v8527_v4 = vld [vmem:[%s11235_s9 + $0xd60] sm:$0xf]  ;;  %v10482_v10 = vld [vmem:[%s11235_s9 + $0xe6c] sm:$0xf0]  ;;  %v8400_v13 = vor.u32 %v10418_v3, %v8399_v2  ;;  %5401 = vmatpush.bf16.msrb.mxu2 %v8672_v1 }
  0xb5   : > { %v8655_v9 = vld [vmem:[%s11235_s9 + $0xe60] sm:$0xf]  ;;  %v10514_v12 = vld [vmem:[%s11235_s9 + $0xf6c] sm:$0xf0]  ;;  %v8528_v14 = vor.u32 %v10450_v8, %v8527_v4  ;;  %5414 = vmatpush.bf16.msrb.mxu3 %v8800_v6 }
  0xb6   : > { %v8783_v11 = vld [vmem:[%s11235_s9 + $0xf60] sm:$0xf]  ;;  %v8656_v15 = vor.u32 %v10482_v10, %v8655_v9  ;;  %v10414_v17 = vld [vmem:[%s11235_s9 + $0xc4c] sm:$0xf0]  ;;  %5376 = vmatpush.bf16.msrb.mxu0 %v8400_v13 }
  0xb7   : > { %v8383_v16 = vld [vmem:[%s11235_s9 + $0xc40] sm:$0xf]  ;;  %v8784_v19 = vor.u32 %v10514_v12, %v8783_v11  ;;  %v10446_v20 = vld [vmem:[%s11235_s9 + $0xd4c] sm:$0xf0]  ;;  %5389 = vmatpush.bf16.msrb.mxu1 %v8528_v14  ;;  %v1155_v11 = vunpack.c.l.b16 %v322_v60 }
  0xb8   : > { %v8511_v18 = vld [vmem:[%s11235_s9 + $0xd40] sm:$0xf]  ;;  %v10478_v24 = vld [vmem:[%s11235_s9 + $0xe4c] sm:$0xf0]  ;;  %v8384_v28 = vor.u32 %v10414_v17, %v8383_v16  ;;  %5402 = vmatpush.bf16.msrb.mxu2 %v8656_v15  ;;  %v1156_v15 = vunpack.c.h.b16 %v322_v60 }
  0xb9   : > { %v8639_v23 = vld [vmem:[%s11235_s9 + $0xe40] sm:$0xf]  ;;  %v10510_v27 = vld [vmem:[%s11235_s9 + $0xf4c] sm:$0xf0]  ;;  %v8512_v29 = vor.u32 %v10446_v20, %v8511_v18  ;;  %5415 = vmatpush.bf16.msrb.mxu3 %v8784_v19 }
  0xba   : > { %v8767_v25 = vld [vmem:[%s11235_s9 + $0xf40] sm:$0xf]  ;;  %v8640_v32 = vor.u32 %v10478_v24, %v8639_v23  ;;  %v10410_v35 = vld [vmem:[%s11235_s9 + $0xc2c] sm:$0xf0]  ;;  %5377 = vmatpush.bf16.msrb.mxu0 %v8384_v28 }
  0xbb   : > { %v8367_v33 = vld [vmem:[%s11235_s9 + $0xc20] sm:$0xf]  ;;  %v8768_v37 = vor.u32 %v10510_v27, %v8767_v25  ;;  %v10442_v38 = vld [vmem:[%s11235_s9 + $0xd2c] sm:$0xf0]  ;;  %5390 = vmatpush.bf16.msrb.mxu1 %v8512_v29  ;;  %v11573_v29 = vpack.c.b16 %v1155_v11, %v1155_v11 }
  0xbc   : > { %v8495_v36 = vld [vmem:[%s11235_s9 + $0xd20] sm:$0xf]  ;;  %v10474_v41 = vld [vmem:[%s11235_s9 + $0xe2c] sm:$0xf0]  ;;  %v8368_v48 = vor.u32 %v10410_v35, %v8367_v33  ;;  %5403 = vmatpush.bf16.msrb.mxu2 %v8640_v32 }
  0xbd   : > { %v8623_v40 = vld [vmem:[%s11235_s9 + $0xe20] sm:$0xf]  ;;  %v10506_v46 = vld [vmem:[%s11235_s9 + $0xf2c] sm:$0xf0]  ;;  %v8496_v52 = vor.u32 %v10442_v38, %v8495_v36  ;;  %5416 = vmatpush.bf16.msrb.mxu3 %v8768_v37  ;;  %v11579_v36 = vpack.c.b16 %v1156_v15, %v1156_v15 }
  0xbe   : > { %v8751_v44 = vld [vmem:[%s11235_s9 + $0xf20] sm:$0xf]  ;;  %v10406_v49 = vld [vmem:[%s11235_s9 + $0xc0c] sm:$0xf0]  ;;  %v8624_v53 = vor.u32 %v10474_v41, %v8623_v40  ;;  %5378 = vmatpush.bf16.msrb.mxu0 %v8368_v48 }
  0xbf   : > { %v8351_v47 = vld [vmem:[%s11235_s9 + $0xc00] sm:$0xf]  ;;  %v10438_v51 = vld [vmem:[%s11235_s9 + $0xd0c] sm:$0xf0]  ;;  %v8752_v57 = vor.u32 %v10506_v46, %v8751_v44  ;;  %5391 = vmatpush.bf16.msrb.mxu1 %v8496_v52 }
  0xc0   : > { %v8479_v50 = vld [vmem:[%s11235_s9 + $0xd00] sm:$0xf]  ;;  %v10470_v55 = vld [vmem:[%s11235_s9 + $0xe0c] sm:$0xf0]  ;;  %v8352_v0 = vor.u32 %v10406_v49, %v8351_v47  ;;  %5404 = vmatpush.bf16.msrb.mxu2 %v8624_v53 }
  0xc1   : > { %v8607_v54 = vld [vmem:[%s11235_s9 + $0xe00] sm:$0xf]  ;;  %v321_v56 = vld [vmem:[%s11253_s11 + $0x30] sm:$0xff]  ;;  %v8480_v6 = vor.u32 %v10438_v51, %v8479_v50  ;;  %5417 = vmatpush.bf16.msrb.mxu3 %v8752_v57 }
  0xc2   : > { %v8735_v58 = vld [vmem:[%s11235_s9 + $0xf00] sm:$0xf]  ;;  %v10502_v59 = vld [vmem:[%s11235_s9 + $0xf0c] sm:$0xf0]  ;;  %v1153_v4 = vunpack.c.l.b16 %v321_v56  ;;  %v8608_v8 = vor.u32 %v10470_v55, %v8607_v54  ;;  %v1154_v12 = vunpack.c.h.b16 %v321_v56  ;;  %5379 = vmatpush.bf16.msrb.mxu0 %v8352_v0 }
  0xc3   : > { %v8975_v61 = vld [vmem:[%s11235_s9 + $0x10e0] sm:$0xf]  ;;  %v10562_v62 = vld [vmem:[%s11235_s9 + $0x10ec] sm:$0xf0]  ;;  %v8736_v13 = vor.u32 %v10502_v59, %v8735_v58  ;;  %5392 = vmatpush.bf16.msrb.mxu1 %v8480_v6 }
  0xc4   : > { %v9103_v63 = vld [vmem:[%s11235_s9 + $0x11e0] sm:$0xf]  ;;  %v10594_v1 = vld [vmem:[%s11235_s9 + $0x11ec] sm:$0xf0]  ;;  %v8976_v14 = vor.u32 %v10562_v62, %v8975_v61  ;;  %v11568_v24 = vpack.c.b16 %v1153_v4, %v1153_v4  ;;  %5405 = vmatpush.bf16.msrb.mxu2 %v8608_v8  ;;  %v11575_v32 = vpack.c.b16 %v1154_v12, %v1154_v12 }
  0xc5   : > { %v9231_v2 = vld [vmem:[%s11235_s9 + $0x12e0] sm:$0xf]  ;;  %v10626_v3 = vld [vmem:[%s11235_s9 + $0x12ec] sm:$0xf0]  ;;  %v9104_v16 = vor.u32 %v10594_v1, %v9103_v63  ;;  %5418 = vmatpush.bf16.msrb.mxu3 %v8736_v13 }
  0xc6   : > { %v9359_v9 = vld [vmem:[%s11235_s9 + $0x13e0] sm:$0xf]  ;;  %v10658_v10 = vld [vmem:[%s11235_s9 + $0x13ec] sm:$0xf0]  ;;  %v9232_v17 = vor.u32 %v10626_v3, %v9231_v2  ;;  %5424 = vmatpush.bf16.msra.mxu0 %v8976_v14  ;;  %5393 = vmatmul.bf16.vlgmr.msrb.gmra.mxu1 %v11575_v32 }
  0xc7   : > { %v8959_v18 = vld [vmem:[%s11235_s9 + $0x10c0] sm:$0xf]  ;;  %v10558_v19 = vld [vmem:[%s11235_s9 + $0x10cc] sm:$0xf0]  ;;  %v9360_v23 = vor.u32 %v10658_v10, %v9359_v9  ;;  %5437 = vmatpush.bf16.msra.mxu1 %v9104_v16  ;;  %5380 = vmatmul.bf16.vlgmr.msrb.gmra.mxu0 %v11568_v24 }
  0xc8   : > { %v9087_v20 = vld [vmem:[%s11235_s9 + $0x11c0] sm:$0xf]  ;;  %v10590_v25 = vld [vmem:[%s11235_s9 + $0x11cc] sm:$0xf0]  ;;  %v8960_v37 = vor.u32 %v10558_v19, %v8959_v18  ;;  %5450 = vmatpush.bf16.msra.mxu2 %v9232_v17  ;;  %5419 = vmatmul.bf16.vlgmr.msrb.gmra.mxu3 %v11579_v36 }
  0xc9   : > { %v9215_v27 = vld [vmem:[%s11235_s9 + $0x12c0] sm:$0xf]  ;;  %v10622_v28 = vld [vmem:[%s11235_s9 + $0x12cc] sm:$0xf0]  ;;  %v9088_v38 = vor.u32 %v10590_v25, %v9087_v20  ;;  %5463 = vmatpush.bf16.msra.mxu3 %v9360_v23  ;;  %5406 = vmatmul.bf16.vlgmr.msrb.gmra.mxu2 %v11573_v29 }
  0xca   : > { %v9343_v33 = vld [vmem:[%s11235_s9 + $0x13c0] sm:$0xf]  ;;  %v10654_v35 = vld [vmem:[%s11235_s9 + $0x13cc] sm:$0xf0]  ;;  %v9216_v40 = vor.u32 %v10622_v28, %v9215_v27  ;;  %5425 = vmatpush.bf16.msra.mxu0 %v8960_v37 }
  0xcb   : > { %v8943_v41 = vld [vmem:[%s11235_s9 + $0x10a0] sm:$0xf]  ;;  %v10554_v44 = vld [vmem:[%s11235_s9 + $0x10ac] sm:$0xf0]  ;;  %v9344_v47 = vor.u32 %v10654_v35, %v9343_v33  ;;  %5438 = vmatpush.bf16.msra.mxu1 %v9088_v38 }
  0xcc   : > { %v9071_v46 = vld [vmem:[%s11235_s9 + $0x11a0] sm:$0xf]  ;;  %v10586_v48 = vld [vmem:[%s11235_s9 + $0x11ac] sm:$0xf0]  ;;  %v8944_v53 = vor.u32 %v10554_v44, %v8943_v41  ;;  %5451 = vmatpush.bf16.msra.mxu2 %v9216_v40 }
  0xcd   : > { %v9199_v49 = vld [vmem:[%s11235_s9 + $0x12a0] sm:$0xf]  ;;  %v10618_v50 = vld [vmem:[%s11235_s9 + $0x12ac] sm:$0xf0]  ;;  %v9072_v54 = vor.u32 %v10586_v48, %v9071_v46  ;;  %5464 = vmatpush.bf16.msra.mxu3 %v9344_v47 }
  0xce   : > { %v9327_v51 = vld [vmem:[%s11235_s9 + $0x13a0] sm:$0xf]  ;;  %v10650_v52 = vld [vmem:[%s11235_s9 + $0x13ac] sm:$0xf0]  ;;  %v9200_v55 = vor.u32 %v10618_v50, %v9199_v49  ;;  %5426 = vmatpush.bf16.msra.mxu0 %v8944_v53 }
  0xcf   : > { %v8927_v56 = vld [vmem:[%s11235_s9 + $0x1080] sm:$0xf]  ;;  %v10550_v57 = vld [vmem:[%s11235_s9 + $0x108c] sm:$0xf0]  ;;  %v9328_v59 = vor.u32 %v10650_v52, %v9327_v51  ;;  %5439 = vmatpush.bf16.msra.mxu1 %v9072_v54 }
  0xd0   : > { %v9055_v58 = vld [vmem:[%s11235_s9 + $0x1180] sm:$0xf]  ;;  %v10582_v60 = vld [vmem:[%s11235_s9 + $0x118c] sm:$0xf0]  ;;  %v8928_v1 = vor.u32 %v10550_v57, %v8927_v56  ;;  %5452 = vmatpush.bf16.msra.mxu2 %v9200_v55 }
  0xd1   : > { %v9183_v61 = vld [vmem:[%s11235_s9 + $0x1280] sm:$0xf]  ;;  %v10614_v62 = vld [vmem:[%s11235_s9 + $0x128c] sm:$0xf0]  ;;  %v9056_v2 = vor.u32 %v10582_v60, %v9055_v58  ;;  %5465 = vmatpush.bf16.msra.mxu3 %v9328_v59 }
  0xd2   : > { %v9311_v63 = vld [vmem:[%s11235_s9 + $0x1380] sm:$0xf]  ;;  %v10646_v0 = vld [vmem:[%s11235_s9 + $0x138c] sm:$0xf0]  ;;  %v9184_v3 = vor.u32 %v10614_v62, %v9183_v61  ;;  %5427 = vmatpush.bf16.msra.mxu0 %v8928_v1 }
  0xd3   : > { %v8911_v4 = vld [vmem:[%s11235_s9 + $0x1060] sm:$0xf]  ;;  %v10546_v6 = vld [vmem:[%s11235_s9 + $0x106c] sm:$0xf0]  ;;  %v9312_v9 = vor.u32 %v10646_v0, %v9311_v63  ;;  %5440 = vmatpush.bf16.msra.mxu1 %v9056_v2  ;;  %v324_v2 = vld [vmem:[%s11253_s11 + $0x48] sm:$0xff] }
  0xd4   : > { %v9039_v8 = vld [vmem:[%s11235_s9 + $0x1160] sm:$0xf]  ;;  %v10578_v10 = vld [vmem:[%s11235_s9 + $0x116c] sm:$0xf0]  ;;  %v8912_v15 = vor.u32 %v10546_v6, %v8911_v4  ;;  %5453 = vmatpush.bf16.msra.mxu2 %v9184_v3 }
  0xd5   : > { %v9167_v11 = vld [vmem:[%s11235_s9 + $0x1260] sm:$0xf]  ;;  %v10610_v12 = vld [vmem:[%s11235_s9 + $0x126c] sm:$0xf0]  ;;  %v9040_v16 = vor.u32 %v10578_v10, %v9039_v8  ;;  %5466 = vmatpush.bf16.msra.mxu3 %v9312_v9 }
  0xd6   : > { %v9295_v13 = vld [vmem:[%s11235_s9 + $0x1360] sm:$0xf]  ;;  %v10642_v14 = vld [vmem:[%s11235_s9 + $0x136c] sm:$0xf0]  ;;  %v9168_v17 = vor.u32 %v10610_v12, %v9167_v11  ;;  %5428 = vmatpush.bf16.msra.mxu0 %v8912_v15 }
  0xd7   : > { %v8895_v18 = vld [vmem:[%s11235_s9 + $0x1040] sm:$0xf]  ;;  %v10542_v19 = vld [vmem:[%s11235_s9 + $0x104c] sm:$0xf0]  ;;  %v9296_v23 = vor.u32 %v10642_v14, %v9295_v13  ;;  %5441 = vmatpush.bf16.msra.mxu1 %v9040_v16 }
  0xd8   : > { %v9023_v20 = vld [vmem:[%s11235_s9 + $0x1140] sm:$0xf]  ;;  %v10574_v25 = vld [vmem:[%s11235_s9 + $0x114c] sm:$0xf0]  ;;  %v8896_v37 = vor.u32 %v10542_v19, %v8895_v18  ;;  %5454 = vmatpush.bf16.msra.mxu2 %v9168_v17  ;;  %v1159_v17 = vunpack.c.l.b16 %v324_v2 }
  0xd9   : > { %v9151_v27 = vld [vmem:[%s11235_s9 + $0x1240] sm:$0xf]  ;;  %v10606_v28 = vld [vmem:[%s11235_s9 + $0x124c] sm:$0xf0]  ;;  %v9024_v38 = vor.u32 %v10574_v25, %v9023_v20  ;;  %5467 = vmatpush.bf16.msra.mxu3 %v9296_v23  ;;  %v1160_v23 = vunpack.c.h.b16 %v324_v2 }
  0xda   : > { %v9279_v33 = vld [vmem:[%s11235_s9 + $0x1340] sm:$0xf]  ;;  %v10638_v35 = vld [vmem:[%s11235_s9 + $0x134c] sm:$0xf0]  ;;  %v9152_v40 = vor.u32 %v10606_v28, %v9151_v27  ;;  %5429 = vmatpush.bf16.msra.mxu0 %v8896_v37 }
  0xdb   : > { %v8879_v41 = vld [vmem:[%s11235_s9 + $0x1020] sm:$0xf]  ;;  %v10538_v44 = vld [vmem:[%s11235_s9 + $0x102c] sm:$0xf0]  ;;  %v9280_v47 = vor.u32 %v10638_v35, %v9279_v33  ;;  %5442 = vmatpush.bf16.msra.mxu1 %v9024_v38 }
  0xdc   : > { %v9007_v46 = vld [vmem:[%s11235_s9 + $0x1120] sm:$0xf]  ;;  %v10570_v48 = vld [vmem:[%s11235_s9 + $0x112c] sm:$0xf0]  ;;  %v8880_v54 = vor.u32 %v10538_v44, %v8879_v41  ;;  %5455 = vmatpush.bf16.msra.mxu2 %v9152_v40 }
  0xdd   : > { %v9135_v49 = vld [vmem:[%s11235_s9 + $0x1220] sm:$0xf]  ;;  %v10602_v50 = vld [vmem:[%s11235_s9 + $0x122c] sm:$0xf0]  ;;  %v9008_v58 = vor.u32 %v10570_v48, %v9007_v46  ;;  %5468 = vmatpush.bf16.msra.mxu3 %v9280_v47  ;;  %v11651_v46 = vpack.c.b16 %v1159_v17, %v1159_v17 }
  0xde   : > { %v9263_v51 = vld [vmem:[%s11235_s9 + $0x1320] sm:$0xf]  ;;  %v10634_v52 = vld [vmem:[%s11235_s9 + $0x132c] sm:$0xf0]  ;;  %v9136_v59 = vor.u32 %v10602_v50, %v9135_v49  ;;  %5430 = vmatpush.bf16.msra.mxu0 %v8880_v54  ;;  %v11657_v50 = vpack.c.b16 %v1160_v23, %v1160_v23 }
  0xdf   : > { %v8863_v53 = vld [vmem:[%s11235_s9 + $0x1000] sm:$0xf]  ;;  %v10534_v55 = vld [vmem:[%s11235_s9 + $0x100c] sm:$0xf0]  ;;  %v9264_v63 = vor.u32 %v10634_v52, %v9263_v51  ;;  %5443 = vmatpush.bf16.msra.mxu1 %v9008_v58 }
  0xe0   : > { %v8991_v56 = vld [vmem:[%s11235_s9 + $0x1100] sm:$0xf]  ;;  %v10566_v57 = vld [vmem:[%s11235_s9 + $0x110c] sm:$0xf0]  ;;  %v8864_v8 = vor.u32 %v10534_v55, %v8863_v53  ;;  %5456 = vmatpush.bf16.msra.mxu2 %v9136_v59 }
  0xe1   : > { %v9119_v60 = vld [vmem:[%s11235_s9 + $0x1200] sm:$0xf]  ;;  %v10598_v61 = vld [vmem:[%s11235_s9 + $0x120c] sm:$0xf0]  ;;  %v8992_v13 = vor.u32 %v10566_v57, %v8991_v56  ;;  %5469 = vmatpush.bf16.msra.mxu3 %v9264_v63 }
  0xe2   : > { %v323_v62 = vld [vmem:[%s11253_s11 + $0x40] sm:$0xff]  ;;  %v10630_v1 = vld [vmem:[%s11235_s9 + $0x130c] sm:$0xf0]  ;;  %v9120_v14 = vor.u32 %v10598_v61, %v9119_v60  ;;  %5431 = vmatpush.bf16.msra.mxu0 %v8864_v8 }
  0xe3   : > { %v9247_v0 = vld [vmem:[%s11235_s9 + $0x1300] sm:$0xf]  ;;  %v10690_v4 = vld [vmem:[%s11235_s9 + $0x14ec] sm:$0xf0]  ;;  %v1157_v12 = vunpack.c.l.b16 %v323_v62  ;;  %v1158_v18 = vunpack.c.h.b16 %v323_v62  ;;  %5444 = vmatpush.bf16.msra.mxu1 %v8992_v13 }
  0xe4   : > { %v9487_v3 = vld [vmem:[%s11235_s9 + $0x14e0] sm:$0xf]  ;;  %v10722_v9 = vld [vmem:[%s11235_s9 + $0x15ec] sm:$0xf0]  ;;  %v9248_v19 = vor.u32 %v10630_v1, %v9247_v0  ;;  %5457 = vmatpush.bf16.msra.mxu2 %v9120_v14 }
  0xe5   : > { %v9615_v6 = vld [vmem:[%s11235_s9 + $0x15e0] sm:$0xf]  ;;  %v10754_v11 = vld [vmem:[%s11235_s9 + $0x16ec] sm:$0xf0]  ;;  %v9488_v20 = vor.u32 %v10690_v4, %v9487_v3  ;;  %v11646_v38 = vpack.c.b16 %v1157_v12, %v1157_v12  ;;  %v11653_v47 = vpack.c.b16 %v1158_v18, %v1158_v18 }
  0xe6   : > { %v9743_v10 = vld [vmem:[%s11235_s9 + $0x16e0] sm:$0xf]  ;;  %v10786_v16 = vld [vmem:[%s11235_s9 + $0x17ec] sm:$0xf0]  ;;  %v9616_v25 = vor.u32 %v10722_v9, %v9615_v6  ;;  %5470 = vmatpush.bf16.msra.mxu3 %v9248_v19 }
  0xe7   : > { %v9871_v15 = vld [vmem:[%s11235_s9 + $0x17e0] sm:$0xf]  ;;  %v9744_v27 = vor.u32 %v10754_v11, %v9743_v10  ;;  %v10686_v33 = vld [vmem:[%s11235_s9 + $0x14cc] sm:$0xf0]  ;;  %5476 = vmatpush.bf16.msrb.mxu0 %v9488_v20  ;;  %5458 = vmatmul.bf16.vlgmr.msra.gmra.mxu2 %v11651_v46 }
  0xe8   : > { %v9471_v28 = vld [vmem:[%s11235_s9 + $0x14c0] sm:$0xf]  ;;  %v9872_v37 = vor.u32 %v10786_v16, %v9871_v15  ;;  %v10718_v40 = vld [vmem:[%s11235_s9 + $0x15cc] sm:$0xf0]  ;;  %5489 = vmatpush.bf16.msrb.mxu1 %v9616_v25  ;;  %5432 = vmatmul.bf16.vlgmr.msra.gmra.mxu0 %v11646_v38 }
  0xe9   : > { %v9599_v35 = vld [vmem:[%s11235_s9 + $0x15c0] sm:$0xf]  ;;  %v10750_v44 = vld [vmem:[%s11235_s9 + $0x16cc] sm:$0xf0]  ;;  %v9472_v51 = vor.u32 %v10686_v33, %v9471_v28  ;;  %5502 = vmatpush.bf16.msrb.mxu2 %v9744_v27  ;;  %5445 = vmatmul.bf16.vlgmr.msra.gmra.mxu1 %v11653_v47 }
  0xea   : > { %v9727_v41 = vld [vmem:[%s11235_s9 + $0x16c0] sm:$0xf]  ;;  %v10782_v49 = vld [vmem:[%s11235_s9 + $0x17cc] sm:$0xf0]  ;;  %v9600_v52 = vor.u32 %v10718_v40, %v9599_v35  ;;  %5515 = vmatpush.bf16.msrb.mxu3 %v9872_v37 }
  0xeb   : > { %v9855_v48 = vld [vmem:[%s11235_s9 + $0x17c0] sm:$0xf]  ;;  %v9728_v53 = vor.u32 %v10750_v44, %v9727_v41  ;;  %v10682_v55 = vld [vmem:[%s11235_s9 + $0x14ac] sm:$0xf0]  ;;  %5471 = vmatmul.bf16.vlgmr.msra.gmra.mxu3 %v11657_v50  ;;  %5477 = vmatpush.bf16.msrb.mxu0 %v9472_v51 }
  0xec   : > { %v9455_v54 = vld [vmem:[%s11235_s9 + $0x14a0] sm:$0xf]  ;;  %v9856_v57 = vor.u32 %v10782_v49, %v9855_v48  ;;  %v10714_v58 = vld [vmem:[%s11235_s9 + $0x15ac] sm:$0xf0]  ;;  %5490 = vmatpush.bf16.msrb.mxu1 %v9600_v52 }
  0xed   : > { %v9583_v56 = vld [vmem:[%s11235_s9 + $0x15a0] sm:$0xf]  ;;  %v10746_v60 = vld [vmem:[%s11235_s9 + $0x16ac] sm:$0xf0]  ;;  %v9456_v63 = vor.u32 %v10682_v55, %v9455_v54  ;;  %5503 = vmatpush.bf16.msrb.mxu2 %v9728_v53 }
  0xee   : > { %v9711_v59 = vld [vmem:[%s11235_s9 + $0x16a0] sm:$0xf]  ;;  %v10778_v62 = vld [vmem:[%s11235_s9 + $0x17ac] sm:$0xf0]  ;;  %v9584_v0 = vor.u32 %v10714_v58, %v9583_v56  ;;  %5516 = vmatpush.bf16.msrb.mxu3 %v9856_v57 }
  0xef   : > { %v9839_v61 = vld [vmem:[%s11235_s9 + $0x17a0] sm:$0xf]  ;;  %v9712_v1 = vor.u32 %v10746_v60, %v9711_v59  ;;  %v10678_v3 = vld [vmem:[%s11235_s9 + $0x148c] sm:$0xf0]  ;;  %5478 = vmatpush.bf16.msrb.mxu0 %v9456_v63  ;;  %v5225_v55 = vpop.f32.mrf.mxu0  ;;  %v5238_v57 = vpop.f32.mrf.mxu1 }
  0xf0   : > { %v9439_v2 = vld [vmem:[%s11235_s9 + $0x1480] sm:$0xf]  ;;  %v9840_v6 = vor.u32 %v10778_v62, %v9839_v61  ;;  %v10710_v8 = vld [vmem:[%s11235_s9 + $0x158c] sm:$0xf0]  ;;  %5491 = vmatpush.bf16.msrb.mxu1 %v9584_v0  ;;  %v5239_v63 = vadd.f32 %v5238_v57, %v5225_v55  ;;  %v5251_v0 = vpop.f32.mrf.mxu2  ;;  %v7185_v57 = vld [vmem:[%s11235_s9 + $0x2f0] sm:$0xf0] }
  0xf1   : > { %v9567_v4 = vld [vmem:[%s11235_s9 + $0x1580] sm:$0xf]  ;;  %v10742_v10 = vld [vmem:[%s11235_s9 + $0x168c] sm:$0xf0]  ;;  %v9440_v13 = vor.u32 %v10678_v3, %v9439_v2  ;;  %5504 = vmatpush.bf16.msrb.mxu2 %v9712_v1 }
  0xf2   : > { %v9695_v9 = vld [vmem:[%s11235_s9 + $0x1680] sm:$0xf]  ;;  %v10774_v12 = vld [vmem:[%s11235_s9 + $0x178c] sm:$0xf0]  ;;  %v9568_v14 = vor.u32 %v10710_v8, %v9567_v4  ;;  %5517 = vmatpush.bf16.msrb.mxu3 %v9840_v6  ;;  %v5264_v6 = vpop.f32.mrf.mxu3 }
  0xf3   : > { %v9823_v11 = vld [vmem:[%s11235_s9 + $0x1780] sm:$0xf]  ;;  %v9696_v15 = vor.u32 %v10742_v10, %v9695_v9  ;;  %v10674_v17 = vld [vmem:[%s11235_s9 + $0x146c] sm:$0xf0]  ;;  %5479 = vmatpush.bf16.msrb.mxu0 %v9440_v13 }
  0xf4   : > { %v9423_v16 = vld [vmem:[%s11235_s9 + $0x1460] sm:$0xf]  ;;  %v9824_v19 = vor.u32 %v10774_v12, %v9823_v11  ;;  %v10706_v20 = vld [vmem:[%s11235_s9 + $0x156c] sm:$0xf0]  ;;  %5492 = vmatpush.bf16.msrb.mxu1 %v9568_v14  ;;  %v5252_v11 = vadd.f32 %v5251_v0, %v5239_v63 }
  0xf5   : > { %v9551_v18 = vld [vmem:[%s11235_s9 + $0x1560] sm:$0xf]  ;;  %v10738_v25 = vld [vmem:[%s11235_s9 + $0x166c] sm:$0xf0]  ;;  %v9424_v33 = vor.u32 %v10674_v17, %v9423_v16  ;;  %5505 = vmatpush.bf16.msrb.mxu2 %v9696_v15 }
  0xf6   : > { %v9679_v23 = vld [vmem:[%s11235_s9 + $0x1660] sm:$0xf]  ;;  %v10770_v28 = vld [vmem:[%s11235_s9 + $0x176c] sm:$0xf0]  ;;  %v9552_v35 = vor.u32 %v10706_v20, %v9551_v18  ;;  %5518 = vmatpush.bf16.msrb.mxu3 %v9824_v19 }
  0xf7   : > { %v9807_v27 = vld [vmem:[%s11235_s9 + $0x1760] sm:$0xf]  ;;  %v9680_v37 = vor.u32 %v10738_v25, %v9679_v23  ;;  %v10670_v41 = vld [vmem:[%s11235_s9 + $0x144c] sm:$0xf0]  ;;  %5480 = vmatpush.bf16.msrb.mxu0 %v9424_v33  ;;  %v11710_v23 = vadd.f32 %v5264_v6, %v5252_v11  ;;  %v326_v33 = vld [vmem:[%s11253_s11 + $0x58] sm:$0xff] }
  0xf8   : > { %v9407_v40 = vld [vmem:[%s11235_s9 + $0x1440] sm:$0xf]  ;;  %v9808_v48 = vor.u32 %v10770_v28, %v9807_v27  ;;  %v10702_v49 = vld [vmem:[%s11235_s9 + $0x154c] sm:$0xf0]  ;;  %5493 = vmatpush.bf16.msrb.mxu1 %v9552_v35  ;;  %v1164_v63 = vunpack.c.h.b16 %v326_v33  ;;  %v10044_v6 = vld [vmem:[%s11235_s9 + $0xc4] sm:$0xf] }
  0xf9   : > { %v9535_v44 = vld [vmem:[%s11235_s9 + $0x1540] sm:$0xf]  ;;  %v10734_v52 = vld [vmem:[%s11235_s9 + $0x164c] sm:$0xf0]  ;;  %v9408_v56 = vor.u32 %v10670_v41, %v9407_v40  ;;  %5506 = vmatpush.bf16.msrb.mxu2 %v9680_v37  ;;  %v10048_v40 = vld [vmem:[%s11235_s9 + $0xe4] sm:$0xf]  ;;  %v5227_v41 = vpop.f32.mrf.mxu0 }
  0xfa   : > { %v9663_v51 = vld [vmem:[%s11235_s9 + $0x1640] sm:$0xf]  ;;  %v10766_v54 = vld [vmem:[%s11235_s9 + $0x174c] sm:$0xf0]  ;;  %v9536_v58 = vor.u32 %v10702_v49, %v9535_v44  ;;  %5519 = vmatpush.bf16.msrb.mxu3 %v9808_v48  ;;  %v6929_v48 = vld [vmem:[%s11235_s9 + $0xf0] sm:$0xf0]  ;;  %v5266_v0 = vpop.f32.mrf.mxu3 }
  0xfb   : > { %v9791_v53 = vld [vmem:[%s11235_s9 + $0x1740] sm:$0xf]  ;;  %v9664_v59 = vor.u32 %v10734_v52, %v9663_v51  ;;  %v10666_v61 = vld [vmem:[%s11235_s9 + $0x142c] sm:$0xf0]  ;;  %5481 = vmatpush.bf16.msrb.mxu0 %v9408_v56  ;;  %v10080_v49 = vld [vmem:[%s11235_s9 + $0x1e4] sm:$0xf] }
  0xfc   : > { %v9391_v60 = vld [vmem:[%s11235_s9 + $0x1420] sm:$0xf]  ;;  %v9792_v1 = vor.u32 %v10766_v54, %v9791_v53  ;;  %v10698_v2 = vld [vmem:[%s11235_s9 + $0x152c] sm:$0xf0]  ;;  %5494 = vmatpush.bf16.msrb.mxu1 %v9536_v58  ;;  %v7057_v51 = vld [vmem:[%s11235_s9 + $0x1f0] sm:$0xf0]  ;;  %v5240_v53 = vpop.f32.mrf.mxu1  ;;  %v1163_v58 = vunpack.c.l.b16 %v326_v33 }
  0xfd   : > { %v9519_v62 = vld [vmem:[%s11235_s9 + $0x1520] sm:$0xf]  ;;  %v10730_v4 = vld [vmem:[%s11235_s9 + $0x162c] sm:$0xf0]  ;;  %v9392_v12 = vor.u32 %v10666_v61, %v9391_v60  ;;  %5507 = vmatpush.bf16.msrb.mxu2 %v9664_v59  ;;  %v10112_v56 = vld [vmem:[%s11235_s9 + $0x2e4] sm:$0xf]  ;;  %v5253_v60 = vpop.f32.mrf.mxu2 }
  0xfe   : > { %v9647_v3 = vld [vmem:[%s11235_s9 + $0x1620] sm:$0xf]  ;;  %v10762_v9 = vld [vmem:[%s11235_s9 + $0x172c] sm:$0xf0]  ;;  %v9520_v16 = vor.u32 %v10698_v2, %v9519_v62  ;;  %5520 = vmatpush.bf16.msrb.mxu3 %v9792_v1  ;;  %v6932_v1 = vor.u32 %v10048_v40, %v6929_v48  ;;  %v7060_v2 = vor.u32 %v10080_v49, %v7057_v51  ;;  %v10076_v11 = vld [vmem:[%s11235_s9 + $0x1c4] sm:$0xf] }
  0xff   : > { %v9775_v8 = vld [vmem:[%s11235_s9 + $0x1720] sm:$0xf]  ;;  %v10662_v13 = vld [vmem:[%s11235_s9 + $0x140c] sm:$0xf0]  ;;  %v9648_v17 = vor.u32 %v10730_v4, %v9647_v3  ;;  %5482 = vmatpush.bf16.msrb.mxu0 %v9392_v12  ;;  %v7041_v12 = vld [vmem:[%s11235_s9 + $0x1d0] sm:$0xf0] }
 0x100   : > { %v9375_v10 = vld [vmem:[%s11235_s9 + $0x1400] sm:$0xf]  ;;  %v10694_v15 = vld [vmem:[%s11235_s9 + $0x150c] sm:$0xf0]  ;;  %v9776_v25 = vor.u32 %v10762_v9, %v9775_v8  ;;  %5495 = vmatpush.bf16.msrb.mxu1 %v9520_v16  ;;  %v7188_v8 = vor.u32 %v10112_v56, %v7185_v57  ;;  %v7169_v16 = vld [vmem:[%s11235_s9 + $0x2d0] sm:$0xf0] }
 0x101   : > { %v9503_v14 = vld [vmem:[%s11235_s9 + $0x1500] sm:$0xf]  ;;  %v10726_v19 = vld [vmem:[%s11235_s9 + $0x160c] sm:$0xf0]  ;;  %v9376_v44 = vor.u32 %v10662_v13, %v9375_v10  ;;  %5508 = vmatpush.bf16.msrb.mxu2 %v9648_v17  ;;  %v6913_v10 = vld [vmem:[%s11235_s9 + $0xd0] sm:$0xf0]  ;;  %v11731_v13 = vpack.c.b16 %v1163_v58, %v1163_v58  ;;  %v11737_v17 = vpack.c.b16 %v1164_v63, %v1164_v63 }
 0x102   : > { %v9631_v18 = vld [vmem:[%s11235_s9 + $0x1600] sm:$0xf]  ;;  %v325_v20 = vld [vmem:[%s11253_s11 + $0x50] sm:$0xff]  ;;  %v9504_v54 = vor.u32 %v10694_v15, %v9503_v14  ;;  %5521 = vmatpush.bf16.msrb.mxu3 %v9776_v25  ;;  %v10108_v15 = vld [vmem:[%s11235_s9 + $0x2c4] sm:$0xf] }
 0x103   : > { %v9759_v27 = vld [vmem:[%s11235_s9 + $0x1700] sm:$0xf]  ;;  %v10758_v28 = vld [vmem:[%s11235_s9 + $0x170c] sm:$0xf0]  ;;  %v1161_v52 = vunpack.c.l.b16 %v325_v20  ;;  %v9632_v55 = vor.u32 %v10726_v19, %v9631_v18  ;;  %v1162_v59 = vunpack.c.h.b16 %v325_v20  ;;  %5483 = vmatpush.bf16.msrb.mxu0 %v9376_v44  ;;  %v6916_v19 = vor.u32 %v10044_v6, %v6913_v10  ;;  %v7025_v40 = vld [vmem:[%s11235_s9 + $0x1b0] sm:$0xf0] }
 0x104   : > { %v9999_v35 = vld [vmem:[%s11235_s9 + $0x18e0] sm:$0xf]  ;;  %v10818_v37 = vld [vmem:[%s11235_s9 + $0x18ec] sm:$0xf0]  ;;  %v9760_v61 = vor.u32 %v10758_v28, %v9759_v27  ;;  %5496 = vmatpush.bf16.msrb.mxu1 %v9504_v54  ;;  %v7044_v20 = vor.u32 %v10076_v11, %v7041_v12  ;;  %v10040_v28 = vld [vmem:[%s11235_s9 + $0xa4] sm:$0xf]  ;;  %v7172_v33 = vor.u32 %v10108_v15, %v7169_v16 }
 0x105   : > { %v10000_v62 = vor.u32 %v10818_v37, %v9999_v35  ;;  %v9983_v3 = vld [vmem:[%s11235_s9 + $0x18c0] sm:$0xf]  ;;  %v10814_v4 = vld [vmem:[%s11235_s9 + $0x18cc] sm:$0xf0]  ;;  %v11726_v9 = vpack.c.b16 %v1161_v52, %v1161_v52  ;;  %5509 = vmatpush.bf16.msrb.mxu2 %v9632_v55  ;;  %v11733_v14 = vpack.c.b16 %v1162_v59, %v1162_v59  ;;  %v6897_v35 = vld [vmem:[%s11235_s9 + $0xb0] sm:$0xf0]  ;;  %v5290_v6 = vpop.f32.mrf.mxu1 }
 0x106   : > { %5522 = vmatpush.bf16.msrb.mxu3 %v9760_v61  ;;  %v9984_v18 = vor.u32 %v10814_v4, %v9983_v3  ;;  %v9967_v25 = vld [vmem:[%s11235_s9 + $0x18a0] sm:$0xf]  ;;  %v10810_v27 = vld [vmem:[%s11235_s9 + $0x18ac] sm:$0xf0]  ;;  %v10072_v37 = vld [vmem:[%s11235_s9 + $0x1a4] sm:$0xf]  ;;  %v6900_v49 = vor.u32 %v10040_v28, %v6897_v35 }
 0x107   : > { %5528 = vmatpush.bf16.msra.mxu0 %v10000_v62  ;;  %5497 = vmatmul.bf16.vlgmr.msrb.gmra.mxu1 %v11733_v14  ;;  %v10104_v41 = vld [vmem:[%s11235_s9 + $0x2a4] sm:$0xf]  ;;  %v7153_v44 = vld [vmem:[%s11235_s9 + $0x2b0] sm:$0xf0]  ;;  %v9968_v48 = vor.u32 %v10810_v27, %v9967_v25  ;;  %v7028_v51 = vor.u32 %v10072_v37, %v7025_v40  ;;  %v9951_v52 = vld [vmem:[%s11235_s9 + $0x1880] sm:$0xf]  ;;  %v5277_v62 = vpop.f32.mrf.mxu0 }
 0x108   : > { %5541 = vmatpush.bf16.msra.mxu1 %v6932_v1  ;;  %5484 = vmatmul.bf16.vlgmr.msrb.gmra.mxu0 %v11726_v9  ;;  %v10806_v53 = vld [vmem:[%s11235_s9 + $0x188c] sm:$0xf0]  ;;  %v10036_v54 = vld [vmem:[%s11235_s9 + $0x84] sm:$0xf]  ;;  %v7156_v55 = vor.u32 %v10104_v41, %v7153_v44  ;;  %v6881_v56 = vld [vmem:[%s11235_s9 + $0x90] sm:$0xf0]  ;;  %v5278_v4 = vadd.f32 %v5277_v62, %v11710_v23 }
 0x109   : > { %5554 = vmatpush.bf16.msra.mxu2 %v7060_v2  ;;  %5523 = vmatmul.bf16.vlgmr.msrb.gmra.mxu3 %v11737_v17  ;;  %v10068_v57 = vld [vmem:[%s11235_s9 + $0x184] sm:$0xf]  ;;  %v7009_v58 = vld [vmem:[%s11235_s9 + $0x190] sm:$0xf0]  ;;  %v9952_v61 = vor.u32 %v10806_v53, %v9951_v52  ;;  %v6884_v63 = vor.u32 %v10036_v54, %v6881_v56  ;;  %v9935_v1 = vld [vmem:[%s11235_s9 + $0x1860] sm:$0xf] }
 0x10a   : > { %5567 = vmatpush.bf16.msra.mxu3 %v7188_v8  ;;  %5510 = vmatmul.bf16.vlgmr.msrb.gmra.mxu2 %v11731_v13  ;;  %v10100_v59 = vld [vmem:[%s11235_s9 + $0x284] sm:$0xf]  ;;  %v7137_v60 = vld [vmem:[%s11235_s9 + $0x290] sm:$0xf0]  ;;  %v7012_v0 = vor.u32 %v10068_v57, %v7009_v58  ;;  %v10802_v2 = vld [vmem:[%s11235_s9 + $0x186c] sm:$0xf0] }
 0x10b   : > { %5529 = vmatpush.bf16.msra.mxu0 %v9984_v18  ;;  %v10032_v3 = vld [vmem:[%s11235_s9 + $0x64] sm:$0xf]  ;;  %v7140_v8 = vor.u32 %v10100_v59, %v7137_v60  ;;  %v6865_v10 = vld [vmem:[%s11235_s9 + $0x70] sm:$0xf0]  ;;  %v5291_v18 = vadd.f32 %v5290_v6, %v5278_v4  ;;  %v9919_v25 = vld [vmem:[%s11235_s9 + $0x1840] sm:$0xf] }
 0x10c   : > { %5542 = vmatpush.bf16.msra.mxu1 %v6916_v19  ;;  %v10064_v11 = vld [vmem:[%s11235_s9 + $0x164] sm:$0xf]  ;;  %v6993_v12 = vld [vmem:[%s11235_s9 + $0x170] sm:$0xf0]  ;;  %v9936_v19 = vor.u32 %v10802_v2, %v9935_v1  ;;  %v6868_v23 = vor.u32 %v10032_v3, %v6865_v10  ;;  %v10798_v27 = vld [vmem:[%s11235_s9 + $0x184c] sm:$0xf0] }
 0x10d   : > { %5555 = vmatpush.bf16.msra.mxu2 %v7044_v20  ;;  %v10096_v15 = vld [vmem:[%s11235_s9 + $0x264] sm:$0xf]  ;;  %v7121_v16 = vld [vmem:[%s11235_s9 + $0x270] sm:$0xf0]  ;;  %v6996_v20 = vor.u32 %v10064_v11, %v6993_v12  ;;  %v9920_v52 = vor.u32 %v10798_v27, %v9919_v25  ;;  %v9903_v57 = vld [vmem:[%s11235_s9 + $0x1820] sm:$0xf]  ;;  %v5292_v60 = vpop.f32.mrf.mxu1 }
 0x10e   : > { %5568 = vmatpush.bf16.msra.mxu3 %v7172_v33  ;;  %v10028_v28 = vld [vmem:[%s11235_s9 + $0x44] sm:$0xf]  ;;  %v5303_v33 = vpop.f32.mrf.mxu2  ;;  %v7124_v35 = vor.u32 %v10096_v15, %v7121_v16  ;;  %v6849_v37 = vld [vmem:[%s11235_s9 + $0x50] sm:$0xf0]  ;;  %v10794_v58 = vld [vmem:[%s11235_s9 + $0x182c] sm:$0xf0] }
 0x10f   : > { %5530 = vmatpush.bf16.msra.mxu0 %v9968_v48  ;;  %v10060_v40 = vld [vmem:[%s11235_s9 + $0x144] sm:$0xf]  ;;  %v6977_v41 = vld [vmem:[%s11235_s9 + $0x150] sm:$0xf0]  ;;  %v5304_v44 = vadd.f32 %v5303_v33, %v5291_v18  ;;  %v5316_v48 = vpop.f32.mrf.mxu3  ;;  %v5279_v54 = vpop.f32.mrf.mxu0  ;;  %v9904_v3 = vor.u32 %v10794_v58, %v9903_v57  ;;  %v9887_v4 = vld [vmem:[%s11235_s9 + $0x1800] sm:$0xf] }
 0x110   : > { %5543 = vmatpush.bf16.msra.mxu1 %v6900_v49  ;;  %v10092_v49 = vld [vmem:[%s11235_s9 + $0x244] sm:$0xf]  ;;  %v6980_v56 = vor.u32 %v10060_v40, %v6977_v41  ;;  %v6833_v62 = vld [vmem:[%s11235_s9 + $0x30] sm:$0xf0]  ;;  %v10790_v6 = vld [vmem:[%s11235_s9 + $0x180c] sm:$0xf0] }
 0x111   : > { %5556 = vmatpush.bf16.msra.mxu2 %v7028_v51  ;;  %v7105_v51 = vld [vmem:[%s11235_s9 + $0x250] sm:$0xf0]  ;;  %v11776_v53 = vadd.f32 %v5316_v48, %v5304_v44  ;;  %v10024_v59 = vld [vmem:[%s11235_s9 + $0x24] sm:$0xf]  ;;  %v327_v16 = vld [vmem:[%s11253_s11 + $0x60] sm:$0xf] }
 0x112   : > { %5569 = vmatpush.bf16.msra.mxu3 %v7156_v55  ;;  %v6852_v55 = vor.u32 %v10028_v28, %v6849_v37  ;;  %v10088_v1 = vld [vmem:[%s11235_s9 + $0x224] sm:$0xf]  ;;  %v7089_v2 = vld [vmem:[%s11235_s9 + $0x230] sm:$0xf0]  ;;  %v6836_v10 = vor.u32 %v10024_v59, %v6833_v62  ;;  %v9888_v37 = vor.u32 %v10790_v6, %v9887_v4  ;;  %v1165_v48 = vunpack.c.l.b16 %v327_v16 }
 0x113   : > { %5531 = vmatpush.bf16.msra.mxu0 %v9952_v61  ;;  %v7108_v61 = vor.u32 %v10092_v49, %v7105_v51  ;;  %v6817_v12 = vld [vmem:[%s11235_s9 + $0x10] sm:$0xf0]  ;;  %v10052_v15 = vld [vmem:[%s11235_s9 + $0x104] sm:$0xf] }
 0x114   : > { %5544 = vmatpush.bf16.msra.mxu1 %v6884_v63  ;;  %v10056_v63 = vld [vmem:[%s11235_s9 + $0x124] sm:$0xf]  ;;  %v7073_v25 = vld [vmem:[%s11235_s9 + $0x210] sm:$0xf0] }
 0x115   : > { %5557 = vmatpush.bf16.msra.mxu2 %v7012_v0  ;;  %v6961_v0 = vld [vmem:[%s11235_s9 + $0x130] sm:$0xf0]  ;;  %v10144_v28 = vld [vmem:[%s11235_s9 + $0x3e4] sm:$0xf] }
 0x116   : > { %5570 = vmatpush.bf16.msra.mxu3 %v7140_v8  ;;  %v10020_v8 = vld [vmem:[%s11235_s9 + $0x4] sm:$0xf]  ;;  %v6964_v11 = vor.u32 %v10056_v63, %v6961_v0  ;;  %v5305_v18 = vpop.f32.mrf.mxu2  ;;  %v7313_v33 = vld [vmem:[%s11235_s9 + $0x3f0] sm:$0xf0]  ;;  %v11806_v63 = vpack.c.b16 %v1165_v48, %v1165_v48 }
 0x117   : > { %5532 = vmatpush.bf16.msra.mxu0 %v9936_v19  ;;  %v7092_v19 = vor.u32 %v10088_v1, %v7089_v2  ;;  %v5318_v27 = vpop.f32.mrf.mxu3  ;;  %v7441_v40 = vld [vmem:[%s11235_s9 + $0x4f0] sm:$0xf0]  ;;  %v10208_v41 = vld [vmem:[%s11235_s9 + $0x5e4] sm:$0xf]  ;;  %v6820_v49 = vor.u32 %v10020_v8, %v6817_v12 }
 0x118   : > { %5545 = vmatpush.bf16.msra.mxu1 %v6868_v23  ;;  %v6945_v23 = vld [vmem:[%s11235_s9 + $0x110] sm:$0xf0]  ;;  %v10140_v59 = vld [vmem:[%s11235_s9 + $0x3c4] sm:$0xf] }
 0x119   : > { %5558 = vmatpush.bf16.msra.mxu2 %v6996_v20  ;;  %v10084_v20 = vld [vmem:[%s11235_s9 + $0x204] sm:$0xf]  ;;  %v7569_v44 = vld [vmem:[%s11235_s9 + $0x5f0] sm:$0xf0]  ;;  %v6948_v51 = vor.u32 %v10052_v15, %v6945_v23 }
 0x11a   : > { %5571 = vmatpush.bf16.msra.mxu3 %v7124_v35  ;;  %v10176_v35 = vld [vmem:[%s11235_s9 + $0x4e4] sm:$0xf]  ;;  %v7697_v54 = vld [vmem:[%s11235_s9 + $0x6f0] sm:$0xf0]  ;;  %v7572_v58 = vor.u32 %v10208_v41, %v7569_v44 }
 0x11b   : > { %5533 = vmatpush.bf16.msra.mxu0 %v9920_v52  ;;  %v10240_v52 = vld [vmem:[%s11235_s9 + $0x6e4] sm:$0xf]  ;;  %v7444_v57 = vor.u32 %v10176_v35, %v7441_v40  ;;  %v7297_v60 = vld [vmem:[%s11235_s9 + $0x3d0] sm:$0xf0] }
 0x11c   : > { %5546 = vmatpush.bf16.msra.mxu1 %v6852_v55  ;;  %v7076_v55 = vor.u32 %v10084_v20, %v7073_v25  ;;  %v7700_v62 = vor.u32 %v10240_v52, %v7697_v54  ;;  %v7425_v0 = vld [vmem:[%s11235_s9 + $0x4d0] sm:$0xf0]  ;;  %v10204_v1 = vld [vmem:[%s11235_s9 + $0x5c4] sm:$0xf]  ;;  %v7300_v6 = vor.u32 %v10140_v59, %v7297_v60 }
 0x11d   : > { %5559 = vmatpush.bf16.msra.mxu2 %v6980_v56  ;;  %v7316_v56 = vor.u32 %v10144_v28, %v7313_v33  ;;  %v7553_v2 = vld [vmem:[%s11235_s9 + $0x5d0] sm:$0xf0]  ;;  %v10168_v15 = vld [vmem:[%s11235_s9 + $0x4a4] sm:$0xf] }
 0x11e   : > { %5572 = vmatpush.bf16.msra.mxu3 %v7108_v61  ;;  %v10172_v61 = vld [vmem:[%s11235_s9 + $0x4c4] sm:$0xf]  ;;  %v7681_v4 = vld [vmem:[%s11235_s9 + $0x6d0] sm:$0xf0] }
 0x11f   : > { %5534 = vmatpush.bf16.msra.mxu0 %v9904_v3  ;;  %v10236_v3 = vld [vmem:[%s11235_s9 + $0x6c4] sm:$0xf]  ;;  %v7428_v8 = vor.u32 %v10172_v61, %v7425_v0  ;;  %v7281_v12 = vld [vmem:[%s11235_s9 + $0x3b0] sm:$0xf0] }
 0x120   : > { %5547 = vmatpush.bf16.msra.mxu1 %v6836_v10  ;;  %v7556_v10 = vor.u32 %v10204_v1, %v7553_v2  ;;  %v7684_v16 = vor.u32 %v10236_v3, %v7681_v4  ;;  %v7409_v18 = vld [vmem:[%s11235_s9 + $0x4b0] sm:$0xf0]  ;;  %v10232_v20 = vld [vmem:[%s11235_s9 + $0x6a4] sm:$0xf] }
 0x121   : > { %5560 = vmatpush.bf16.msra.mxu2 %v6964_v11  ;;  %v10136_v11 = vld [vmem:[%s11235_s9 + $0x3a4] sm:$0xf]  ;;  %v7537_v23 = vld [vmem:[%s11235_s9 + $0x5b0] sm:$0xf0]  ;;  %v7412_v28 = vor.u32 %v10168_v15, %v7409_v18 }
 0x122   : > { %5573 = vmatpush.bf16.msra.mxu3 %v7092_v19  ;;  %v10200_v19 = vld [vmem:[%s11235_s9 + $0x5a4] sm:$0xf]  ;;  %v7665_v25 = vld [vmem:[%s11235_s9 + $0x6b0] sm:$0xf0]  ;;  %v7284_v27 = vor.u32 %v10136_v11, %v7281_v12 }
 0x123   : > { %5535 = vmatpush.bf16.msra.mxu0 %v9888_v37  ;;  %v7540_v33 = vor.u32 %v10200_v19, %v7537_v23  ;;  %v10132_v35 = vld [vmem:[%s11235_s9 + $0x384] sm:$0xf]  ;;  %v7265_v37 = vld [vmem:[%s11235_s9 + $0x390] sm:$0xf0]  ;;  %v7668_v41 = vor.u32 %v10232_v20, %v7665_v25 }
 0x124   : > { %5548 = vmatpush.bf16.msra.mxu1 %v6820_v49  ;;  %v10164_v40 = vld [vmem:[%s11235_s9 + $0x484] sm:$0xf]  ;;  %v7393_v44 = vld [vmem:[%s11235_s9 + $0x490] sm:$0xf0] }
 0x125   : > { %5561 = vmatpush.bf16.msra.mxu2 %v6948_v51  ;;  %v10196_v48 = vld [vmem:[%s11235_s9 + $0x584] sm:$0xf]  ;;  %v7521_v49 = vld [vmem:[%s11235_s9 + $0x590] sm:$0xf0]  ;;  %v5329_v51 = vpop.f32.mrf.mxu0 }
 0x126   : > { %5574 = vmatpush.bf16.msra.mxu3 %v7076_v55  ;;  %5536 = vmatmul.bf16.vlgmr.msra.gmra.mxu0 %v11806_v63  ;;  %v10228_v52 = vld [vmem:[%s11235_s9 + $0x684] sm:$0xf]  ;;  %v7649_v54 = vld [vmem:[%s11235_s9 + $0x690] sm:$0xf0]  ;;  %v5330_v55 = vadd.f32 %v5329_v51, %v11776_v53  ;;  %v7524_v59 = vor.u32 %v10196_v48, %v7521_v49 }
 0x127   : > { %5580 = vmatpush.bf16.msrb.mxu0 %v7316_v56  ;;  %5549 = vmatmul.bf16.vlgmr.msra.gmra.mxu1 %v11360_v21  ;;  %v7268_v56 = vor.u32 %v10132_v35, %v7265_v37  ;;  %v10128_v60 = vld [vmem:[%s11235_s9 + $0x364] sm:$0xf]  ;;  %v7249_v61 = vld [vmem:[%s11235_s9 + $0x370] sm:$0xf0]  ;;  %v7652_v0 = vor.u32 %v10228_v52, %v7649_v54 }
 0x128   : > { %5593 = vmatpush.bf16.msrb.mxu1 %v7444_v57  ;;  %5562 = vmatmul.bf16.vlgmr.msra.gmra.mxu2 %v11363_v22  ;;  %v5342_v57 = vpop.f32.mrf.mxu1  ;;  %v7377_v2 = vld [vmem:[%s11235_s9 + $0x470] sm:$0xf0]  ;;  %v10192_v3 = vld [vmem:[%s11235_s9 + $0x564] sm:$0xf] }
 0x129   : > { %5606 = vmatpush.bf16.msrb.mxu2 %v7572_v58  ;;  %5575 = vmatmul.bf16.vlgmr.msra.gmra.mxu3 %v11346_v5  ;;  %v7396_v58 = vor.u32 %v10164_v40, %v7393_v44  ;;  %v5343_v1 = vadd.f32 %v5342_v57, %v5330_v55  ;;  %v7505_v53 = vld [vmem:[%s11235_s9 + $0x570] sm:$0xf0]  ;;  %v10224_v4 = vld [vmem:[%s11235_s9 + $0x664] sm:$0xf]  ;;  %v5355_v19 = vpop.f32.mrf.mxu2 }
 0x12a   : > { %5619 = vmatpush.bf16.msrb.mxu3 %v7700_v62  ;;  %v10160_v62 = vld [vmem:[%s11235_s9 + $0x464] sm:$0xf]  ;;  %v7508_v11 = vor.u32 %v10192_v3, %v7505_v53  ;;  %v7233_v15 = vld [vmem:[%s11235_s9 + $0x350] sm:$0xf0] }
 0x12b   : > { %5581 = vmatpush.bf16.msrb.mxu0 %v7300_v6  ;;  %v7633_v6 = vld [vmem:[%s11235_s9 + $0x670] sm:$0xf0]  ;;  %v10124_v12 = vld [vmem:[%s11235_s9 + $0x344] sm:$0xf] }
 0x12c   : > { %5594 = vmatpush.bf16.msrb.mxu1 %v7428_v8  ;;  %v7252_v8 = vor.u32 %v10128_v60, %v7249_v61  ;;  %v7636_v18 = vor.u32 %v10224_v4, %v7633_v6  ;;  %v7361_v23 = vld [vmem:[%s11235_s9 + $0x450] sm:$0xf0]  ;;  %v10188_v20 = vld [vmem:[%s11235_s9 + $0x544] sm:$0xf]  ;;  %v7236_v40 = vor.u32 %v10124_v12, %v7233_v15 }
 0x12d   : > { %5607 = vmatpush.bf16.msrb.mxu2 %v7556_v10  ;;  %v7380_v10 = vor.u32 %v10160_v62, %v7377_v2  ;;  %v7489_v25 = vld [vmem:[%s11235_s9 + $0x550] sm:$0xf0]  ;;  %v5331_v37 = vpop.f32.mrf.mxu0  ;;  %v10120_v51 = vld [vmem:[%s11235_s9 + $0x324] sm:$0xf] }
 0x12e   : > { %5620 = vmatpush.bf16.msrb.mxu3 %v7684_v16  ;;  %v10156_v16 = vld [vmem:[%s11235_s9 + $0x444] sm:$0xf]  ;;  %v7617_v35 = vld [vmem:[%s11235_s9 + $0x650] sm:$0xf0]  ;;  %v7492_v49 = vor.u32 %v10188_v20, %v7489_v25 }
 0x12f   : > { %5582 = vmatpush.bf16.msrb.mxu0 %v7284_v27  ;;  %v5356_v27 = vadd.f32 %v5355_v19, %v5343_v1  ;;  %v7364_v48 = vor.u32 %v10156_v16, %v7361_v23  ;;  %v7217_v52 = vld [vmem:[%s11235_s9 + $0x330] sm:$0xf0]  ;;  %v10152_v54 = vld [vmem:[%s11235_s9 + $0x424] sm:$0xf] }
 0x130   : > { %5595 = vmatpush.bf16.msrb.mxu1 %v7412_v28  ;;  %v5368_v28 = vpop.f32.mrf.mxu3  ;;  %v10184_v57 = vld [vmem:[%s11235_s9 + $0x524] sm:$0xf]  ;;  %v7601_v60 = vld [vmem:[%s11235_s9 + $0x630] sm:$0xf0]  ;;  %v7220_v61 = vor.u32 %v10120_v51, %v7217_v52 }
 0x131   : > { %5608 = vmatpush.bf16.msrb.mxu2 %v7540_v33  ;;  %v10220_v33 = vld [vmem:[%s11235_s9 + $0x644] sm:$0xf]  ;;  %v11850_v44 = vadd.f32 %v5368_v28, %v5356_v27  ;;  %v7329_v53 = vld [vmem:[%s11235_s9 + $0x410] sm:$0xf0]  ;;  %v5357_v12 = vpop.f32.mrf.mxu2 }
 0x132   : > { %5621 = vmatpush.bf16.msrb.mxu3 %v7668_v41  ;;  %v5344_v41 = vpop.f32.mrf.mxu1  ;;  %v7620_v55 = vor.u32 %v10220_v33, %v7617_v35  ;;  %v10116_v62 = vld [vmem:[%s11235_s9 + $0x304] sm:$0xf]  ;;  %v7825_v16 = vld [vmem:[%s11235_s9 + $0x7f0] sm:$0xf0] }
 0x133   : > { %5583 = vmatpush.bf16.msrb.mxu0 %v7268_v56  ;;  %v7345_v56 = vld [vmem:[%s11235_s9 + $0x430] sm:$0xf0]  ;;  %v10148_v3 = vld [vmem:[%s11235_s9 + $0x404] sm:$0xf] }
 0x134   : > { %5596 = vmatpush.bf16.msrb.mxu1 %v7396_v58  ;;  %v7473_v58 = vld [vmem:[%s11235_s9 + $0x530] sm:$0xf0]  ;;  %v7348_v1 = vor.u32 %v10152_v54, %v7345_v56  ;;  %v10180_v4 = vld [vmem:[%s11235_s9 + $0x504] sm:$0xf]  ;;  %v7332_v28 = vor.u32 %v10148_v3, %v7329_v53 }
 0x135   : > { %5609 = vmatpush.bf16.msrb.mxu2 %v7524_v59  ;;  %v10216_v59 = vld [vmem:[%s11235_s9 + $0x624] sm:$0xf]  ;;  %v7476_v2 = vor.u32 %v10184_v57, %v7473_v58  ;;  %v7953_v20 = vld [vmem:[%s11235_s9 + $0x8f0] sm:$0xf0] }
 0x136   : > { %5622 = vmatpush.bf16.msrb.mxu3 %v7652_v0  ;;  %v7201_v0 = vld [vmem:[%s11235_s9 + $0x310] sm:$0xf0]  ;;  %v7604_v6 = vor.u32 %v10216_v59, %v7601_v60  ;;  %v10272_v15 = vld [vmem:[%s11235_s9 + $0x7e4] sm:$0xf] }
 0x137   : > { %5584 = vmatpush.bf16.msrb.mxu0 %v7252_v8  ;;  %v7457_v8 = vld [vmem:[%s11235_s9 + $0x510] sm:$0xf0]  ;;  %v7204_v23 = vor.u32 %v10116_v62, %v7201_v0  ;;  %v10336_v25 = vld [vmem:[%s11235_s9 + $0x9e4] sm:$0xf]  ;;  %v7828_v41 = vor.u32 %v10272_v15, %v7825_v16 }
 0x138   : > { %5597 = vmatpush.bf16.msrb.mxu1 %v7380_v10  ;;  %v10212_v10 = vld [vmem:[%s11235_s9 + $0x604] sm:$0xf]  ;;  %v5370_v19 = vpop.f32.mrf.mxu3  ;;  %v8081_v27 = vld [vmem:[%s11235_s9 + $0x9f0] sm:$0xf0]  ;;  %v7460_v33 = vor.u32 %v10180_v4, %v7457_v8 }
 0x139   : > { %5610 = vmatpush.bf16.msrb.mxu2 %v7508_v11  ;;  %v7585_v11 = vld [vmem:[%s11235_s9 + $0x610] sm:$0xf0]  ;;  %v10368_v35 = vld [vmem:[%s11235_s9 + $0xae4] sm:$0xf] }
 0x13a   : > { %5623 = vmatpush.bf16.msrb.mxu3 %v7636_v18  ;;  %v10304_v18 = vld [vmem:[%s11235_s9 + $0x8e4] sm:$0xf]  ;;  %v8209_v37 = vld [vmem:[%s11235_s9 + $0xaf0] sm:$0xf0] }
 0x13b   : > { %5585 = vmatpush.bf16.msrb.mxu0 %v7236_v40  ;;  %v7588_v40 = vor.u32 %v10212_v10, %v7585_v11  ;;  %v10268_v51 = vld [vmem:[%s11235_s9 + $0x7c4] sm:$0xf]  ;;  %v7809_v52 = vld [vmem:[%s11235_s9 + $0x7d0] sm:$0xf0] }
 0x13c   : > { %5598 = vmatpush.bf16.msrb.mxu1 %v7364_v48  ;;  %v7956_v48 = vor.u32 %v10304_v18, %v7953_v20  ;;  %v10300_v54 = vld [vmem:[%s11235_s9 + $0x8c4] sm:$0xf]  ;;  %v7937_v56 = vld [vmem:[%s11235_s9 + $0x8d0] sm:$0xf0] }
 0x13d   : > { %5611 = vmatpush.bf16.msrb.mxu2 %v7492_v49  ;;  %v8084_v49 = vor.u32 %v10336_v25, %v8081_v27  ;;  %v10332_v57 = vld [vmem:[%s11235_s9 + $0x9c4] sm:$0xf]  ;;  %v8065_v58 = vld [vmem:[%s11235_s9 + $0x9d0] sm:$0xf0]  ;;  %v7940_v62 = vor.u32 %v10300_v54, %v7937_v56 }
 0x13e   : > { %5624 = vmatpush.bf16.msrb.mxu3 %v7620_v55  ;;  %v8212_v55 = vor.u32 %v10368_v35, %v8209_v37  ;;  %v10364_v59 = vld [vmem:[%s11235_s9 + $0xac4] sm:$0xf]  ;;  %v8193_v60 = vld [vmem:[%s11235_s9 + $0xad0] sm:$0xf0]  ;;  %v8068_v0 = vor.u32 %v10332_v57, %v8065_v58 }
 0x13f   : > { %5586 = vmatpush.bf16.msrb.mxu0 %v7220_v61  ;;  %v7812_v61 = vor.u32 %v10268_v51, %v7809_v52  ;;  %v10296_v3 = vld [vmem:[%s11235_s9 + $0x8a4] sm:$0xf]  ;;  %v8196_v53 = vor.u32 %v10364_v59, %v8193_v60  ;;  %v7921_v4 = vld [vmem:[%s11235_s9 + $0x8b0] sm:$0xf0] }
 0x140   : > { %5599 = vmatpush.bf16.msrb.mxu1 %v7348_v1  ;;  %v10264_v1 = vld [vmem:[%s11235_s9 + $0x7a4] sm:$0xf]  ;;  %v8049_v8 = vld [vmem:[%s11235_s9 + $0x9b0] sm:$0xf0]  ;;  %v7924_v15 = vor.u32 %v10296_v3, %v7921_v4 }
 0x141   : > { %5612 = vmatpush.bf16.msrb.mxu2 %v7476_v2  ;;  %v7793_v2 = vld [vmem:[%s11235_s9 + $0x7b0] sm:$0xf0]  ;;  %v10360_v10 = vld [vmem:[%s11235_s9 + $0xaa4] sm:$0xf] }
 0x142   : > { %5625 = vmatpush.bf16.msrb.mxu3 %v7604_v6  ;;  %v10328_v6 = vld [vmem:[%s11235_s9 + $0x9a4] sm:$0xf]  ;;  %v8177_v11 = vld [vmem:[%s11235_s9 + $0xab0] sm:$0xf0]  ;;  %v7796_v12 = vor.u32 %v10264_v1, %v7793_v2 }
 0x143   : > { %5587 = vmatpush.bf16.msrb.mxu0 %v7204_v23  ;;  %v8052_v16 = vor.u32 %v10328_v6, %v8049_v8  ;;  %v10260_v18 = vld [vmem:[%s11235_s9 + $0x784] sm:$0xf]  ;;  %v7777_v19 = vld [vmem:[%s11235_s9 + $0x790] sm:$0xf0]  ;;  %v8180_v20 = vor.u32 %v10360_v10, %v8177_v11 }
 0x144   : > { %5600 = vmatpush.bf16.msrb.mxu1 %v7332_v28  ;;  %v10292_v23 = vld [vmem:[%s11235_s9 + $0x884] sm:$0xf]  ;;  %v7905_v25 = vld [vmem:[%s11235_s9 + $0x890] sm:$0xf0] }
 0x145   : > { %5613 = vmatpush.bf16.msrb.mxu2 %v7460_v33  ;;  %v10324_v27 = vld [vmem:[%s11235_s9 + $0x984] sm:$0xf]  ;;  %v8033_v28 = vld [vmem:[%s11235_s9 + $0x990] sm:$0xf0]  ;;  %v5381_v33 = vpop.f32.mrf.mxu0 }
 0x146   : > { %5626 = vmatpush.bf16.msrb.mxu3 %v7588_v40  ;;  %5588 = vmatmul.bf16.vlgmr.msrb.gmra.mxu0 %v11349_v7  ;;  %v10356_v35 = vld [vmem:[%s11235_s9 + $0xa84] sm:$0xf]  ;;  %v8161_v37 = vld [vmem:[%s11235_s9 + $0xa90] sm:$0xf0]  ;;  %v5382_v40 = vadd.f32 %v5381_v33, %v11850_v44  ;;  %v8036_v51 = vor.u32 %v10324_v27, %v8033_v28 }
 0x147   : > { %5632 = vmatpush.bf16.msra.mxu0 %v7828_v41  ;;  %5601 = vmatmul.bf16.vlgmr.msrb.gmra.mxu1 %v11419_v42  ;;  %v7780_v41 = vor.u32 %v10260_v18, %v7777_v19  ;;  %v10256_v52 = vld [vmem:[%s11235_s9 + $0x764] sm:$0xf]  ;;  %v7761_v54 = vld [vmem:[%s11235_s9 + $0x770] sm:$0xf0]  ;;  %v8164_v56 = vor.u32 %v10356_v35, %v8161_v37 }
 0x148   : > { %5645 = vmatpush.bf16.msra.mxu1 %v7956_v48  ;;  %5614 = vmatmul.bf16.vlgmr.msrb.gmra.mxu2 %v11423_v45  ;;  %v5394_v48 = vpop.f32.mrf.mxu1  ;;  %v7889_v58 = vld [vmem:[%s11235_s9 + $0x870] sm:$0xf0]  ;;  %v10320_v59 = vld [vmem:[%s11235_s9 + $0x964] sm:$0xf] }
 0x149   : > { %5658 = vmatpush.bf16.msra.mxu2 %v8084_v49  ;;  %5627 = vmatmul.bf16.vlgmr.msrb.gmra.mxu3 %v11415_v39  ;;  %v7908_v49 = vor.u32 %v10292_v23, %v7905_v25  ;;  %v5395_v57 = vadd.f32 %v5394_v48, %v5382_v40  ;;  %v8017_v44 = vld [vmem:[%s11235_s9 + $0x970] sm:$0xf0]  ;;  %v10352_v60 = vld [vmem:[%s11235_s9 + $0xa64] sm:$0xf] }
 0x14a   : > { %5671 = vmatpush.bf16.msra.mxu3 %v8212_v55  ;;  %v10288_v55 = vld [vmem:[%s11235_s9 + $0x864] sm:$0xf]  ;;  %v8020_v1 = vor.u32 %v10320_v59, %v8017_v44  ;;  %v7745_v3 = vld [vmem:[%s11235_s9 + $0x750] sm:$0xf0] }
 0x14b   : > { %5633 = vmatpush.bf16.msra.mxu0 %v7812_v61  ;;  %v8145_v61 = vld [vmem:[%s11235_s9 + $0xa70] sm:$0xf0]  ;;  %v10252_v2 = vld [vmem:[%s11235_s9 + $0x744] sm:$0xf] }
 0x14c   : > { %5646 = vmatpush.bf16.msra.mxu1 %v7940_v62  ;;  %v7764_v62 = vor.u32 %v10256_v52, %v7761_v54  ;;  %v8148_v4 = vor.u32 %v10352_v60, %v8145_v61  ;;  %v5407_v6 = vpop.f32.mrf.mxu2  ;;  %v7873_v8 = vld [vmem:[%s11235_s9 + $0x850] sm:$0xf0]  ;;  %v10316_v10 = vld [vmem:[%s11235_s9 + $0x944] sm:$0xf]  ;;  %v7748_v23 = vor.u32 %v10252_v2, %v7745_v3 }
 0x14d   : > { %5659 = vmatpush.bf16.msra.mxu2 %v8068_v0  ;;  %v7892_v0 = vor.u32 %v10288_v55, %v7889_v58  ;;  %v8001_v11 = vld [vmem:[%s11235_s9 + $0x950] sm:$0xf0]  ;;  %v5383_v19 = vpop.f32.mrf.mxu0  ;;  %v10248_v33 = vld [vmem:[%s11235_s9 + $0x724] sm:$0xf] }
 0x14e   : > { %5672 = vmatpush.bf16.msra.mxu3 %v8196_v53  ;;  %v10284_v53 = vld [vmem:[%s11235_s9 + $0x844] sm:$0xf]  ;;  %v8129_v18 = vld [vmem:[%s11235_s9 + $0xa50] sm:$0xf0]  ;;  %v8004_v28 = vor.u32 %v10316_v10, %v8001_v11 }
 0x14f   : > { %5634 = vmatpush.bf16.msra.mxu0 %v7796_v12  ;;  %v5408_v12 = vadd.f32 %v5407_v6, %v5395_v57  ;;  %v7876_v27 = vor.u32 %v10284_v53, %v7873_v8  ;;  %v7729_v35 = vld [vmem:[%s11235_s9 + $0x730] sm:$0xf0]  ;;  %v10280_v37 = vld [vmem:[%s11235_s9 + $0x824] sm:$0xf] }
 0x150   : > { %5647 = vmatpush.bf16.msra.mxu1 %v7924_v15  ;;  %v5420_v15 = vpop.f32.mrf.mxu3  ;;  %v10312_v48 = vld [vmem:[%s11235_s9 + $0x924] sm:$0xf]  ;;  %v8113_v52 = vld [vmem:[%s11235_s9 + $0xa30] sm:$0xf0]  ;;  %v7732_v54 = vor.u32 %v10248_v33, %v7729_v35 }
 0x151   : > { %5660 = vmatpush.bf16.msra.mxu2 %v8052_v16  ;;  %v10348_v16 = vld [vmem:[%s11235_s9 + $0xa44] sm:$0xf]  ;;  %v11921_v25 = vadd.f32 %v5420_v15, %v5408_v12  ;;  %v7841_v44 = vld [vmem:[%s11235_s9 + $0x810] sm:$0xf0] }
 0x152   : > { %5673 = vmatpush.bf16.msra.mxu3 %v8180_v20  ;;  %v5396_v20 = vpop.f32.mrf.mxu1  ;;  %v8132_v40 = vor.u32 %v10348_v16, %v8129_v18  ;;  %v10244_v55 = vld [vmem:[%s11235_s9 + $0x704] sm:$0xf]  ;;  %v8337_v53 = vld [vmem:[%s11235_s9 + $0xbf0] sm:$0xf0] }
 0x153   : > { %5635 = vmatpush.bf16.msra.mxu0 %v7780_v41  ;;  %v7857_v41 = vld [vmem:[%s11235_s9 + $0x830] sm:$0xf0]  ;;  %v10276_v59 = vld [vmem:[%s11235_s9 + $0x804] sm:$0xf] }
 0x154   : > { %5648 = vmatpush.bf16.msra.mxu1 %v7908_v49  ;;  %v7985_v49 = vld [vmem:[%s11235_s9 + $0x930] sm:$0xf0]  ;;  %v7860_v57 = vor.u32 %v10280_v37, %v7857_v41  ;;  %v10308_v60 = vld [vmem:[%s11235_s9 + $0x904] sm:$0xf]  ;;  %v5409_v2 = vpop.f32.mrf.mxu2  ;;  %v7844_v15 = vor.u32 %v10276_v59, %v7841_v44 }
 0x155   : > { %5661 = vmatpush.bf16.msra.mxu2 %v8036_v51  ;;  %v10344_v51 = vld [vmem:[%s11235_s9 + $0xa24] sm:$0xf]  ;;  %v7988_v58 = vor.u32 %v10312_v48, %v7985_v49  ;;  %v8465_v10 = vld [vmem:[%s11235_s9 + $0xcf0] sm:$0xf0] }
 0x156   : > { %5674 = vmatpush.bf16.msra.mxu3 %v8164_v56  ;;  %v7713_v56 = vld [vmem:[%s11235_s9 + $0x710] sm:$0xf0]  ;;  %v8116_v61 = vor.u32 %v10344_v51, %v8113_v52  ;;  %v10400_v3 = vld [vmem:[%s11235_s9 + $0xbe4] sm:$0xf] }
 0x157   : > { %5636 = vmatpush.bf16.msra.mxu0 %v7764_v62  ;;  %v7969_v62 = vld [vmem:[%s11235_s9 + $0x910] sm:$0xf0]  ;;  %v7716_v8 = vor.u32 %v10244_v55, %v7713_v56  ;;  %v10464_v11 = vld [vmem:[%s11235_s9 + $0xde4] sm:$0xf]  ;;  %v8340_v20 = vor.u32 %v10400_v3, %v8337_v53 }
 0x158   : > { %5649 = vmatpush.bf16.msra.mxu1 %v7892_v0  ;;  %v10340_v0 = vld [vmem:[%s11235_s9 + $0xa04] sm:$0xf]  ;;  %v5422_v6 = vpop.f32.mrf.mxu3  ;;  %v8593_v12 = vld [vmem:[%s11235_s9 + $0xdf0] sm:$0xf0]  ;;  %v7972_v16 = vor.u32 %v10308_v60, %v7969_v62 }
 0x159   : > { %5662 = vmatpush.bf16.msra.mxu2 %v8020_v1  ;;  %v8097_v1 = vld [vmem:[%s11235_s9 + $0xa10] sm:$0xf0]  ;;  %v10496_v18 = vld [vmem:[%s11235_s9 + $0xee4] sm:$0xf] }
 0x15a   : > { %5675 = vmatpush.bf16.msra.mxu3 %v8148_v4  ;;  %v10432_v4 = vld [vmem:[%s11235_s9 + $0xce4] sm:$0xf]  ;;  %v8721_v19 = vld [vmem:[%s11235_s9 + $0xef0] sm:$0xf0] }
 0x15b   : > { %5637 = vmatpush.bf16.msra.mxu0 %v7748_v23  ;;  %v8100_v23 = vor.u32 %v10340_v0, %v8097_v1  ;;  %v10396_v33 = vld [vmem:[%s11235_s9 + $0xbc4] sm:$0xf]  ;;  %v8321_v35 = vld [vmem:[%s11235_s9 + $0xbd0] sm:$0xf0] }
 0x15c   : > { %5650 = vmatpush.bf16.msra.mxu1 %v7876_v27  ;;  %v8468_v27 = vor.u32 %v10432_v4, %v8465_v10  ;;  %v10428_v37 = vld [vmem:[%s11235_s9 + $0xcc4] sm:$0xf]  ;;  %v8449_v41 = vld [vmem:[%s11235_s9 + $0xcd0] sm:$0xf0] }
 0x15d   : > { %5663 = vmatpush.bf16.msra.mxu2 %v8004_v28  ;;  %v8596_v28 = vor.u32 %v10464_v11, %v8593_v12  ;;  %v10460_v48 = vld [vmem:[%s11235_s9 + $0xdc4] sm:$0xf]  ;;  %v8577_v49 = vld [vmem:[%s11235_s9 + $0xdd0] sm:$0xf0]  ;;  %v8452_v55 = vor.u32 %v10428_v37, %v8449_v41 }
 0x15e   : > { %5676 = vmatpush.bf16.msra.mxu3 %v8132_v40  ;;  %v8724_v40 = vor.u32 %v10496_v18, %v8721_v19  ;;  %v10492_v51 = vld [vmem:[%s11235_s9 + $0xec4] sm:$0xf]  ;;  %v8705_v52 = vld [vmem:[%s11235_s9 + $0xed0] sm:$0xf0]  ;;  %v8580_v56 = vor.u32 %v10460_v48, %v8577_v49 }
 0x15f   : > { %5638 = vmatpush.bf16.msra.mxu0 %v7732_v54  ;;  %v8324_v54 = vor.u32 %v10396_v33, %v8321_v35  ;;  %v10424_v59 = vld [vmem:[%s11235_s9 + $0xca4] sm:$0xf]  ;;  %v8708_v44 = vor.u32 %v10492_v51, %v8705_v52  ;;  %v8433_v60 = vld [vmem:[%s11235_s9 + $0xcb0] sm:$0xf0] }
 0x160   : > { %5651 = vmatpush.bf16.msra.mxu1 %v7860_v57  ;;  %v10392_v57 = vld [vmem:[%s11235_s9 + $0xba4] sm:$0xf]  ;;  %v8561_v62 = vld [vmem:[%s11235_s9 + $0xdb0] sm:$0xf0]  ;;  %v8436_v3 = vor.u32 %v10424_v59, %v8433_v60 }
 0x161   : > { %5664 = vmatpush.bf16.msra.mxu2 %v7988_v58  ;;  %v8305_v58 = vld [vmem:[%s11235_s9 + $0xbb0] sm:$0xf0]  ;;  %v10488_v0 = vld [vmem:[%s11235_s9 + $0xea4] sm:$0xf] }
 0x162   : > { %5677 = vmatpush.bf16.msra.mxu3 %v8116_v61  ;;  %v10456_v61 = vld [vmem:[%s11235_s9 + $0xda4] sm:$0xf]  ;;  %v8689_v1 = vld [vmem:[%s11235_s9 + $0xeb0] sm:$0xf0]  ;;  %v8308_v2 = vor.u32 %v10392_v57, %v8305_v58 }
 0x163   : > { %5639 = vmatpush.bf16.msra.mxu0 %v7716_v8  ;;  %v8564_v53 = vor.u32 %v10456_v61, %v8561_v62  ;;  %v10388_v4 = vld [vmem:[%s11235_s9 + $0xb84] sm:$0xf]  ;;  %v8289_v6 = vld [vmem:[%s11235_s9 + $0xb90] sm:$0xf0]  ;;  %v8692_v10 = vor.u32 %v10488_v0, %v8689_v1 }
 0x164   : > { %5652 = vmatpush.bf16.msra.mxu1 %v7844_v15  ;;  %v10420_v8 = vld [vmem:[%s11235_s9 + $0xc84] sm:$0xf]  ;;  %v8417_v11 = vld [vmem:[%s11235_s9 + $0xc90] sm:$0xf0] }
 0x165   : > { %5665 = vmatpush.bf16.msra.mxu2 %v7972_v16  ;;  %v10452_v12 = vld [vmem:[%s11235_s9 + $0xd84] sm:$0xf]  ;;  %v8545_v15 = vld [vmem:[%s11235_s9 + $0xd90] sm:$0xf0]  ;;  %v11973_v16 = vpop.f32.mrf.mxu0 }
 0x166   : > { %5678 = vmatpush.bf16.msra.mxu3 %v8100_v23  ;;  %5640 = vmatmul.bf16.vlgmr.msra.gmra.mxu0 %v11421_v43  ;;  %v10484_v18 = vld [vmem:[%s11235_s9 + $0xe84] sm:$0xf]  ;;  %v8673_v19 = vld [vmem:[%s11235_s9 + $0xe90] sm:$0xf0]  ;;  %v8292_v23 = vor.u32 %v10388_v4, %v8289_v6 }
 0x167   : > { %5684 = vmatpush.bf16.msrb.mxu0 %v8340_v20  ;;  %5653 = vmatmul.bf16.vlgmr.msra.gmra.mxu1 %v11490_v26  ;;  %v11977_v20 = vpop.f32.mrf.mxu1  ;;  %v10384_v33 = vld [vmem:[%s11235_s9 + $0xb64] sm:$0xf]  ;;  %v8273_v35 = vld [vmem:[%s11235_s9 + $0xb70] sm:$0xf0] }
 0x168   : > { %5697 = vmatpush.bf16.msrb.mxu1 %v8468_v27  ;;  %5666 = vmatmul.bf16.vlgmr.msra.gmra.mxu2 %v11497_v31  ;;  %v8420_v27 = vor.u32 %v10420_v8, %v8417_v11  ;;  %v10416_v37 = vld [vmem:[%s11235_s9 + $0xc64] sm:$0xf]  ;;  %v8401_v41 = vld [vmem:[%s11235_s9 + $0xc70] sm:$0xf0] }
 0x169   : > { %5710 = vmatpush.bf16.msrb.mxu2 %v8596_v28  ;;  %5679 = vmatmul.bf16.vlgmr.msra.gmra.mxu3 %v11495_v30  ;;  %v8548_v28 = vor.u32 %v10452_v12, %v8545_v15  ;;  %v10448_v48 = vld [vmem:[%s11235_s9 + $0xd64] sm:$0xf]  ;;  %v8529_v49 = vld [vmem:[%s11235_s9 + $0xd70] sm:$0xf0] }
 0x16a   : > { %5723 = vmatpush.bf16.msrb.mxu3 %v8724_v40  ;;  %v8676_v40 = vor.u32 %v10484_v18, %v8673_v19  ;;  %v10480_v51 = vld [vmem:[%s11235_s9 + $0xe64] sm:$0xf]  ;;  %v8657_v52 = vld [vmem:[%s11235_s9 + $0xe70] sm:$0xf0]  ;;  %v11990_v60 = vpop.f32.mrf.mxu2 }
 0x16b   : > { %5685 = vmatpush.bf16.msrb.mxu0 %v8324_v54  ;;  %v8276_v54 = vor.u32 %v10384_v33, %v8273_v35  ;;  %v10380_v57 = vld [vmem:[%s11235_s9 + $0xb44] sm:$0xf]  ;;  %v8257_v58 = vld [vmem:[%s11235_s9 + $0xb50] sm:$0xf0] }
 0x16c   : > { %5698 = vmatpush.bf16.msrb.mxu1 %v8452_v55  ;;  %v8404_v55 = vor.u32 %v10416_v37, %v8401_v41  ;;  %v10412_v59 = vld [vmem:[%s11235_s9 + $0xc44] sm:$0xf]  ;;  %v8385_v61 = vld [vmem:[%s11235_s9 + $0xc50] sm:$0xf0]  ;;  %v8260_v4 = vor.u32 %v10380_v57, %v8257_v58 }
 0x16d   : > { %5711 = vmatpush.bf16.msrb.mxu2 %v8580_v56  ;;  %v8532_v56 = vor.u32 %v10448_v48, %v8529_v49  ;;  %v10444_v62 = vld [vmem:[%s11235_s9 + $0xd44] sm:$0xf]  ;;  %v8513_v0 = vld [vmem:[%s11235_s9 + $0xd50] sm:$0xf0]  ;;  %v8388_v8 = vor.u32 %v10412_v59, %v8385_v61 }
 0x16e   : > { %5724 = vmatpush.bf16.msrb.mxu3 %v8708_v44  ;;  %v8660_v44 = vor.u32 %v10480_v51, %v8657_v52  ;;  %v11995_v1 = vpop.f32.mrf.mxu3  ;;  %v10376_v11 = vld [vmem:[%s11235_s9 + $0xb24] sm:$0xf]  ;;  %v8241_v12 = vld [vmem:[%s11235_s9 + $0xb30] sm:$0xf0] }
 0x16f   : > { %5686 = vmatpush.bf16.msrb.mxu0 %v8308_v2  ;;  %v10476_v2 = vld [vmem:[%s11235_s9 + $0xe44] sm:$0xf]  ;;  %v5448_v6 = vpop.f32.mrf.mxu1  ;;  %v8369_v19 = vld [vmem:[%s11235_s9 + $0xc30] sm:$0xf0]  ;;  %v8244_v35 = vor.u32 %v10376_v11, %v8241_v12 }
 0x170   : > { %5699 = vmatpush.bf16.msrb.mxu1 %v8436_v3  ;;  %v8641_v3 = vld [vmem:[%s11235_s9 + $0xe50] sm:$0xf0]  ;;  %v10408_v15 = vld [vmem:[%s11235_s9 + $0xc24] sm:$0xf] }
 0x171   : > { %5712 = vmatpush.bf16.msrb.mxu2 %v8564_v53  ;;  %v5435_v53 = vpop.f32.mrf.mxu0  ;;  %v8644_v18 = vor.u32 %v10476_v2, %v8641_v3  ;;  %v8625_v33 = vld [vmem:[%s11235_s9 + $0xe30] sm:$0xf0]  ;;  %v10372_v37 = vld [vmem:[%s11235_s9 + $0xb04] sm:$0xf]  ;;  %v8372_v41 = vor.u32 %v10408_v15, %v8369_v19 }
 0x172   : > { %5725 = vmatpush.bf16.msrb.mxu3 %v8692_v10  ;;  %v8516_v10 = vor.u32 %v10444_v62, %v8513_v0  ;;  %v10404_v49 = vld [vmem:[%s11235_s9 + $0xc04] sm:$0xf]  ;;  %v8353_v51 = vld [vmem:[%s11235_s9 + $0xc10] sm:$0xf0]  ;;  %v5461_v58 = vpop.f32.mrf.mxu2 }
 0x173   : > { %5687 = vmatpush.bf16.msrb.mxu0 %v8292_v23  ;;  %v10440_v23 = vld [vmem:[%s11235_s9 + $0xd24] sm:$0xf]  ;;  %v8609_v57 = vld [vmem:[%s11235_s9 + $0xe10] sm:$0xf0] }
 0x174   : > { %5700 = vmatpush.bf16.msrb.mxu1 %v8420_v27  ;;  %v8497_v27 = vld [vmem:[%s11235_s9 + $0xd30] sm:$0xf0]  ;;  %v10436_v52 = vld [vmem:[%s11235_s9 + $0xd04] sm:$0xf] }
 0x175   : > { %5713 = vmatpush.bf16.msrb.mxu2 %v8548_v28  ;;  %v10472_v28 = vld [vmem:[%s11235_s9 + $0xe24] sm:$0xf]  ;;  %v8500_v48 = vor.u32 %v10440_v23, %v8497_v27  ;;  %v8977_v2 = vld [vmem:[%s11235_s9 + $0x10f0] sm:$0xf0] }
 0x176   : > { %5726 = vmatpush.bf16.msrb.mxu3 %v8676_v40  ;;  %v8225_v40 = vld [vmem:[%s11235_s9 + $0xb10] sm:$0xf0]  ;;  %v10528_v59 = vld [vmem:[%s11235_s9 + $0xfe4] sm:$0xf]  ;;  %v5474_v62 = vpop.f32.mrf.mxu3 }
 0x177   : > { %5688 = vmatpush.bf16.msrb.mxu0 %v8276_v54  ;;  %v8628_v54 = vor.u32 %v10472_v28, %v8625_v33  ;;  %v10560_v61 = vld [vmem:[%s11235_s9 + $0x10e4] sm:$0xf]  ;;  %v8228_v0 = vor.u32 %v10372_v37, %v8225_v40  ;;  %v9105_v53 = vld [vmem:[%s11235_s9 + $0x11f0] sm:$0xf0] }
 0x178   : > { %5701 = vmatpush.bf16.msrb.mxu1 %v8404_v55  ;;  %v8481_v55 = vld [vmem:[%s11235_s9 + $0xd10] sm:$0xf0]  ;;  %v10592_v3 = vld [vmem:[%s11235_s9 + $0x11e4] sm:$0xf]  ;;  %v8980_v15 = vor.u32 %v10560_v61, %v8977_v2 }
 0x179   : > { %5714 = vmatpush.bf16.msrb.mxu2 %v8532_v56  ;;  %v10468_v56 = vld [vmem:[%s11235_s9 + $0xe04] sm:$0xf]  ;;  %v8484_v6 = vor.u32 %v10436_v52, %v8481_v55  ;;  %v8833_v23 = vld [vmem:[%s11235_s9 + $0xfd0] sm:$0xf0] }
 0x17a   : > { %5727 = vmatpush.bf16.msrb.mxu3 %v8660_v44  ;;  %v8849_v44 = vld [vmem:[%s11235_s9 + $0xff0] sm:$0xf0]  ;;  %v8612_v11 = vor.u32 %v10468_v56, %v8609_v57  ;;  %v10524_v19 = vld [vmem:[%s11235_s9 + $0xfc4] sm:$0xf] }
 0x17b   : > { %5689 = vmatpush.bf16.msrb.mxu0 %v8260_v4  ;;  %v8356_v4 = vor.u32 %v10404_v49, %v8353_v51  ;;  %v8852_v12 = vor.u32 %v10528_v59, %v8849_v44  ;;  %v10556_v27 = vld [vmem:[%s11235_s9 + $0x10c4] sm:$0xf]  ;;  %v8961_v33 = vld [vmem:[%s11235_s9 + $0x10d0] sm:$0xf0] }
 0x17c   : > { %5702 = vmatpush.bf16.msrb.mxu1 %v8388_v8  ;;  %v10624_v8 = vld [vmem:[%s11235_s9 + $0x12e4] sm:$0xf]  ;;  %v9089_v37 = vld [vmem:[%s11235_s9 + $0x11d0] sm:$0xf0]  ;;  %v8964_v49 = vor.u32 %v10556_v27, %v8961_v33 }
 0x17d   : > { %5715 = vmatpush.bf16.msrb.mxu2 %v8516_v10  ;;  %v9233_v10 = vld [vmem:[%s11235_s9 + $0x12f0] sm:$0xf0]  ;;  %v10620_v40 = vld [vmem:[%s11235_s9 + $0x12c4] sm:$0xf] }
 0x17e   : > { %5728 = vmatpush.bf16.msrb.mxu3 %v8644_v18  ;;  %v9108_v18 = vor.u32 %v10592_v3, %v9105_v53  ;;  %v9236_v28 = vor.u32 %v10624_v8, %v9233_v10  ;;  %v10520_v52 = vld [vmem:[%s11235_s9 + $0xfa4] sm:$0xf]  ;;  %v8945_v57 = vld [vmem:[%s11235_s9 + $0x10b0] sm:$0xf0] }
 0x17f   : > { %5690 = vmatpush.bf16.msrb.mxu0 %v8244_v35  ;;  %v10588_v35 = vld [vmem:[%s11235_s9 + $0x11c4] sm:$0xf]  ;;  %v9073_v59 = vld [vmem:[%s11235_s9 + $0x11b0] sm:$0xf0] }
 0x180   : > { %5703 = vmatpush.bf16.msrb.mxu1 %v8372_v41  ;;  %v9217_v41 = vld [vmem:[%s11235_s9 + $0x12d0] sm:$0xf0]  ;;  %v9092_v51 = vor.u32 %v10588_v35, %v9089_v37  ;;  %v10552_v55 = vld [vmem:[%s11235_s9 + $0x10a4] sm:$0xf] }
 0x181   : > { %5716 = vmatpush.bf16.msrb.mxu2 %v8500_v48  ;;  %v8836_v48 = vor.u32 %v10524_v19, %v8833_v23  ;;  %v9220_v56 = vor.u32 %v10620_v40, %v9217_v41  ;;  %v10584_v58 = vld [vmem:[%s11235_s9 + $0x11a4] sm:$0xf]  ;;  %v9201_v61 = vld [vmem:[%s11235_s9 + $0x12b0] sm:$0xf0] }
 0x182   : > { %5729 = vmatpush.bf16.msrb.mxu3 %v8628_v54  ;;  %v8817_v54 = vld [vmem:[%s11235_s9 + $0xfb0] sm:$0xf0]  ;;  %v10616_v44 = vld [vmem:[%s11235_s9 + $0x12a4] sm:$0xf]  ;;  %v9076_v2 = vor.u32 %v10584_v58, %v9073_v59 }
 0x183   : > { %5691 = vmatpush.bf16.msrb.mxu0 %v8228_v0  ;;  %v8820_v62 = vor.u32 %v10520_v52, %v8817_v54  ;;  %v8948_v0 = vor.u32 %v10552_v55, %v8945_v57  ;;  %v10516_v3 = vld [vmem:[%s11235_s9 + $0xf84] sm:$0xf]  ;;  %v8801_v53 = vld [vmem:[%s11235_s9 + $0xf90] sm:$0xf0] }
 0x184   : > { %5704 = vmatpush.bf16.msrb.mxu1 %v8356_v4  ;;  %v10548_v4 = vld [vmem:[%s11235_s9 + $0x1084] sm:$0xf]  ;;  %v8929_v8 = vld [vmem:[%s11235_s9 + $0x1090] sm:$0xf0]  ;;  %v8804_v19 = vor.u32 %v10516_v3, %v8801_v53  ;;  %v12053_v23 = vpop.f32.mrf.mxu1 }
 0x185   : > { %5717 = vmatpush.bf16.msrb.mxu2 %v8484_v6  ;;  %v9204_v6 = vor.u32 %v10616_v44, %v9201_v61  ;;  %v10580_v10 = vld [vmem:[%s11235_s9 + $0x1184] sm:$0xf]  ;;  %v8932_v27 = vor.u32 %v10548_v4, %v8929_v8  ;;  %v8785_v35 = vld [vmem:[%s11235_s9 + $0xf70] sm:$0xf0]  ;;  %v5434_v44 = vadd.f32 %v11973_v16, %v11921_v25 }
 0x186   : > { %5730 = vmatpush.bf16.msrb.mxu3 %v8612_v11  ;;  %5692 = vmatmul.bf16.vlgmr.msrb.gmra.mxu0 %v11501_v34  ;;  %v9057_v11 = vld [vmem:[%s11235_s9 + $0x1190] sm:$0xf0]  ;;  %v10512_v33 = vld [vmem:[%s11235_s9 + $0xf64] sm:$0xf] }
 0x187   : > { %5736 = vmatpush.bf16.msra.mxu0 %v8852_v12  ;;  %5705 = vmatmul.bf16.vlgmr.msrb.gmra.mxu1 %v11568_v24  ;;  %v12049_v12 = vpop.f32.mrf.mxu0  ;;  %v10544_v37 = vld [vmem:[%s11235_s9 + $0x1064] sm:$0xf]  ;;  %v8913_v41 = vld [vmem:[%s11235_s9 + $0x1070] sm:$0xf0]  ;;  %v8788_v54 = vor.u32 %v10512_v33, %v8785_v35 }
 0x188   : > { %5749 = vmatpush.bf16.msra.mxu1 %v8980_v15  ;;  %5718 = vmatmul.bf16.vlgmr.msrb.gmra.mxu2 %v11575_v32  ;;  %v10612_v15 = vld [vmem:[%s11235_s9 + $0x1284] sm:$0xf]  ;;  %v9169_v52 = vld [vmem:[%s11235_s9 + $0x1270] sm:$0xf0]  ;;  %v8916_v55 = vor.u32 %v10544_v37, %v8913_v41 }
 0x189   : > { %5762 = vmatpush.bf16.msra.mxu2 %v9108_v18  ;;  %5731 = vmatmul.bf16.vlgmr.msrb.gmra.mxu3 %v11573_v29  ;;  %v9185_v18 = vld [vmem:[%s11235_s9 + $0x1290] sm:$0xf0]  ;;  %v10508_v57 = vld [vmem:[%s11235_s9 + $0xf44] sm:$0xf] }
 0x18a   : > { %5775 = vmatpush.bf16.msra.mxu3 %v9236_v28  ;;  %v9060_v28 = vor.u32 %v10580_v10, %v9057_v11  ;;  %v9188_v40 = vor.u32 %v10612_v15, %v9185_v18  ;;  %v8769_v58 = vld [vmem:[%s11235_s9 + $0xf50] sm:$0xf0]  ;;  %v10540_v59 = vld [vmem:[%s11235_s9 + $0x1044] sm:$0xf] }
 0x18b   : > { %5737 = vmatpush.bf16.msra.mxu0 %v8836_v48  ;;  %v10576_v48 = vld [vmem:[%s11235_s9 + $0x1164] sm:$0xf]  ;;  %v9025_v3 = vld [vmem:[%s11235_s9 + $0x1150] sm:$0xf0]  ;;  %v8772_v25 = vor.u32 %v10508_v57, %v8769_v58 }
 0x18c   : > { %5750 = vmatpush.bf16.msra.mxu1 %v8964_v49  ;;  %v9041_v49 = vld [vmem:[%s11235_s9 + $0x1170] sm:$0xf0]  ;;  %v12073_v53 = vpop.f32.mrf.mxu3  ;;  %v10604_v4 = vld [vmem:[%s11235_s9 + $0x1244] sm:$0xf]  ;;  %v5500_v16 = vpop.f32.mrf.mxu1 }
 0x18d   : > { %5763 = vmatpush.bf16.msra.mxu2 %v9092_v51  ;;  %v10608_v51 = vld [vmem:[%s11235_s9 + $0x1264] sm:$0xf]  ;;  %v8753_v18 = vld [vmem:[%s11235_s9 + $0xf30] sm:$0xf0] }
 0x18e   : > { %5776 = vmatpush.bf16.msra.mxu3 %v9220_v56  ;;  %v9044_v56 = vor.u32 %v10576_v48, %v9041_v49  ;;  %v9172_v61 = vor.u32 %v10608_v51, %v9169_v52  ;;  %v10504_v15 = vld [vmem:[%s11235_s9 + $0xf24] sm:$0xf]  ;;  %v8881_v33 = vld [vmem:[%s11235_s9 + $0x1030] sm:$0xf0] }
 0x18f   : > { %5738 = vmatpush.bf16.msra.mxu0 %v8820_v62  ;;  %v12068_v62 = vpop.f32.mrf.mxu2  ;;  %v5487_v8 = vpop.f32.mrf.mxu0  ;;  %v10568_v35 = vld [vmem:[%s11235_s9 + $0x1124] sm:$0xf]  ;;  %v9009_v37 = vld [vmem:[%s11235_s9 + $0x1130] sm:$0xf0]  ;;  %v8756_v49 = vor.u32 %v10504_v15, %v8753_v18 }
 0x190   : > { %5751 = vmatpush.bf16.msra.mxu1 %v8948_v0  ;;  %v8897_v0 = vld [vmem:[%s11235_s9 + $0x1050] sm:$0xf0]  ;;  %v10500_v51 = vld [vmem:[%s11235_s9 + $0xf04] sm:$0xf] }
 0x191   : > { %5764 = vmatpush.bf16.msra.mxu2 %v9076_v2  ;;  %v10572_v2 = vld [vmem:[%s11235_s9 + $0x1144] sm:$0xf]  ;;  %v8900_v10 = vor.u32 %v10540_v59, %v8897_v0  ;;  %v9137_v41 = vld [vmem:[%s11235_s9 + $0x1230] sm:$0xf0] }
 0x192   : > { %5777 = vmatpush.bf16.msra.mxu3 %v9204_v6  ;;  %v9153_v6 = vld [vmem:[%s11235_s9 + $0x1250] sm:$0xf0]  ;;  %v9028_v11 = vor.u32 %v10572_v2, %v9025_v3  ;;  %v10564_v57 = vld [vmem:[%s11235_s9 + $0x1104] sm:$0xf] }
 0x193   : > { %5739 = vmatpush.bf16.msra.mxu0 %v8804_v19  ;;  %v10536_v19 = vld [vmem:[%s11235_s9 + $0x1024] sm:$0xf]  ;;  %v8993_v58 = vld [vmem:[%s11235_s9 + $0x1110] sm:$0xf0] }
 0x194   : > { %5752 = vmatpush.bf16.msra.mxu1 %v8932_v27  ;;  %v5447_v27 = vadd.f32 %v11977_v20, %v5434_v44  ;;  %v8737_v20 = vld [vmem:[%s11235_s9 + $0xf10] sm:$0xf0]  ;;  %v8884_v52 = vor.u32 %v10536_v19, %v8881_v33  ;;  %v10596_v59 = vld [vmem:[%s11235_s9 + $0x1204] sm:$0xf]  ;;  %v8996_v15 = vor.u32 %v10564_v57, %v8993_v58 }
 0x195   : > { %5765 = vmatpush.bf16.msra.mxu2 %v9060_v28  ;;  %v9156_v28 = vor.u32 %v10604_v4, %v9153_v6  ;;  %v9121_v44 = vld [vmem:[%s11235_s9 + $0x1210] sm:$0xf0]  ;;  %v10656_v0 = vld [vmem:[%s11235_s9 + $0x13e4] sm:$0xf]  ;;  %v5526_v4 = vpop.f32.mrf.mxu3  ;;  %v8740_v8 = vor.u32 %v10500_v51, %v8737_v20 }
 0x196   : > { %5778 = vmatpush.bf16.msra.mxu3 %v9188_v40  ;;  %v10600_v40 = vld [vmem:[%s11235_s9 + $0x1224] sm:$0xf]  ;;  %v5460_v48 = vadd.f32 %v11990_v60, %v5447_v27  ;;  %v9361_v2 = vld [vmem:[%s11235_s9 + $0x13f0] sm:$0xf0] }
 0x197   : > { %5740 = vmatpush.bf16.msra.mxu0 %v8788_v54  ;;  %v9012_v54 = vor.u32 %v10568_v35, %v9009_v37  ;;  %v9140_v60 = vor.u32 %v10600_v40, %v9137_v41  ;;  %v10688_v3 = vld [vmem:[%s11235_s9 + $0x14e4] sm:$0xf]  ;;  %v9745_v19 = vld [vmem:[%s11235_s9 + $0x16f0] sm:$0xf0] }
 0x198   : > { %5753 = vmatpush.bf16.msra.mxu1 %v8916_v55  ;;  %v10532_v55 = vld [vmem:[%s11235_s9 + $0x1004] sm:$0xf]  ;;  %v5473_v6 = vadd.f32 %v11995_v1, %v5460_v48  ;;  %v9124_v1 = vor.u32 %v10596_v59, %v9121_v44  ;;  %v9345_v40 = vld [vmem:[%s11235_s9 + $0x13d0] sm:$0xf0] }
 0x199   : > { %5766 = vmatpush.bf16.msra.mxu2 %v9044_v56  ;;  %v8865_v56 = vld [vmem:[%s11235_s9 + $0x1010] sm:$0xf0]  ;;  %v10720_v16 = vld [vmem:[%s11235_s9 + $0x15e4] sm:$0xf] }
 0x19a   : > { %5779 = vmatpush.bf16.msra.mxu3 %v9172_v61  ;;  %v5513_v61 = vpop.f32.mrf.mxu2  ;;  %v10752_v18 = vld [vmem:[%s11235_s9 + $0x16e4] sm:$0xf]  ;;  %v5486_v27 = vadd.f32 %v12049_v12, %v5473_v6  ;;  %v9601_v20 = vld [vmem:[%s11235_s9 + $0x15d0] sm:$0xf0] }
 0x19b   : > { %5741 = vmatpush.bf16.msra.mxu0 %v8772_v25  ;;  %v9489_v25 = vld [vmem:[%s11235_s9 + $0x14f0] sm:$0xf0]  ;;  %v10652_v37 = vld [vmem:[%s11235_s9 + $0x13c4] sm:$0xf]  ;;  %v9748_v48 = vor.u32 %v10752_v18, %v9745_v19 }
 0x19c   : > { %5754 = vmatpush.bf16.msra.mxu1 %v8900_v10  ;;  %v9617_v10 = vld [vmem:[%s11235_s9 + $0x15f0] sm:$0xf0]  ;;  %v9492_v33 = vor.u32 %v10688_v3, %v9489_v25  ;;  %v10684_v41 = vld [vmem:[%s11235_s9 + $0x14c4] sm:$0xf] }
 0x19d   : > { %5767 = vmatpush.bf16.msra.mxu2 %v9028_v11  ;;  %v8868_v11 = vor.u32 %v10532_v55, %v8865_v56  ;;  %v9620_v35 = vor.u32 %v10720_v16, %v9617_v10  ;;  %v10716_v51 = vld [vmem:[%s11235_s9 + $0x15c4] sm:$0xf]  ;;  %v9348_v55 = vor.u32 %v10652_v37, %v9345_v40  ;;  %v9329_v58 = vld [vmem:[%s11235_s9 + $0x13b0] sm:$0xf0] }
 0x19e   : > { %5780 = vmatpush.bf16.msra.mxu3 %v9156_v28  ;;  %v9364_v28 = vor.u32 %v10656_v0, %v9361_v2  ;;  %v10748_v12 = vld [vmem:[%s11235_s9 + $0x16c4] sm:$0xf]  ;;  %v9604_v57 = vor.u32 %v10716_v51, %v9601_v20  ;;  %v9457_v61 = vld [vmem:[%s11235_s9 + $0x14b0] sm:$0xf0] }
 0x19f   : > { %5742 = vmatpush.bf16.msra.mxu0 %v8756_v49  ;;  %v9473_v49 = vld [vmem:[%s11235_s9 + $0x14d0] sm:$0xf0]  ;;  %v10680_v59 = vld [vmem:[%s11235_s9 + $0x14a4] sm:$0xf] }
 0x1a0   : > { %5755 = vmatpush.bf16.msra.mxu1 %v8884_v52  ;;  %v9729_v52 = vld [vmem:[%s11235_s9 + $0x16d0] sm:$0xf0]  ;;  %v9476_v56 = vor.u32 %v10684_v41, %v9473_v49  ;;  %v10712_v0 = vld [vmem:[%s11235_s9 + $0x15a4] sm:$0xf]  ;;  %v9460_v6 = vor.u32 %v10680_v59, %v9457_v61 }
 0x1a1   : > { %5768 = vmatpush.bf16.msra.mxu2 %v9012_v54  ;;  %v5499_v54 = vadd.f32 %v12053_v23, %v5486_v27  ;;  %v9732_v23 = vor.u32 %v10748_v12, %v9729_v52  ;;  %v9585_v2 = vld [vmem:[%s11235_s9 + $0x15b0] sm:$0xf0]  ;;  %v10744_v3 = vld [vmem:[%s11235_s9 + $0x16a4] sm:$0xf] }
 0x1a2   : > { %5781 = vmatpush.bf16.msra.mxu3 %v9140_v60  ;;  %v10648_v60 = vld [vmem:[%s11235_s9 + $0x13a4] sm:$0xf]  ;;  %v9713_v4 = vld [vmem:[%s11235_s9 + $0x16b0] sm:$0xf0] }
 0x1a3   : > { %5743 = vmatpush.bf16.msra.mxu0 %v8740_v8  ;;  %v5512_v44 = vadd.f32 %v12068_v62, %v5499_v54  ;;  %v9332_v62 = vor.u32 %v10648_v60, %v9329_v58  ;;  %v9588_v8 = vor.u32 %v10712_v0, %v9585_v2  ;;  %v10644_v25 = vld [vmem:[%s11235_s9 + $0x1384] sm:$0xf]  ;;  %v9313_v16 = vld [vmem:[%s11235_s9 + $0x1390] sm:$0xf0] }
 0x1a4   : > { %5756 = vmatpush.bf16.msra.mxu1 %v8868_v11  ;;  %v10676_v10 = vld [vmem:[%s11235_s9 + $0x1484] sm:$0xf]  ;;  %v9441_v18 = vld [vmem:[%s11235_s9 + $0x1490] sm:$0xf0]  ;;  %v9316_v40 = vor.u32 %v10644_v25, %v9313_v16  ;;  %v5550_v20 = vpop.f32.mrf.mxu1 }
 0x1a5   : > { %5769 = vmatpush.bf16.msra.mxu2 %v8996_v15  ;;  %v5525_v11 = vadd.f32 %v12073_v53, %v5512_v44  ;;  %v9716_v15 = vor.u32 %v10744_v3, %v9713_v4  ;;  %v10708_v19 = vld [vmem:[%s11235_s9 + $0x1584] sm:$0xf]  ;;  %v9569_v27 = vld [vmem:[%s11235_s9 + $0x1590] sm:$0xf0]  ;;  %v9444_v53 = vor.u32 %v10676_v10, %v9441_v18 }
 0x1a6   : > { %5782 = vmatpush.bf16.msra.mxu3 %v9124_v1  ;;  %5744 = vmatmul.bf16.vlgmr.msra.gmra.mxu0 %v11579_v36  ;;  %v311_v1 = vld [vmem:[#allocation2 + $0x10] sm:$0xff]  ;;  %v9572_v41 = vor.u32 %v10708_v19, %v9569_v27  ;;  %v10672_v51 = vld [vmem:[%s11235_s9 + $0x1464] sm:$0xf] }
 0x1a7   : > { %5788 = vmatpush.bf16.msrb.mxu0 %v9364_v28  ;;  %5757 = vmatmul.bf16.vlgmr.msra.gmra.mxu1 %v11646_v38  ;;  %v5537_v28 = vpop.f32.mrf.mxu0  ;;  %v9297_v49 = vld [vmem:[%s11235_s9 + $0x1370] sm:$0xf0]  ;;  %v10668_v0 = vld [vmem:[%s11235_s9 + $0x1444] sm:$0xf] }
 0x1a8   : > { %5801 = vmatpush.bf16.msrb.mxu1 %v9492_v33  ;;  %5770 = vmatmul.bf16.vlgmr.msra.gmra.mxu2 %v11653_v47  ;;  %v10740_v33 = vld [vmem:[%s11235_s9 + $0x1684] sm:$0xf]  ;;  %v5538_v37 = vadd.f32 %v5537_v28, %v5525_v11  ;;  %v9425_v54 = vld [vmem:[%s11235_s9 + $0x1470] sm:$0xf0] }
 0x1a9   : > { %5814 = vmatpush.bf16.msrb.mxu2 %v9620_v35  ;;  %5783 = vmatmul.bf16.vlgmr.msra.gmra.mxu3 %v11651_v46  ;;  %v9697_v35 = vld [vmem:[%s11235_s9 + $0x1690] sm:$0xf0]  ;;  %v9428_v59 = vor.u32 %v10672_v51, %v9425_v54  ;;  %v10700_v4 = vld [vmem:[%s11235_s9 + $0x1544] sm:$0xf] }
 0x1aa   : > { %5827 = vmatpush.bf16.msrb.mxu3 %v9748_v48  ;;  %v10640_v48 = vld [vmem:[%s11235_s9 + $0x1364] sm:$0xf]  ;;  %v6516_v12 = vadd.f32 %v5538_v37, %v311_v1  ;;  %v9700_v52 = vor.u32 %v10740_v33, %v9697_v35  ;;  %v9681_v60 = vld [vmem:[%s11235_s9 + $0x1670] sm:$0xf0] }
 0x1ab   : > { %5789 = vmatpush.bf16.msrb.mxu0 %v9348_v55  ;;  %v10704_v55 = vld [vmem:[%s11235_s9 + $0x1564] sm:$0xf]  ;;  %v9300_v58 = vor.u32 %v10640_v48, %v9297_v49  ;;  %v9281_v61 = vld [vmem:[%s11235_s9 + $0x1350] sm:$0xf0] }
 0x1ac   : > { %5802 = vmatpush.bf16.msrb.mxu1 %v9476_v56  ;;  %v9553_v56 = vld [vmem:[%s11235_s9 + $0x1570] sm:$0xf0]  ;;  %6520 = vst [vmem:[#allocation2 + $0x10] sm:$0xff] %v6516_v12  ;;  %v10732_v25 = vld [vmem:[%s11235_s9 + $0x1644] sm:$0xf]  ;;  %v5552_v35 = vpop.f32.mrf.mxu1 }
 0x1ad   : > { %5815 = vmatpush.bf16.msrb.mxu2 %v9604_v57  ;;  %v10736_v57 = vld [vmem:[%s11235_s9 + $0x1664] sm:$0xf]  ;;  %v9556_v44 = vor.u32 %v10704_v55, %v9553_v56  ;;  %v9409_v3 = vld [vmem:[%s11235_s9 + $0x1450] sm:$0xf0] }
 0x1ae   : > { %5828 = vmatpush.bf16.msrb.mxu3 %v9732_v23  ;;  %v10636_v23 = vld [vmem:[%s11235_s9 + $0x1344] sm:$0xf]  ;;  %v9684_v2 = vor.u32 %v10736_v57, %v9681_v60  ;;  %v9665_v16 = vld [vmem:[%s11235_s9 + $0x1650] sm:$0xf0]  ;;  %v9412_v18 = vor.u32 %v10668_v0, %v9409_v3 }
 0x1af   : > { %5790 = vmatpush.bf16.msrb.mxu0 %v9332_v62  ;;  %v9537_v62 = vld [vmem:[%s11235_s9 + $0x1550] sm:$0xf0]  ;;  %v5539_v11 = vpop.f32.mrf.mxu0  ;;  %v10632_v27 = vld [vmem:[%s11235_s9 + $0x1324] sm:$0xf]  ;;  %v9668_v37 = vor.u32 %v10732_v25, %v9665_v16 }
 0x1b0   : > { %5803 = vmatpush.bf16.msrb.mxu1 %v9460_v6  ;;  %v5563_v6 = vpop.f32.mrf.mxu2  ;;  %v9540_v19 = vor.u32 %v10700_v4, %v9537_v62  ;;  %v9265_v1 = vld [vmem:[%s11235_s9 + $0x1330] sm:$0xf0]  ;;  %v10664_v28 = vld [vmem:[%s11235_s9 + $0x1424] sm:$0xf]  ;;  %v10083_v11 = vld [vmem:[%s11235_s9 + $0x1f4] sm:$0xf0] }
 0x1b1   : > { %5816 = vmatpush.bf16.msrb.mxu2 %v9588_v8  ;;  %v5576_v8 = vpop.f32.mrf.mxu3  ;;  %v5564_v10 = vadd.f32 %v5563_v6, %v5550_v20  ;;  %v10728_v48 = vld [vmem:[%s11235_s9 + $0x1624] sm:$0xf]  ;;  %v9649_v49 = vld [vmem:[%s11235_s9 + $0x1630] sm:$0xf0]  ;;  %v9268_v51 = vor.u32 %v10632_v27, %v9265_v1  ;;  %v6935_v6 = vld [vmem:[%s11235_s9 + $0xe8] sm:$0xf] }
 0x1b2   : > { %5829 = vmatpush.bf16.msrb.mxu3 %v9716_v15  ;;  %v9284_v15 = vor.u32 %v10636_v23, %v9281_v61  ;;  %v10628_v20 = vld [vmem:[%s11235_s9 + $0x1304] sm:$0xf]  ;;  %v9249_v12 = vld [vmem:[%s11235_s9 + $0x1310] sm:$0xf0]  ;;  %v9652_v60 = vor.u32 %v10728_v48, %v9649_v49  ;;  %v7047_v48 = vld [vmem:[%s11235_s9 + $0x1c8] sm:$0xf] }
 0x1b3   : > { %5791 = vmatpush.bf16.msrb.mxu0 %v9316_v40  ;;  %v12155_v33 = vadd.f32 %v5576_v8, %v5564_v10  ;;  %v9393_v40 = vld [vmem:[%s11235_s9 + $0x1430] sm:$0xf0]  ;;  %v10660_v55 = vld [vmem:[%s11235_s9 + $0x1404] sm:$0xf]  ;;  %v9252_v4 = vor.u32 %v10628_v20, %v9249_v12  ;;  %v10051_v8 = vld [vmem:[%s11235_s9 + $0xf4] sm:$0xf0] }
 0x1b4   : > { %5804 = vmatpush.bf16.msrb.mxu1 %v9444_v53  ;;  %v10696_v53 = vld [vmem:[%s11235_s9 + $0x1524] sm:$0xf]  ;;  %v9377_v56 = vld [vmem:[%s11235_s9 + $0x1410] sm:$0xf0]  ;;  %v7063_v10 = vld [vmem:[%s11235_s9 + $0x1e8] sm:$0xf]  ;;  %v6936_v27 = vor.u32 %v10051_v8, %v6935_v6 }
 0x1b5   : > { %5817 = vmatpush.bf16.msrb.mxu2 %v9572_v41  ;;  %v9521_v41 = vld [vmem:[%s11235_s9 + $0x1530] sm:$0xf0]  ;;  %v10692_v57 = vld [vmem:[%s11235_s9 + $0x1504] sm:$0xf]  ;;  %v9380_v25 = vor.u32 %v10660_v55, %v9377_v56  ;;  %v10079_v49 = vld [vmem:[%s11235_s9 + $0x1d4] sm:$0xf0] }
 0x1b6   : > { %5830 = vmatpush.bf16.msrb.mxu3 %v9700_v52  ;;  %v9396_v52 = vor.u32 %v10664_v28, %v9393_v40  ;;  %v9524_v54 = vor.u32 %v10696_v53, %v9521_v41  ;;  %v10784_v0 = vld [vmem:[%s11235_s9 + $0x17e4] sm:$0xf]  ;;  %v10001_v62 = vld [vmem:[%s11235_s9 + $0x18f0] sm:$0xf0]  ;;  %v6919_v53 = vld [vmem:[%s11235_s9 + $0xc8] sm:$0xf]  ;;  %v7048_v56 = vor.u32 %v10079_v49, %v7047_v48 }
 0x1b7   : > { %5792 = vmatpush.bf16.msrb.mxu0 %v9300_v58  ;;  %v9505_v58 = vld [vmem:[%s11235_s9 + $0x1510] sm:$0xf0]  ;;  %v10816_v3 = vld [vmem:[%s11235_s9 + $0x18e4] sm:$0xf]  ;;  %v10047_v41 = vld [vmem:[%s11235_s9 + $0xd4] sm:$0xf0] }
 0x1b8   : > { %5805 = vmatpush.bf16.msrb.mxu1 %v9428_v59  ;;  %v10724_v59 = vld [vmem:[%s11235_s9 + $0x1604] sm:$0xf]  ;;  %v5565_v23 = vpop.f32.mrf.mxu2  ;;  %v9508_v16 = vor.u32 %v10692_v57, %v9505_v58  ;;  %v9857_v28 = vld [vmem:[%s11235_s9 + $0x17d0] sm:$0xf0]  ;;  %v6920_v12 = vor.u32 %v10047_v41, %v6919_v53  ;;  %v10043_v58 = vld [vmem:[%s11235_s9 + $0xb4] sm:$0xf0] }
 0x1b9   : > { %5818 = vmatpush.bf16.msrb.mxu2 %v9556_v44  ;;  %v9633_v44 = vld [vmem:[%s11235_s9 + $0x1610] sm:$0xf0]  ;;  %v5578_v61 = vpop.f32.mrf.mxu3  ;;  %v10780_v1 = vld [vmem:[%s11235_s9 + $0x17c4] sm:$0xf]  ;;  %v6887_v8 = vld [vmem:[%s11235_s9 + $0x88] sm:$0xf] }
 0x1ba   : > { %5831 = vmatpush.bf16.msrb.mxu3 %v9684_v2  ;;  %v9873_v2 = vld [vmem:[%s11235_s9 + $0x17f0] sm:$0xf0]  ;;  %v10812_v35 = vld [vmem:[%s11235_s9 + $0x18c4] sm:$0xf]  ;;  %v6871_v41 = vld [vmem:[%s11235_s9 + $0x68] sm:$0xf] }
 0x1bb   : > { %5793 = vmatpush.bf16.msrb.mxu0 %v9284_v15  ;;  %v9636_v15 = vor.u32 %v10724_v59, %v9633_v44  ;;  %v9985_v40 = vld [vmem:[%s11235_s9 + $0x18d0] sm:$0xf0]  ;;  %v10808_v55 = vld [vmem:[%s11235_s9 + $0x18a4] sm:$0xf]  ;;  %v7031_v59 = vld [vmem:[%s11235_s9 + $0x1a8] sm:$0xf] }
 0x1bc   : > { %5806 = vmatpush.bf16.msrb.mxu1 %v9412_v18  ;;  %v9876_v18 = vor.u32 %v10784_v0, %v9873_v2  ;;  %v9988_v20 = vor.u32 %v10812_v35, %v9985_v40  ;;  %v9969_v57 = vld [vmem:[%s11235_s9 + $0x18b0] sm:$0xf0]  ;;  %v10075_v44 = vld [vmem:[%s11235_s9 + $0x1b4] sm:$0xf0]  ;;  %v10772_v2 = vld [vmem:[%s11235_s9 + $0x1784] sm:$0xf] }
 0x1bd   : > { %5819 = vmatpush.bf16.msrb.mxu2 %v9540_v19  ;;  %v10004_v19 = vor.u32 %v10816_v3, %v10001_v62  ;;  %v9972_v61 = vor.u32 %v10808_v55, %v9969_v57  ;;  %v9825_v3 = vld [vmem:[%s11235_s9 + $0x1790] sm:$0xf0]  ;;  %v7032_v62 = vor.u32 %v10075_v44, %v7031_v59  ;;  %v10035_v48 = vld [vmem:[%s11235_s9 + $0x74] sm:$0xf0]  ;;  %v6999_v49 = vld [vmem:[%s11235_s9 + $0x168] sm:$0xf] }
 0x1be   : > { %5832 = vmatpush.bf16.msrb.mxu3 %v9668_v37  ;;  %v7064_v37 = vor.u32 %v10083_v11, %v7063_v10  ;;  %v9953_v6 = vld [vmem:[%s11235_s9 + $0x1890] sm:$0xf0]  ;;  %v10071_v10 = vld [vmem:[%s11235_s9 + $0x194] sm:$0xf0]  ;;  %v9828_v11 = vor.u32 %v10772_v2, %v9825_v3  ;;  %v6855_v59 = vld [vmem:[%s11235_s9 + $0x48] sm:$0xf] }
 0x1bf   : > { %5794 = vmatpush.bf16.msrb.mxu0 %v9268_v51  ;;  %v9860_v51 = vor.u32 %v10780_v1, %v9857_v28  ;;  %v9809_v1 = vld [vmem:[%s11235_s9 + $0x1770] sm:$0xf0]  ;;  %v10800_v28 = vld [vmem:[%s11235_s9 + $0x1864] sm:$0xf]  ;;  %v10031_v44 = vld [vmem:[%s11235_s9 + $0x54] sm:$0xf0] }
 0x1c0   : > { %5807 = vmatpush.bf16.msrb.mxu1 %v9396_v52  ;;  %v10776_v52 = vld [vmem:[%s11235_s9 + $0x17a4] sm:$0xf]  ;;  %v9937_v53 = vld [vmem:[%s11235_s9 + $0x1870] sm:$0xf0]  ;;  %v10063_v2 = vld [vmem:[%s11235_s9 + $0x154] sm:$0xf0] }
 0x1c1   : > { %5820 = vmatpush.bf16.msrb.mxu2 %v9524_v54  ;;  %v9841_v54 = vld [vmem:[%s11235_s9 + $0x17b0] sm:$0xf0] }
 0x1c2   : > { %5833 = vmatpush.bf16.msrb.mxu3 %v9652_v60  ;;  %v6903_v60 = vld [vmem:[%s11235_s9 + $0xa8] sm:$0xf]  ;;  %v9844_v23 = vor.u32 %v10776_v52, %v9841_v54  ;;  %v6872_v52 = vor.u32 %v10035_v48, %v6871_v41  ;;  %v10764_v54 = vld [vmem:[%s11235_s9 + $0x1744] sm:$0xf]  ;;  %v9793_v55 = vld [vmem:[%s11235_s9 + $0x1750] sm:$0xf0] }
 0x1c3   : > { %5795 = vmatpush.bf16.msrb.mxu0 %v9252_v4  ;;  %v6904_v0 = vor.u32 %v10043_v58, %v6903_v60  ;;  %v10804_v4 = vld [vmem:[%s11235_s9 + $0x1884] sm:$0xf]  ;;  %v9921_v58 = vld [vmem:[%s11235_s9 + $0x1850] sm:$0xf0]  ;;  %v9796_v3 = vor.u32 %v10764_v54, %v9793_v55  ;;  %v10055_v54 = vld [vmem:[%s11235_s9 + $0x114] sm:$0xf0] }
 0x1c4   : > { %5808 = vmatpush.bf16.msrb.mxu1 %v9380_v25  ;;  %v10039_v25 = vld [vmem:[%s11235_s9 + $0x94] sm:$0xf0]  ;;  %v10788_v48 = vld [vmem:[%s11235_s9 + $0x1804] sm:$0xf] }
 0x1c5   : > { %5821 = vmatpush.bf16.msrb.mxu2 %v9508_v16  ;;  %v7015_v16 = vld [vmem:[%s11235_s9 + $0x188] sm:$0xf] }
 0x1c6   : > { %5834 = vmatpush.bf16.msrb.mxu3 %v9636_v15  ;;  %5796 = vmatmul.bf16.vlgmr.msrb.gmra.mxu0 %v11657_v50  ;;  %v5589_v15 = vpop.f32.mrf.mxu0  ;;  %v7016_v40 = vor.u32 %v10071_v10, %v7015_v16  ;;  %v9777_v16 = vld [vmem:[%s11235_s9 + $0x1730] sm:$0xf0]  ;;  %v10792_v10 = vld [vmem:[%s11235_s9 + $0x1824] sm:$0xf] }
 0x1c7   : > { %5840 = vmatpush.bf16.msra.mxu0 %v9876_v18  ;;  %5809 = vmatmul.bf16.vlgmr.msrb.gmra.mxu1 %v11726_v9  ;;  %v9956_v18 = vor.u32 %v10804_v4, %v9953_v6  ;;  %v5590_v35 = vadd.f32 %v5589_v15, %v12155_v33  ;;  %v9940_v33 = vor.u32 %v10800_v28, %v9937_v53  ;;  %v10059_v28 = vld [vmem:[%s11235_s9 + $0x134] sm:$0xf0] }
 0x1c8   : > { %5853 = vmatpush.bf16.msra.mxu1 %v10004_v19  ;;  %5822 = vmatmul.bf16.vlgmr.msrb.gmra.mxu2 %v11733_v14  ;;  %v6888_v19 = vor.u32 %v10039_v25, %v6887_v8  ;;  %v6856_v8 = vor.u32 %v10031_v44, %v6855_v59  ;;  %v10760_v25 = vld [vmem:[%s11235_s9 + $0x1724] sm:$0xf]  ;;  %v10147_v59 = vld [vmem:[%s11235_s9 + $0x3f4] sm:$0xf0]  ;;  %v7447_v44 = vld [vmem:[%s11235_s9 + $0x4e8] sm:$0xf] }
 0x1c9   : > { %5866 = vmatpush.bf16.msra.mxu2 %v6936_v27  ;;  %5835 = vmatmul.bf16.vlgmr.msrb.gmra.mxu3 %v11731_v13  ;;  %v10768_v27 = vld [vmem:[%s11235_s9 + $0x1764] sm:$0xf] }
 0x1ca   : > { %5879 = vmatpush.bf16.msra.mxu3 %v7064_v37  ;;  %v5602_v37 = vpop.f32.mrf.mxu1 }
 0x1cb   : > { %5841 = vmatpush.bf16.msra.mxu0 %v9860_v51  ;;  %v10067_v51 = vld [vmem:[%s11235_s9 + $0x174] sm:$0xf0]  ;;  %v5615_v57 = vpop.f32.mrf.mxu2 }
 0x1cc   : > { %5854 = vmatpush.bf16.msra.mxu1 %v9988_v20  ;;  %v5603_v20 = vadd.f32 %v5602_v37, %v5590_v35  ;;  %v7000_v60 = vor.u32 %v10067_v51, %v6999_v49  ;;  %v9780_v35 = vor.u32 %v10760_v25, %v9777_v16  ;;  %v10756_v37 = vld [vmem:[%s11235_s9 + $0x1704] sm:$0xf]  ;;  %v9889_v49 = vld [vmem:[%s11235_s9 + $0x1810] sm:$0xf0]  ;;  %v6823_v51 = vld [vmem:[%s11235_s9 + $0x8] sm:$0xf] }
 0x1cd   : > { %5867 = vmatpush.bf16.msra.mxu2 %v6920_v12  ;;  %v9812_v12 = vor.u32 %v10768_v27, %v9809_v1  ;;  %v10027_v27 = vld [vmem:[%s11235_s9 + $0x34] sm:$0xf0]  ;;  %v6967_v1 = vld [vmem:[%s11235_s9 + $0x128] sm:$0xf] }
 0x1ce   : > { %5880 = vmatpush.bf16.msra.mxu3 %v7048_v56  ;;  %v10796_v56 = vld [vmem:[%s11235_s9 + $0x1844] sm:$0xf]  ;;  %v7175_v16 = vld [vmem:[%s11235_s9 + $0x2c8] sm:$0xf] }
 0x1cf   : > { %5842 = vmatpush.bf16.msra.mxu0 %v9844_v23  ;;  %v5616_v23 = vadd.f32 %v5615_v57, %v5603_v20  ;;  %v9924_v6 = vor.u32 %v10796_v56, %v9921_v58  ;;  %v7191_v56 = vld [vmem:[%s11235_s9 + $0x2e8] sm:$0xf]  ;;  %v10115_v57 = vld [vmem:[%s11235_s9 + $0x2f4] sm:$0xf0] }
 0x1d0   : > { %5855 = vmatpush.bf16.msra.mxu1 %v9972_v61  ;;  %v5628_v61 = vpop.f32.mrf.mxu3 }
 0x1d1   : > { %5868 = vmatpush.bf16.msra.mxu2 %v6904_v0  ;;  %v6983_v0 = vld [vmem:[%s11235_s9 + $0x148] sm:$0xf]  ;;  %v12223_v4 = vadd.f32 %v5628_v61, %v5616_v23  ;;  %v10179_v23 = vld [vmem:[%s11235_s9 + $0x4f4] sm:$0xf0]  ;;  %v9892_v61 = vor.u32 %v10788_v48, %v9889_v49 }
 0x1d2   : > { %5881 = vmatpush.bf16.msra.mxu3 %v7032_v62  ;;  %v5591_v62 = vpop.f32.mrf.mxu0  ;;  %v6984_v15 = vor.u32 %v10063_v2, %v6983_v0  ;;  %v7575_v2 = vld [vmem:[%s11235_s9 + $0x5e8] sm:$0xf]  ;;  %v7448_v25 = vor.u32 %v10179_v23, %v7447_v44  ;;  %v10135_v44 = vld [vmem:[%s11235_s9 + $0x394] sm:$0xf0] }
 0x1d3   : > { %5843 = vmatpush.bf16.msra.mxu0 %v9828_v11  ;;  %v5604_v11 = vpop.f32.mrf.mxu1  ;;  %v5617_v20 = vpop.f32.mrf.mxu2  ;;  %v7287_v48 = vld [vmem:[%s11235_s9 + $0x3a8] sm:$0xf] }
 0x1d4   : > { %5856 = vmatpush.bf16.msra.mxu1 %v9956_v18  ;;  %v9905_v18 = vld [vmem:[%s11235_s9 + $0x1830] sm:$0xf0]  ;;  %v7303_v11 = vld [vmem:[%s11235_s9 + $0x3c8] sm:$0xf] }
 0x1d5   : > { %5869 = vmatpush.bf16.msra.mxu2 %v6888_v19  ;;  %v6839_v19 = vld [vmem:[%s11235_s9 + $0x28] sm:$0xf]  ;;  %v9908_v53 = vor.u32 %v10792_v10, %v9905_v18  ;;  %v10111_v10 = vld [vmem:[%s11235_s9 + $0x2d4] sm:$0xf0] }
 0x1d6   : > { %5882 = vmatpush.bf16.msra.mxu3 %v7016_v40  ;;  %v9761_v40 = vld [vmem:[%s11235_s9 + $0x1710] sm:$0xf0]  ;;  %v6840_v41 = vor.u32 %v10027_v27, %v6839_v19  ;;  %v10143_v18 = vld [vmem:[%s11235_s9 + $0x3d4] sm:$0xf0]  ;;  %v7431_v19 = vld [vmem:[%s11235_s9 + $0x4c8] sm:$0xf] }
 0x1d7   : > { %5844 = vmatpush.bf16.msra.mxu0 %v9812_v12  ;;  %v6968_v12 = vor.u32 %v10059_v28, %v6967_v1  ;;  %v9764_v58 = vor.u32 %v10756_v37, %v9761_v40  ;;  %v10175_v27 = vld [vmem:[%s11235_s9 + $0x4d4] sm:$0xf0]  ;;  %v7559_v1 = vld [vmem:[%s11235_s9 + $0x5c8] sm:$0xf]  ;;  %v7304_v37 = vor.u32 %v10143_v18, %v7303_v11 }
 0x1d8   : > { %5857 = vmatpush.bf16.msra.mxu1 %v9940_v33  ;;  %v10023_v33 = vld [vmem:[%s11235_s9 + $0x14] sm:$0xf0]  ;;  %v5630_v55 = vpop.f32.mrf.mxu3  ;;  %v7432_v40 = vor.u32 %v10175_v27, %v7431_v19  ;;  %v7415_v20 = vld [vmem:[%s11235_s9 + $0x4a8] sm:$0xf] }
 0x1d9   : > { %5870 = vmatpush.bf16.msra.mxu2 %v6872_v52  ;;  %v6951_v52 = vld [vmem:[%s11235_s9 + $0x108] sm:$0xf]  ;;  %v6824_v0 = vor.u32 %v10023_v33, %v6823_v51  ;;  %v10207_v28 = vld [vmem:[%s11235_s9 + $0x5d4] sm:$0xf0] }
 0x1da   : > { %5883 = vmatpush.bf16.msra.mxu3 %v7000_v60  ;;  %v7319_v60 = vld [vmem:[%s11235_s9 + $0x3e8] sm:$0xf]  ;;  %v6952_v62 = vor.u32 %v10055_v54, %v6951_v52  ;;  %v7560_v49 = vor.u32 %v10207_v28, %v7559_v1  ;;  %v10139_v51 = vld [vmem:[%s11235_s9 + $0x3b4] sm:$0xf0] }
 0x1db   : > { %5845 = vmatpush.bf16.msra.mxu0 %v9796_v3  ;;  %v10211_v3 = vld [vmem:[%s11235_s9 + $0x5f4] sm:$0xf0]  ;;  %v7543_v33 = vld [vmem:[%s11235_s9 + $0x5a8] sm:$0xf]  ;;  %v7288_v55 = vor.u32 %v10139_v51, %v7287_v48 }
 0x1dc   : > { %5858 = vmatpush.bf16.msra.mxu1 %v9924_v6  ;;  %v7192_v6 = vor.u32 %v10115_v57, %v7191_v56  ;;  %v10203_v52 = vld [vmem:[%s11235_s9 + $0x5b4] sm:$0xf0]  ;;  %v7143_v57 = vld [vmem:[%s11235_s9 + $0x288] sm:$0xf] }
 0x1dd   : > { %5871 = vmatpush.bf16.msra.mxu2 %v6856_v8  ;;  %v7320_v8 = vor.u32 %v10147_v59, %v7319_v60  ;;  %v10103_v60 = vld [vmem:[%s11235_s9 + $0x294] sm:$0xf0]  ;;  %v7544_v59 = vor.u32 %v10203_v52, %v7543_v33  ;;  %v7399_v23 = vld [vmem:[%s11235_s9 + $0x488] sm:$0xf] }
 0x1de   : > { %5884 = vmatpush.bf16.msra.mxu3 %v6984_v15  ;;  %v7576_v15 = vor.u32 %v10211_v3, %v7575_v2  ;;  %v7527_v2 = vld [vmem:[%s11235_s9 + $0x588] sm:$0xf]  ;;  %v10199_v3 = vld [vmem:[%s11235_s9 + $0x594] sm:$0xf0] }
 0x1df   : > { %5846 = vmatpush.bf16.msra.mxu0 %v9780_v35  ;;  %v7176_v35 = vor.u32 %v10111_v10, %v7175_v16  ;;  %v7127_v10 = vld [vmem:[%s11235_s9 + $0x268] sm:$0xf]  ;;  %v10099_v11 = vld [vmem:[%s11235_s9 + $0x274] sm:$0xf0]  ;;  %v7528_v18 = vor.u32 %v10199_v3, %v7527_v2 }
 0x1e0   : > { %5859 = vmatpush.bf16.msra.mxu1 %v9908_v53  ;;  %v7159_v53 = vld [vmem:[%s11235_s9 + $0x2a8] sm:$0xf]  ;;  %v10131_v27 = vld [vmem:[%s11235_s9 + $0x374] sm:$0xf0] }
 0x1e1   : > { %5872 = vmatpush.bf16.msra.mxu2 %v6840_v41  ;;  %v10107_v41 = vld [vmem:[%s11235_s9 + $0x2b4] sm:$0xf0]  ;;  %v7383_v1 = vld [vmem:[%s11235_s9 + $0x468] sm:$0xf] }
 0x1e2   : > { %5885 = vmatpush.bf16.msra.mxu3 %v6968_v12  ;;  %v10171_v12 = vld [vmem:[%s11235_s9 + $0x4b4] sm:$0xf0]  ;;  %v7160_v54 = vor.u32 %v10107_v41, %v7159_v53  ;;  %v7511_v28 = vld [vmem:[%s11235_s9 + $0x568] sm:$0xf] }
 0x1e3   : > { %5847 = vmatpush.bf16.msra.mxu0 %v9764_v58  ;;  %v7416_v56 = vor.u32 %v10171_v12, %v7415_v20  ;;  %v7271_v58 = vld [vmem:[%s11235_s9 + $0x388] sm:$0xf]  ;;  %v10095_v48 = vld [vmem:[%s11235_s9 + $0x254] sm:$0xf0] }
 0x1e4   : > { %5860 = vmatpush.bf16.msra.mxu1 %v9892_v61  ;;  %v10167_v61 = vld [vmem:[%s11235_s9 + $0x494] sm:$0xf0]  ;;  %v7111_v41 = vld [vmem:[%s11235_s9 + $0x248] sm:$0xf] }
 0x1e5   : > { %5873 = vmatpush.bf16.msra.mxu2 %v6824_v0  ;;  %v5641_v0 = vpop.f32.mrf.mxu0  ;;  %v7400_v16 = vor.u32 %v10167_v61, %v7399_v23  ;;  %v10127_v12 = vld [vmem:[%s11235_s9 + $0x354] sm:$0xf0]  ;;  %v7367_v33 = vld [vmem:[%s11235_s9 + $0x448] sm:$0xf] }
 0x1e6   : > { %5886 = vmatpush.bf16.msra.mxu3 %v6952_v62  ;;  %5848 = vmatmul.bf16.vlgmr.msra.gmra.mxu0 %v11737_v17  ;;  %v5642_v62 = vadd.f32 %v5641_v0, %v12223_v4  ;;  %v10163_v4 = vld [vmem:[%s11235_s9 + $0x474] sm:$0xf0]  ;;  %v7095_v0 = vld [vmem:[%s11235_s9 + $0x228] sm:$0xf] }
 0x1e7   : > { %5892 = vmatpush.bf16.msrb.mxu0 %v7192_v6  ;;  %5861 = vmatmul.bf16.vlgmr.msra.gmra.mxu1 %v11806_v63  ;;  %v7144_v6 = vor.u32 %v10103_v60, %v7143_v57  ;;  %v7384_v53 = vor.u32 %v10163_v4, %v7383_v1  ;;  %v10159_v52 = vld [vmem:[%s11235_s9 + $0x454] sm:$0xf0]  ;;  %v7223_v3 = vld [vmem:[%s11235_s9 + $0x328] sm:$0xf] }
 0x1e8   : > { %5905 = vmatpush.bf16.msrb.mxu1 %v7320_v8  ;;  %5874 = vmatmul.bf16.vlgmr.msra.gmra.mxu2 %v11360_v21  ;;  %v5654_v8 = vpop.f32.mrf.mxu1  ;;  %v10191_v57 = vld [vmem:[%s11235_s9 + $0x554] sm:$0xf0]  ;;  %v7368_v61 = vor.u32 %v10159_v52, %v7367_v33  ;;  %v7207_v1 = vld [vmem:[%s11235_s9 + $0x308] sm:$0xf] }
 0x1e9   : > { %5918 = vmatpush.bf16.msrb.mxu2 %v7448_v25  ;;  %5887 = vmatmul.bf16.vlgmr.msra.gmra.mxu3 %v11363_v22  ;;  %v7272_v25 = vor.u32 %v10135_v44, %v7271_v58  ;;  %v5655_v19 = vadd.f32 %v5654_v8, %v5642_v62  ;;  %v7112_v58 = vor.u32 %v10095_v48, %v7111_v41  ;;  %v10091_v2 = vld [vmem:[%s11235_s9 + $0x234] sm:$0xf0]  ;;  %v7351_v8 = vld [vmem:[%s11235_s9 + $0x428] sm:$0xf] }
 0x1ea   : > { %5931 = vmatpush.bf16.msrb.mxu3 %v7576_v15  ;;  %v7255_v15 = vld [vmem:[%s11235_s9 + $0x368] sm:$0xf]  ;;  %v10119_v4 = vld [vmem:[%s11235_s9 + $0x314] sm:$0xf0] }
 0x1eb   : > { %5893 = vmatpush.bf16.msrb.mxu0 %v7176_v35  ;;  %v10195_v35 = vld [vmem:[%s11235_s9 + $0x574] sm:$0xf0]  ;;  %v5667_v20 = vpop.f32.mrf.mxu2  ;;  %v7703_v48 = vld [vmem:[%s11235_s9 + $0x6e8] sm:$0xf] }
 0x1ec   : > { %5906 = vmatpush.bf16.msrb.mxu1 %v7304_v37  ;;  %v7128_v37 = vor.u32 %v10099_v11, %v7127_v10  ;;  %v7512_v51 = vor.u32 %v10195_v35, %v7511_v28  ;;  %v10187_v10 = vld [vmem:[%s11235_s9 + $0x534] sm:$0xf0]  ;;  %v7096_v11 = vor.u32 %v10091_v2, %v7095_v0  ;;  %v7335_v28 = vld [vmem:[%s11235_s9 + $0x408] sm:$0xf] }
 0x1ed   : > { %5919 = vmatpush.bf16.msrb.mxu2 %v7432_v40  ;;  %v7256_v40 = vor.u32 %v10131_v27, %v7255_v15  ;;  %v5643_v60 = vpop.f32.mrf.mxu0  ;;  %v7079_v15 = vld [vmem:[%s11235_s9 + $0x208] sm:$0xf]  ;;  %v10275_v33 = vld [vmem:[%s11235_s9 + $0x7f4] sm:$0xf0] }
 0x1ee   : > { %5932 = vmatpush.bf16.msrb.mxu3 %v7560_v49  ;;  %v7239_v49 = vld [vmem:[%s11235_s9 + $0x348] sm:$0xf]  ;;  %v10339_v60 = vld [vmem:[%s11235_s9 + $0x9f4] sm:$0xf0] }
 0x1ef   : > { %5894 = vmatpush.bf16.msrb.mxu0 %v7160_v54  ;;  %v5668_v54 = vadd.f32 %v5667_v20, %v5655_v19  ;;  %v7240_v23 = vor.u32 %v10127_v12, %v7239_v49  ;;  %v10243_v49 = vld [vmem:[%s11235_s9 + $0x6f4] sm:$0xf0]  ;;  %v7959_v52 = vld [vmem:[%s11235_s9 + $0x8e8] sm:$0xf] }
 0x1f0   : > { %5907 = vmatpush.bf16.msrb.mxu1 %v7288_v55  ;;  %v5680_v55 = vpop.f32.mrf.mxu3  ;;  %v7687_v0 = vld [vmem:[%s11235_s9 + $0x6c8] sm:$0xf]  ;;  %v10239_v2 = vld [vmem:[%s11235_s9 + $0x6d4] sm:$0xf0] }
 0x1f1   : > { %5920 = vmatpush.bf16.msrb.mxu2 %v7416_v56  ;;  %v7495_v56 = vld [vmem:[%s11235_s9 + $0x548] sm:$0xf]  ;;  %v12294_v44 = vadd.f32 %v5680_v55, %v5668_v54  ;;  %v10307_v54 = vld [vmem:[%s11235_s9 + $0x8f4] sm:$0xf0]  ;;  %v7208_v55 = vor.u32 %v10119_v4, %v7207_v1 }
 0x1f2   : > { %5933 = vmatpush.bf16.msrb.mxu3 %v7544_v59  ;;  %v5656_v59 = vpop.f32.mrf.mxu1  ;;  %v7496_v62 = vor.u32 %v10191_v57, %v7495_v56  ;;  %v8087_v57 = vld [vmem:[%s11235_s9 + $0x9e8] sm:$0xf] }
 0x1f3   : > { %5895 = vmatpush.bf16.msrb.mxu0 %v7144_v6  ;;  %v10123_v6 = vld [vmem:[%s11235_s9 + $0x334] sm:$0xf0]  ;;  %v5669_v41 = vpop.f32.mrf.mxu2  ;;  %v7704_v59 = vor.u32 %v10243_v49, %v7703_v48  ;;  %v7799_v1 = vld [vmem:[%s11235_s9 + $0x7a8] sm:$0xf] }
 0x1f4   : > { %5908 = vmatpush.bf16.msrb.mxu1 %v7272_v25  ;;  %v10155_v25 = vld [vmem:[%s11235_s9 + $0x434] sm:$0xf0]  ;;  %v7224_v19 = vor.u32 %v10123_v6, %v7223_v3  ;;  %v7815_v3 = vld [vmem:[%s11235_s9 + $0x7c8] sm:$0xf] }
 0x1f5   : > { %5921 = vmatpush.bf16.msrb.mxu2 %v7400_v16  ;;  %v7479_v16 = vld [vmem:[%s11235_s9 + $0x528] sm:$0xf]  ;;  %v7352_v27 = vor.u32 %v10155_v25, %v7351_v8  ;;  %v10271_v6 = vld [vmem:[%s11235_s9 + $0x7d4] sm:$0xf0] }
 0x1f6   : > { %5934 = vmatpush.bf16.msrb.mxu3 %v7528_v18  ;;  %v10087_v18 = vld [vmem:[%s11235_s9 + $0x214] sm:$0xf0]  ;;  %v7480_v35 = vor.u32 %v10187_v10, %v7479_v16  ;;  %v7943_v8 = vld [vmem:[%s11235_s9 + $0x8c8] sm:$0xf] }
 0x1f7   : > { %5896 = vmatpush.bf16.msrb.mxu0 %v7128_v37  ;;  %v10151_v37 = vld [vmem:[%s11235_s9 + $0x414] sm:$0xf0]  ;;  %v7080_v12 = vor.u32 %v10087_v18, %v7079_v15  ;;  %v8071_v16 = vld [vmem:[%s11235_s9 + $0x9c8] sm:$0xf]  ;;  %v7816_v15 = vor.u32 %v10271_v6, %v7815_v3 }
 0x1f8   : > { %5909 = vmatpush.bf16.msrb.mxu1 %v7256_v40  ;;  %v7463_v40 = vld [vmem:[%s11235_s9 + $0x508] sm:$0xf]  ;;  %v5682_v20 = vpop.f32.mrf.mxu3  ;;  %v7336_v56 = vor.u32 %v10151_v37, %v7335_v28  ;;  %v10303_v25 = vld [vmem:[%s11235_s9 + $0x8d4] sm:$0xf0] }
 0x1f9   : > { %5922 = vmatpush.bf16.msrb.mxu2 %v7384_v53  ;;  %v10183_v53 = vld [vmem:[%s11235_s9 + $0x514] sm:$0xf0]  ;;  %v7944_v18 = vor.u32 %v10303_v25, %v7943_v8 }
 0x1fa   : > { %5935 = vmatpush.bf16.msrb.mxu3 %v7512_v51  ;;  %v7831_v51 = vld [vmem:[%s11235_s9 + $0x7e8] sm:$0xf]  ;;  %v10335_v10 = vld [vmem:[%s11235_s9 + $0x9d4] sm:$0xf0] }
 0x1fb   : > { %5897 = vmatpush.bf16.msrb.mxu0 %v7112_v58  ;;  %v7464_v58 = vor.u32 %v10183_v53, %v7463_v40  ;;  %v8072_v4 = vor.u32 %v10335_v10, %v8071_v16  ;;  %v10267_v28 = vld [vmem:[%s11235_s9 + $0x7b4] sm:$0xf0]  ;;  %v8055_v40 = vld [vmem:[%s11235_s9 + $0x9a8] sm:$0xf] }
 0x1fc   : > { %5910 = vmatpush.bf16.msrb.mxu1 %v7240_v23  ;;  %v7832_v23 = vor.u32 %v10275_v33, %v7831_v51  ;;  %v10299_v37 = vld [vmem:[%s11235_s9 + $0x8b4] sm:$0xf0]  ;;  %v7800_v48 = vor.u32 %v10267_v28, %v7799_v1  ;;  %v7655_v51 = vld [vmem:[%s11235_s9 + $0x688] sm:$0xf] }
 0x1fd   : > { %5923 = vmatpush.bf16.msrb.mxu2 %v7368_v61  ;;  %v7960_v61 = vor.u32 %v10307_v54, %v7959_v52  ;;  %v10331_v53 = vld [vmem:[%s11235_s9 + $0x9b4] sm:$0xf0]  ;;  %v7911_v54 = vld [vmem:[%s11235_s9 + $0x888] sm:$0xf] }
 0x1fe   : > { %5936 = vmatpush.bf16.msrb.mxu3 %v7496_v62  ;;  %v8088_v62 = vor.u32 %v10339_v60, %v8087_v57  ;;  %v10231_v20 = vld [vmem:[%s11235_s9 + $0x694] sm:$0xf0]  ;;  %v8056_v33 = vor.u32 %v10331_v53, %v8055_v40  ;;  %v8039_v57 = vld [vmem:[%s11235_s9 + $0x988] sm:$0xf] }
 0x1ff   : > { %5898 = vmatpush.bf16.msrb.mxu0 %v7096_v11  ;;  %v7688_v11 = vor.u32 %v10239_v2, %v7687_v0  ;;  %v10263_v52 = vld [vmem:[%s11235_s9 + $0x794] sm:$0xf0]  ;;  %v7639_v2 = vld [vmem:[%s11235_s9 + $0x668] sm:$0xf] }
 0x200   : > { %5911 = vmatpush.bf16.msrb.mxu1 %v7224_v19  ;;  %v7671_v19 = vld [vmem:[%s11235_s9 + $0x6a8] sm:$0xf]  ;;  %v10327_v60 = vld [vmem:[%s11235_s9 + $0x994] sm:$0xf0] }
 0x201   : > { %5924 = vmatpush.bf16.msrb.mxu2 %v7352_v27  ;;  %v10235_v27 = vld [vmem:[%s11235_s9 + $0x6b4] sm:$0xf0]  ;;  %v8040_v6 = vor.u32 %v10327_v60, %v8039_v57  ;;  %v7895_v16 = vld [vmem:[%s11235_s9 + $0x868] sm:$0xf] }
 0x202   : > { %5937 = vmatpush.bf16.msrb.mxu3 %v7480_v35  ;;  %v7927_v35 = vld [vmem:[%s11235_s9 + $0x8a8] sm:$0xf]  ;;  %v7672_v41 = vor.u32 %v10235_v27, %v7671_v19  ;;  %v10227_v3 = vld [vmem:[%s11235_s9 + $0x674] sm:$0xf0] }
 0x203   : > { %5899 = vmatpush.bf16.msrb.mxu0 %v7080_v12  ;;  %v7928_v49 = vor.u32 %v10299_v37, %v7927_v35  ;;  %v7783_v12 = vld [vmem:[%s11235_s9 + $0x788] sm:$0xf]  ;;  %v10259_v25 = vld [vmem:[%s11235_s9 + $0x774] sm:$0xf0] }
 0x204   : > { %5912 = vmatpush.bf16.msrb.mxu1 %v7208_v55  ;;  %v10295_v55 = vld [vmem:[%s11235_s9 + $0x894] sm:$0xf0]  ;;  %v8023_v10 = vld [vmem:[%s11235_s9 + $0x968] sm:$0xf] }
 0x205   : > { %5925 = vmatpush.bf16.msrb.mxu2 %v7336_v56  ;;  %v5693_v56 = vpop.f32.mrf.mxu0  ;;  %v7912_v0 = vor.u32 %v10295_v55, %v7911_v54  ;;  %v7623_v27 = vld [vmem:[%s11235_s9 + $0x648] sm:$0xf]  ;;  %v10223_v1 = vld [vmem:[%s11235_s9 + $0x654] sm:$0xf0] }
 0x206   : > { %5938 = vmatpush.bf16.msrb.mxu3 %v7464_v58  ;;  %5900 = vmatmul.bf16.vlgmr.msrb.gmra.mxu0 %v11346_v5  ;;  %v5694_v58 = vadd.f32 %v5693_v56, %v12294_v44  ;;  %v10291_v44 = vld [vmem:[%s11235_s9 + $0x874] sm:$0xf0]  ;;  %v7879_v40 = vld [vmem:[%s11235_s9 + $0x848] sm:$0xf] }
 0x207   : > { %5944 = vmatpush.bf16.msra.mxu0 %v7704_v59  ;;  %5913 = vmatmul.bf16.vlgmr.msrb.gmra.mxu1 %v11349_v7  ;;  %v7656_v59 = vor.u32 %v10231_v20, %v7655_v51  ;;  %v7896_v19 = vor.u32 %v10291_v44, %v7895_v16  ;;  %v10255_v37 = vld [vmem:[%s11235_s9 + $0x754] sm:$0xf0]  ;;  %v7607_v56 = vld [vmem:[%s11235_s9 + $0x628] sm:$0xf] }
 0x208   : > { %5957 = vmatpush.bf16.msra.mxu1 %v7832_v23  ;;  %5926 = vmatmul.bf16.vlgmr.msrb.gmra.mxu2 %v11419_v42  ;;  %v5706_v23 = vpop.f32.mrf.mxu1  ;;  %v10287_v53 = vld [vmem:[%s11235_s9 + $0x854] sm:$0xf0]  ;;  %v7735_v60 = vld [vmem:[%s11235_s9 + $0x728] sm:$0xf] }
 0x209   : > { %5970 = vmatpush.bf16.msra.mxu2 %v7960_v61  ;;  %5939 = vmatmul.bf16.vlgmr.msrb.gmra.mxu3 %v11423_v45  ;;  %v7784_v61 = vor.u32 %v10263_v52, %v7783_v12  ;;  %v5707_v8 = vadd.f32 %v5706_v23, %v5694_v58  ;;  %v10319_v51 = vld [vmem:[%s11235_s9 + $0x954] sm:$0xf0]  ;;  %v7624_v12 = vor.u32 %v10223_v1, %v7623_v27  ;;  %v7863_v23 = vld [vmem:[%s11235_s9 + $0x828] sm:$0xf] }
 0x20a   : > { %5983 = vmatpush.bf16.msra.mxu3 %v8088_v62  ;;  %v7767_v62 = vld [vmem:[%s11235_s9 + $0x768] sm:$0xf]  ;;  %v7880_v55 = vor.u32 %v10287_v53, %v7879_v40  ;;  %v10219_v57 = vld [vmem:[%s11235_s9 + $0x634] sm:$0xf0] }
 0x20b   : > { %5945 = vmatpush.bf16.msra.mxu0 %v7688_v11  ;;  %v10323_v11 = vld [vmem:[%s11235_s9 + $0x974] sm:$0xf0]  ;;  %v5719_v35 = vpop.f32.mrf.mxu2  ;;  %v7719_v16 = vld [vmem:[%s11235_s9 + $0x708] sm:$0xf] }
 0x20c   : > { %5958 = vmatpush.bf16.msra.mxu1 %v7816_v15  ;;  %v7640_v15 = vor.u32 %v10227_v3, %v7639_v2  ;;  %v8024_v28 = vor.u32 %v10323_v11, %v8023_v10  ;;  %v10315_v2 = vld [vmem:[%s11235_s9 + $0x934] sm:$0xf0]  ;;  %v7608_v3 = vor.u32 %v10219_v57, %v7607_v56  ;;  %v7847_v10 = vld [vmem:[%s11235_s9 + $0x808] sm:$0xf] }
 0x20d   : > { %5971 = vmatpush.bf16.msra.mxu2 %v7944_v18  ;;  %v7768_v18 = vor.u32 %v10259_v25, %v7767_v62  ;;  %v5695_v20 = vpop.f32.mrf.mxu0  ;;  %v7591_v62 = vld [vmem:[%s11235_s9 + $0x608] sm:$0xf]  ;;  %v10247_v44 = vld [vmem:[%s11235_s9 + $0x714] sm:$0xf0] }
 0x20e   : > { %5984 = vmatpush.bf16.msra.mxu3 %v8072_v4  ;;  %v7751_v4 = vld [vmem:[%s11235_s9 + $0x748] sm:$0xf]  ;;  %v10403_v40 = vld [vmem:[%s11235_s9 + $0xbf4] sm:$0xf0] }
 0x20f   : > { %5946 = vmatpush.bf16.msra.mxu0 %v7672_v41  ;;  %v5720_v41 = vadd.f32 %v5719_v35, %v5707_v8  ;;  %v7752_v54 = vor.u32 %v10255_v37, %v7751_v4  ;;  %v8215_v1 = vld [vmem:[%s11235_s9 + $0xae8] sm:$0xf]  ;;  %v10371_v4 = vld [vmem:[%s11235_s9 + $0xaf4] sm:$0xf0] }
 0x210   : > { %5959 = vmatpush.bf16.msra.mxu1 %v7800_v48  ;;  %v5732_v48 = vpop.f32.mrf.mxu3  ;;  %v8471_v53 = vld [vmem:[%s11235_s9 + $0xce8] sm:$0xf]  ;;  %v10467_v20 = vld [vmem:[%s11235_s9 + $0xdf4] sm:$0xf0] }
 0x211   : > { %5972 = vmatpush.bf16.msra.mxu2 %v7928_v49  ;;  %v8007_v49 = vld [vmem:[%s11235_s9 + $0x948] sm:$0xf]  ;;  %v12365_v52 = vadd.f32 %v5732_v48, %v5720_v41  ;;  %v10435_v41 = vld [vmem:[%s11235_s9 + $0xcf4] sm:$0xf0]  ;;  %v7720_v48 = vor.u32 %v10247_v44, %v7719_v16 }
 0x212   : > { %5985 = vmatpush.bf16.msra.mxu3 %v8056_v33  ;;  %v5708_v33 = vpop.f32.mrf.mxu1  ;;  %v8008_v58 = vor.u32 %v10319_v51, %v8007_v49  ;;  %v8599_v51 = vld [vmem:[%s11235_s9 + $0xde8] sm:$0xf]  ;;  %v10367_v57 = vld [vmem:[%s11235_s9 + $0xad4] sm:$0xf0] }
 0x213   : > { %5947 = vmatpush.bf16.msra.mxu0 %v7656_v59  ;;  %v10251_v59 = vld [vmem:[%s11235_s9 + $0x734] sm:$0xf0]  ;;  %v5721_v27 = vpop.f32.mrf.mxu2  ;;  %v8216_v33 = vor.u32 %v10371_v4, %v8215_v1  ;;  %v8199_v56 = vld [vmem:[%s11235_s9 + $0xac8] sm:$0xf] }
 0x214   : > { %5960 = vmatpush.bf16.msra.mxu1 %v7784_v61  ;;  %v10283_v61 = vld [vmem:[%s11235_s9 + $0x834] sm:$0xf0]  ;;  %v7736_v8 = vor.u32 %v10251_v59, %v7735_v60  ;;  %v8327_v60 = vld [vmem:[%s11235_s9 + $0xbc8] sm:$0xf] }
 0x215   : > { %5973 = vmatpush.bf16.msra.mxu2 %v7912_v0  ;;  %v7991_v0 = vld [vmem:[%s11235_s9 + $0x928] sm:$0xf]  ;;  %v7864_v25 = vor.u32 %v10283_v61, %v7863_v23  ;;  %v10399_v59 = vld [vmem:[%s11235_s9 + $0xbd4] sm:$0xf0] }
 0x216   : > { %5986 = vmatpush.bf16.msra.mxu3 %v8040_v6  ;;  %v10215_v6 = vld [vmem:[%s11235_s9 + $0x614] sm:$0xf0]  ;;  %v7992_v11 = vor.u32 %v10315_v2, %v7991_v0  ;;  %v8455_v23 = vld [vmem:[%s11235_s9 + $0xcc8] sm:$0xf] }
 0x217   : > { %5948 = vmatpush.bf16.msra.mxu0 %v7640_v15  ;;  %v10279_v15 = vld [vmem:[%s11235_s9 + $0x814] sm:$0xf0]  ;;  %v7592_v37 = vor.u32 %v10215_v6, %v7591_v62  ;;  %v8583_v0 = vld [vmem:[%s11235_s9 + $0xdc8] sm:$0xf]  ;;  %v8328_v62 = vor.u32 %v10399_v59, %v8327_v60 }
 0x218   : > { %5961 = vmatpush.bf16.msra.mxu1 %v7768_v18  ;;  %v7975_v18 = vld [vmem:[%s11235_s9 + $0x908] sm:$0xf]  ;;  %v5734_v35 = vpop.f32.mrf.mxu3  ;;  %v7848_v49 = vor.u32 %v10279_v15, %v7847_v10  ;;  %v10431_v61 = vld [vmem:[%s11235_s9 + $0xcd4] sm:$0xf0] }
 0x219   : > { %5974 = vmatpush.bf16.msra.mxu2 %v7896_v19  ;;  %v10311_v19 = vld [vmem:[%s11235_s9 + $0x914] sm:$0xf0]  ;;  %v8456_v6 = vor.u32 %v10431_v61, %v8455_v23  ;;  %v8311_v16 = vld [vmem:[%s11235_s9 + $0xba8] sm:$0xf] }
 0x21a   : > { %5987 = vmatpush.bf16.msra.mxu3 %v8024_v28  ;;  %v8343_v28 = vld [vmem:[%s11235_s9 + $0xbe8] sm:$0xf]  ;;  %v10463_v2 = vld [vmem:[%s11235_s9 + $0xdd4] sm:$0xf0] }
 0x21b   : > { %5949 = vmatpush.bf16.msra.mxu0 %v7624_v12  ;;  %v7976_v12 = vor.u32 %v10311_v19, %v7975_v18  ;;  %v8584_v44 = vor.u32 %v10463_v2, %v8583_v0  ;;  %v10395_v10 = vld [vmem:[%s11235_s9 + $0xbb4] sm:$0xf0]  ;;  %v8567_v18 = vld [vmem:[%s11235_s9 + $0xda8] sm:$0xf] }
 0x21c   : > { %5962 = vmatpush.bf16.msra.mxu1 %v7752_v54  ;;  %v8344_v54 = vor.u32 %v10403_v40, %v8343_v28  ;;  %v10427_v15 = vld [vmem:[%s11235_s9 + $0xcb4] sm:$0xf0]  ;;  %v8312_v1 = vor.u32 %v10395_v10, %v8311_v16  ;;  %v8167_v28 = vld [vmem:[%s11235_s9 + $0xa88] sm:$0xf] }
 0x21d   : > { %5975 = vmatpush.bf16.msra.mxu2 %v7880_v55  ;;  %v8472_v55 = vor.u32 %v10435_v41, %v8471_v53  ;;  %v10459_v19 = vld [vmem:[%s11235_s9 + $0xdb4] sm:$0xf0]  ;;  %v8423_v41 = vld [vmem:[%s11235_s9 + $0xc88] sm:$0xf] }
 0x21e   : > { %5988 = vmatpush.bf16.msra.mxu3 %v8008_v58  ;;  %v8600_v58 = vor.u32 %v10467_v20, %v8599_v51  ;;  %v10359_v35 = vld [vmem:[%s11235_s9 + $0xa94] sm:$0xf0]  ;;  %v8568_v40 = vor.u32 %v10459_v19, %v8567_v18  ;;  %v8551_v51 = vld [vmem:[%s11235_s9 + $0xd88] sm:$0xf] }
 0x21f   : > { %5950 = vmatpush.bf16.msra.mxu0 %v7608_v3  ;;  %v8200_v3 = vor.u32 %v10367_v57, %v8199_v56  ;;  %v10391_v53 = vld [vmem:[%s11235_s9 + $0xb94] sm:$0xf0]  ;;  %v8151_v56 = vld [vmem:[%s11235_s9 + $0xa68] sm:$0xf] }
 0x220   : > { %5963 = vmatpush.bf16.msra.mxu1 %v7736_v8  ;;  %v8183_v8 = vld [vmem:[%s11235_s9 + $0xaa8] sm:$0xf]  ;;  %v10455_v20 = vld [vmem:[%s11235_s9 + $0xd94] sm:$0xf0] }
 0x221   : > { %5976 = vmatpush.bf16.msra.mxu2 %v7864_v25  ;;  %v10363_v25 = vld [vmem:[%s11235_s9 + $0xab4] sm:$0xf0]  ;;  %v8279_v60 = vld [vmem:[%s11235_s9 + $0xb68] sm:$0xf] }
 0x222   : > { %5989 = vmatpush.bf16.msra.mxu3 %v7992_v11  ;;  %v8439_v11 = vld [vmem:[%s11235_s9 + $0xca8] sm:$0xf]  ;;  %v8184_v27 = vor.u32 %v10363_v25, %v8183_v8  ;;  %v10355_v57 = vld [vmem:[%s11235_s9 + $0xa74] sm:$0xf0] }
 0x223   : > { %5951 = vmatpush.bf16.msra.mxu0 %v7592_v37  ;;  %v8440_v4 = vor.u32 %v10427_v15, %v8439_v11  ;;  %v8295_v37 = vld [vmem:[%s11235_s9 + $0xb88] sm:$0xf]  ;;  %v10387_v59 = vld [vmem:[%s11235_s9 + $0xb74] sm:$0xf0] }
 0x224   : > { %5964 = vmatpush.bf16.msra.mxu1 %v7720_v48  ;;  %v10423_v48 = vld [vmem:[%s11235_s9 + $0xc94] sm:$0xf0]  ;;  %v8407_v23 = vld [vmem:[%s11235_s9 + $0xc68] sm:$0xf] }
 0x225   : > { %5977 = vmatpush.bf16.msra.mxu2 %v7848_v49  ;;  %v12417_v49 = vpop.f32.mrf.mxu0  ;;  %v10419_v61 = vld [vmem:[%s11235_s9 + $0xc74] sm:$0xf0]  ;;  %v8535_v0 = vld [vmem:[%s11235_s9 + $0xd68] sm:$0xf] }
 0x226   : > { %5990 = vmatpush.bf16.msra.mxu3 %v7976_v12  ;;  %5952 = vmatmul.bf16.vlgmr.msra.gmra.mxu0 %v11415_v39  ;;  %v8168_v12 = vor.u32 %v10359_v35, %v8167_v28  ;;  %v10451_v2 = vld [vmem:[%s11235_s9 + $0xd74] sm:$0xf0]  ;;  %v8135_v8 = vld [vmem:[%s11235_s9 + $0xa48] sm:$0xf] }
 0x227   : > { %5996 = vmatpush.bf16.msrb.mxu0 %v8216_v33  ;;  %5965 = vmatmul.bf16.vlgmr.msra.gmra.mxu1 %v11421_v43  ;;  %v12421_v33 = vpop.f32.mrf.mxu1  ;;  %v10351_v25 = vld [vmem:[%s11235_s9 + $0xa54] sm:$0xf0]  ;;  %v8263_v16 = vld [vmem:[%s11235_s9 + $0xb48] sm:$0xf] }
 0x228   : > { %6009 = vmatpush.bf16.msrb.mxu1 %v8344_v54  ;;  %5978 = vmatmul.bf16.vlgmr.msra.gmra.mxu2 %v11490_v26  ;;  %v8296_v54 = vor.u32 %v10391_v53, %v8295_v37  ;;  %v10383_v11 = vld [vmem:[%s11235_s9 + $0xb54] sm:$0xf0]  ;;  %v8391_v15 = vld [vmem:[%s11235_s9 + $0xc48] sm:$0xf]  ;;  %v8136_v28 = vor.u32 %v10351_v25, %v8135_v8 }
 0x229   : > { %6022 = vmatpush.bf16.msrb.mxu2 %v8472_v55  ;;  %5991 = vmatmul.bf16.vlgmr.msra.gmra.mxu3 %v11497_v31  ;;  %v8424_v55 = vor.u32 %v10423_v48, %v8423_v41  ;;  %v10415_v18 = vld [vmem:[%s11235_s9 + $0xc54] sm:$0xf0]  ;;  %v8264_v37 = vor.u32 %v10383_v11, %v8263_v16  ;;  %v8119_v53 = vld [vmem:[%s11235_s9 + $0xa28] sm:$0xf] }
 0x22a   : > { %6035 = vmatpush.bf16.msrb.mxu3 %v8600_v58  ;;  %v8552_v58 = vor.u32 %v10455_v20, %v8551_v51  ;;  %v10347_v41 = vld [vmem:[%s11235_s9 + $0xa34] sm:$0xf0]  ;;  %v8247_v48 = vld [vmem:[%s11235_s9 + $0xb28] sm:$0xf] }
 0x22b   : > { %5997 = vmatpush.bf16.msrb.mxu0 %v8200_v3  ;;  %v8152_v3 = vor.u32 %v10355_v57, %v8151_v56  ;;  %v12434_v10 = vpop.f32.mrf.mxu2  ;;  %v10379_v20 = vld [vmem:[%s11235_s9 + $0xb34] sm:$0xf0]  ;;  %v8120_v57 = vor.u32 %v10347_v41, %v8119_v53  ;;  %v8727_v16 = vld [vmem:[%s11235_s9 + $0xee8] sm:$0xf] }
 0x22c   : > { %6010 = vmatpush.bf16.msrb.mxu1 %v8328_v62  ;;  %v8280_v62 = vor.u32 %v10387_v59, %v8279_v60  ;;  %v12439_v19 = vpop.f32.mrf.mxu3  ;;  %v10443_v56 = vld [vmem:[%s11235_s9 + $0xd34] sm:$0xf0]  ;;  %v8103_v60 = vld [vmem:[%s11235_s9 + $0xa08] sm:$0xf]  ;;  %v8248_v59 = vor.u32 %v10379_v20, %v8247_v48 }
 0x22d   : > { %6023 = vmatpush.bf16.msrb.mxu2 %v8456_v6  ;;  %v8408_v6 = vor.u32 %v10419_v61, %v8407_v23  ;;  %v8231_v61 = vld [vmem:[%s11235_s9 + $0xb08] sm:$0xf]  ;;  %v10439_v8 = vld [vmem:[%s11235_s9 + $0xd14] sm:$0xf0] }
 0x22e   : > { %6036 = vmatpush.bf16.msrb.mxu3 %v8584_v44  ;;  %v8536_v44 = vor.u32 %v10451_v2, %v8535_v0  ;;  %v10375_v0 = vld [vmem:[%s11235_s9 + $0xb14] sm:$0xf0]  ;;  %v8359_v2 = vld [vmem:[%s11235_s9 + $0xc08] sm:$0xf] }
 0x22f   : > { %5998 = vmatpush.bf16.msrb.mxu0 %v8184_v27  ;;  %v8519_v27 = vld [vmem:[%s11235_s9 + $0xd48] sm:$0xf]  ;;  %v5760_v35 = vpop.f32.mrf.mxu1 }
 0x230   : > { %6011 = vmatpush.bf16.msrb.mxu1 %v8312_v1  ;;  %v10447_v1 = vld [vmem:[%s11235_s9 + $0xd54] sm:$0xf0]  ;;  %v8855_v11 = vld [vmem:[%s11235_s9 + $0xfe8] sm:$0xf] }
 0x231   : > { %6024 = vmatpush.bf16.msrb.mxu2 %v8440_v4  ;;  %v5747_v4 = vpop.f32.mrf.mxu0  ;;  %v8520_v51 = vor.u32 %v10447_v1, %v8519_v27  ;;  %v10531_v27 = vld [vmem:[%s11235_s9 + $0xff4] sm:$0xf0]  ;;  %v8983_v1 = vld [vmem:[%s11235_s9 + $0x10e8] sm:$0xf] }
 0x232   : > { %6037 = vmatpush.bf16.msrb.mxu3 %v8568_v40  ;;  %v8392_v40 = vor.u32 %v10415_v18, %v8391_v15  ;;  %v10563_v4 = vld [vmem:[%s11235_s9 + $0x10f4] sm:$0xf0]  ;;  %v8856_v48 = vor.u32 %v10531_v27, %v8855_v11  ;;  %v8711_v20 = vld [vmem:[%s11235_s9 + $0xec8] sm:$0xf] }
 0x233   : > { %5999 = vmatpush.bf16.msrb.mxu0 %v8168_v12  ;;  %v8375_v12 = vld [vmem:[%s11235_s9 + $0xc28] sm:$0xf]  ;;  %v5773_v25 = vpop.f32.mrf.mxu2  ;;  %v10587_v11 = vld [vmem:[%s11235_s9 + $0x11b4] sm:$0xf0] }
 0x234   : > { %6012 = vmatpush.bf16.msrb.mxu1 %v8296_v54  ;;  %v10411_v54 = vld [vmem:[%s11235_s9 + $0xc34] sm:$0xf0]  ;;  %v5786_v15 = vpop.f32.mrf.mxu3  ;;  %v8951_v25 = vld [vmem:[%s11235_s9 + $0x10a8] sm:$0xf] }
 0x235   : > { %6025 = vmatpush.bf16.msrb.mxu2 %v8424_v55  ;;  %v8503_v55 = vld [vmem:[%s11235_s9 + $0xd28] sm:$0xf]  ;;  %v8376_v23 = vor.u32 %v10411_v54, %v8375_v12  ;;  %v10495_v12 = vld [vmem:[%s11235_s9 + $0xed4] sm:$0xf0] }
 0x236   : > { %6038 = vmatpush.bf16.msrb.mxu3 %v8552_v58  ;;  %v10343_v58 = vld [vmem:[%s11235_s9 + $0xa14] sm:$0xf0]  ;;  %v8839_v54 = vld [vmem:[%s11235_s9 + $0xfc8] sm:$0xf] }
 0x237   : > { %6000 = vmatpush.bf16.msrb.mxu0 %v8152_v3  ;;  %v8504_v3 = vor.u32 %v10443_v56, %v8503_v55  ;;  %v8104_v18 = vor.u32 %v10343_v58, %v8103_v60  ;;  %v10527_v56 = vld [vmem:[%s11235_s9 + $0xfd4] sm:$0xf0]  ;;  %v9095_v58 = vld [vmem:[%s11235_s9 + $0x11c8] sm:$0xf] }
 0x238   : > { %6013 = vmatpush.bf16.msrb.mxu1 %v8280_v62  ;;  %v10407_v62 = vld [vmem:[%s11235_s9 + $0xc14] sm:$0xf0] }
 0x239   : > { %6026 = vmatpush.bf16.msrb.mxu2 %v8408_v6  ;;  %v8487_v6 = vld [vmem:[%s11235_s9 + $0xd08] sm:$0xf]  ;;  %v8360_v35 = vor.u32 %v10407_v62, %v8359_v2  ;;  %v10559_v60 = vld [vmem:[%s11235_s9 + $0x10d4] sm:$0xf0] }
 0x23a   : > { %6039 = vmatpush.bf16.msrb.mxu3 %v8536_v44  ;;  %v10499_v44 = vld [vmem:[%s11235_s9 + $0xef4] sm:$0xf0]  ;;  %v8488_v53 = vor.u32 %v10439_v8, %v8487_v6  ;;  %v8695_v2 = vld [vmem:[%s11235_s9 + $0xea8] sm:$0xf] }
 0x23b   : > { %6001 = vmatpush.bf16.msrb.mxu0 %v8136_v28  ;;  %v8232_v28 = vor.u32 %v10375_v0, %v8231_v61  ;;  %v8728_v41 = vor.u32 %v10499_v44, %v8727_v16  ;;  %v8840_v61 = vor.u32 %v10527_v56, %v8839_v54  ;;  %v8823_v62 = vld [vmem:[%s11235_s9 + $0xfa8] sm:$0xf]  ;;  %v10523_v8 = vld [vmem:[%s11235_s9 + $0xfb4] sm:$0xf0] }
 0x23c   : > { %6014 = vmatpush.bf16.msrb.mxu1 %v8264_v37  ;;  %v9111_v37 = vld [vmem:[%s11235_s9 + $0x11e8] sm:$0xf]  ;;  %v10555_v16 = vld [vmem:[%s11235_s9 + $0x10b4] sm:$0xf0] }
 0x23d   : > { %6027 = vmatpush.bf16.msrb.mxu2 %v8392_v40  ;;  %v10595_v40 = vld [vmem:[%s11235_s9 + $0x11f4] sm:$0xf0]  ;;  %v9079_v44 = vld [vmem:[%s11235_s9 + $0x11a8] sm:$0xf]  ;;  %v8952_v27 = vor.u32 %v10555_v16, %v8951_v25 }
 0x23e   : > { %6040 = vmatpush.bf16.msrb.mxu3 %v8520_v51  ;;  %v8984_v51 = vor.u32 %v10563_v4, %v8983_v1  ;;  %v9112_v55 = vor.u32 %v10595_v40, %v9111_v37  ;;  %v8679_v1 = vld [vmem:[%s11235_s9 + $0xe88] sm:$0xf]  ;;  %v10487_v4 = vld [vmem:[%s11235_s9 + $0xe94] sm:$0xf0] }
 0x23f   : > { %6002 = vmatpush.bf16.msrb.mxu0 %v8120_v57  ;;  %v8967_v57 = vld [vmem:[%s11235_s9 + $0x10c8] sm:$0xf]  ;;  %v10519_v37 = vld [vmem:[%s11235_s9 + $0xf94] sm:$0xf0] }
 0x240   : > { %6015 = vmatpush.bf16.msrb.mxu1 %v8248_v59  ;;  %v10591_v59 = vld [vmem:[%s11235_s9 + $0x11d4] sm:$0xf0]  ;;  %v8968_v0 = vor.u32 %v10559_v60, %v8967_v57  ;;  %v8935_v40 = vld [vmem:[%s11235_s9 + $0x1088] sm:$0xf] }
 0x241   : > { %6028 = vmatpush.bf16.msrb.mxu2 %v8376_v23  ;;  %v8712_v23 = vor.u32 %v10495_v12, %v8711_v20  ;;  %v9096_v6 = vor.u32 %v10591_v59, %v9095_v58  ;;  %v8680_v20 = vor.u32 %v10487_v4, %v8679_v1  ;;  %v8663_v56 = vld [vmem:[%s11235_s9 + $0xe68] sm:$0xf]  ;;  %v10483_v57 = vld [vmem:[%s11235_s9 + $0xe74] sm:$0xf0] }
 0x242   : > { %6041 = vmatpush.bf16.msrb.mxu3 %v8504_v3  ;;  %v10491_v3 = vld [vmem:[%s11235_s9 + $0xeb4] sm:$0xf0]  ;;  %v8791_v60 = vld [vmem:[%s11235_s9 + $0xf68] sm:$0xf] }
 0x243   : > { %6003 = vmatpush.bf16.msrb.mxu0 %v8104_v18  ;;  %v8696_v15 = vor.u32 %v10491_v3, %v8695_v2  ;;  %v8824_v18 = vor.u32 %v10523_v8, %v8823_v62  ;;  %v10515_v59 = vld [vmem:[%s11235_s9 + $0xf74] sm:$0xf0]  ;;  %v8664_v3 = vor.u32 %v10483_v57, %v8663_v56  ;;  %v8647_v8 = vld [vmem:[%s11235_s9 + $0xe48] sm:$0xf] }
 0x244   : > { %6016 = vmatpush.bf16.msrb.mxu1 %v8232_v28  ;;  %v8807_v28 = vld [vmem:[%s11235_s9 + $0xf88] sm:$0xf]  ;;  %v12497_v12 = vpop.f32.mrf.mxu1  ;;  %v10579_v2 = vld [vmem:[%s11235_s9 + $0x1174] sm:$0xf0]  ;;  %v8792_v62 = vor.u32 %v10515_v59, %v8791_v60 }
 0x245   : > { %6029 = vmatpush.bf16.msrb.mxu2 %v8360_v35  ;;  %v9080_v35 = vor.u32 %v10587_v11, %v9079_v44  ;;  %v8808_v54 = vor.u32 %v10519_v37, %v8807_v28  ;;  %v10479_v25 = vld [vmem:[%s11235_s9 + $0xe54] sm:$0xf0]  ;;  %v8775_v16 = vld [vmem:[%s11235_s9 + $0xf48] sm:$0xf]  ;;  %v5746_v44 = vadd.f32 %v12417_v49, %v12365_v52 }
 0x246   : > { %6042 = vmatpush.bf16.msrb.mxu3 %v8488_v53  ;;  %6004 = vmatmul.bf16.vlgmr.msrb.gmra.mxu0 %v11495_v30  ;;  %v10551_v53 = vld [vmem:[%s11235_s9 + $0x1094] sm:$0xf0]  ;;  %v9031_v28 = vld [vmem:[%s11235_s9 + $0x1148] sm:$0xf]  ;;  %v8648_v52 = vor.u32 %v10479_v25, %v8647_v8 }
 0x247   : > { %6048 = vmatpush.bf16.msra.mxu0 %v8728_v41  ;;  %6017 = vmatmul.bf16.vlgmr.msrb.gmra.mxu1 %v11501_v34  ;;  %v12493_v41 = vpop.f32.mrf.mxu0  ;;  %v10543_v1 = vld [vmem:[%s11235_s9 + $0x1054] sm:$0xf0]  ;;  %v8887_v57 = vld [vmem:[%s11235_s9 + $0x1028] sm:$0xf] }
 0x248   : > { %6061 = vmatpush.bf16.msra.mxu1 %v8856_v48  ;;  %6030 = vmatmul.bf16.vlgmr.msrb.gmra.mxu2 %v11568_v24  ;;  %v9063_v48 = vld [vmem:[%s11235_s9 + $0x1188] sm:$0xf]  ;;  %v10507_v56 = vld [vmem:[%s11235_s9 + $0xf34] sm:$0xf0] }
 0x249   : > { %6074 = vmatpush.bf16.msra.mxu2 %v8984_v51  ;;  %6043 = vmatmul.bf16.vlgmr.msrb.gmra.mxu3 %v11575_v32  ;;  %v10583_v51 = vld [vmem:[%s11235_s9 + $0x1194] sm:$0xf0]  ;;  %v8871_v8 = vld [vmem:[%s11235_s9 + $0x1008] sm:$0xf] }
 0x24a   : > { %6087 = vmatpush.bf16.msra.mxu3 %v9112_v55  ;;  %v8936_v55 = vor.u32 %v10551_v53, %v8935_v40  ;;  %v9064_v58 = vor.u32 %v10583_v51, %v9063_v48  ;;  %v8631_v48 = vld [vmem:[%s11235_s9 + $0xe28] sm:$0xf]  ;;  %v10475_v51 = vld [vmem:[%s11235_s9 + $0xe34] sm:$0xf0] }
 0x24b   : > { %6049 = vmatpush.bf16.msra.mxu0 %v8712_v23  ;;  %v8919_v23 = vld [vmem:[%s11235_s9 + $0x1068] sm:$0xf]  ;;  %v10539_v60 = vld [vmem:[%s11235_s9 + $0x1034] sm:$0xf0] }
 0x24c   : > { %6062 = vmatpush.bf16.msra.mxu1 %v8840_v61  ;;  %v10547_v61 = vld [vmem:[%s11235_s9 + $0x1074] sm:$0xf0]  ;;  %v12517_v4 = vpop.f32.mrf.mxu3  ;;  %v5812_v49 = vpop.f32.mrf.mxu1 }
 0x24d   : > { %6075 = vmatpush.bf16.msra.mxu2 %v8968_v0  ;;  %v9047_v0 = vld [vmem:[%s11235_s9 + $0x1168] sm:$0xf]  ;;  %v10571_v59 = vld [vmem:[%s11235_s9 + $0x1134] sm:$0xf0] }
 0x24e   : > { %6088 = vmatpush.bf16.msra.mxu3 %v9096_v6  ;;  %v8920_v6 = vor.u32 %v10547_v61, %v8919_v23  ;;  %v9048_v11 = vor.u32 %v10579_v2, %v9047_v0  ;;  %v8632_v61 = vor.u32 %v10475_v51, %v8631_v48  ;;  %v8615_v0 = vld [vmem:[%s11235_s9 + $0xe08] sm:$0xf]  ;;  %v10535_v25 = vld [vmem:[%s11235_s9 + $0x1014] sm:$0xf0] }
 0x24f   : > { %6050 = vmatpush.bf16.msra.mxu0 %v8696_v15  ;;  %v12512_v15 = vpop.f32.mrf.mxu2  ;;  %v5799_v37 = vpop.f32.mrf.mxu0  ;;  %v9495_v49 = vld [vmem:[%s11235_s9 + $0x14e8] sm:$0xf]  ;;  %v8872_v48 = vor.u32 %v10535_v25, %v8871_v8  ;;  %v10619_v25 = vld [vmem:[%s11235_s9 + $0x12b4] sm:$0xf0] }
 0x250   : > { %6063 = vmatpush.bf16.msra.mxu1 %v8824_v18  ;;  %v10511_v18 = vld [vmem:[%s11235_s9 + $0xf54] sm:$0xf0]  ;;  %v9623_v51 = vld [vmem:[%s11235_s9 + $0x15e8] sm:$0xf] }
 0x251   : > { %6076 = vmatpush.bf16.msra.mxu2 %v8952_v27  ;;  %v8903_v27 = vld [vmem:[%s11235_s9 + $0x1048] sm:$0xf]  ;;  %v8776_v40 = vor.u32 %v10511_v18, %v8775_v16 }
 0x252   : > { %6089 = vmatpush.bf16.msra.mxu3 %v9080_v35  ;;  %v10575_v35 = vld [vmem:[%s11235_s9 + $0x1154] sm:$0xf0]  ;;  %v8904_v53 = vor.u32 %v10543_v1, %v8903_v27  ;;  %v8999_v16 = vld [vmem:[%s11235_s9 + $0x1108] sm:$0xf] }
 0x253   : > { %6051 = vmatpush.bf16.msra.mxu0 %v8680_v20  ;;  %v8759_v20 = vld [vmem:[%s11235_s9 + $0xf28] sm:$0xf]  ;;  %v10627_v27 = vld [vmem:[%s11235_s9 + $0x12f4] sm:$0xf0] }
 0x254   : > { %6064 = vmatpush.bf16.msra.mxu1 %v8808_v54  ;;  %v5759_v54 = vadd.f32 %v12421_v33, %v5746_v44  ;;  %v10471_v33 = vld [vmem:[%s11235_s9 + $0xe14] sm:$0xf0]  ;;  %v8760_v2 = vor.u32 %v10507_v56, %v8759_v20  ;;  %v9239_v18 = vld [vmem:[%s11235_s9 + $0x12e8] sm:$0xf] }
 0x255   : > { %6077 = vmatpush.bf16.msra.mxu2 %v8936_v55  ;;  %v9032_v55 = vor.u32 %v10575_v35, %v9031_v28  ;;  %v10567_v44 = vld [vmem:[%s11235_s9 + $0x1114] sm:$0xf0]  ;;  %v9367_v1 = vld [vmem:[%s11235_s9 + $0x13e8] sm:$0xf]  ;;  %v5838_v28 = vpop.f32.mrf.mxu3  ;;  %v8616_v37 = vor.u32 %v10471_v33, %v8615_v0 }
 0x256   : > { %6090 = vmatpush.bf16.msra.mxu3 %v9064_v58  ;;  %v9015_v58 = vld [vmem:[%s11235_s9 + $0x1128] sm:$0xf]  ;;  %v5772_v23 = vadd.f32 %v12434_v10, %v5759_v54  ;;  %v10723_v20 = vld [vmem:[%s11235_s9 + $0x15f4] sm:$0xf0] }
 0x257   : > { %6052 = vmatpush.bf16.msra.mxu0 %v8664_v3  ;;  %v8888_v3 = vor.u32 %v10539_v60, %v8887_v57  ;;  %v9016_v10 = vor.u32 %v10571_v59, %v9015_v58  ;;  %v9223_v60 = vld [vmem:[%s11235_s9 + $0x12c8] sm:$0xf]  ;;  %v10623_v58 = vld [vmem:[%s11235_s9 + $0x12d4] sm:$0xf0] }
 0x258   : > { %6065 = vmatpush.bf16.msra.mxu1 %v8792_v62  ;;  %v8743_v62 = vld [vmem:[%s11235_s9 + $0xf08] sm:$0xf]  ;;  %v5785_v35 = vadd.f32 %v12439_v19, %v5772_v23  ;;  %v9000_v19 = vor.u32 %v10567_v44, %v8999_v16  ;;  %v9624_v23 = vor.u32 %v10723_v20, %v9623_v51  ;;  %v10687_v33 = vld [vmem:[%s11235_s9 + $0x14d4] sm:$0xf0] }
 0x259   : > { %6078 = vmatpush.bf16.msra.mxu2 %v8920_v6  ;;  %v10503_v6 = vld [vmem:[%s11235_s9 + $0xf14] sm:$0xf0]  ;;  %v9351_v59 = vld [vmem:[%s11235_s9 + $0x13c8] sm:$0xf] }
 0x25a   : > { %6091 = vmatpush.bf16.msra.mxu3 %v9048_v11  ;;  %v5825_v11 = vpop.f32.mrf.mxu2  ;;  %v5798_v54 = vadd.f32 %v12493_v41, %v5785_v35  ;;  %v9479_v0 = vld [vmem:[%s11235_s9 + $0x14c8] sm:$0xf]  ;;  %v10715_v28 = vld [vmem:[%s11235_s9 + $0x15b4] sm:$0xf0] }
 0x25b   : > { %6053 = vmatpush.bf16.msra.mxu0 %v8648_v52  ;;  %v10659_v52 = vld [vmem:[%s11235_s9 + $0x13f4] sm:$0xf0]  ;;  %v9607_v41 = vld [vmem:[%s11235_s9 + $0x15c8] sm:$0xf]  ;;  %v9480_v8 = vor.u32 %v10687_v33, %v9479_v0 }
 0x25c   : > { %6066 = vmatpush.bf16.msra.mxu1 %v8776_v40  ;;  %v10691_v40 = vld [vmem:[%s11235_s9 + $0x14f4] sm:$0xf0]  ;;  %v9368_v56 = vor.u32 %v10659_v52, %v9367_v1  ;;  %v9335_v16 = vld [vmem:[%s11235_s9 + $0x13a8] sm:$0xf] }
 0x25d   : > { %6079 = vmatpush.bf16.msra.mxu2 %v8904_v53  ;;  %v8744_v53 = vor.u32 %v10503_v6, %v8743_v62  ;;  %v9496_v57 = vor.u32 %v10691_v40, %v9495_v49  ;;  %v9224_v62 = vor.u32 %v10623_v58, %v9223_v60  ;;  %v10651_v11 = vld [vmem:[%s11235_s9 + $0x13b4] sm:$0xf0]  ;;  %v9591_v1 = vld [vmem:[%s11235_s9 + $0x15a8] sm:$0xf]  ;;  %v312_v58 = vld [vmem:[#allocation2] sm:$0xff] }
 0x25e   : > { %6092 = vmatpush.bf16.msra.mxu3 %v9032_v55  ;;  %v9240_v55 = vor.u32 %v10627_v27, %v9239_v18  ;;  %v9463_v18 = vld [vmem:[%s11235_s9 + $0x14a8] sm:$0xf]  ;;  %v10683_v27 = vld [vmem:[%s11235_s9 + $0x14b4] sm:$0xf0]  ;;  %v9336_v35 = vor.u32 %v10651_v11, %v9335_v16 }
 0x25f   : > { %6054 = vmatpush.bf16.msra.mxu0 %v8632_v61  ;;  %v10655_v61 = vld [vmem:[%s11235_s9 + $0x13d4] sm:$0xf0]  ;;  %v9191_v52 = vld [vmem:[%s11235_s9 + $0x1288] sm:$0xf] }
 0x260   : > { %6067 = vmatpush.bf16.msra.mxu1 %v8760_v2  ;;  %v10719_v2 = vld [vmem:[%s11235_s9 + $0x15d4] sm:$0xf0]  ;;  %v9352_v6 = vor.u32 %v10655_v61, %v9351_v59  ;;  %v9319_v40 = vld [vmem:[%s11235_s9 + $0x1388] sm:$0xf] }
 0x261   : > { %6080 = vmatpush.bf16.msra.mxu2 %v8888_v3  ;;  %v5811_v3 = vadd.f32 %v12497_v12, %v5798_v54  ;;  %v9608_v12 = vor.u32 %v10719_v2, %v9607_v41  ;;  %v10615_v49 = vld [vmem:[%s11235_s9 + $0x1294] sm:$0xf0]  ;;  %v9447_v20 = vld [vmem:[%s11235_s9 + $0x1488] sm:$0xf] }
 0x262   : > { %6093 = vmatpush.bf16.msra.mxu3 %v9016_v10  ;;  %v9207_v10 = vld [vmem:[%s11235_s9 + $0x12a8] sm:$0xf]  ;;  %v10647_v51 = vld [vmem:[%s11235_s9 + $0x1394] sm:$0xf0]  ;;  %v9192_v60 = vor.u32 %v10615_v49, %v9191_v52 }
 0x263   : > { %6055 = vmatpush.bf16.msra.mxu0 %v8616_v37  ;;  %v5824_v44 = vadd.f32 %v12512_v15, %v5811_v3  ;;  %v9208_v15 = vor.u32 %v10619_v25, %v9207_v10  ;;  %v9464_v37 = vor.u32 %v10683_v27, %v9463_v18  ;;  %v10679_v54 = vld [vmem:[%s11235_s9 + $0x1494] sm:$0xf0]  ;;  %v9320_v59 = vor.u32 %v10647_v51, %v9319_v40  ;;  %v9175_v61 = vld [vmem:[%s11235_s9 + $0x1268] sm:$0xf] }
 0x264   : > { %6068 = vmatpush.bf16.msra.mxu1 %v8744_v53  ;;  %v10611_v0 = vld [vmem:[%s11235_s9 + $0x1274] sm:$0xf0]  ;;  %v9303_v33 = vld [vmem:[%s11235_s9 + $0x1368] sm:$0xf] }
 0x265   : > { %6081 = vmatpush.bf16.msra.mxu2 %v8872_v48  ;;  %v5837_v53 = vadd.f32 %v12517_v4, %v5824_v44  ;;  %v9592_v48 = vor.u32 %v10715_v28, %v9591_v1  ;;  %v5862_v4 = vpop.f32.mrf.mxu1  ;;  %v10643_v3 = vld [vmem:[%s11235_s9 + $0x1374] sm:$0xf0]  ;;  %v9176_v16 = vor.u32 %v10611_v0, %v9175_v61  ;;  %v9159_v44 = vld [vmem:[%s11235_s9 + $0x1248] sm:$0xf] }
 0x266   : > { %6094 = vmatpush.bf16.msra.mxu3 %v9000_v19  ;;  %6056 = vmatmul.bf16.vlgmr.msra.gmra.mxu0 %v11573_v29  ;;  %v5849_v19 = vpop.f32.mrf.mxu0  ;;  %v10707_v10 = vld [vmem:[%s11235_s9 + $0x1574] sm:$0xf0]  ;;  %v9287_v27 = vld [vmem:[%s11235_s9 + $0x1348] sm:$0xf] }
 0x267   : > { %6100 = vmatpush.bf16.msrb.mxu0 %v9240_v55  ;;  %6069 = vmatmul.bf16.vlgmr.msra.gmra.mxu1 %v11579_v36  ;;  %v9575_v55 = vld [vmem:[%s11235_s9 + $0x1588] sm:$0xf]  ;;  %v10607_v18 = vld [vmem:[%s11235_s9 + $0x1254] sm:$0xf0] }
 0x268   : > { %6113 = vmatpush.bf16.msrb.mxu1 %v9368_v56  ;;  %6082 = vmatmul.bf16.vlgmr.msra.gmra.mxu2 %v11646_v38  ;;  %v10711_v56 = vld [vmem:[%s11235_s9 + $0x1594] sm:$0xf0]  ;;  %v9543_v52 = vld [vmem:[%s11235_s9 + $0x1548] sm:$0xf] }
 0x269   : > { %6126 = vmatpush.bf16.msrb.mxu2 %v9496_v57  ;;  %6095 = vmatmul.bf16.vlgmr.msra.gmra.mxu3 %v11653_v47  ;;  %v5850_v57 = vadd.f32 %v5849_v19, %v5837_v53  ;;  %v9576_v41 = vor.u32 %v10711_v56, %v9575_v55  ;;  %v10639_v1 = vld [vmem:[%s11235_s9 + $0x1354] sm:$0xf0]  ;;  %v9143_v55 = vld [vmem:[%s11235_s9 + $0x1228] sm:$0xf] }
 0x26a   : > { %6139 = vmatpush.bf16.msrb.mxu3 %v9624_v23  ;;  %v9448_v23 = vor.u32 %v10679_v54, %v9447_v20  ;;  %v10703_v49 = vld [vmem:[%s11235_s9 + $0x1554] sm:$0xf0]  ;;  %v9288_v54 = vor.u32 %v10639_v1, %v9287_v27  ;;  %v9879_v27 = vld [vmem:[%s11235_s9 + $0x17e8] sm:$0xf] }
 0x26b   : > { %6101 = vmatpush.bf16.msrb.mxu0 %v9224_v62  ;;  %v5863_v2 = vadd.f32 %v5862_v4, %v5850_v57  ;;  %v9431_v62 = vld [vmem:[%s11235_s9 + $0x1468] sm:$0xf]  ;;  %v10603_v56 = vld [vmem:[%s11235_s9 + $0x1234] sm:$0xf0] }
 0x26c   : > { %6114 = vmatpush.bf16.msrb.mxu1 %v9352_v6  ;;  %v10675_v6 = vld [vmem:[%s11235_s9 + $0x1474] sm:$0xf0]  ;;  %v5888_v40 = vpop.f32.mrf.mxu3  ;;  %v9271_v57 = vld [vmem:[%s11235_s9 + $0x1328] sm:$0xf]  ;;  %v9144_v0 = vor.u32 %v10603_v56, %v9143_v55 }
 0x26d   : > { %6127 = vmatpush.bf16.msrb.mxu2 %v9480_v8  ;;  %v9559_v8 = vld [vmem:[%s11235_s9 + $0x1568] sm:$0xf]  ;;  %v6517_v25 = vadd.f32 %v5863_v2, %v312_v58  ;;  %v9432_v11 = vor.u32 %v10675_v6, %v9431_v62  ;;  %v5864_v20 = vpop.f32.mrf.mxu1  ;;  %v10635_v58 = vld [vmem:[%s11235_s9 + $0x1334] sm:$0xf0] }
 0x26e   : > { %6140 = vmatpush.bf16.msrb.mxu3 %v9608_v12  ;;  %v9304_v12 = vor.u32 %v10643_v3, %v9303_v33  ;;  %v9560_v28 = vor.u32 %v10707_v10, %v9559_v8  ;;  %v5851_v53 = vpop.f32.mrf.mxu0  ;;  %v9399_v4 = vld [vmem:[%s11235_s9 + $0x1428] sm:$0xf]  ;;  %v10699_v61 = vld [vmem:[%s11235_s9 + $0x1534] sm:$0xf0]  ;;  %v9272_v2 = vor.u32 %v10635_v58, %v9271_v57 }
 0x26f   : > { %6102 = vmatpush.bf16.msrb.mxu0 %v9208_v15  ;;  %6521 = vst [vmem:[#allocation2] sm:$0xff] %v6517_v25  ;;  %v9415_v15 = vld [vmem:[%s11235_s9 + $0x1448] sm:$0xf]  ;;  %v10631_v6 = vld [vmem:[%s11235_s9 + $0x1314] sm:$0xf0] }
 0x270   : > { %6115 = vmatpush.bf16.msrb.mxu1 %v9336_v35  ;;  %v10671_v35 = vld [vmem:[%s11235_s9 + $0x1454] sm:$0xf0]  ;;  %v9127_v33 = vld [vmem:[%s11235_s9 + $0x1208] sm:$0xf]  ;;  %v6937_v53 = vld [vmem:[%s11235_s9 + $0xf8] sm:$0xf0] }
 0x271   : > { %6128 = vmatpush.bf16.msrb.mxu2 %v9464_v37  ;;  %v5875_v37 = vpop.f32.mrf.mxu2  ;;  %v9416_v19 = vor.u32 %v10671_v35, %v9415_v15  ;;  %v9255_v62 = vld [vmem:[%s11235_s9 + $0x1308] sm:$0xf]  ;;  %v10663_v25 = vld [vmem:[%s11235_s9 + $0x1414] sm:$0xf0] }
 0x272   : > { %6141 = vmatpush.bf16.msrb.mxu3 %v9592_v48  ;;  %v9160_v48 = vor.u32 %v10607_v18, %v9159_v44  ;;  %v12596_v51 = vadd.f32 %v5888_v40, %v5875_v37  ;;  %v9383_v8 = vld [vmem:[%s11235_s9 + $0x1408] sm:$0xf]  ;;  %v10695_v44 = vld [vmem:[%s11235_s9 + $0x1514] sm:$0xf0]  ;;  %v10049_v40 = vld [vmem:[%s11235_s9 + $0xec] sm:$0xf] }
 0x273   : > { %6103 = vmatpush.bf16.msrb.mxu0 %v9192_v60  ;;  %v9544_v60 = vor.u32 %v10703_v49, %v9543_v52  ;;  %v10755_v18 = vld [vmem:[%s11235_s9 + $0x16f4] sm:$0xf0]  ;;  %v10007_v35 = vld [vmem:[%s11235_s9 + $0x18e8] sm:$0xf]  ;;  %v9256_v52 = vor.u32 %v10631_v6, %v9255_v62  ;;  %v9384_v49 = vor.u32 %v10663_v25, %v9383_v8 }
 0x274   : > { %6116 = vmatpush.bf16.msrb.mxu1 %v9320_v59  ;;  %v10667_v59 = vld [vmem:[%s11235_s9 + $0x1434] sm:$0xf0]  ;;  %v5890_v1 = vpop.f32.mrf.mxu3  ;;  %v9735_v55 = vld [vmem:[%s11235_s9 + $0x16c8] sm:$0xf] }
 0x275   : > { %6129 = vmatpush.bf16.msrb.mxu2 %v9448_v23  ;;  %v9527_v23 = vld [vmem:[%s11235_s9 + $0x1528] sm:$0xf]  ;;  %v9400_v3 = vor.u32 %v10667_v59, %v9399_v4  ;;  %v10787_v15 = vld [vmem:[%s11235_s9 + $0x17f4] sm:$0xf0] }
 0x276   : > { %6142 = vmatpush.bf16.msrb.mxu3 %v9576_v41  ;;  %v10599_v41 = vld [vmem:[%s11235_s9 + $0x1214] sm:$0xf0]  ;;  %v9528_v10 = vor.u32 %v10699_v61, %v9527_v23  ;;  %v9863_v57 = vld [vmem:[%s11235_s9 + $0x17c8] sm:$0xf]  ;;  %v10045_v23 = vld [vmem:[%s11235_s9 + $0xcc] sm:$0xf] }
 0x277   : > { %6104 = vmatpush.bf16.msrb.mxu0 %v9176_v16  ;;  %v9511_v16 = vld [vmem:[%s11235_s9 + $0x1508] sm:$0xf]  ;;  %v10819_v37 = vld [vmem:[%s11235_s9 + $0x18f4] sm:$0xf0]  ;;  %v6921_v61 = vld [vmem:[%s11235_s9 + $0xd8] sm:$0xf0] }
 0x278   : > { %6117 = vmatpush.bf16.msrb.mxu1 %v9304_v12  ;;  %v10751_v56 = vld [vmem:[%s11235_s9 + $0x16d4] sm:$0xf0]  ;;  %v9991_v4 = vld [vmem:[%s11235_s9 + $0x18c8] sm:$0xf]  ;;  %v6924_v6 = vor.u32 %v10045_v23, %v6921_v61  ;;  %v10033_v61 = vld [vmem:[%s11235_s9 + $0x6c] sm:$0xf] }
 0x279   : > { %6130 = vmatpush.bf16.msrb.mxu2 %v9432_v11  ;;  %v5877_v12 = vpop.f32.mrf.mxu2  ;;  %v9751_v11 = vld [vmem:[%s11235_s9 + $0x16e8] sm:$0xf]  ;;  %v10783_v58 = vld [vmem:[%s11235_s9 + $0x17d4] sm:$0xf0] }
 0x27a   : > { %6143 = vmatpush.bf16.msrb.mxu3 %v9560_v28  ;;  %v9128_v28 = vor.u32 %v10599_v41, %v9127_v33  ;;  %v9752_v20 = vor.u32 %v10755_v18, %v9751_v11  ;;  %v10815_v59 = vld [vmem:[%s11235_s9 + $0x18d4] sm:$0xf0]  ;;  %v9864_v33 = vor.u32 %v10783_v58, %v9863_v57  ;;  %v9847_v62 = vld [vmem:[%s11235_s9 + $0x17a8] sm:$0xf] }
 0x27b   : > { %6105 = vmatpush.bf16.msrb.mxu0 %v9160_v48  ;;  %v9512_v48 = vor.u32 %v10695_v44, %v9511_v16  ;;  %v9992_v41 = vor.u32 %v10815_v59, %v9991_v4  ;;  %v10779_v8 = vld [vmem:[%s11235_s9 + $0x17b4] sm:$0xf0]  ;;  %v10041_v16 = vld [vmem:[%s11235_s9 + $0xac] sm:$0xf]  ;;  %v6905_v44 = vld [vmem:[%s11235_s9 + $0xb8] sm:$0xf0] }
 0x27c   : > { %6118 = vmatpush.bf16.msrb.mxu1 %v9288_v54  ;;  %v9880_v54 = vor.u32 %v10787_v15, %v9879_v27  ;;  %v10811_v25 = vld [vmem:[%s11235_s9 + $0x18b4] sm:$0xf0]  ;;  %v9848_v11 = vor.u32 %v10779_v8, %v9847_v62  ;;  %v9703_v27 = vld [vmem:[%s11235_s9 + $0x1688] sm:$0xf]  ;;  %v6908_v15 = vor.u32 %v10041_v16, %v6905_v44 }
 0x27d   : > { %6131 = vmatpush.bf16.msrb.mxu2 %v9416_v19  ;;  %v10008_v19 = vor.u32 %v10819_v37, %v10007_v35  ;;  %v10743_v1 = vld [vmem:[%s11235_s9 + $0x1694] sm:$0xf0]  ;;  %v9959_v37 = vld [vmem:[%s11235_s9 + $0x1888] sm:$0xf] }
 0x27e   : > { %6144 = vmatpush.bf16.msrb.mxu3 %v9544_v60  ;;  %v6940_v60 = vor.u32 %v10049_v40, %v6937_v53  ;;  %v10775_v35 = vld [vmem:[%s11235_s9 + $0x1794] sm:$0xf0]  ;;  %v6889_v40 = vld [vmem:[%s11235_s9 + $0x98] sm:$0xf0]  ;;  %v9704_v53 = vor.u32 %v10743_v1, %v9703_v27  ;;  %v9943_v59 = vld [vmem:[%s11235_s9 + $0x1868] sm:$0xf] }
 0x27f   : > { %6106 = vmatpush.bf16.msrb.mxu0 %v9144_v0  ;;  %v9736_v0 = vor.u32 %v10751_v56, %v9735_v55  ;;  %v10739_v55 = vld [vmem:[%s11235_s9 + $0x1674] sm:$0xf0]  ;;  %v9815_v56 = vld [vmem:[%s11235_s9 + $0x1768] sm:$0xf]  ;;  %v6857_v27 = vld [vmem:[%s11235_s9 + $0x58] sm:$0xf0] }
 0x280   : > { %6119 = vmatpush.bf16.msrb.mxu1 %v9272_v2  ;;  %v9719_v2 = vld [vmem:[%s11235_s9 + $0x16a8] sm:$0xf]  ;;  %v10771_v4 = vld [vmem:[%s11235_s9 + $0x1774] sm:$0xf0] }
 0x281   : > { %6132 = vmatpush.bf16.msrb.mxu2 %v9400_v3  ;;  %v10747_v3 = vld [vmem:[%s11235_s9 + $0x16b4] sm:$0xf0]  ;;  %v9927_v16 = vld [vmem:[%s11235_s9 + $0x1848] sm:$0xf] }
 0x282   : > { %6145 = vmatpush.bf16.msrb.mxu3 %v9528_v10  ;;  %v9975_v10 = vld [vmem:[%s11235_s9 + $0x18a8] sm:$0xf]  ;;  %v9720_v12 = vor.u32 %v10747_v3, %v9719_v2  ;;  %v10803_v23 = vld [vmem:[%s11235_s9 + $0x1874] sm:$0xf0] }
 0x283   : > { %6107 = vmatpush.bf16.msrb.mxu0 %v9128_v28  ;;  %v9976_v18 = vor.u32 %v10811_v25, %v9975_v10  ;;  %v9831_v28 = vld [vmem:[%s11235_s9 + $0x1788] sm:$0xf]  ;;  %v9944_v2 = vor.u32 %v10803_v23, %v9943_v59  ;;  %v10735_v62 = vld [vmem:[%s11235_s9 + $0x1654] sm:$0xf0] }
 0x284   : > { %6120 = vmatpush.bf16.msrb.mxu1 %v9256_v52  ;;  %v10807_v52 = vld [vmem:[%s11235_s9 + $0x1894] sm:$0xf0]  ;;  %v9671_v3 = vld [vmem:[%s11235_s9 + $0x1648] sm:$0xf] }
 0x285   : > { %6133 = vmatpush.bf16.msrb.mxu2 %v9384_v49  ;;  %v10037_v49 = vld [vmem:[%s11235_s9 + $0x8c] sm:$0xf]  ;;  %v10767_v25 = vld [vmem:[%s11235_s9 + $0x1754] sm:$0xf0]  ;;  %v9672_v1 = vor.u32 %v10735_v62, %v9671_v3  ;;  %v9767_v23 = vld [vmem:[%s11235_s9 + $0x1708] sm:$0xf] }
 0x286   : > { %6146 = vmatpush.bf16.msrb.mxu3 %v9512_v48  ;;  %6108 = vmatmul.bf16.vlgmr.msrb.gmra.mxu0 %v11651_v46  ;;  %v5901_v48 = vpop.f32.mrf.mxu0  ;;  %v6892_v58 = vor.u32 %v10037_v49, %v6889_v40  ;;  %v10799_v44 = vld [vmem:[%s11235_s9 + $0x1854] sm:$0xf0]  ;;  %v9783_v40 = vld [vmem:[%s11235_s9 + $0x1728] sm:$0xf]  ;;  %v6825_v3 = vld [vmem:[%s11235_s9 + $0x18] sm:$0xf0] }
 0x287   : > { %6152 = vmatpush.bf16.msra.mxu0 %v9752_v20  ;;  %6121 = vmatmul.bf16.vlgmr.msrb.gmra.mxu1 %v11657_v50  ;;  %v9832_v20 = vor.u32 %v10775_v35, %v9831_v28  ;;  %v5902_v57 = vadd.f32 %v5901_v48, %v12596_v51  ;;  %v9816_v51 = vor.u32 %v10771_v4, %v9815_v56  ;;  %v10731_v49 = vld [vmem:[%s11235_s9 + $0x1634] sm:$0xf0]  ;;  %v6841_v56 = vld [vmem:[%s11235_s9 + $0x38] sm:$0xf0] }
 0x288   : > { %6165 = vmatpush.bf16.msra.mxu1 %v9880_v54  ;;  %6134 = vmatmul.bf16.vlgmr.msrb.gmra.mxu2 %v11726_v9  ;;  %v9960_v54 = vor.u32 %v10807_v52, %v9959_v37  ;;  %v9928_v37 = vor.u32 %v10799_v44, %v9927_v16  ;;  %v9655_v52 = vld [vmem:[%s11235_s9 + $0x1628] sm:$0xf]  ;;  %v7193_v16 = vld [vmem:[%s11235_s9 + $0x2f8] sm:$0xf0]  ;;  %v10145_v44 = vld [vmem:[%s11235_s9 + $0x3ec] sm:$0xf] }
 0x289   : > { %6178 = vmatpush.bf16.msra.mxu2 %v10008_v19  ;;  %6147 = vmatmul.bf16.vlgmr.msrb.gmra.mxu3 %v11733_v14  ;;  %v9687_v19 = vld [vmem:[%s11235_s9 + $0x1668] sm:$0xf] }
 0x28a   : > { %6191 = vmatpush.bf16.msra.mxu3 %v6940_v60  ;;  %v5914_v60 = vpop.f32.mrf.mxu1 }
 0x28b   : > { %6153 = vmatpush.bf16.msra.mxu0 %v9736_v0  ;;  %v6873_v0 = vld [vmem:[%s11235_s9 + $0x78] sm:$0xf0]  ;;  %v5927_v8 = vpop.f32.mrf.mxu2 }
 0x28c   : > { %6166 = vmatpush.bf16.msra.mxu1 %v9864_v33  ;;  %v5915_v33 = vadd.f32 %v5914_v60, %v5902_v57  ;;  %v6876_v10 = vor.u32 %v10033_v61, %v6873_v0  ;;  %v9656_v57 = vor.u32 %v10731_v49, %v9655_v52  ;;  %v9639_v60 = vld [vmem:[%s11235_s9 + $0x1608] sm:$0xf]  ;;  %v10759_v61 = vld [vmem:[%s11235_s9 + $0x1714] sm:$0xf0]  ;;  %v10077_v49 = vld [vmem:[%s11235_s9 + $0x1cc] sm:$0xf] }
 0x28d   : > { %6179 = vmatpush.bf16.msra.mxu2 %v9992_v41  ;;  %v9688_v41 = vor.u32 %v10739_v55, %v9687_v19  ;;  %v10795_v19 = vld [vmem:[%s11235_s9 + $0x1834] sm:$0xf0]  ;;  %v10025_v55 = vld [vmem:[%s11235_s9 + $0x2c] sm:$0xf]  ;;  %v9895_v0 = vld [vmem:[%s11235_s9 + $0x1808] sm:$0xf] }
 0x28e   : > { %6192 = vmatpush.bf16.msra.mxu3 %v6924_v6  ;;  %v9799_v6 = vld [vmem:[%s11235_s9 + $0x1748] sm:$0xf] }
 0x28f   : > { %6154 = vmatpush.bf16.msra.mxu0 %v9720_v12  ;;  %v5928_v12 = vadd.f32 %v5927_v8, %v5915_v33  ;;  %v9800_v35 = vor.u32 %v10767_v25, %v9799_v6  ;;  %v10081_v6 = vld [vmem:[%s11235_s9 + $0x1ec] sm:$0xf]  ;;  %v7065_v8 = vld [vmem:[%s11235_s9 + $0x1f8] sm:$0xf0] }
 0x290   : > { %6167 = vmatpush.bf16.msra.mxu1 %v9848_v11  ;;  %v5940_v11 = vpop.f32.mrf.mxu3 }
 0x291   : > { %6180 = vmatpush.bf16.msra.mxu2 %v9976_v18  ;;  %v10029_v18 = vld [vmem:[%s11235_s9 + $0x4c] sm:$0xf]  ;;  %v12667_v28 = vadd.f32 %v5940_v11, %v5928_v12  ;;  %v7321_v12 = vld [vmem:[%s11235_s9 + $0x3f8] sm:$0xf0]  ;;  %v9768_v11 = vor.u32 %v10759_v61, %v9767_v23 }
 0x292   : > { %6193 = vmatpush.bf16.msra.mxu3 %v6908_v15  ;;  %v5903_v15 = vpop.f32.mrf.mxu0  ;;  %v6860_v48 = vor.u32 %v10029_v18, %v6857_v27  ;;  %v10177_v27 = vld [vmem:[%s11235_s9 + $0x4ec] sm:$0xf]  ;;  %v7324_v52 = vor.u32 %v10145_v44, %v7321_v12  ;;  %v7145_v44 = vld [vmem:[%s11235_s9 + $0x298] sm:$0xf0] }
 0x293   : > { %6155 = vmatpush.bf16.msra.mxu0 %v9704_v53  ;;  %v5916_v53 = vpop.f32.mrf.mxu1  ;;  %v5929_v33 = vpop.f32.mrf.mxu2  ;;  %v10105_v23 = vld [vmem:[%s11235_s9 + $0x2ac] sm:$0xf] }
 0x294   : > { %6168 = vmatpush.bf16.msra.mxu1 %v9832_v20  ;;  %v10763_v20 = vld [vmem:[%s11235_s9 + $0x1734] sm:$0xf0]  ;;  %v10109_v53 = vld [vmem:[%s11235_s9 + $0x2cc] sm:$0xf] }
 0x295   : > { %6181 = vmatpush.bf16.msra.mxu2 %v9960_v54  ;;  %v9911_v54 = vld [vmem:[%s11235_s9 + $0x1828] sm:$0xf]  ;;  %v9784_v4 = vor.u32 %v10763_v20, %v9783_v40  ;;  %v7049_v40 = vld [vmem:[%s11235_s9 + $0x1d8] sm:$0xf0]  ;;  %v10137_v33 = vld [vmem:[%s11235_s9 + $0x3ac] sm:$0xf] }
 0x296   : > { %6194 = vmatpush.bf16.msra.mxu3 %v6892_v58  ;;  %v10727_v58 = vld [vmem:[%s11235_s9 + $0x1614] sm:$0xf0]  ;;  %v9912_v59 = vor.u32 %v10795_v19, %v9911_v54  ;;  %v7177_v20 = vld [vmem:[%s11235_s9 + $0x2d8] sm:$0xf0]  ;;  %v10141_v54 = vld [vmem:[%s11235_s9 + $0x3cc] sm:$0xf] }
 0x297   : > { %6156 = vmatpush.bf16.msra.mxu0 %v9688_v41  ;;  %v6844_v41 = vor.u32 %v10025_v55, %v6841_v56  ;;  %v9640_v25 = vor.u32 %v10727_v58, %v9639_v60  ;;  %v7305_v19 = vld [vmem:[%s11235_s9 + $0x3d8] sm:$0xf0]  ;;  %v10173_v55 = vld [vmem:[%s11235_s9 + $0x4cc] sm:$0xf]  ;;  %v7180_v60 = vor.u32 %v10109_v53, %v7177_v20 }
 0x298   : > { %6169 = vmatpush.bf16.msra.mxu1 %v9816_v51  ;;  %v10791_v51 = vld [vmem:[%s11235_s9 + $0x1814] sm:$0xf0]  ;;  %v5942_v62 = vpop.f32.mrf.mxu3  ;;  %v7433_v56 = vld [vmem:[%s11235_s9 + $0x4d8] sm:$0xf0]  ;;  %v7308_v58 = vor.u32 %v10141_v54, %v7305_v19  ;;  %v10133_v12 = vld [vmem:[%s11235_s9 + $0x38c] sm:$0xf] }
 0x299   : > { %6182 = vmatpush.bf16.msra.mxu2 %v9944_v2  ;;  %v10021_v2 = vld [vmem:[%s11235_s9 + $0xc] sm:$0xf]  ;;  %v9896_v18 = vor.u32 %v10791_v51, %v9895_v0  ;;  %v7436_v61 = vor.u32 %v10173_v55, %v7433_v56  ;;  %v7161_v0 = vld [vmem:[%s11235_s9 + $0x2b8] sm:$0xf0] }
 0x29a   : > { %6195 = vmatpush.bf16.msra.mxu3 %v6876_v10  ;;  %v10113_v10 = vld [vmem:[%s11235_s9 + $0x2ec] sm:$0xf]  ;;  %v6828_v15 = vor.u32 %v10021_v2, %v6825_v3  ;;  %v7417_v2 = vld [vmem:[%s11235_s9 + $0x4b8] sm:$0xf0]  ;;  %v7164_v62 = vor.u32 %v10105_v23, %v7161_v0 }
 0x29b   : > { %6157 = vmatpush.bf16.msra.mxu0 %v9672_v1  ;;  %v7449_v1 = vld [vmem:[%s11235_s9 + $0x4f8] sm:$0xf0]  ;;  %v10169_v51 = vld [vmem:[%s11235_s9 + $0x4ac] sm:$0xf] }
 0x29c   : > { %6170 = vmatpush.bf16.msra.mxu1 %v9800_v35  ;;  %v7068_v35 = vor.u32 %v10081_v6, %v7065_v8  ;;  %v10069_v8 = vld [vmem:[%s11235_s9 + $0x18c] sm:$0xf]  ;;  %v7129_v54 = vld [vmem:[%s11235_s9 + $0x278] sm:$0xf0] }
 0x29d   : > { %6183 = vmatpush.bf16.msra.mxu2 %v9928_v37  ;;  %v7196_v37 = vor.u32 %v10113_v10, %v7193_v16  ;;  %v7017_v10 = vld [vmem:[%s11235_s9 + $0x198] sm:$0xf0]  ;;  %v7420_v16 = vor.u32 %v10169_v51, %v7417_v2  ;;  %v10097_v53 = vld [vmem:[%s11235_s9 + $0x26c] sm:$0xf] }
 0x29e   : > { %6196 = vmatpush.bf16.msra.mxu3 %v6860_v48  ;;  %v7452_v48 = vor.u32 %v10177_v27, %v7449_v1  ;;  %v10165_v27 = vld [vmem:[%s11235_s9 + $0x48c] sm:$0xf]  ;;  %v7401_v1 = vld [vmem:[%s11235_s9 + $0x498] sm:$0xf0] }
 0x29f   : > { %6158 = vmatpush.bf16.msra.mxu0 %v9656_v57  ;;  %v7052_v57 = vor.u32 %v10077_v49, %v7049_v40  ;;  %v10065_v49 = vld [vmem:[%s11235_s9 + $0x16c] sm:$0xf]  ;;  %v7001_v40 = vld [vmem:[%s11235_s9 + $0x178] sm:$0xf0] }
 0x2a0   : > { %6171 = vmatpush.bf16.msra.mxu1 %v9784_v4  ;;  %v10073_v4 = vld [vmem:[%s11235_s9 + $0x1ac] sm:$0xf]  ;;  %v7385_v56 = vld [vmem:[%s11235_s9 + $0x478] sm:$0xf0] }
 0x2a1   : > { %6184 = vmatpush.bf16.msra.mxu2 %v9912_v59  ;;  %v7033_v59 = vld [vmem:[%s11235_s9 + $0x1b8] sm:$0xf0]  ;;  %v10129_v19 = vld [vmem:[%s11235_s9 + $0x36c] sm:$0xf] }
 0x2a2   : > { %6197 = vmatpush.bf16.msra.mxu3 %v6844_v41  ;;  %v7289_v41 = vld [vmem:[%s11235_s9 + $0x3b8] sm:$0xf0]  ;;  %v7036_v3 = vor.u32 %v10073_v4, %v7033_v59  ;;  %v10161_v55 = vld [vmem:[%s11235_s9 + $0x46c] sm:$0xf] }
 0x2a3   : > { %6159 = vmatpush.bf16.msra.mxu0 %v9640_v25  ;;  %v7292_v6 = vor.u32 %v10137_v33, %v7289_v41  ;;  %v10101_v25 = vld [vmem:[%s11235_s9 + $0x28c] sm:$0xf]  ;;  %v6985_v59 = vld [vmem:[%s11235_s9 + $0x158] sm:$0xf0] }
 0x2a4   : > { %6172 = vmatpush.bf16.msra.mxu1 %v9768_v11  ;;  %v7273_v11 = vld [vmem:[%s11235_s9 + $0x398] sm:$0xf0]  ;;  %v10061_v4 = vld [vmem:[%s11235_s9 + $0x14c] sm:$0xf] }
 0x2a5   : > { %6185 = vmatpush.bf16.msra.mxu2 %v9896_v18  ;;  %v5953_v18 = vpop.f32.mrf.mxu0  ;;  %v10093_v23 = vld [vmem:[%s11235_s9 + $0x24c] sm:$0xf]  ;;  %v7113_v33 = vld [vmem:[%s11235_s9 + $0x258] sm:$0xf0] }
 0x2a6   : > { %6198 = vmatpush.bf16.msra.mxu3 %v6828_v15  ;;  %6160 = vmatmul.bf16.vlgmr.msra.gmra.mxu0 %v11731_v13  ;;  %v7020_v15 = vor.u32 %v10069_v8, %v7017_v10  ;;  %v10125_v41 = vld [vmem:[%s11235_s9 + $0x34c] sm:$0xf]  ;;  %v7241_v51 = vld [vmem:[%s11235_s9 + $0x358] sm:$0xf0]  ;;  %v6988_v10 = vor.u32 %v10061_v4, %v6985_v59 }
 0x2a7   : > { %6204 = vmatpush.bf16.msrb.mxu0 %v7068_v35  ;;  %6173 = vmatmul.bf16.vlgmr.msra.gmra.mxu1 %v11737_v17  ;;  %v5966_v35 = vpop.f32.mrf.mxu1  ;;  %v10209_v4 = vld [vmem:[%s11235_s9 + $0x5ec] sm:$0xf]  ;;  %v7577_v59 = vld [vmem:[%s11235_s9 + $0x5f8] sm:$0xf0] }
 0x2a8   : > { %6217 = vmatpush.bf16.msrb.mxu1 %v7196_v37  ;;  %6186 = vmatmul.bf16.vlgmr.msra.gmra.mxu2 %v11806_v63  ;;  %v7148_v37 = vor.u32 %v10101_v25, %v7145_v44  ;;  %v7116_v44 = vor.u32 %v10093_v23, %v7113_v33  ;;  %v10241_v23 = vld [vmem:[%s11235_s9 + $0x6ec] sm:$0xf]  ;;  %v7705_v33 = vld [vmem:[%s11235_s9 + $0x6f8] sm:$0xf0] }
 0x2a9   : > { %6230 = vmatpush.bf16.msrb.mxu2 %v7324_v52  ;;  %6199 = vmatmul.bf16.vlgmr.msra.gmra.mxu3 %v11360_v21  ;;  %v5954_v21 = vadd.f32 %v5953_v18, %v12667_v28  ;;  %v7276_v52 = vor.u32 %v10133_v12, %v7273_v11  ;;  %v7257_v28 = vld [vmem:[%s11235_s9 + $0x378] sm:$0xf0]  ;;  %v7244_v12 = vor.u32 %v10125_v41, %v7241_v51  ;;  %v10057_v11 = vld [vmem:[%s11235_s9 + $0x12c] sm:$0xf] }
 0x2aa   : > { %6243 = vmatpush.bf16.msrb.mxu3 %v7452_v48  ;;  %v7404_v48 = vor.u32 %v10165_v27, %v7401_v1  ;;  %v6969_v18 = vld [vmem:[%s11235_s9 + $0x138] sm:$0xf0]  ;;  %v10089_v27 = vld [vmem:[%s11235_s9 + $0x22c] sm:$0xf] }
 0x2ab   : > { %6205 = vmatpush.bf16.msrb.mxu0 %v7052_v57  ;;  %v5967_v20 = vadd.f32 %v5966_v35, %v5954_v21  ;;  %v7004_v57 = vor.u32 %v10065_v49, %v7001_v40  ;;  %v5979_v0 = vpop.f32.mrf.mxu2  ;;  %v7097_v21 = vld [vmem:[%s11235_s9 + $0x238] sm:$0xf0]  ;;  %v6972_v49 = vor.u32 %v10057_v11, %v6969_v18  ;;  %v10053_v40 = vld [vmem:[%s11235_s9 + $0x10c] sm:$0xf] }
 0x2ac   : > { %6218 = vmatpush.bf16.msrb.mxu1 %v7180_v60  ;;  %v7132_v60 = vor.u32 %v10097_v53, %v7129_v54  ;;  %v7225_v35 = vld [vmem:[%s11235_s9 + $0x338] sm:$0xf0]  ;;  %v10085_v54 = vld [vmem:[%s11235_s9 + $0x20c] sm:$0xf] }
 0x2ad   : > { %6231 = vmatpush.bf16.msrb.mxu2 %v7308_v58  ;;  %v7260_v58 = vor.u32 %v10129_v19, %v7257_v28  ;;  %v5980_v2 = vadd.f32 %v5979_v0, %v5967_v20  ;;  %v5955_v8 = vpop.f32.mrf.mxu0  ;;  %v6953_v53 = vld [vmem:[%s11235_s9 + $0x118] sm:$0xf0]  ;;  %v10117_v28 = vld [vmem:[%s11235_s9 + $0x30c] sm:$0xf] }
 0x2ae   : > { %6244 = vmatpush.bf16.msrb.mxu3 %v7436_v61  ;;  %v7388_v61 = vor.u32 %v10161_v55, %v7385_v56  ;;  %v7081_v19 = vld [vmem:[%s11235_s9 + $0x218] sm:$0xf0]  ;;  %v6956_v0 = vor.u32 %v10053_v40, %v6953_v53  ;;  %v10273_v41 = vld [vmem:[%s11235_s9 + $0x7ec] sm:$0xf] }
 0x2af   : > { %6206 = vmatpush.bf16.msrb.mxu0 %v7036_v3  ;;  %v5992_v3 = vpop.f32.mrf.mxu3  ;;  %v5968_v25 = vpop.f32.mrf.mxu1  ;;  %v7209_v56 = vld [vmem:[%s11235_s9 + $0x318] sm:$0xf0]  ;;  %v10237_v18 = vld [vmem:[%s11235_s9 + $0x6cc] sm:$0xf] }
 0x2b0   : > { %6219 = vmatpush.bf16.msrb.mxu1 %v7164_v62  ;;  %v10157_v62 = vld [vmem:[%s11235_s9 + $0x44c] sm:$0xf]  ;;  %v7833_v51 = vld [vmem:[%s11235_s9 + $0x7f8] sm:$0xf0]  ;;  %v7708_v25 = vor.u32 %v10241_v23, %v7705_v33 }
 0x2b1   : > { %6232 = vmatpush.bf16.msrb.mxu2 %v7292_v6  ;;  %v7369_v6 = vld [vmem:[%s11235_s9 + $0x458] sm:$0xf0]  ;;  %v10201_v53 = vld [vmem:[%s11235_s9 + $0x5ac] sm:$0xf] }
 0x2b2   : > { %6245 = vmatpush.bf16.msrb.mxu3 %v7420_v16  ;;  %v12738_v16 = vadd.f32 %v5992_v3, %v5980_v2  ;;  %v7372_v1 = vor.u32 %v10157_v62, %v7369_v6  ;;  %v7084_v2 = vor.u32 %v10085_v54, %v7081_v19  ;;  %v7212_v3 = vor.u32 %v10117_v28, %v7209_v56  ;;  %v10305_v62 = vld [vmem:[%s11235_s9 + $0x8ec] sm:$0xf]  ;;  %v7961_v6 = vld [vmem:[%s11235_s9 + $0x8f8] sm:$0xf0] }
 0x2b3   : > { %6207 = vmatpush.bf16.msrb.mxu0 %v7020_v15  ;;  %v10121_v15 = vld [vmem:[%s11235_s9 + $0x32c] sm:$0xf]  ;;  %v7561_v11 = vld [vmem:[%s11235_s9 + $0x5d8] sm:$0xf0] }
 0x2b4   : > { %6220 = vmatpush.bf16.msrb.mxu1 %v7148_v37  ;;  %v10153_v37 = vld [vmem:[%s11235_s9 + $0x42c] sm:$0xf]  ;;  %v7228_v20 = vor.u32 %v10121_v15, %v7225_v35  ;;  %v7817_v15 = vld [vmem:[%s11235_s9 + $0x7d8] sm:$0xf0] }
 0x2b5   : > { %6233 = vmatpush.bf16.msrb.mxu2 %v7276_v52  ;;  %v7353_v52 = vld [vmem:[%s11235_s9 + $0x438] sm:$0xf0]  ;;  %v10301_v35 = vld [vmem:[%s11235_s9 + $0x8cc] sm:$0xf] }
 0x2b6   : > { %6246 = vmatpush.bf16.msrb.mxu3 %v7404_v48  ;;  %v7100_v48 = vor.u32 %v10089_v27, %v7097_v21  ;;  %v7356_v55 = vor.u32 %v10153_v37, %v7353_v52  ;;  %v7964_v27 = vor.u32 %v10305_v62, %v7961_v6  ;;  %v10269_v21 = vld [vmem:[%s11235_s9 + $0x7cc] sm:$0xf]  ;;  %v7945_v37 = vld [vmem:[%s11235_s9 + $0x8d8] sm:$0xf0] }
 0x2b7   : > { %6208 = vmatpush.bf16.msrb.mxu0 %v7004_v57  ;;  %v10149_v57 = vld [vmem:[%s11235_s9 + $0x40c] sm:$0xf]  ;;  %v7820_v40 = vor.u32 %v10269_v21, %v7817_v15  ;;  %v7948_v54 = vor.u32 %v10301_v35, %v7945_v37  ;;  %v7673_v19 = vld [vmem:[%s11235_s9 + $0x6b8] sm:$0xf0] }
 0x2b8   : > { %6221 = vmatpush.bf16.msrb.mxu1 %v7132_v60  ;;  %v7337_v60 = vld [vmem:[%s11235_s9 + $0x418] sm:$0xf0]  ;;  %v10265_v28 = vld [vmem:[%s11235_s9 + $0x7ac] sm:$0xf] }
 0x2b9   : > { %6234 = vmatpush.bf16.msrb.mxu2 %v7260_v58  ;;  %v5981_v58 = vpop.f32.mrf.mxu2  ;;  %v7340_v8 = vor.u32 %v10149_v57, %v7337_v60  ;;  %v10297_v56 = vld [vmem:[%s11235_s9 + $0x8ac] sm:$0xf]  ;;  %v7929_v57 = vld [vmem:[%s11235_s9 + $0x8b8] sm:$0xf0] }
 0x2ba   : > { %6247 = vmatpush.bf16.msrb.mxu3 %v7388_v61  ;;  %v5994_v61 = vpop.f32.mrf.mxu3  ;;  %v7657_v23 = vld [vmem:[%s11235_s9 + $0x698] sm:$0xf0]  ;;  %v10189_v37 = vld [vmem:[%s11235_s9 + $0x54c] sm:$0xf] }
 0x2bb   : > { %6209 = vmatpush.bf16.msrb.mxu0 %v6988_v10  ;;  %v7580_v10 = vor.u32 %v10209_v4, %v7577_v59  ;;  %v10197_v4 = vld [vmem:[%s11235_s9 + $0x58c] sm:$0xf]  ;;  %v7529_v59 = vld [vmem:[%s11235_s9 + $0x598] sm:$0xf0] }
 0x2bc   : > { %6222 = vmatpush.bf16.msrb.mxu1 %v7116_v44  ;;  %v7836_v44 = vor.u32 %v10273_v41, %v7833_v51  ;;  %v10261_v61 = vld [vmem:[%s11235_s9 + $0x78c] sm:$0xf] }
 0x2bd   : > { %6235 = vmatpush.bf16.msrb.mxu2 %v7244_v12  ;;  %v10205_v12 = vld [vmem:[%s11235_s9 + $0x5cc] sm:$0xf] }
 0x2be   : > { %6248 = vmatpush.bf16.msrb.mxu3 %v7372_v1  ;;  %v7689_v1 = vld [vmem:[%s11235_s9 + $0x6d8] sm:$0xf0]  ;;  %v7564_v52 = vor.u32 %v10205_v12, %v7561_v11  ;;  %v10293_v41 = vld [vmem:[%s11235_s9 + $0x88c] sm:$0xf] }
 0x2bf   : > { %6210 = vmatpush.bf16.msrb.mxu0 %v6972_v49  ;;  %v7692_v49 = vor.u32 %v10237_v18, %v7689_v1  ;;  %v7641_v11 = vld [vmem:[%s11235_s9 + $0x678] sm:$0xf0]  ;;  %v10257_v18 = vld [vmem:[%s11235_s9 + $0x76c] sm:$0xf] }
 0x2c0   : > { %6223 = vmatpush.bf16.msrb.mxu1 %v7100_v48  ;;  %v7545_v48 = vld [vmem:[%s11235_s9 + $0x5b8] sm:$0xf0] }
 0x2c1   : > { %6236 = vmatpush.bf16.msrb.mxu2 %v7228_v20  ;;  %v10233_v20 = vld [vmem:[%s11235_s9 + $0x6ac] sm:$0xf]  ;;  %v7897_v1 = vld [vmem:[%s11235_s9 + $0x878] sm:$0xf0] }
 0x2c2   : > { %6249 = vmatpush.bf16.msrb.mxu3 %v7356_v55  ;;  %v7801_v55 = vld [vmem:[%s11235_s9 + $0x7b8] sm:$0xf0]  ;;  %v7676_v60 = vor.u32 %v10233_v20, %v7673_v19  ;;  %v10253_v20 = vld [vmem:[%s11235_s9 + $0x74c] sm:$0xf] }
 0x2c3   : > { %6211 = vmatpush.bf16.msrb.mxu0 %v6956_v0  ;;  %v7804_v58 = vor.u32 %v10265_v28, %v7801_v55  ;;  %v7785_v0 = vld [vmem:[%s11235_s9 + $0x798] sm:$0xf0]  ;;  %v6005_v33 = vpop.f32.mrf.mxu0  ;;  %v10285_v55 = vld [vmem:[%s11235_s9 + $0x84c] sm:$0xf] }
 0x2c4   : > { %6224 = vmatpush.bf16.msrb.mxu1 %v7084_v2  ;;  %v6006_v51 = vadd.f32 %v6005_v33, %v12738_v16  ;;  %v7532_v2 = vor.u32 %v10197_v4, %v7529_v59  ;;  %v7788_v6 = vor.u32 %v10261_v61, %v7785_v0  ;;  %v7769_v16 = vld [vmem:[%s11235_s9 + $0x778] sm:$0xf0]  ;;  %v10249_v33 = vld [vmem:[%s11235_s9 + $0x72c] sm:$0xf] }
 0x2c5   : > { %6237 = vmatpush.bf16.msrb.mxu2 %v7212_v3  ;;  %v6018_v3 = vpop.f32.mrf.mxu1  ;;  %v7772_v35 = vor.u32 %v10257_v18, %v7769_v16  ;;  %v7609_v0 = vld [vmem:[%s11235_s9 + $0x638] sm:$0xf0]  ;;  %v10277_v18 = vld [vmem:[%s11235_s9 + $0x80c] sm:$0xf] }
 0x2c6   : > { %6250 = vmatpush.bf16.msrb.mxu3 %v7340_v8  ;;  %6212 = vmatmul.bf16.vlgmr.msrb.gmra.mxu0 %v11363_v22  ;;  %v10229_v22 = vld [vmem:[%s11235_s9 + $0x68c] sm:$0xf]  ;;  %v6019_v12 = vadd.f32 %v6018_v3, %v6006_v51  ;;  %v7865_v51 = vld [vmem:[%s11235_s9 + $0x838] sm:$0xf0] }
 0x2c7   : > { %6256 = vmatpush.bf16.msra.mxu0 %v7580_v10  ;;  %6225 = vmatmul.bf16.vlgmr.msrb.gmra.mxu1 %v11346_v5  ;;  %v7913_v5 = vld [vmem:[%s11235_s9 + $0x898] sm:$0xf0]  ;;  %v7660_v62 = vor.u32 %v10229_v22, %v7657_v23  ;;  %v10193_v8 = vld [vmem:[%s11235_s9 + $0x56c] sm:$0xf] }
 0x2c8   : > { %6269 = vmatpush.bf16.msra.mxu1 %v7708_v25  ;;  %6238 = vmatmul.bf16.vlgmr.msrb.gmra.mxu2 %v11349_v7  ;;  %v7548_v7 = vor.u32 %v10201_v53, %v7545_v48  ;;  %v7513_v10 = vld [vmem:[%s11235_s9 + $0x578] sm:$0xf0]  ;;  %v10225_v25 = vld [vmem:[%s11235_s9 + $0x66c] sm:$0xf] }
 0x2c9   : > { %6282 = vmatpush.bf16.msra.mxu2 %v7836_v44  ;;  %6251 = vmatmul.bf16.vlgmr.msrb.gmra.mxu3 %v11419_v42  ;;  %v7932_v42 = vor.u32 %v10297_v56, %v7929_v57  ;;  %v7916_v44 = vor.u32 %v10293_v41, %v7913_v5  ;;  %v7516_v21 = vor.u32 %v10193_v8, %v7513_v10  ;;  %v7625_v48 = vld [vmem:[%s11235_s9 + $0x658] sm:$0xf0]  ;;  %v10185_v22 = vld [vmem:[%s11235_s9 + $0x52c] sm:$0xf] }
 0x2ca   : > { %6295 = vmatpush.bf16.msra.mxu3 %v7964_v27  ;;  %v10289_v27 = vld [vmem:[%s11235_s9 + $0x86c] sm:$0xf]  ;;  %v7644_v15 = vor.u32 %v10225_v25, %v7641_v11  ;;  %v7881_v56 = vld [vmem:[%s11235_s9 + $0x858] sm:$0xf0] }
 0x2cb   : > { %6257 = vmatpush.bf16.msra.mxu0 %v7564_v52  ;;  %v7497_v52 = vld [vmem:[%s11235_s9 + $0x558] sm:$0xf0]  ;;  %v6031_v53 = vpop.f32.mrf.mxu2  ;;  %v6007_v57 = vpop.f32.mrf.mxu0  ;;  %v10217_v23 = vld [vmem:[%s11235_s9 + $0x62c] sm:$0xf]  ;;  %v7884_v61 = vor.u32 %v10285_v55, %v7881_v56 }
 0x2cc   : > { %6270 = vmatpush.bf16.msra.mxu1 %v7692_v49  ;;  %v10221_v49 = vld [vmem:[%s11235_s9 + $0x64c] sm:$0xf]  ;;  %v6032_v19 = vadd.f32 %v6031_v53, %v6019_v12  ;;  %v6044_v28 = vpop.f32.mrf.mxu3  ;;  %v7737_v41 = vld [vmem:[%s11235_s9 + $0x738] sm:$0xf0] }
 0x2cd   : > { %6283 = vmatpush.bf16.msra.mxu2 %v7820_v40  ;;  %v7900_v40 = vor.u32 %v10289_v27, %v7897_v1  ;;  %v7628_v4 = vor.u32 %v10221_v49, %v7625_v48  ;;  %v10281_v5 = vld [vmem:[%s11235_s9 + $0x82c] sm:$0xf]  ;;  %v7740_v8 = vor.u32 %v10249_v33, %v7737_v41  ;;  %v7593_v25 = vld [vmem:[%s11235_s9 + $0x618] sm:$0xf0] }
 0x2ce   : > { %6296 = vmatpush.bf16.msra.mxu3 %v7948_v54  ;;  %v7753_v54 = vld [vmem:[%s11235_s9 + $0x758] sm:$0xf0]  ;;  %v10181_v3 = vld [vmem:[%s11235_s9 + $0x50c] sm:$0xf]  ;;  %v7868_v12 = vor.u32 %v10281_v5, %v7865_v51 }
 0x2cf   : > { %6258 = vmatpush.bf16.msra.mxu0 %v7548_v7  ;;  %v7500_v7 = vor.u32 %v10189_v37, %v7497_v52  ;;  %v7756_v59 = vor.u32 %v10253_v20, %v7753_v54  ;;  %v10213_v10 = vld [vmem:[%s11235_s9 + $0x60c] sm:$0xf]  ;;  %v7721_v11 = vld [vmem:[%s11235_s9 + $0x718] sm:$0xf0] }
 0x2d0   : > { %6271 = vmatpush.bf16.msra.mxu1 %v7676_v60  ;;  %v6020_v60 = vpop.f32.mrf.mxu1  ;;  %v7849_v16 = vld [vmem:[%s11235_s9 + $0x818] sm:$0xf0]  ;;  %v10337_v1 = vld [vmem:[%s11235_s9 + $0x9ec] sm:$0xf]  ;;  %v7596_v53 = vor.u32 %v10213_v10, %v7593_v25 }
 0x2d1   : > { %6284 = vmatpush.bf16.msra.mxu2 %v7804_v58  ;;  %v12809_v58 = vadd.f32 %v6044_v28, %v6032_v19  ;;  %v8217_v52 = vld [vmem:[%s11235_s9 + $0xaf8] sm:$0xf0]  ;;  %v10401_v49 = vld [vmem:[%s11235_s9 + $0xbec] sm:$0xf]  ;;  %v7852_v19 = vor.u32 %v10277_v18, %v7849_v16 }
 0x2d2   : > { %6297 = vmatpush.bf16.msra.mxu3 %v7932_v42  ;;  %v7481_v42 = vld [vmem:[%s11235_s9 + $0x538] sm:$0xf0]  ;;  %v10433_v20 = vld [vmem:[%s11235_s9 + $0xcec] sm:$0xf] }
 0x2d3   : > { %6259 = vmatpush.bf16.msra.mxu0 %v7532_v2  ;;  %v7484_v2 = vor.u32 %v10185_v22, %v7481_v42  ;;  %v6033_v27 = vpop.f32.mrf.mxu2  ;;  %v8473_v54 = vld [vmem:[%s11235_s9 + $0xcf8] sm:$0xf0]  ;;  %v10333_v57 = vld [vmem:[%s11235_s9 + $0x9cc] sm:$0xf] }
 0x2d4   : > { %6272 = vmatpush.bf16.msra.mxu1 %v7660_v62  ;;  %v7465_v62 = vld [vmem:[%s11235_s9 + $0x518] sm:$0xf0]  ;;  %v10365_v60 = vld [vmem:[%s11235_s9 + $0xacc] sm:$0xf] }
 0x2d5   : > { %6285 = vmatpush.bf16.msra.mxu2 %v7788_v6  ;;  %v7612_v6 = vor.u32 %v10217_v23, %v7609_v0  ;;  %v7468_v37 = vor.u32 %v10181_v3, %v7465_v62  ;;  %v10397_v22 = vld [vmem:[%s11235_s9 + $0xbcc] sm:$0xf]  ;;  %v8329_v42 = vld [vmem:[%s11235_s9 + $0xbd8] sm:$0xf0] }
 0x2d6   : > { %6298 = vmatpush.bf16.msra.mxu3 %v7916_v44  ;;  %v10245_v44 = vld [vmem:[%s11235_s9 + $0x70c] sm:$0xf]  ;;  %v8332_v41 = vor.u32 %v10397_v22, %v8329_v42  ;;  %v8057_v51 = vld [vmem:[%s11235_s9 + $0x9b8] sm:$0xf0] }
 0x2d7   : > { %6260 = vmatpush.bf16.msra.mxu0 %v7516_v21  ;;  %v8089_v21 = vld [vmem:[%s11235_s9 + $0x9f8] sm:$0xf0]  ;;  %v7724_v48 = vor.u32 %v10245_v44, %v7721_v11  ;;  %v10429_v23 = vld [vmem:[%s11235_s9 + $0xccc] sm:$0xf] }
 0x2d8   : > { %6273 = vmatpush.bf16.msra.mxu1 %v7644_v15  ;;  %v10369_v15 = vld [vmem:[%s11235_s9 + $0xaec] sm:$0xf]  ;;  %v8092_v28 = vor.u32 %v10337_v1, %v8089_v21  ;;  %v8185_v62 = vld [vmem:[%s11235_s9 + $0xab8] sm:$0xf0] }
 0x2d9   : > { %6286 = vmatpush.bf16.msra.mxu2 %v7772_v35  ;;  %v6046_v35 = vpop.f32.mrf.mxu3  ;;  %v8220_v55 = vor.u32 %v10369_v15, %v8217_v52  ;;  %v10329_v5 = vld [vmem:[%s11235_s9 + $0x9ac] sm:$0xf]  ;;  %v8441_v25 = vld [vmem:[%s11235_s9 + $0xcb8] sm:$0xf0] }
 0x2da   : > { %6299 = vmatpush.bf16.msra.mxu3 %v7900_v40  ;;  %v8345_v40 = vld [vmem:[%s11235_s9 + $0xbf8] sm:$0xf0]  ;;  %v10425_v10 = vld [vmem:[%s11235_s9 + $0xcac] sm:$0xf] }
 0x2db   : > { %6261 = vmatpush.bf16.msra.mxu0 %v7500_v7  ;;  %v8348_v56 = vor.u32 %v10401_v49, %v8345_v40  ;;  %v8073_v7 = vld [vmem:[%s11235_s9 + $0x9d8] sm:$0xf0]  ;;  %v10325_v11 = vld [vmem:[%s11235_s9 + $0x98c] sm:$0xf] }
 0x2dc   : > { %6274 = vmatpush.bf16.msra.mxu1 %v7628_v4  ;;  %v8476_v4 = vor.u32 %v10433_v20, %v8473_v54  ;;  %v8076_v0 = vor.u32 %v10333_v57, %v8073_v7  ;;  %v8041_v18 = vld [vmem:[%s11235_s9 + $0x998] sm:$0xf0]  ;;  %v10389_v27 = vld [vmem:[%s11235_s9 + $0xb8c] sm:$0xf] }
 0x2dd   : > { %6287 = vmatpush.bf16.msra.mxu2 %v7756_v59  ;;  %v8201_v59 = vld [vmem:[%s11235_s9 + $0xad8] sm:$0xf0]  ;;  %v10421_v21 = vld [vmem:[%s11235_s9 + $0xc8c] sm:$0xf]  ;;  %v8044_v35 = vor.u32 %v10325_v11, %v8041_v18 }
 0x2de   : > { %6300 = vmatpush.bf16.msra.mxu3 %v7884_v61  ;;  %v8457_v61 = vld [vmem:[%s11235_s9 + $0xcd8] sm:$0xf0]  ;;  %v8204_v33 = vor.u32 %v10365_v60, %v8201_v59  ;;  %v10321_v40 = vld [vmem:[%s11235_s9 + $0x96c] sm:$0xf] }
 0x2df   : > { %6262 = vmatpush.bf16.msra.mxu0 %v7484_v2  ;;  %v10361_v2 = vld [vmem:[%s11235_s9 + $0xaac] sm:$0xf]  ;;  %v8460_v3 = vor.u32 %v10429_v23, %v8457_v61  ;;  %v8169_v16 = vld [vmem:[%s11235_s9 + $0xa98] sm:$0xf0] }
 0x2e0   : > { %6275 = vmatpush.bf16.msra.mxu1 %v7612_v6  ;;  %v10393_v6 = vld [vmem:[%s11235_s9 + $0xbac] sm:$0xf]  ;;  %v8188_v44 = vor.u32 %v10361_v2, %v8185_v62  ;;  %v8297_v1 = vld [vmem:[%s11235_s9 + $0xb98] sm:$0xf0] }
 0x2e1   : > { %6288 = vmatpush.bf16.msra.mxu2 %v7740_v8  ;;  %v8313_v8 = vld [vmem:[%s11235_s9 + $0xbb8] sm:$0xf0]  ;;  %v8300_v49 = vor.u32 %v10389_v27, %v8297_v1  ;;  %v10349_v22 = vld [vmem:[%s11235_s9 + $0xa4c] sm:$0xf] }
 0x2e2   : > { %6301 = vmatpush.bf16.msra.mxu3 %v7868_v12  ;;  %v8316_v12 = vor.u32 %v10393_v6, %v8313_v8  ;;  %v8425_v15 = vld [vmem:[%s11235_s9 + $0xc98] sm:$0xf0]  ;;  %v10377_v11 = vld [vmem:[%s11235_s9 + $0xb2c] sm:$0xf] }
 0x2e3   : > { %6263 = vmatpush.bf16.msra.mxu0 %v7468_v37  ;;  %v8428_v20 = vor.u32 %v10421_v21, %v8425_v15  ;;  %v8153_v54 = vld [vmem:[%s11235_s9 + $0xa78] sm:$0xf0]  ;;  %v10309_v27 = vld [vmem:[%s11235_s9 + $0x90c] sm:$0xf] }
 0x2e4   : > { %6276 = vmatpush.bf16.msra.mxu1 %v7596_v53  ;;  %v12865_v37 = vpop.f32.mrf.mxu1  ;;  %v8025_v53 = vld [vmem:[%s11235_s9 + $0x978] sm:$0xf0] }
 0x2e5   : > { %6289 = vmatpush.bf16.msra.mxu2 %v7724_v48  ;;  %v10353_v48 = vld [vmem:[%s11235_s9 + $0xa6c] sm:$0xf]  ;;  %v8028_v57 = vor.u32 %v10321_v40, %v8025_v53  ;;  %v8009_v59 = vld [vmem:[%s11235_s9 + $0x958] sm:$0xf0] }
 0x2e6   : > { %6302 = vmatpush.bf16.msra.mxu3 %v7852_v19  ;;  %6264 = vmatmul.bf16.vlgmr.msra.gmra.mxu0 %v11423_v45  ;;  %v8060_v45 = vor.u32 %v10329_v5, %v8057_v51  ;;  %v10385_v19 = vld [vmem:[%s11235_s9 + $0xb6c] sm:$0xf]  ;;  %v8156_v7 = vor.u32 %v10353_v48, %v8153_v54  ;;  %v8137_v61 = vld [vmem:[%s11235_s9 + $0xa58] sm:$0xf0] }
 0x2e7   : > { %6308 = vmatpush.bf16.msrb.mxu0 %v8092_v28  ;;  %6277 = vmatmul.bf16.vlgmr.msra.gmra.mxu1 %v11415_v39  ;;  %v8444_v39 = vor.u32 %v10425_v10, %v8441_v25  ;;  %v8281_v28 = vld [vmem:[%s11235_s9 + $0xb78] sm:$0xf0]  ;;  %v10413_v5 = vld [vmem:[%s11235_s9 + $0xc4c] sm:$0xf]  ;;  %v8140_v6 = vor.u32 %v10349_v22, %v8137_v61 }
 0x2e8   : > { %6321 = vmatpush.bf16.msrb.mxu1 %v8220_v55  ;;  %6290 = vmatmul.bf16.vlgmr.msra.gmra.mxu2 %v11421_v43  ;;  %v10357_v43 = vld [vmem:[%s11235_s9 + $0xa8c] sm:$0xf]  ;;  %v8284_v60 = vor.u32 %v10385_v19, %v8281_v28  ;;  %v8393_v51 = vld [vmem:[%s11235_s9 + $0xc58] sm:$0xf0] }
 0x2e9   : > { %6334 = vmatpush.bf16.msrb.mxu2 %v8348_v56  ;;  %6303 = vmatmul.bf16.vlgmr.msra.gmra.mxu3 %v11490_v26  ;;  %v12861_v26 = vpop.f32.mrf.mxu0  ;;  %v8172_v52 = vor.u32 %v10357_v43, %v8169_v16  ;;  %v10417_v55 = vld [vmem:[%s11235_s9 + $0xc6c] sm:$0xf]  ;;  %v8409_v56 = vld [vmem:[%s11235_s9 + $0xc78] sm:$0xf0] }
 0x2ea   : > { %6347 = vmatpush.bf16.msrb.mxu3 %v8476_v4  ;;  %v10317_v4 = vld [vmem:[%s11235_s9 + $0x94c] sm:$0xf]  ;;  %v8412_v42 = vor.u32 %v10417_v55, %v8409_v56  ;;  %v7993_v25 = vld [vmem:[%s11235_s9 + $0x938] sm:$0xf0] }
 0x2eb   : > { %6309 = vmatpush.bf16.msrb.mxu0 %v8076_v0  ;;  %v12878_v23 = vpop.f32.mrf.mxu2  ;;  %v10381_v0 = vld [vmem:[%s11235_s9 + $0xb4c] sm:$0xf]  ;;  %v8249_v18 = vld [vmem:[%s11235_s9 + $0xb38] sm:$0xf0] }
 0x2ec   : > { %6322 = vmatpush.bf16.msrb.mxu1 %v8204_v33  ;;  %v8265_v33 = vld [vmem:[%s11235_s9 + $0xb58] sm:$0xf0]  ;;  %v6072_v62 = vpop.f32.mrf.mxu1  ;;  %v10313_v10 = vld [vmem:[%s11235_s9 + $0x92c] sm:$0xf]  ;;  %v8252_v15 = vor.u32 %v10377_v11, %v8249_v18 }
 0x2ed   : > { %6335 = vmatpush.bf16.msrb.mxu2 %v8332_v41  ;;  %v12883_v41 = vpop.f32.mrf.mxu3  ;;  %v8268_v8 = vor.u32 %v10381_v0, %v8265_v33  ;;  %v10409_v43 = vld [vmem:[%s11235_s9 + $0xc2c] sm:$0xf]  ;;  %v7996_v16 = vor.u32 %v10313_v10, %v7993_v25  ;;  %v7977_v1 = vld [vmem:[%s11235_s9 + $0x918] sm:$0xf0] }
 0x2ee   : > { %6348 = vmatpush.bf16.msrb.mxu3 %v8460_v3  ;;  %v8012_v3 = vor.u32 %v10317_v4, %v8009_v59  ;;  %v8233_v53 = vld [vmem:[%s11235_s9 + $0xb18] sm:$0xf0]  ;;  %v10405_v48 = vld [vmem:[%s11235_s9 + $0xc0c] sm:$0xf] }
 0x2ef   : > { %6310 = vmatpush.bf16.msrb.mxu0 %v8060_v45  ;;  %v10345_v45 = vld [vmem:[%s11235_s9 + $0xa2c] sm:$0xf]  ;;  %v8601_v28 = vld [vmem:[%s11235_s9 + $0xdf8] sm:$0xf0] }
 0x2f0   : > { %6323 = vmatpush.bf16.msrb.mxu1 %v8188_v44  ;;  %v8396_v44 = vor.u32 %v10413_v5, %v8393_v51  ;;  %v10465_v19 = vld [vmem:[%s11235_s9 + $0xdec] sm:$0xf]  ;;  %v8857_v4 = vld [vmem:[%s11235_s9 + $0xff8] sm:$0xf0] }
 0x2f1   : > { %6336 = vmatpush.bf16.msrb.mxu2 %v8316_v12  ;;  %v6059_v2 = vpop.f32.mrf.mxu0  ;;  %v8121_v12 = vld [vmem:[%s11235_s9 + $0xa38] sm:$0xf0]  ;;  %v10497_v55 = vld [vmem:[%s11235_s9 + $0xeec] sm:$0xf]  ;;  %v8604_v33 = vor.u32 %v10465_v19, %v8601_v28 }
 0x2f2   : > { %6349 = vmatpush.bf16.msrb.mxu3 %v8444_v39  ;;  %v8377_v39 = vld [vmem:[%s11235_s9 + $0xc38] sm:$0xf0]  ;;  %v8124_v21 = vor.u32 %v10345_v45, %v8121_v12  ;;  %v10461_v2 = vld [vmem:[%s11235_s9 + $0xdcc] sm:$0xf] }
 0x2f3   : > { %6311 = vmatpush.bf16.msrb.mxu0 %v8044_v35  ;;  %v10341_v35 = vld [vmem:[%s11235_s9 + $0xa0c] sm:$0xf]  ;;  %v8380_v40 = vor.u32 %v10409_v43, %v8377_v39  ;;  %v6085_v54 = vpop.f32.mrf.mxu2  ;;  %v8985_v61 = vld [vmem:[%s11235_s9 + $0x10f8] sm:$0xf0] }
 0x2f4   : > { %6324 = vmatpush.bf16.msrb.mxu1 %v8172_v52  ;;  %v8105_v52 = vld [vmem:[%s11235_s9 + $0xa18] sm:$0xf0]  ;;  %v10493_v62 = vld [vmem:[%s11235_s9 + $0xecc] sm:$0xf] }
 0x2f5   : > { %6337 = vmatpush.bf16.msrb.mxu2 %v8300_v49  ;;  %v10373_v49 = vld [vmem:[%s11235_s9 + $0xb0c] sm:$0xf]  ;;  %v6098_v56 = vpop.f32.mrf.mxu3  ;;  %v8108_v59 = vor.u32 %v10341_v35, %v8105_v52  ;;  %v8841_v25 = vld [vmem:[%s11235_s9 + $0xfd8] sm:$0xf0] }
 0x2f6   : > { %6350 = vmatpush.bf16.msrb.mxu3 %v8428_v20  ;;  %v8361_v20 = vld [vmem:[%s11235_s9 + $0xc18] sm:$0xf0]  ;;  %v8236_v22 = vor.u32 %v10373_v49, %v8233_v53  ;;  %v10525_v10 = vld [vmem:[%s11235_s9 + $0xfcc] sm:$0xf] }
 0x2f7   : > { %6312 = vmatpush.bf16.msrb.mxu0 %v8028_v57  ;;  %v7980_v57 = vor.u32 %v10309_v27, %v7977_v1  ;;  %v8364_v0 = vor.u32 %v10405_v48, %v8361_v20  ;;  %v10557_v45 = vld [vmem:[%s11235_s9 + $0x10cc] sm:$0xf]  ;;  %v8844_v18 = vor.u32 %v10525_v10, %v8841_v25  ;;  %v8569_v39 = vld [vmem:[%s11235_s9 + $0xdb8] sm:$0xf0] }
 0x2f8   : > { %6325 = vmatpush.bf16.msrb.mxu1 %v8156_v7  ;;  %v8729_v7 = vld [vmem:[%s11235_s9 + $0xef8] sm:$0xf0]  ;;  %v10457_v43 = vld [vmem:[%s11235_s9 + $0xdac] sm:$0xf] }
 0x2f9   : > { %6338 = vmatpush.bf16.msrb.mxu2 %v8284_v60  ;;  %v10529_v60 = vld [vmem:[%s11235_s9 + $0xfec] sm:$0xf]  ;;  %v8732_v5 = vor.u32 %v10497_v55, %v8729_v7  ;;  %v8697_v1 = vld [vmem:[%s11235_s9 + $0xeb8] sm:$0xf0] }
 0x2fa   : > { %6351 = vmatpush.bf16.msrb.mxu3 %v8412_v42  ;;  %v10561_v42 = vld [vmem:[%s11235_s9 + $0x10ec] sm:$0xf]  ;;  %v8860_v51 = vor.u32 %v10529_v60, %v8857_v4  ;;  %v8953_v52 = vld [vmem:[%s11235_s9 + $0x10b8] sm:$0xf0] }
 0x2fb   : > { %6313 = vmatpush.bf16.msrb.mxu0 %v8012_v3  ;;  %v8585_v3 = vld [vmem:[%s11235_s9 + $0xdd8] sm:$0xf0]  ;;  %v10553_v35 = vld [vmem:[%s11235_s9 + $0x10ac] sm:$0xf] }
 0x2fc   : > { %6326 = vmatpush.bf16.msrb.mxu1 %v8140_v6  ;;  %v8988_v6 = vor.u32 %v10561_v42, %v8985_v61  ;;  %v8588_v12 = vor.u32 %v10461_v2, %v8585_v3  ;;  %v10453_v53 = vld [vmem:[%s11235_s9 + $0xd8c] sm:$0xf]  ;;  %v8553_v48 = vld [vmem:[%s11235_s9 + $0xd98] sm:$0xf0] }
 0x2fd   : > { %6339 = vmatpush.bf16.msrb.mxu2 %v8268_v8  ;;  %v8713_v8 = vld [vmem:[%s11235_s9 + $0xed8] sm:$0xf0]  ;;  %v10517_v54 = vld [vmem:[%s11235_s9 + $0xf8c] sm:$0xf]  ;;  %v8556_v56 = vor.u32 %v10453_v53, %v8553_v48 }
 0x2fe   : > { %6352 = vmatpush.bf16.msrb.mxu3 %v8396_v44  ;;  %v8969_v44 = vld [vmem:[%s11235_s9 + $0x10d8] sm:$0xf0]  ;;  %v8716_v11 = vor.u32 %v10493_v62, %v8713_v8  ;;  %v10549_v28 = vld [vmem:[%s11235_s9 + $0x108c] sm:$0xf] }
 0x2ff   : > { %6314 = vmatpush.bf16.msrb.mxu0 %v7996_v16  ;;  %v10489_v16 = vld [vmem:[%s11235_s9 + $0xeac] sm:$0xf]  ;;  %v8972_v27 = vor.u32 %v10557_v45, %v8969_v44  ;;  %v8681_v20 = vld [vmem:[%s11235_s9 + $0xe98] sm:$0xf0] }
 0x300   : > { %6327 = vmatpush.bf16.msrb.mxu1 %v8124_v21  ;;  %v10521_v21 = vld [vmem:[%s11235_s9 + $0xfac] sm:$0xf]  ;;  %v8700_v49 = vor.u32 %v10489_v16, %v8697_v1  ;;  %v8809_v19 = vld [vmem:[%s11235_s9 + $0xf98] sm:$0xf0] }
 0x301   : > { %6340 = vmatpush.bf16.msrb.mxu2 %v8252_v15  ;;  %v8825_v15 = vld [vmem:[%s11235_s9 + $0xfb8] sm:$0xf0]  ;;  %v8812_v60 = vor.u32 %v10517_v54, %v8809_v19  ;;  %v10449_v4 = vld [vmem:[%s11235_s9 + $0xd6c] sm:$0xf] }
 0x302   : > { %6353 = vmatpush.bf16.msrb.mxu3 %v8380_v40  ;;  %v8828_v40 = vor.u32 %v10521_v21, %v8825_v15  ;;  %v8937_v55 = vld [vmem:[%s11235_s9 + $0x1098] sm:$0xf0]  ;;  %v10477_v10 = vld [vmem:[%s11235_s9 + $0xe4c] sm:$0xf] }
 0x303   : > { %6315 = vmatpush.bf16.msrb.mxu0 %v7980_v57  ;;  %v8940_v42 = vor.u32 %v10549_v28, %v8937_v55  ;;  %v8665_v61 = vld [vmem:[%s11235_s9 + $0xe78] sm:$0xf0]  ;;  %v10437_v54 = vld [vmem:[%s11235_s9 + $0xd0c] sm:$0xf] }
 0x304   : > { %6328 = vmatpush.bf16.msrb.mxu1 %v8108_v59  ;;  %v12941_v57 = vpop.f32.mrf.mxu1  ;;  %v8537_v59 = vld [vmem:[%s11235_s9 + $0xd78] sm:$0xf0] }
 0x305   : > { %6341 = vmatpush.bf16.msrb.mxu2 %v8236_v22  ;;  %v10481_v22 = vld [vmem:[%s11235_s9 + $0xe6c] sm:$0xf]  ;;  %v8540_v2 = vor.u32 %v10449_v4, %v8537_v59  ;;  %v8521_v8 = vld [vmem:[%s11235_s9 + $0xd58] sm:$0xf0] }
 0x306   : > { %6354 = vmatpush.bf16.msrb.mxu3 %v8364_v0  ;;  %6316 = vmatmul.bf16.vlgmr.msrb.gmra.mxu0 %v11497_v31  ;;  %v8572_v31 = vor.u32 %v10457_v43, %v8569_v39  ;;  %v10513_v0 = vld [vmem:[%s11235_s9 + $0xf6c] sm:$0xf]  ;;  %v8668_v3 = vor.u32 %v10481_v22, %v8665_v61  ;;  %v8649_v44 = vld [vmem:[%s11235_s9 + $0xe58] sm:$0xf0] }
 0x307   : > { %6360 = vmatpush.bf16.msra.mxu0 %v8604_v33  ;;  %6329 = vmatmul.bf16.vlgmr.msrb.gmra.mxu1 %v11495_v30  ;;  %v8956_v30 = vor.u32 %v10553_v35, %v8953_v52  ;;  %v8793_v33 = vld [vmem:[%s11235_s9 + $0xf78] sm:$0xf0]  ;;  %v10541_v39 = vld [vmem:[%s11235_s9 + $0x104c] sm:$0xf]  ;;  %v8652_v15 = vor.u32 %v10477_v10, %v8649_v44 }
 0x308   : > { %6373 = vmatpush.bf16.msra.mxu1 %v8732_v5  ;;  %6342 = vmatmul.bf16.vlgmr.msrb.gmra.mxu2 %v11501_v34  ;;  %v10485_v34 = vld [vmem:[%s11235_s9 + $0xe8c] sm:$0xf]  ;;  %v8796_v62 = vor.u32 %v10513_v0, %v8793_v33  ;;  %v8905_v16 = vld [vmem:[%s11235_s9 + $0x1058] sm:$0xf0] }
 0x309   : > { %6386 = vmatpush.bf16.msra.mxu2 %v8860_v51  ;;  %6355 = vmatmul.bf16.vlgmr.msrb.gmra.mxu3 %v11568_v24  ;;  %v12937_v24 = vpop.f32.mrf.mxu0  ;;  %v8684_v7 = vor.u32 %v10485_v34, %v8681_v20  ;;  %v10545_v5 = vld [vmem:[%s11235_s9 + $0x106c] sm:$0xf]  ;;  %v8921_v51 = vld [vmem:[%s11235_s9 + $0x1078] sm:$0xf0] }
 0x30a   : > { %6399 = vmatpush.bf16.msra.mxu3 %v8988_v6  ;;  %v10445_v6 = vld [vmem:[%s11235_s9 + $0xd4c] sm:$0xf]  ;;  %v8924_v25 = vor.u32 %v10545_v5, %v8921_v51  ;;  %v8761_v53 = vld [vmem:[%s11235_s9 + $0xf38] sm:$0xf0] }
 0x30b   : > { %6361 = vmatpush.bf16.msra.mxu0 %v8588_v12  ;;  %v12954_v45 = vpop.f32.mrf.mxu2  ;;  %v10509_v12 = vld [vmem:[%s11235_s9 + $0xf4c] sm:$0xf]  ;;  %v8524_v1 = vor.u32 %v10445_v6, %v8521_v8  ;;  %v8489_v19 = vld [vmem:[%s11235_s9 + $0xd18] sm:$0xf0] }
 0x30c   : > { %6374 = vmatpush.bf16.msra.mxu1 %v8716_v11  ;;  %v8777_v11 = vld [vmem:[%s11235_s9 + $0xf58] sm:$0xf0]  ;;  %v12961_v43 = vpop.f32.mrf.mxu3  ;;  %v6124_v21 = vpop.f32.mrf.mxu1  ;;  %v10473_v52 = vld [vmem:[%s11235_s9 + $0xe2c] sm:$0xf]  ;;  %v8492_v51 = vor.u32 %v10437_v54, %v8489_v19 }
 0x30d   : > { %6387 = vmatpush.bf16.msra.mxu2 %v8844_v18  ;;  %v6058_v18 = vadd.f32 %v12861_v26, %v12809_v58  ;;  %v8780_v35 = vor.u32 %v10509_v12, %v8777_v11  ;;  %v10441_v58 = vld [vmem:[%s11235_s9 + $0xd2c] sm:$0xf]  ;;  %v8505_v26 = vld [vmem:[%s11235_s9 + $0xd38] sm:$0xf0] }
 0x30e   : > { %6400 = vmatpush.bf16.msra.mxu3 %v8972_v27  ;;  %v10537_v34 = vld [vmem:[%s11235_s9 + $0x102c] sm:$0xf]  ;;  %v8508_v20 = vor.u32 %v10441_v58, %v8505_v26  ;;  %v8745_v59 = vld [vmem:[%s11235_s9 + $0xf18] sm:$0xf0] }
 0x30f   : > { %6362 = vmatpush.bf16.msra.mxu0 %v8572_v31  ;;  %v8908_v31 = vor.u32 %v10541_v39, %v8905_v16  ;;  %v6071_v48 = vadd.f32 %v12865_v37, %v6058_v18  ;;  %v10469_v37 = vld [vmem:[%s11235_s9 + $0xe0c] sm:$0xf]  ;;  %v9113_v0 = vld [vmem:[%s11235_s9 + $0x11f8] sm:$0xf0] }
 0x310   : > { %6375 = vmatpush.bf16.msra.mxu1 %v8700_v49  ;;  %v8633_v49 = vld [vmem:[%s11235_s9 + $0xe38] sm:$0xf0]  ;;  %v10533_v22 = vld [vmem:[%s11235_s9 + $0x100c] sm:$0xf] }
 0x311   : > { %6388 = vmatpush.bf16.msra.mxu2 %v8828_v40  ;;  %v6111_v27 = vpop.f32.mrf.mxu0  ;;  %v10505_v40 = vld [vmem:[%s11235_s9 + $0xf2c] sm:$0xf]  ;;  %v6084_v28 = vadd.f32 %v12878_v23, %v6071_v48  ;;  %v8636_v55 = vor.u32 %v10473_v52, %v8633_v49  ;;  %v9497_v44 = vld [vmem:[%s11235_s9 + $0x14f8] sm:$0xf0] }
 0x312   : > { %6401 = vmatpush.bf16.msra.mxu3 %v8956_v30  ;;  %v8889_v30 = vld [vmem:[%s11235_s9 + $0x1038] sm:$0xf0]  ;;  %v10593_v23 = vld [vmem:[%s11235_s9 + $0x11ec] sm:$0xf] }
 0x313   : > { %6363 = vmatpush.bf16.msra.mxu0 %v8556_v56  ;;  %v8764_v56 = vor.u32 %v10505_v40, %v8761_v53  ;;  %v8892_v4 = vor.u32 %v10537_v34, %v8889_v30  ;;  %v6137_v61 = vpop.f32.mrf.mxu2  ;;  %v10625_v33 = vld [vmem:[%s11235_s9 + $0x12ec] sm:$0xf]  ;;  %v6097_v6 = vadd.f32 %v12883_v41, %v6084_v28  ;;  %v9116_v11 = vor.u32 %v10593_v23, %v9113_v0  ;;  %v9097_v41 = vld [vmem:[%s11235_s9 + $0x11d8] sm:$0xf0] }
 0x314   : > { %6376 = vmatpush.bf16.msra.mxu1 %v8684_v7  ;;  %v8617_v7 = vld [vmem:[%s11235_s9 + $0xe18] sm:$0xf0]  ;;  %v6150_v5 = vpop.f32.mrf.mxu3  ;;  %v10589_v27 = vld [vmem:[%s11235_s9 + $0x11cc] sm:$0xf] }
 0x315   : > { %6389 = vmatpush.bf16.msra.mxu2 %v8812_v60  ;;  %v10501_v60 = vld [vmem:[%s11235_s9 + $0xf0c] sm:$0xf]  ;;  %v8620_v8 = vor.u32 %v10469_v37, %v8617_v7  ;;  %v6110_v18 = vadd.f32 %v12937_v24, %v6097_v6  ;;  %v9353_v58 = vld [vmem:[%s11235_s9 + $0x13d8] sm:$0xf0]  ;;  %v9100_v24 = vor.u32 %v10589_v27, %v9097_v41 }
 0x316   : > { %6402 = vmatpush.bf16.msra.mxu3 %v8940_v42  ;;  %v8873_v42 = vld [vmem:[%s11235_s9 + $0x1018] sm:$0xf0]  ;;  %v8748_v10 = vor.u32 %v10501_v60, %v8745_v59  ;;  %v10685_v26 = vld [vmem:[%s11235_s9 + $0x14cc] sm:$0xf] }
 0x317   : > { %6364 = vmatpush.bf16.msra.mxu0 %v8540_v2  ;;  %v9241_v2 = vld [vmem:[%s11235_s9 + $0x12f8] sm:$0xf0]  ;;  %v8876_v12 = vor.u32 %v10533_v22, %v8873_v42  ;;  %v10585_v53 = vld [vmem:[%s11235_s9 + $0x11ac] sm:$0xf] }
 0x318   : > { %6377 = vmatpush.bf16.msra.mxu1 %v8668_v3  ;;  %v10657_v3 = vld [vmem:[%s11235_s9 + $0x13ec] sm:$0xf]  ;;  %v9244_v39 = vor.u32 %v10625_v33, %v9241_v2  ;;  %v9481_v52 = vld [vmem:[%s11235_s9 + $0x14d8] sm:$0xf0] }
 0x319   : > { %6390 = vmatpush.bf16.msra.mxu2 %v8796_v62  ;;  %v9369_v62 = vld [vmem:[%s11235_s9 + $0x13f8] sm:$0xf0]  ;;  %v10617_v34 = vld [vmem:[%s11235_s9 + $0x12ac] sm:$0xf]  ;;  %v9484_v30 = vor.u32 %v10685_v26, %v9481_v52 }
 0x31a   : > { %6403 = vmatpush.bf16.msra.mxu3 %v8924_v25  ;;  %v10689_v25 = vld [vmem:[%s11235_s9 + $0x14ec] sm:$0xf]  ;;  %v9372_v16 = vor.u32 %v10657_v3, %v9369_v62  ;;  %v9081_v48 = vld [vmem:[%s11235_s9 + $0x11b8] sm:$0xf0] }
 0x31b   : > { %6365 = vmatpush.bf16.msra.mxu0 %v8524_v1  ;;  %v10621_v1 = vld [vmem:[%s11235_s9 + $0x12cc] sm:$0xf]  ;;  %v9500_v21 = vor.u32 %v10689_v25, %v9497_v44  ;;  %v9337_v19 = vld [vmem:[%s11235_s9 + $0x13b8] sm:$0xf0] }
 0x31c   : > { %6378 = vmatpush.bf16.msra.mxu1 %v8652_v15  ;;  %v9225_v15 = vld [vmem:[%s11235_s9 + $0x12d8] sm:$0xf0]  ;;  %v10649_v54 = vld [vmem:[%s11235_s9 + $0x13ac] sm:$0xf] }
 0x31d   : > { %6391 = vmatpush.bf16.msra.mxu2 %v8780_v35  ;;  %v10653_v35 = vld [vmem:[%s11235_s9 + $0x13cc] sm:$0xf]  ;;  %v9228_v49 = vor.u32 %v10621_v1, %v9225_v15  ;;  %v9340_v37 = vor.u32 %v10649_v54, %v9337_v19  ;;  %v9065_v7 = vld [vmem:[%s11235_s9 + $0x1198] sm:$0xf0] }
 0x31e   : > { %6404 = vmatpush.bf16.msra.mxu3 %v8908_v31  ;;  %v6123_v31 = vadd.f32 %v12941_v57, %v6110_v18  ;;  %v9356_v40 = vor.u32 %v10653_v35, %v9353_v58  ;;  %v10681_v28 = vld [vmem:[%s11235_s9 + $0x14ac] sm:$0xf]  ;;  %v9321_v59 = vld [vmem:[%s11235_s9 + $0x1398] sm:$0xf0] }
 0x31f   : > { %6366 = vmatpush.bf16.msra.mxu0 %v8508_v20  ;;  %v9209_v20 = vld [vmem:[%s11235_s9 + $0x12b8] sm:$0xf0]  ;;  %v10677_v42 = vld [vmem:[%s11235_s9 + $0x148c] sm:$0xf] }
 0x320   : > { %6379 = vmatpush.bf16.msra.mxu1 %v8636_v55  ;;  %v6136_v57 = vadd.f32 %v12954_v45, %v6123_v31  ;;  %v9465_v55 = vld [vmem:[%s11235_s9 + $0x14b8] sm:$0xf0]  ;;  %v10581_v45 = vld [vmem:[%s11235_s9 + $0x118c] sm:$0xf] }
 0x321   : > { %6392 = vmatpush.bf16.msra.mxu2 %v8764_v56  ;;  %v9212_v56 = vor.u32 %v10617_v34, %v9209_v20  ;;  %v9468_v60 = vor.u32 %v10681_v28, %v9465_v55  ;;  %v9449_v61 = vld [vmem:[%s11235_s9 + $0x1498] sm:$0xf0]  ;;  %v9068_v23 = vor.u32 %v10581_v45, %v9065_v7  ;;  %v10577_v2 = vld [vmem:[%s11235_s9 + $0x116c] sm:$0xf] }
 0x322   : > { %6405 = vmatpush.bf16.msra.mxu3 %v8892_v4  ;;  %v10645_v4 = vld [vmem:[%s11235_s9 + $0x138c] sm:$0xf]  ;;  %v9049_v3 = vld [vmem:[%s11235_s9 + $0x1178] sm:$0xf0] }
 0x323   : > { %6367 = vmatpush.bf16.msra.mxu0 %v8492_v51  ;;  %v6161_v22 = vpop.f32.mrf.mxu0  ;;  %v9324_v51 = vor.u32 %v10645_v4, %v9321_v59  ;;  %v10609_v62 = vld [vmem:[%s11235_s9 + $0x126c] sm:$0xf]  ;;  %v9177_v6 = vld [vmem:[%s11235_s9 + $0x1278] sm:$0xf0] }
 0x324   : > { %6380 = vmatpush.bf16.msra.mxu1 %v8620_v8  ;;  %v6174_v0 = vpop.f32.mrf.mxu1  ;;  %v10641_v8 = vld [vmem:[%s11235_s9 + $0x136c] sm:$0xf]  ;;  %v9433_v44 = vld [vmem:[%s11235_s9 + $0x1478] sm:$0xf0] }
 0x325   : > { %6393 = vmatpush.bf16.msra.mxu2 %v8748_v10  ;;  %v9305_v10 = vld [vmem:[%s11235_s9 + $0x1378] sm:$0xf0]  ;;  %v10673_v25 = vld [vmem:[%s11235_s9 + $0x146c] sm:$0xf] }
 0x326   : > { %6406 = vmatpush.bf16.msra.mxu3 %v8876_v12  ;;  %6368 = vmatmul.bf16.vlgmr.msra.gmra.mxu0 %v11575_v32  ;;  %v9084_v32 = vor.u32 %v10585_v53, %v9081_v48  ;;  %v9052_v12 = vor.u32 %v10577_v2, %v9049_v3  ;;  %v10573_v27 = vld [vmem:[%s11235_s9 + $0x114c] sm:$0xf]  ;;  %v9033_v41 = vld [vmem:[%s11235_s9 + $0x1158] sm:$0xf0] }
 0x327   : > { %6412 = vmatpush.bf16.msrb.mxu0 %v9116_v11  ;;  %6381 = vmatmul.bf16.vlgmr.msra.gmra.mxu1 %v11573_v29  ;;  %v9193_v29 = vld [vmem:[%s11235_s9 + $0x1298] sm:$0xf0]  ;;  %v10605_v1 = vld [vmem:[%s11235_s9 + $0x124c] sm:$0xf]  ;;  %v9036_v53 = vor.u32 %v10573_v27, %v9033_v41 }
 0x328   : > { %6425 = vmatpush.bf16.msrb.mxu1 %v9244_v39  ;;  %6394 = vmatmul.bf16.vlgmr.msra.gmra.mxu2 %v11579_v36  ;;  %v10613_v36 = vld [vmem:[%s11235_s9 + $0x128c] sm:$0xf]  ;;  %v313_v11 = vld [vmem:[#allocation2 + $0x18] sm:$0xff]  ;;  %v9180_v39 = vor.u32 %v10609_v62, %v9177_v6 }
 0x329   : > { %6438 = vmatpush.bf16.msrb.mxu2 %v9372_v16  ;;  %6407 = vmatmul.bf16.vlgmr.msra.gmra.mxu3 %v11646_v38  ;;  %v6149_v38 = vadd.f32 %v12961_v43, %v6136_v57  ;;  %v9196_v5 = vor.u32 %v10613_v36, %v9193_v29  ;;  %v9452_v43 = vor.u32 %v10677_v42, %v9449_v61  ;;  %v9161_v35 = vld [vmem:[%s11235_s9 + $0x1258] sm:$0xf0]  ;;  %v10637_v58 = vld [vmem:[%s11235_s9 + $0x134c] sm:$0xf] }
 0x32a   : > { %6451 = vmatpush.bf16.msrb.mxu3 %v9500_v21  ;;  %v9308_v16 = vor.u32 %v10641_v8, %v9305_v10  ;;  %v9436_v21 = vor.u32 %v10673_v25, %v9433_v44  ;;  %v9289_v26 = vld [vmem:[%s11235_s9 + $0x1358] sm:$0xf0]  ;;  %v10569_v54 = vld [vmem:[%s11235_s9 + $0x112c] sm:$0xf] }
 0x32b   : > { %6413 = vmatpush.bf16.msrb.mxu0 %v9100_v24  ;;  %v6162_v33 = vadd.f32 %v6161_v22, %v6149_v38  ;;  %v6187_v15 = vpop.f32.mrf.mxu2  ;;  %v10669_v24 = vld [vmem:[%s11235_s9 + $0x144c] sm:$0xf]  ;;  %v9417_v31 = vld [vmem:[%s11235_s9 + $0x1458] sm:$0xf0]  ;;  %v9292_v20 = vor.u32 %v10637_v58, %v9289_v26 }
 0x32c   : > { %6426 = vmatpush.bf16.msrb.mxu1 %v9228_v49  ;;  %v13040_v49 = vpop.f32.mrf.mxu3  ;;  %v6176_v48 = vpop.f32.mrf.mxu1  ;;  %v9017_v19 = vld [vmem:[%s11235_s9 + $0x1138] sm:$0xf0]  ;;  %v10601_v57 = vld [vmem:[%s11235_s9 + $0x122c] sm:$0xf]  ;;  %v9420_v28 = vor.u32 %v10669_v24, %v9417_v31 }
 0x32d   : > { %6439 = vmatpush.bf16.msrb.mxu2 %v9356_v40  ;;  %v6175_v18 = vadd.f32 %v6174_v0, %v6162_v33  ;;  %v6163_v40 = vpop.f32.mrf.mxu0  ;;  %v9145_v55 = vld [vmem:[%s11235_s9 + $0x1238] sm:$0xf0]  ;;  %v9020_v7 = vor.u32 %v10569_v54, %v9017_v19  ;;  %v10565_v36 = vld [vmem:[%s11235_s9 + $0x110c] sm:$0xf] }
 0x32e   : > { %6452 = vmatpush.bf16.msrb.mxu3 %v9484_v30  ;;  %v9164_v30 = vor.u32 %v10605_v1, %v9161_v35  ;;  %v9401_v45 = vld [vmem:[%s11235_s9 + $0x1438] sm:$0xf0]  ;;  %v9148_v29 = vor.u32 %v10601_v57, %v9145_v55  ;;  %v10597_v59 = vld [vmem:[%s11235_s9 + $0x120c] sm:$0xf] }
 0x32f   : > { %6414 = vmatpush.bf16.msrb.mxu0 %v9084_v32  ;;  %v6188_v52 = vadd.f32 %v6187_v15, %v6175_v18  ;;  %v10633_v32 = vld [vmem:[%s11235_s9 + $0x132c] sm:$0xf]  ;;  %v9129_v38 = vld [vmem:[%s11235_s9 + $0x1218] sm:$0xf0] }
 0x330   : > { %6427 = vmatpush.bf16.msrb.mxu1 %v9212_v56  ;;  %v9273_v56 = vld [vmem:[%s11235_s9 + $0x1338] sm:$0xf0]  ;;  %v10629_v22 = vld [vmem:[%s11235_s9 + $0x130c] sm:$0xf]  ;;  %v9132_v10 = vor.u32 %v10597_v59, %v9129_v38 }
 0x331   : > { %6440 = vmatpush.bf16.msrb.mxu2 %v9340_v37  ;;  %v6518_v34 = vadd.f32 %v6188_v52, %v313_v11  ;;  %v10665_v37 = vld [vmem:[%s11235_s9 + $0x142c] sm:$0xf]  ;;  %v9276_v4 = vor.u32 %v10633_v32, %v9273_v56  ;;  %v9257_v61 = vld [vmem:[%s11235_s9 + $0x1318] sm:$0xf0] }
 0x332   : > { %6453 = vmatpush.bf16.msrb.mxu3 %v9468_v60  ;;  %v9001_v60 = vld [vmem:[%s11235_s9 + $0x1118] sm:$0xf0]  ;;  %v9404_v42 = vor.u32 %v10665_v37, %v9401_v45  ;;  %v10753_v2 = vld [vmem:[%s11235_s9 + $0x16ec] sm:$0xf]  ;;  %v9260_v25 = vor.u32 %v10629_v22, %v9257_v61 }
 0x333   : > { %6415 = vmatpush.bf16.msrb.mxu0 %v9068_v23  ;;  %6522 = vst [vmem:[#allocation2 + $0x18] sm:$0xff] %v6518_v34  ;;  %v10661_v23 = vld [vmem:[%s11235_s9 + $0x140c] sm:$0xf]  ;;  %v9385_v0 = vld [vmem:[%s11235_s9 + $0x1418] sm:$0xf0]  ;;  %v6189_v33 = vpop.f32.mrf.mxu2  ;;  %v9004_v62 = vor.u32 %v10565_v36, %v9001_v60 }
 0x334   : > { %6428 = vmatpush.bf16.msrb.mxu1 %v9196_v5  ;;  %v10721_v5 = vld [vmem:[%s11235_s9 + $0x15ec] sm:$0xf]  ;;  %v6202_v3 = vpop.f32.mrf.mxu3  ;;  %v9881_v8 = vld [vmem:[%s11235_s9 + $0x17f8] sm:$0xf0]  ;;  %v9388_v11 = vor.u32 %v10661_v23, %v9385_v0 }
 0x335   : > { %6441 = vmatpush.bf16.msrb.mxu2 %v9324_v51  ;;  %v9625_v51 = vld [vmem:[%s11235_s9 + $0x15f8] sm:$0xf0]  ;;  %v10785_v6 = vld [vmem:[%s11235_s9 + $0x17ec] sm:$0xf] }
 0x336   : > { %6454 = vmatpush.bf16.msrb.mxu3 %v9452_v43  ;;  %v9753_v43 = vld [vmem:[%s11235_s9 + $0x16f8] sm:$0xf0]  ;;  %v10817_v44 = vld [vmem:[%s11235_s9 + $0x18ec] sm:$0xf]  ;;  %v9628_v18 = vor.u32 %v10721_v5, %v9625_v51 }
 0x337   : > { %6416 = vmatpush.bf16.msrb.mxu0 %v9052_v12  ;;  %v10009_v12 = vld [vmem:[%s11235_s9 + $0x18f8] sm:$0xf0]  ;;  %v10717_v27 = vld [vmem:[%s11235_s9 + $0x15cc] sm:$0xf] }
 0x338   : > { %6429 = vmatpush.bf16.msrb.mxu1 %v9180_v39  ;;  %v9756_v39 = vor.u32 %v10753_v2, %v9753_v43  ;;  %v9609_v41 = vld [vmem:[%s11235_s9 + $0x15d8] sm:$0xf0]  ;;  %v10749_v1 = vld [vmem:[%s11235_s9 + $0x16cc] sm:$0xf] }
 0x339   : > { %6442 = vmatpush.bf16.msrb.mxu2 %v9308_v16  ;;  %v9884_v16 = vor.u32 %v10785_v6, %v9881_v8  ;;  %v9737_v15 = vld [vmem:[%s11235_s9 + $0x16d8] sm:$0xf0]  ;;  %v10781_v35 = vld [vmem:[%s11235_s9 + $0x17cc] sm:$0xf]  ;;  %v9612_v24 = vor.u32 %v10717_v27, %v9609_v41 }
 0x33a   : > { %6455 = vmatpush.bf16.msrb.mxu3 %v9436_v21  ;;  %v10012_v21 = vor.u32 %v10817_v44, %v10009_v12  ;;  %v9865_v58 = vld [vmem:[%s11235_s9 + $0x17d8] sm:$0xf0]  ;;  %v10813_v26 = vld [vmem:[%s11235_s9 + $0x18cc] sm:$0xf]  ;;  %v9740_v31 = vor.u32 %v10749_v1, %v9737_v15 }
 0x33b   : > { %6417 = vmatpush.bf16.msrb.mxu0 %v9036_v53  ;;  %v9993_v52 = vld [vmem:[%s11235_s9 + $0x18d8] sm:$0xf0]  ;;  %v9868_v40 = vor.u32 %v10781_v35, %v9865_v58  ;;  %v10713_v53 = vld [vmem:[%s11235_s9 + $0x15ac] sm:$0xf] }
 0x33c   : > { %6430 = vmatpush.bf16.msrb.mxu1 %v9164_v30  ;;  %v9593_v48 = vld [vmem:[%s11235_s9 + $0x15b8] sm:$0xf0]  ;;  %v10745_v34 = vld [vmem:[%s11235_s9 + $0x16ac] sm:$0xf]  ;;  %v9996_v30 = vor.u32 %v10813_v26, %v9993_v52 }
 0x33d   : > { %6443 = vmatpush.bf16.msrb.mxu2 %v9292_v20  ;;  %v9721_v20 = vld [vmem:[%s11235_s9 + $0x16b8] sm:$0xf0]  ;;  %v10777_v54 = vld [vmem:[%s11235_s9 + $0x17ac] sm:$0xf] }
 0x33e   : > { %6456 = vmatpush.bf16.msrb.mxu3 %v9420_v28  ;;  %v9849_v19 = vld [vmem:[%s11235_s9 + $0x17b8] sm:$0xf0]  ;;  %v10809_v57 = vld [vmem:[%s11235_s9 + $0x18ac] sm:$0xf]  ;;  %v9724_v55 = vor.u32 %v10745_v34, %v9721_v20 }
 0x33f   : > { %6418 = vmatpush.bf16.msrb.mxu0 %v9020_v7  ;;  %v9977_v28 = vld [vmem:[%s11235_s9 + $0x18b8] sm:$0xf0]  ;;  %v9852_v32 = vor.u32 %v10777_v54, %v9849_v19  ;;  %v10709_v56 = vld [vmem:[%s11235_s9 + $0x158c] sm:$0xf] }
 0x340   : > { %6431 = vmatpush.bf16.msrb.mxu1 %v9148_v29  ;;  %v9577_v37 = vld [vmem:[%s11235_s9 + $0x1598] sm:$0xf0]  ;;  %v10773_v7 = vld [vmem:[%s11235_s9 + $0x178c] sm:$0xf] }
 0x341   : > { %6444 = vmatpush.bf16.msrb.mxu2 %v9276_v4  ;;  %v9705_v45 = vld [vmem:[%s11235_s9 + $0x1698] sm:$0xf0]  ;;  %v10805_v60 = vld [vmem:[%s11235_s9 + $0x188c] sm:$0xf]  ;;  %v9580_v29 = vor.u32 %v10709_v56, %v9577_v37 }
 0x342   : > { %6457 = vmatpush.bf16.msrb.mxu3 %v9404_v42  ;;  %v9833_v36 = vld [vmem:[%s11235_s9 + $0x1798] sm:$0xf0]  ;;  %v10705_v42 = vld [vmem:[%s11235_s9 + $0x156c] sm:$0xf] }
 0x343   : > { %6419 = vmatpush.bf16.msrb.mxu0 %v9004_v62  ;;  %v6213_v4 = vpop.f32.mrf.mxu0  ;;  %v9836_v38 = vor.u32 %v10773_v7, %v9833_v36  ;;  %v9561_v61 = vld [vmem:[%s11235_s9 + $0x1578] sm:$0xf0]  ;;  %v10737_v23 = vld [vmem:[%s11235_s9 + $0x166c] sm:$0xf] }
 0x344   : > { %6432 = vmatpush.bf16.msrb.mxu1 %v9132_v10  ;;  %v6214_v22 = vadd.f32 %v6213_v4, %v13040_v49  ;;  %v6226_v0 = vpop.f32.mrf.mxu1  ;;  %v9689_v5 = vld [vmem:[%s11235_s9 + $0x1678] sm:$0xf0]  ;;  %v10769_v51 = vld [vmem:[%s11235_s9 + $0x176c] sm:$0xf]  ;;  %v9564_v49 = vor.u32 %v10705_v42, %v9561_v61 }
 0x345   : > { %6445 = vmatpush.bf16.msrb.mxu2 %v9260_v25  ;;  %v9817_v2 = vld [vmem:[%s11235_s9 + $0x1778] sm:$0xf0]  ;;  %v10801_v3 = vld [vmem:[%s11235_s9 + $0x186c] sm:$0xf]  ;;  %v9692_v6 = vor.u32 %v10737_v23, %v9689_v5 }
 0x346   : > { %6458 = vmatpush.bf16.msrb.mxu3 %v9388_v11  ;;  %6420 = vmatmul.bf16.vlgmr.msrb.gmra.mxu0 %v11653_v47  ;;  %v9596_v47 = vor.u32 %v10713_v53, %v9593_v48  ;;  %v9945_v62 = vld [vmem:[%s11235_s9 + $0x1878] sm:$0xf0]  ;;  %v6227_v43 = vadd.f32 %v6226_v0, %v6214_v22  ;;  %v9820_v8 = vor.u32 %v10769_v51, %v9817_v2  ;;  %v10701_v25 = vld [vmem:[%s11235_s9 + $0x154c] sm:$0xf] }
 0x347   : > { %6464 = vmatpush.bf16.msra.mxu0 %v9628_v18  ;;  %6433 = vmatmul.bf16.vlgmr.msrb.gmra.mxu1 %v11651_v46  ;;  %v9980_v46 = vor.u32 %v10809_v57, %v9977_v28  ;;  %v9545_v44 = vld [vmem:[%s11235_s9 + $0x1558] sm:$0xf0]  ;;  %v10733_v12 = vld [vmem:[%s11235_s9 + $0x164c] sm:$0xf]  ;;  %v9948_v11 = vor.u32 %v10801_v3, %v9945_v62 }
 0x348   : > { %6477 = vmatpush.bf16.msra.mxu1 %v9756_v39  ;;  %6446 = vmatmul.bf16.vlgmr.msrb.gmra.mxu2 %v11657_v50  ;;  %v10741_v50 = vld [vmem:[%s11235_s9 + $0x168c] sm:$0xf]  ;;  %v9673_v39 = vld [vmem:[%s11235_s9 + $0x1658] sm:$0xf0]  ;;  %v9548_v15 = vor.u32 %v10701_v25, %v9545_v44 }
 0x349   : > { %6490 = vmatpush.bf16.msra.mxu2 %v9884_v16  ;;  %6459 = vmatmul.bf16.vlgmr.msrb.gmra.mxu3 %v11726_v9  ;;  %v9961_v9 = vld [vmem:[%s11235_s9 + $0x1898] sm:$0xf0]  ;;  %v9708_v59 = vor.u32 %v10741_v50, %v9705_v45  ;;  %v10765_v16 = vld [vmem:[%s11235_s9 + $0x174c] sm:$0xf]  ;;  %v9676_v26 = vor.u32 %v10733_v12, %v9673_v39 }
 0x34a   : > { %6503 = vmatpush.bf16.msra.mxu3 %v10012_v21  ;;  %v9964_v33 = vor.u32 %v10805_v60, %v9961_v9  ;;  %v9801_v27 = vld [vmem:[%s11235_s9 + $0x1758] sm:$0xf0]  ;;  %v10797_v1 = vld [vmem:[%s11235_s9 + $0x184c] sm:$0xf] }
 0x34b   : > { %6465 = vmatpush.bf16.msra.mxu0 %v9612_v24  ;;  %v6239_v10 = vpop.f32.mrf.mxu2  ;;  %v9929_v21 = vld [vmem:[%s11235_s9 + $0x1858] sm:$0xf0]  ;;  %v6215_v58 = vpop.f32.mrf.mxu0  ;;  %v9804_v52 = vor.u32 %v10765_v16, %v9801_v27  ;;  %v10697_v24 = vld [vmem:[%s11235_s9 + $0x152c] sm:$0xf] }
 0x34c   : > { %6478 = vmatpush.bf16.msra.mxu1 %v9740_v31  ;;  %v6240_v18 = vadd.f32 %v6239_v10, %v6227_v43  ;;  %v6252_v41 = vpop.f32.mrf.mxu3  ;;  %v9529_v31 = vld [vmem:[%s11235_s9 + $0x1538] sm:$0xf0]  ;;  %v6228_v53 = vpop.f32.mrf.mxu1  ;;  %v9932_v48 = vor.u32 %v10797_v1, %v9929_v21  ;;  %v10793_v54 = vld [vmem:[%s11235_s9 + $0x182c] sm:$0xf] }
 0x34d   : > { %6491 = vmatpush.bf16.msra.mxu2 %v9868_v40  ;;  %v10729_v40 = vld [vmem:[%s11235_s9 + $0x162c] sm:$0xf]  ;;  %v9657_v34 = vld [vmem:[%s11235_s9 + $0x1638] sm:$0xf0]  ;;  %v9532_v57 = vor.u32 %v10697_v24, %v9529_v31 }
 0x34e   : > { %6504 = vmatpush.bf16.msra.mxu3 %v9996_v30  ;;  %v6253_v35 = vadd.f32 %v6252_v41, %v6240_v18  ;;  %v10761_v30 = vld [vmem:[%s11235_s9 + $0x172c] sm:$0xf]  ;;  %v9785_v20 = vld [vmem:[%s11235_s9 + $0x1738] sm:$0xf0]  ;;  %v9660_v28 = vor.u32 %v10729_v40, %v9657_v34 }
 0x34f   : > { %6466 = vmatpush.bf16.msra.mxu0 %v9596_v47  ;;  %v9913_v19 = vld [vmem:[%s11235_s9 + $0x1838] sm:$0xf0]  ;;  %v9788_v47 = vor.u32 %v10761_v30, %v9785_v20  ;;  %v10725_v56 = vld [vmem:[%s11235_s9 + $0x160c] sm:$0xf] }
 0x350   : > { %6479 = vmatpush.bf16.msra.mxu1 %v9724_v55  ;;  %v10693_v55 = vld [vmem:[%s11235_s9 + $0x150c] sm:$0xf]  ;;  %v9916_v50 = vor.u32 %v10793_v54, %v9913_v19  ;;  %v9769_v7 = vld [vmem:[%s11235_s9 + $0x1718] sm:$0xf0] }
 0x351   : > { %6492 = vmatpush.bf16.msra.mxu2 %v9852_v32  ;;  %v9513_v32 = vld [vmem:[%s11235_s9 + $0x1518] sm:$0xf0]  ;;  %v10757_v45 = vld [vmem:[%s11235_s9 + $0x170c] sm:$0xf] }
 0x352   : > { %6505 = vmatpush.bf16.msra.mxu3 %v9980_v46  ;;  %v9641_v46 = vld [vmem:[%s11235_s9 + $0x1618] sm:$0xf0]  ;;  %v10789_v60 = vld [vmem:[%s11235_s9 + $0x180c] sm:$0xf] }
 0x353   : > { %6467 = vmatpush.bf16.msra.mxu0 %v9580_v29  ;;  %v6241_v37 = vpop.f32.mrf.mxu2  ;;  %v9897_v9 = vld [vmem:[%s11235_s9 + $0x1818] sm:$0xf0]  ;;  %v9516_v29 = vor.u32 %v10693_v55, %v9513_v32  ;;  %v9644_v4 = vor.u32 %v10725_v56, %v9641_v46 }
 0x354   : > { %6480 = vmatpush.bf16.msra.mxu1 %v9708_v59  ;;  %v6254_v36 = vpop.f32.mrf.mxu3  ;;  %v9772_v59 = vor.u32 %v10757_v45, %v9769_v7  ;;  %v314_v7 = vld [vmem:[#allocation2 + $0x8] sm:$0xff] }
 0x355   : > { %6493 = vmatpush.bf16.msra.mxu2 %v9836_v38  ;;  %v9900_v38 = vor.u32 %v10789_v60, %v9897_v9 }
 0x356   : > { %6506 = vmatpush.bf16.msra.mxu3 %v9964_v33 }
 0x357   : > { %6468 = vmatpush.bf16.msra.mxu0 %v9564_v49 }
 0x358   : > { %6481 = vmatpush.bf16.msra.mxu1 %v9692_v6 }
 0x359   : > { %6494 = vmatpush.bf16.msra.mxu2 %v9820_v8 }
 0x35a   : > { %6507 = vmatpush.bf16.msra.mxu3 %v9948_v11 }
 0x35b   : > { %6469 = vmatpush.bf16.msra.mxu0 %v9548_v15 }
 0x35c   : > { %6482 = vmatpush.bf16.msra.mxu1 %v9676_v26 }
 0x35d   : > { %6495 = vmatpush.bf16.msra.mxu2 %v9804_v52 }
 0x35e   : > { %6508 = vmatpush.bf16.msra.mxu3 %v9932_v48 }
 0x35f   : > { %6470 = vmatpush.bf16.msra.mxu0 %v9532_v57 }
 0x360   : > { %6483 = vmatpush.bf16.msra.mxu1 %v9660_v28 }
 0x361   : > { %6496 = vmatpush.bf16.msra.mxu2 %v9788_v47 }
 0x362   : > { %6509 = vmatpush.bf16.msra.mxu3 %v9916_v50 }
 0x363   : > { %6471 = vmatpush.bf16.msra.mxu0 %v9516_v29  ;;  %v6265_v22 = vpop.f32.mrf.mxu0 }
 0x364   : > { %6484 = vmatpush.bf16.msra.mxu1 %v9644_v4  ;;  %v6266_v42 = vadd.f32 %v6265_v22, %v6253_v35  ;;  %v6278_v61 = vpop.f32.mrf.mxu1 }
 0x365   : > { %6497 = vmatpush.bf16.msra.mxu2 %v9772_v59 }
 0x366   : > { %6510 = vmatpush.bf16.msra.mxu3 %v9900_v38  ;;  %6472 = vmatmul.bf16.vlgmr.msra.gmra.mxu0 %v11733_v14  ;;  %v6279_v23 = vadd.f32 %v6278_v61, %v6266_v42 }
 0x367   : > { %6485 = vmatmul.bf16.vlgmr.msra.gmra.mxu1 %v11731_v13 }
 0x368   : > { %6498 = vmatmul.bf16.vlgmr.msra.gmra.mxu2 %v11737_v17 }
 0x369   : > { %6511 = vmatmul.bf16.vlgmr.msra.gmra.mxu3 %v11806_v63 }
 0x36b   : > { %v6291_v0 = vpop.f32.mrf.mxu2  ;;  %v6267_v51 = vpop.f32.mrf.mxu0 }
 0x36c   : > { %v6292_v33 = vadd.f32 %v6291_v0, %v6279_v23  ;;  %v6304_v5 = vpop.f32.mrf.mxu3  ;;  %v6280_v2 = vpop.f32.mrf.mxu1 }
 0x36e   : > { %v6305_v3 = vadd.f32 %v6304_v5, %v6292_v33 }
 0x373   : > { %v6293_v62 = vpop.f32.mrf.mxu2 }
 0x374   : > { %v6306_v43 = vpop.f32.mrf.mxu3 }
 0x383   : > { %v6317_v49 = vpop.f32.mrf.mxu0 }
 0x384   : > { %v6318_v14 = vadd.f32 %v6317_v49, %v6305_v3  ;;  %v6330_v6 = vpop.f32.mrf.mxu1 }
 0x386   : > { %v6331_v13 = vadd.f32 %v6330_v6, %v6318_v14 }
 0x38b   : > { %v6343_v8 = vpop.f32.mrf.mxu2  ;;  %v6319_v63 = vpop.f32.mrf.mxu0 }
 0x38c   : > { %v6344_v17 = vadd.f32 %v6343_v8, %v6331_v13  ;;  %v6356_v10 = vpop.f32.mrf.mxu3  ;;  %v6332_v25 = vpop.f32.mrf.mxu1 }
 0x38e   : > { %v6357_v44 = vadd.f32 %v6356_v10, %v6344_v17 }
 0x393   : > { %v6345_v12 = vpop.f32.mrf.mxu2 }
 0x394   : > { %v6358_v11 = vpop.f32.mrf.mxu3 }
 0x3a3   : > { %v6369_v18 = vpop.f32.mrf.mxu0 }
 0x3a4   : > { %v6382_v39 = vpop.f32.mrf.mxu1  ;;  %v6370_v26 = vadd.f32 %v6369_v18, %v6357_v44 }
 0x3a6   : > { %v6383_v53 = vadd.f32 %v6382_v39, %v6370_v26 }
 0x3ab   : > { %v6395_v16 = vpop.f32.mrf.mxu2  ;;  %v6371_v41 = vpop.f32.mrf.mxu0 }
 0x3ac   : > { %v6408_v27 = vpop.f32.mrf.mxu3  ;;  %v6384_v1 = vpop.f32.mrf.mxu1  ;;  %v6396_v48 = vadd.f32 %v6395_v16, %v6383_v53 }
 0x3ae   : > { %v6409_v20 = vadd.f32 %v6408_v27, %v6396_v48 }
 0x3b3   : > { %v6397_v21 = vpop.f32.mrf.mxu2 }
 0x3b4   : > { %v6410_v15 = vpop.f32.mrf.mxu3 }
 0x3c3   : > { %v6421_v35 = vpop.f32.mrf.mxu0 }
 0x3c4   : > { %v6434_v58 = vpop.f32.mrf.mxu1  ;;  %v6422_v54 = vadd.f32 %v6421_v35, %v6409_v20 }
 0x3c6   : > { %v6435_v19 = vadd.f32 %v6434_v58, %v6422_v54 }
 0x3cb   : > { %v6447_v52 = vpop.f32.mrf.mxu2  ;;  %v6423_v31 = vpop.f32.mrf.mxu0 }
 0x3cc   : > { %v6460_v24 = vpop.f32.mrf.mxu3  ;;  %v6436_v40 = vpop.f32.mrf.mxu1  ;;  %v6448_v57 = vadd.f32 %v6447_v52, %v6435_v19 }
 0x3ce   : > { %v6461_v28 = vadd.f32 %v6460_v24, %v6448_v57 }
 0x3d3   : > { %v6449_v34 = vpop.f32.mrf.mxu2 }
 0x3d4   : > { %v6462_v30 = vpop.f32.mrf.mxu3 }
 0x3e3   : > { %v6473_v47 = vpop.f32.mrf.mxu0 }
 0x3e4   : > { %v6486_v55 = vpop.f32.mrf.mxu1  ;;  %v6474_v32 = vadd.f32 %v6473_v47, %v6461_v28 }
 0x3e6   : > { %v6487_v56 = vadd.f32 %v6486_v55, %v6474_v32 }
 0x3eb   : > { %v6499_v37 = vpop.f32.mrf.mxu2  ;;  %v6475_v45 = vpop.f32.mrf.mxu0 }
 0x3ec   : > { %v6500_v50 = vadd.f32 %v6499_v37, %v6487_v56  ;;  %v6512_v46 = vpop.f32.mrf.mxu3  ;;  %v6488_v36 = vpop.f32.mrf.mxu1 }
 0x3ee   : > { %v6513_v60 = vadd.f32 %v6512_v46, %v6500_v50 }
 0x3f0   : > { %v6519_v9 = vadd.f32 %v6513_v60, %v314_v7  ;;  %6527 = sbr.rel (%p10013_p1) target bundleno = 1183 (0x49f), region = 64 }
 0x3f2   : > { %6523 = vst [vmem:[#allocation2 + $0x8] sm:$0xff] %v6519_v9 }
 0x3f3   : > { %v6501_v29 = vpop.f32.mrf.mxu2 }
 0x3f4   : > { %v6514_v4 = vpop.f32.mrf.mxu3 }
 0x3f5   : > { %v6597_v59 = vld [vmem:[#allocation8 + $0x178] sm:$0xff]  ;;  %v6596_v22 = vld [vmem:[#allocation8 + $0x170] sm:$0xff]  ;;  %v6595_v0 = vld [vmem:[#allocation8 + $0x168] sm:$0xff] }
 0x3f6   : > { %v6565_v38 = vld [vmem:[#allocation8 + $0x78] sm:$0xff]  ;;  %6658 = vmatpush.msra.mxu2 %v6597_v59  ;;  %v6564_v61 = vld [vmem:[#allocation8 + $0x70] sm:$0xff]  ;;  %v6563_v5 = vld [vmem:[#allocation8 + $0x68] sm:$0xff] }
 0x3f7   : > { %6618 = vmatpush.msra.mxu0 %v6565_v38  ;;  %v6613_v42 = vld [vmem:[#allocation8 + $0x1f8] sm:$0xff]  ;;  %v6612_v33 = vld [vmem:[#allocation8 + $0x1f0] sm:$0xff]  ;;  %v6611_v2 = vld [vmem:[#allocation8 + $0x1e8] sm:$0xff] }
 0x3f8   : > { %v6581_v23 = vld [vmem:[#allocation8 + $0xf8] sm:$0xff]  ;;  %6678 = vmatpush.msra.mxu3 %v6613_v42  ;;  %6659 = vmatpush.msra.mxu2 %v6596_v22  ;;  %v6580_v51 = vld [vmem:[#allocation8 + $0xf0] sm:$0xff]  ;;  %v6594_v3 = vld [vmem:[#allocation8 + $0x160] sm:$0xff] }
 0x3f9   : > { %6638 = vmatpush.msra.mxu1 %v6581_v23  ;;  %6619 = vmatpush.msra.mxu0 %v6564_v61  ;;  %v6562_v62 = vld [vmem:[#allocation8 + $0x60] sm:$0xff]  ;;  %v6579_v43 = vld [vmem:[#allocation8 + $0xe8] sm:$0xff]  ;;  %v6593_v6 = vld [vmem:[#allocation8 + $0x158] sm:$0xff] }
 0x3fa   : > { %6679 = vmatpush.msra.mxu3 %v6612_v33  ;;  %6660 = vmatpush.msra.mxu2 %v6595_v0  ;;  %v6610_v49 = vld [vmem:[#allocation8 + $0x1e0] sm:$0xff]  ;;  %v6561_v13 = vld [vmem:[#allocation8 + $0x58] sm:$0xff]  ;;  %v6592_v10 = vld [vmem:[#allocation8 + $0x150] sm:$0xff] }
 0x3fb   : > { %6639 = vmatpush.msra.mxu1 %v6580_v51  ;;  %6620 = vmatpush.msra.mxu0 %v6563_v5  ;;  %v6578_v14 = vld [vmem:[#allocation8 + $0xe0] sm:$0xff]  ;;  %v6609_v8 = vld [vmem:[#allocation8 + $0x1d8] sm:$0xff]  ;;  %v6560_v63 = vld [vmem:[#allocation8 + $0x50] sm:$0xff] }
 0x3fc   : > { %6680 = vmatpush.msra.mxu3 %v6611_v2  ;;  %6661 = vmatpush.msra.mxu2 %v6594_v3  ;;  %v6577_v17 = vld [vmem:[#allocation8 + $0xd8] sm:$0xff]  ;;  %v6608_v25 = vld [vmem:[#allocation8 + $0x1d0] sm:$0xff]  ;;  %v6591_v12 = vld [vmem:[#allocation8 + $0x148] sm:$0xff] }
 0x3fd   : > { %6640 = vmatpush.msra.mxu1 %v6579_v43  ;;  %6621 = vmatpush.msra.mxu0 %v6562_v62  ;;  %v6576_v44 = vld [vmem:[#allocation8 + $0xd0] sm:$0xff]  ;;  %v6559_v11 = vld [vmem:[#allocation8 + $0x48] sm:$0xff]  ;;  %v6590_v16 = vld [vmem:[#allocation8 + $0x140] sm:$0xff] }
 0x3fe   : > { %6681 = vmatpush.msra.mxu3 %v6610_v49  ;;  %6662 = vmatpush.msra.mxu2 %v6593_v6  ;;  %v6607_v18 = vld [vmem:[#allocation8 + $0x1c8] sm:$0xff]  ;;  %v6558_v27 = vld [vmem:[#allocation8 + $0x40] sm:$0xff]  ;;  %v6589_v21 = vld [vmem:[#allocation8 + $0x138] sm:$0xff] }
 0x3ff   : > { %6641 = vmatpush.msra.mxu1 %v6578_v14  ;;  %6622 = vmatpush.msra.mxu0 %v6561_v13  ;;  %v6575_v39 = vld [vmem:[#allocation8 + $0xc8] sm:$0xff]  ;;  %v6606_v41 = vld [vmem:[#allocation8 + $0x1c0] sm:$0xff]  ;;  %v6557_v15 = vld [vmem:[#allocation8 + $0x38] sm:$0xff] }
 0x400   : > { %6682 = vmatpush.msra.mxu3 %v6609_v8  ;;  %6663 = vmatpush.msra.mxu2 %v6592_v10  ;;  %v6574_v1 = vld [vmem:[#allocation8 + $0xc0] sm:$0xff]  ;;  %v6605_v35 = vld [vmem:[#allocation8 + $0x1b8] sm:$0xff]  ;;  %v6588_v26 = vld [vmem:[#allocation8 + $0x130] sm:$0xff] }
 0x401   : > { %6642 = vmatpush.msra.mxu1 %v6577_v17  ;;  %6623 = vmatpush.msra.mxu0 %v6560_v63  ;;  %v6573_v58 = vld [vmem:[#allocation8 + $0xb8] sm:$0xff]  ;;  %v6556_v52 = vld [vmem:[#allocation8 + $0x30] sm:$0xff]  ;;  %v6587_v40 = vld [vmem:[#allocation8 + $0x128] sm:$0xff] }
 0x402   : > { %6683 = vmatpush.msra.mxu3 %v6608_v25  ;;  %6664 = vmatpush.msra.mxu2 %v6591_v12  ;;  %v6604_v24 = vld [vmem:[#allocation8 + $0x1b0] sm:$0xff]  ;;  %v6555_v53 = vld [vmem:[#allocation8 + $0x28] sm:$0xff]  ;;  %v6586_v48 = vld [vmem:[#allocation8 + $0x120] sm:$0xff] }
 0x403   : > { %6643 = vmatpush.msra.mxu1 %v6576_v44  ;;  %6624 = vmatpush.msra.mxu0 %v6559_v11  ;;  %v6572_v31 = vld [vmem:[#allocation8 + $0xb0] sm:$0xff]  ;;  %v6603_v34 = vld [vmem:[#allocation8 + $0x1a8] sm:$0xff]  ;;  %v6554_v20 = vld [vmem:[#allocation8 + $0x20] sm:$0xff] }
 0x404   : > { %6684 = vmatpush.msra.mxu3 %v6607_v18  ;;  %6665 = vmatpush.msra.mxu2 %v6590_v16  ;;  %v6571_v30 = vld [vmem:[#allocation8 + $0xa8] sm:$0xff]  ;;  %v6585_v54 = vld [vmem:[#allocation8 + $0x118] sm:$0xff]  ;;  %v6602_v57 = vld [vmem:[#allocation8 + $0x1a0] sm:$0xff] }
 0x405   : > { %6644 = vmatpush.msra.mxu1 %v6575_v39  ;;  %6625 = vmatpush.msra.mxu0 %v6558_v27  ;;  %v6532_v19 = vld [vmem:[#allocation6] sm:$0xf]  ;;  %v6570_v28 = vld [vmem:[#allocation8 + $0xa0] sm:$0xff]  ;;  %v6530_v47 = vld [vmem:[#allocation2 + $0x18] sm:$0xff] }
 0x406   : > { %6685 = vmatpush.msra.mxu3 %v6606_v41  ;;  %6666 = vmatpush.msra.mxu2 %v6589_v21  ;;  %v6536_v55 = vperm.slane %v6532_v19, 2  ;;  %v6534_v32 = vperm.slane %v6532_v19, 0  ;;  %v6537_v56 = vperm.slane %v6532_v19, 3  ;;  %v6553_v37 = vld [vmem:[#allocation8 + $0x18] sm:$0xff]  ;;  %v6528_v50 = vld [vmem:[#allocation2 + $0x10] sm:$0xff]  ;;  %v6531_v46 = vld [vmem:[#allocation2 + $0x8] sm:$0xff] }
 0x407   : > { %6645 = vmatpush.msra.mxu1 %v6574_v1  ;;  %6626 = vmatpush.msra.mxu0 %v6557_v15  ;;  %v6601_v45 = vld [vmem:[#allocation8 + $0x198] sm:$0xff]  ;;  %v6535_v36 = vperm.slane %v6532_v19, 1  ;;  %v6584_v60 = vld [vmem:[#allocation8 + $0x110] sm:$0xff]  ;;  %v6583_v61 = vld [vmem:[#allocation8 + $0x108] sm:$0xff] }
 0x408   : > { %6686 = vmatpush.msra.mxu3 %v6605_v35  ;;  %6667 = vmatpush.msra.mxu2 %v6588_v26  ;;  %v6569_v7 = vld [vmem:[#allocation8 + $0x98] sm:$0xff]  ;;  %v6552_v9 = vld [vmem:[#allocation8 + $0x10] sm:$0xff]  ;;  %v6544_v29 = vadd.f32 %v6536_v55, %v6530_v47  ;;  %v6542_v22 = vadd.f32 %v6534_v32, %v6528_v50  ;;  %v6545_v42 = vadd.f32 %v6537_v56, %v6531_v46  ;;  %v6551_v23 = vld [vmem:[#allocation8 + $0x8] sm:$0xff] }
 0x409   : > { %6646 = vmatpush.msra.mxu1 %v6573_v58  ;;  %6627 = vmatpush.msra.mxu0 %v6556_v52  ;;  %v6529_v4 = vld [vmem:[#allocation2] sm:$0xff]  ;;  %v6600_v59 = vld [vmem:[#allocation8 + $0x190] sm:$0xff]  ;;  %v6599_v0 = vld [vmem:[#allocation8 + $0x188] sm:$0xff] }
 0x40a   : > { %6687 = vmatpush.msra.mxu3 %v6604_v24  ;;  %6668 = vmatpush.msra.mxu2 %v6587_v40  ;;  %v6568_v38 = vld [vmem:[#allocation8 + $0x90] sm:$0xff]  ;;  %v6567_v33 = vld [vmem:[#allocation8 + $0x88] sm:$0xff]  ;;  %v6543_v5 = vadd.f32 %v6535_v36, %v6529_v4  ;;  %v6582_v51 = vld [vmem:[#allocation8 + $0x100] sm:$0xff]  ;;  %v6548_v2 = vmax.f32 %v6544_v29, 0.0  ;;  %v6546_v43 = vmax.f32 %v6542_v22, 0.0  ;;  %v6549_v49 = vmax.f32 %v6545_v42, 0.0 }
 0x40b   : > { %6647 = vmatpush.msra.mxu1 %v6572_v31  ;;  %6628 = vmatpush.msra.mxu0 %v6555_v53  ;;  %v6550_v3 = vld [vmem:[#allocation8] sm:$0xff] }
 0x40c   : > { %6688 = vmatpush.msra.mxu3 %v6603_v34  ;;  %6669 = vmatpush.msra.mxu2 %v6586_v48  ;;  %v6598_v62 = vld [vmem:[#allocation8 + $0x180] sm:$0xff]  ;;  %v6547_v6 = vmax.f32 %v6543_v5, 0.0 }
 0x40d   : > { %6648 = vmatpush.msra.mxu1 %v6571_v30  ;;  %6629 = vmatpush.msra.mxu0 %v6554_v20  ;;  %v6566_v14 = vld [vmem:[#allocation8 + $0x80] sm:$0xff] }
 0x40e   : > { %6689 = vmatpush.msra.mxu3 %v6602_v57  ;;  %6670 = vmatpush.msra.mxu2 %v6585_v54  ;;  %v10905_v13 = vld [vmem:[#allocation9] ss:$0 sm:$0xff] }
 0x40f   : > { %6649 = vmatpush.msra.mxu1 %v6570_v28  ;;  %6630 = vmatpush.msra.mxu0 %v6553_v37 }
 0x410   : > { %6690 = vmatpush.msra.mxu3 %v6601_v45  ;;  %6671 = vmatpush.msra.mxu2 %v6584_v60 }
 0x411   : > { %6650 = vmatpush.msra.mxu1 %v6569_v7  ;;  %6631 = vmatpush.msra.mxu0 %v6552_v9 }
 0x412   : > { %6691 = vmatpush.msra.mxu3 %v6600_v59  ;;  %6672 = vmatpush.msra.mxu2 %v6583_v61 }
 0x413   : > { %6651 = vmatpush.msra.mxu1 %v6568_v38  ;;  %6632 = vmatpush.msra.mxu0 %v6551_v23 }
 0x414   : > { %6692 = vmatpush.msra.mxu3 %v6599_v0  ;;  %6673 = vmatpush.msra.mxu2 %v6582_v51 }
 0x415   : > { %6652 = vmatpush.msra.mxu1 %v6567_v33  ;;  %6633 = vmatpush.msra.mxu0 %v6550_v3 }
 0x416   : > { %6674 = vmatmul.f32.vlgmr.msra.gmra.mxu2 %v6548_v2  ;;  %6693 = vmatpush.msra.mxu3 %v6598_v62 }
 0x417   : > { %6634 = vmatmul.f32.vlgmr.msra.gmra.mxu0 %v6546_v43  ;;  %6694 = vmatmul.f32.vlgmr.msra.gmra.mxu3 %v6549_v49 }
 0x418   : > { %6653 = vmatpush.msra.mxu1 %v6566_v14 }
 0x419   : > { %6654 = vmatmul.f32.vlgmr.msra.gmra.mxu1 %v6547_v6 }
 0x494   : > { %v6635_v8 = vpop.f32.mrf.mxu0 }
 0x495   : > { %v6636_v17 = vadd.f32 %v10905_v13, %v6635_v8 }
 0x496   : > { %v6655_v10 = vpop.f32.mrf.mxu1 }
 0x497   : > { %v6656_v63 = vadd.f32 %v6655_v10, %v6636_v17 }
 0x499   : > { %v6675_v25 = vpop.f32.mrf.mxu2 }
 0x49a   : > { %v6676_v44 = vadd.f32 %v6675_v25, %v6656_v63  ;;  %v6695_v12 = vpop.f32.mrf.mxu3 }
 0x49c   : > { %v6696_v11 = vadd.f32 %v6695_v12, %v6676_v44 }
 0x49e   : > { %6698 = vst [vmem:[#allocation11] sm:$0xff] %v6696_v11 }
 0x49f PF: > { %p10862_p4 = scmp.eq.s32.totalorder %s11160_s22, 1  ;;  %s11110_s12 = smov [#allocation11]  }
 0x4a0   : > { %s6705_s13 = sshll.u32 %s11110_s12, 4  ;;  %s6707_s21 = sshll.u32 %s13154_s5, 4  ;;  %s6706_s13 = int_to_ptr.vmem [resolvable:$true] %s6705_s13  ;;  %s6708_s21 = int_to_ptr.hbm [resolvable:$true] %s6707_s21 }
 0x4a1   : > { %10838 = dma.vmem_to_hbm [thread:$0]  (%p10862_p4), %s6706_s13, 128, %s6708_s21, [#allocation5]  }
 0x4a2   : > { %11083 = dma.done.wait (%p10862_p4), [#allocation5], 128  }
 0x4a3   : > { %11085 = vsyncadd (%p10862_p4), [#allocation5], 4294967168 }
 0x4a4 PF: > { %s13159_s16 = smov %s11201_s18  ;;  %p18_p5 = scmp.ge.s32.totalorder %s11201_s18, 4  }
 0x4a5   : > { %s13160_s18 = smov %s11092_s19  ;;  %s13161_s19 = smov %s11096_s20 }
 0x4a6   : > { %s13162_s20 = smov %s11211_s26  ;;  %s13163_s21 = smov %s13159_s16 }
 0x4a7   :  { %20 = sbr.rel (!%p18_p5) target bundleno = 6 (0x6), region = 100 }
 0x4ac   :  { %6721 = vsyncpa [#allocation4], 1 }
 0x4ad   :  { %6723 = vsyncpa [#allocation4 + $0x1], 1 }
 0x4ae   :  { %6724 = vsyncpa [#allocation7], 1 }
 0x4af   :  { %6725 = vsyncpa [#allocation10], 1 }
 0x4b0   :  { %6726 = vsyncpa [#allocation5], 1 }
 0x4b1   :  { %6728 = vsyncpa [#allocation5 + $0x1], 1 }

</bundles_post_ra>
